<compile_context>
chip_gen: v7x
topology: tpu7x:2x2x1
jax: 0.10.0
libtpu: 0.0.40
codegen_flags: <defaults>
</compile_context>

<pallas_src>
import functools

import jax
import jax.numpy as jnp
from jax.experimental import pallas as pl
from jax.experimental.pallas import tpu as pltpu


_VMEM_LIMIT = 48 * 1024 * 1024            # safe on v5e/v6e (128 MiB) and v7x (64 MiB)
_WEIGHT_RESIDENT_BYTES = 4 * 1024 * 1024  # keep whole bf16 weight in VMEM if under this
_FUSED_IN_MAX_ELEMS = 1 << 20             # per-block element budget for fused InstanceNorm


# ----------------------------------------------------------------------------
# Small helpers
# ----------------------------------------------------------------------------
def _round_up(x, m):
    return (x + m - 1) // m * m


def _pad_to(x, shape):
    pads = [(0, s - d) for d, s in zip(x.shape, shape)]
    if any(p[1] for p in pads):
        x = jnp.pad(x, pads)
    return x


def _largest_divisor_tile(dim, unit, cap):
    """Largest multiple of `unit` that divides `dim` and is <= cap (fallback: unit)."""
    best = unit
    t = unit
    top = min(dim, cap)
    while t <= top:
        if dim % t == 0:
            best = t
        t += unit
    return best


# ----------------------------------------------------------------------------
# GEMM kernels (bias [+tanh] fused in the epilogue, bf16 in / bf16 or f32 out)
# ----------------------------------------------------------------------------
def _gemm_bias_kernel(a_ref, b_ref, bias_ref, o_ref, *, activation):
    # Single reduction step: whole K in one MXU pass, no accumulator scratch.
    y = jnp.dot(a_ref[...], b_ref[...], preferred_element_type=jnp.float32)
    y = y + bias_ref[...]
    if activation == "tanh":
        y = jnp.tanh(y)
    o_ref[...] = y.astype(o_ref.dtype)


def _gemm_bias_acc_kernel(a_ref, b_ref, bias_ref, o_ref, acc_ref, *, activation):
    # Multi-k fallback (not hit in this network, all weights are VMEM-resident).
    @pl.when(pl.program_id(2) == 0)
    def _():
        acc_ref[...] = jnp.zeros_like(acc_ref)

    acc_ref[...] += jnp.dot(a_ref[...], b_ref[...],
                            preferred_element_type=jnp.float32)

    @pl.when(pl.program_id(2) == pl.num_programs(2) - 1)
    def _():
        y = acc_ref[...] + bias_ref[...]
        if activation == "tanh":
            y = jnp.tanh(y)
        o_ref[...] = y.astype(o_ref.dtype)


def matmul_bias(a, b, bias, activation=None, out_dtype=jnp.bfloat16):
    """(M,K) @ (K,N) + bias(N,)  — bf16 MXU, f32 accumulation, fused epilogue."""
    M, K = a.shape
    _, N = b.shape

    Kp = _round_up(K, 128)
    Np = _round_up(N, 128)

    # Fixed full-MXU M tile; pad M up to a multiple of it (never shrink to 16).
    tm = 256
    if M <= tm:
        tm = _round_up(M, 16)
    Mp = _round_up(M, tm)

    a_p = _pad_to(a.astype(jnp.bfloat16), (Mp, Kp))
    b_p = _pad_to(b.astype(jnp.bfloat16), (Kp, Np))
    bias_p = _pad_to(bias.reshape(1, N).astype(jnp.float32), (1, Np))

    if Kp * Np * 2 <= _WEIGHT_RESIDENT_BYTES:
        # Weight fully resident in VMEM: constant B block index, single k step.
        out = pl.pallas_call(
            functools.partial(_gemm_bias_kernel, activation=activation),
            out_shape=jax.ShapeDtypeStruct((Mp, Np), out_dtype),
            grid_spec=pltpu.PrefetchScalarGridSpec(
                num_scalar_prefetch=0,
                grid=(Mp // tm,),
                in_specs=[
                    pl.BlockSpec((tm, Kp), lambda i: (i, 0)),
                    pl.BlockSpec((Kp, Np), lambda i: (0, 0)),   # fetched once
                    pl.BlockSpec((1, Np), lambda i: (0, 0)),
                ],
                out_specs=pl.BlockSpec((tm, Np), lambda i: (i, 0)),
            ),
            compiler_params=pltpu.CompilerParams(
                dimension_semantics=("parallel",),
                vmem_limit_bytes=_VMEM_LIMIT),
        )(a_p, b_p, bias_p)
    else:
        tn = _largest_divisor_tile(Np, 128, 512)
        tk = _largest_divisor_tile(Kp, 128, 2048)
        out = pl.pallas_call(
            functools.partial(_gemm_bias_acc_kernel, activation=activation),
            out_shape=jax.ShapeDtypeStruct((Mp, Np), out_dtype),
            grid_spec=pltpu.PrefetchScalarGridSpec(
                num_scalar_prefetch=0,
                grid=(Mp // tm, Np // tn, Kp // tk),
                in_specs=[
                    pl.BlockSpec((tm, tk), lambda i, j, k: (i, k)),
                    pl.BlockSpec((tk, tn), lambda i, j, k: (k, j)),
                    pl.BlockSpec((1, tn), lambda i, j, k: (0, j)),
                ],
                out_specs=pl.BlockSpec((tm, tn), lambda i, j, k: (i, j)),
                scratch_shapes=[pltpu.VMEM((tm, tn), jnp.float32)],
            ),
            compiler_params=pltpu.CompilerParams(
                dimension_semantics=("parallel", "parallel", "arbitrary"),
                vmem_limit_bytes=_VMEM_LIMIT),
        )(a_p, b_p, bias_p)

    if (Mp, Np) != (M, N):
        out = out[:M, :N]
    return out


# ----------------------------------------------------------------------------
# InstanceNorm kernels (bf16 in/out, f32 internal math)
# ----------------------------------------------------------------------------
def _in_fused_kernel(x_ref, o_ref, *, relu, inv_hw):
    x = x_ref[...].astype(jnp.float32)                      # (1, HW, ct)
    mean = jnp.sum(x, axis=1, keepdims=True) * inv_hw
    d = x - mean
    var = jnp.sum(d * d, axis=1, keepdims=True) * inv_hw    # centered (two-pass) variance
    y = d * jax.lax.rsqrt(var + 1e-5)
    if relu:
        y = jnp.maximum(y, 0.0)
    o_ref[...] = y.astype(o_ref.dtype)


def _in_fused_add_kernel(x_ref, r_ref, o_ref, *, inv_hw):
    x = x_ref[...].astype(jnp.float32)
    mean = jnp.sum(x, axis=1, keepdims=True) * inv_hw
    d = x - mean
    var = jnp.sum(d * d, axis=1, keepdims=True) * inv_hw
    y = d * jax.lax.rsqrt(var + 1e-5) + r_ref[...].astype(jnp.float32)
    o_ref[...] = y.astype(o_ref.dtype)


def _in_moments_kernel(x_ref, st_ref, *, inv_hw):
    # Accumulate per-channel sum / sum-of-squares over HW tiles, finalize to
    # (mean, rstd) on the last step.  st_ref block: (1, 2, ct).
    @pl.when(pl.program_id(2) == 0)
    def _():
        st_ref[...] = jnp.zeros_like(st_ref)

    x = x_ref[...].astype(jnp.float32)                      # (1, thw, ct)
    s = jnp.sum(x, axis=1)                                  # (1, ct)
    ss = jnp.sum(x * x, axis=1)                             # (1, ct)
    st_ref[...] += jnp.concatenate([s[:, None, :], ss[:, None, :]], axis=1)

    @pl.when(pl.program_id(2) == pl.num_programs(2) - 1)
    def _():
        acc = st_ref[...]
        mean = acc[:, 0:1, :] * inv_hw
        var = jnp.maximum(acc[:, 1:2, :] * inv_hw - mean * mean, 0.0)
        rstd = jax.lax.rsqrt(var + 1e-5)
        st_ref[...] = jnp.concatenate([mean, rstd], axis=1)


def _in_apply_kernel(x_ref, st_ref, o_ref, *, relu):
    st = st_ref[...]
    y = (x_ref[...].astype(jnp.float32) - st[:, 0:1, :]) * st[:, 1:2, :]
    if relu:
        y = jnp.maximum(y, 0.0)
    o_ref[...] = y.astype(o_ref.dtype)


def _in_apply_add_kernel(x_ref, st_ref, r_ref, o_ref):
    st = st_ref[...]
    y = (x_ref[...].astype(jnp.float32) - st[:, 0:1, :]) * st[:, 1:2, :]
    o_ref[...] = (y + r_ref[...].astype(jnp.float32)).astype(o_ref.dtype)


def instance_norm_nhwc(x, *, relu, residual=None, out_dtype=jnp.bfloat16):
    """InstanceNorm2d(affine=False, eps=1e-5) [+ReLU] [+residual add] on NHWC."""
    N, H, W, C = x.shape
    HW = H * W
    ct = 128 if (C % 128 == 0) else C
    inv_hw = 1.0 / HW
    xr = x.reshape(N, HW, C)
    rr = residual.reshape(N, HW, C) if residual is not None else None

    if HW * ct <= _FUSED_IN_MAX_ELEMS:
        # Whole (HW, ct) slab fits comfortably in VMEM: single fused pass.
        spec = pl.BlockSpec((1, HW, ct), lambda n, c: (n, 0, c))
        cparams = pltpu.CompilerParams(
            dimension_semantics=("parallel", "parallel"),
            vmem_limit_bytes=_VMEM_LIMIT)
        if residual is None:
            out = pl.pallas_call(
                functools.partial(_in_fused_kernel, relu=relu, inv_hw=inv_hw),
                out_shape=jax.ShapeDtypeStruct((N, HW, C), out_dtype),
                grid=(N, C // ct),
                in_specs=[spec],
                out_specs=spec,
                compiler_params=cparams,
            )(xr)
        else:
            out = pl.pallas_call(
                functools.partial(_in_fused_add_kernel, inv_hw=inv_hw),
                out_shape=jax.ShapeDtypeStruct((N, HW, C), out_dtype),
                grid=(N, C // ct),
                in_specs=[spec, spec],
                out_specs=spec,
                compiler_params=cparams,
            )(xr, rr)
        return out.reshape(N, H, W, C)

    # Large HW (real image sizes): two tiled passes so a block never exceeds VMEM.
    thw = _largest_divisor_tile(HW, 8, max(8, _FUSED_IN_MAX_ELEMS // (4 * ct)))
    if HW % thw != 0:
        thw = HW                                   # rare odd-size fallback
    nhw = HW // thw

    x_spec = pl.BlockSpec((1, thw, ct), lambda n, c, h: (n, h, c))
    st_spec = pl.BlockSpec((1, 2, ct), lambda n, c, h: (n, 0, c))

    stats = pl.pallas_call(
        functools.partial(_in_moments_kernel, inv_hw=inv_hw),
        out_shape=jax.ShapeDtypeStruct((N, 2, C), jnp.float32),
        grid=(N, C // ct, nhw),
        in_specs=[x_spec],
        out_specs=st_spec,
        compiler_params=pltpu.CompilerParams(
            dimension_semantics=("parallel", "parallel", "arbitrary"),
            vmem_limit_bytes=_VMEM_LIMIT),
    )(xr)

    apply_params = pltpu.CompilerParams(
        dimension_semantics=("parallel", "parallel", "parallel"),
        vmem_limit_bytes=_VMEM_LIMIT)
    if residual is None:
        out = pl.pallas_call(
            functools.partial(_in_apply_kernel, relu=relu),
            out_shape=jax.ShapeDtypeStruct((N, HW, C), out_dtype),
            grid=(N, C // ct, nhw),
            in_specs=[x_spec, st_spec],
            out_specs=x_spec,
            compiler_params=apply_params,
        )(xr, stats)
    else:
        out = pl.pallas_call(
            _in_apply_add_kernel,
            out_shape=jax.ShapeDtypeStruct((N, HW, C), out_dtype),
            grid=(N, C // ct, nhw),
            in_specs=[x_spec, st_spec, x_spec],
            out_specs=x_spec,
            compiler_params=apply_params,
        )(xr, stats, rr)
    return out.reshape(N, H, W, C)


# ----------------------------------------------------------------------------
# Convolution glue (bf16 im2col / sub-pixel ConvTranspose), GEMM in Pallas
# ----------------------------------------------------------------------------
def reflect_pad(x, p):
    return jnp.pad(x, ((0, 0), (p, p), (p, p), (0, 0)), mode="reflect")


def _im2col_nhwc(x, kh, kw, stride):
    # TODO(synk): replace with a tap-accumulate Pallas GEMM (kh*kw reduction grid
    # axis with shifted index_maps) so this patch tensor never hits HBM.
    N, H, W, C = x.shape
    Ho = (H - kh) // stride + 1
    Wo = (W - kw) // stride + 1
    cols = []
    for i in range(kh):
        for j in range(kw):
            cols.append(
                x[:, i: i + stride * (Ho - 1) + 1: stride,
                     j: j + stride * (Wo - 1) + 1: stride, :])
    p = jnp.stack(cols, axis=3)                       # (N, Ho, Wo, kh*kw, C)
    return p.reshape(N * Ho * Wo, kh * kw * C), (N, Ho, Wo)


def conv2d(x, w, b, stride=1, pad=0, activation=None, out_dtype=jnp.bfloat16):
    """x: NHWC, w: (outC, inC, kh, kw) PyTorch layout, b: (outC,)."""
    x = x.astype(jnp.bfloat16)            # cast BEFORE im2col -> patch tensor is bf16
    if pad > 0:
        x = jnp.pad(x, ((0, 0), (pad, pad), (pad, pad), (0, 0)))
    outC, inC, kh, kw = w.shape
    A, (N, Ho, Wo) = _im2col_nhwc(x, kh, kw, stride)
    Wm = w.transpose(2, 3, 1, 0).reshape(kh * kw * inC, outC)   # matches im2col order
    out = matmul_bias(A, Wm, b, activation=activation, out_dtype=out_dtype)
    return out.reshape(N, Ho, Wo, outC)


def _subpixel_weight(w):
    """ConvTranspose2d(k=3, s=2, p=1, op=1) -> 4-phase 2x2 GEMM weight.

    w: (inC, outC, 3, 3).  Returns (4*inC, 4*outC); row = (du*2+dv)*inC + cin
    (matching the 2x2 im2col tap order), col = (r*2+c)*outC + oc.
    """
    inC, outC, kh, kw = w.shape
    wp = jnp.zeros((2, 2, inC, 2, 2, outC), jnp.float32)
    for du in range(2):
        for dv in range(2):
            for r in range(2):
                for c in range(2):
                    hi = 1 - 2 * du + r
                    wi = 1 - 2 * dv + c
                    if 0 <= hi < kh and 0 <= wi < kw:
                        wp = wp.at[du, dv, :, r, c, :].set(w[:, :, hi, wi])
    return wp.reshape(4 * inC, 4 * outC)


def conv_transpose2d(x, w, b):
    """PyTorch ConvTranspose2d(inC, outC, 3, stride=2, padding=1, output_padding=1)
    via the 4-phase sub-pixel decomposition (no zero-upsampled input)."""
    inC, outC, kh, kw = w.shape
    N, H, W, C = x.shape
    xp = jnp.pad(x.astype(jnp.bfloat16), ((0, 0), (0, 1), (0, 1), (0, 0)))
    A, _ = _im2col_nhwc(xp, 2, 2, 1)                         # (N*H*W, 4*inC) bf16
    Wm = _subpixel_weight(w)                                 # (4*inC, 4*outC)
    out = matmul_bias(A, Wm, jnp.tile(b, 4))                 # (N*H*W, 4*outC) bf16
    out = out.reshape(N, H, W, 2, 2, outC)
    # TODO(synk): fold this pixel-shuffle into the following InstanceNorm kernel.
    out = out.transpose(0, 1, 3, 2, 4, 5).reshape(N, 2 * H, 2 * W, outC)
    return out


# ----------------------------------------------------------------------------
# Generator_A2B forward
# ----------------------------------------------------------------------------
def init_params(key, n_channels):
    ks = jax.random.split(key, 16)
    s = 0.05
    w = lambda k, shape: jax.random.normal(k, shape, jnp.float32) * s
    return {
        # encoder
        "ec1_w": w(ks[0], (64, n_channels, 7, 7)),  "ec1_b": w(ks[1], (64,)),
        "ec2_w": w(ks[2], (128, 64, 3, 3)),          "ec2_b": w(ks[3], (128,)),
        "ec3_w": w(ks[4], (256, 128, 3, 3)),         "ec3_b": w(ks[5], (256,)),
        # shared Resblock (same weights applied 9 times, as in the PyTorch module)
        "r1_w": w(ks[6], (256, 256, 3, 3)),          "r1_b": w(ks[7], (256,)),
        "r2_w": w(ks[8], (256, 256, 3, 3)),          "r2_b": w(ks[9], (256,)),
        # decoder (ConvTranspose weights use PyTorch (inC, outC, kh, kw) layout)
        "d1_w": w(ks[10], (256, 128, 3, 3)),         "d1_b": w(ks[11], (128,)),
        "d2_w": w(ks[12], (128, 64, 3, 3)),          "d2_b": w(ks[13], (64,)),
        "d3_w": w(ks[14], (n_channels, 64, 7, 7)),   "d3_b": w(ks[15], (n_channels,)),
    }


def generator_a2b(x, p):
    # NCHW -> NHWC once at entry; bf16 activations for the whole network.
    h = x.transpose(0, 2, 3, 1).astype(jnp.bfloat16)

    # encoder
    h = reflect_pad(h, 3)
    h = conv2d(h, p["ec1_w"], p["ec1_b"], stride=1)
    h = instance_norm_nhwc(h, relu=True)
    h = conv2d(h, p["ec2_w"], p["ec2_b"], stride=2, pad=1)
    h = instance_norm_nhwc(h, relu=True)
    h = conv2d(h, p["ec3_w"], p["ec3_b"], stride=2, pad=1)
    h = instance_norm_nhwc(h, relu=True)

    # 9 x shared-weight Resblock (the PyTorch module reuses one Resblock instance).
    # TODO(synk): fused 9x-resblock pipeline with weights pinned in VMEM.
    def resblock(h_in):
        y = reflect_pad(h_in, 1)
        y = conv2d(y, p["r1_w"], p["r1_b"], stride=1)
        y = instance_norm_nhwc(y, relu=True)
        y = reflect_pad(y, 1)
        y = conv2d(y, p["r2_w"], p["r2_b"], stride=1)
        return instance_norm_nhwc(y, relu=False, residual=h_in)  # IN + add fused

    for _ in range(9):
        h = resblock(h)

    # decoder
    h = conv_transpose2d(h, p["d1_w"], p["d1_b"])
    h = instance_norm_nhwc(h, relu=True)
    h = conv_transpose2d(h, p["d2_w"], p["d2_b"])
    h = instance_norm_nhwc(h, relu=True)
    h = reflect_pad(h, 3)
    h = conv2d(h, p["d3_w"], p["d3_b"], stride=1, activation="tanh",
               out_dtype=jnp.float32)                             # tanh fused, f32 out

    # NHWC -> NCHW at exit
    return h.transpose(0, 3, 1, 2)


if __name__ == "__main__":
    n_channels = 3
    key = jax.random.PRNGKey(0)
    kx, kp = jax.random.split(key)
    x = jax.random.normal(kx, (2, n_channels, 16, 16), jnp.float32)
    params = init_params(kp, n_channels)

    fwd = jax.jit(generator_a2b)
    out = fwd(x, params)
    out = jax.block_until_ready(out)

    assert out.shape == (2, n_channels, 16, 16), out.shape
    assert out.dtype == jnp.float32
    assert bool(jnp.all(jnp.isfinite(out)))
    print("KERNEL_OK")
</pallas_src>

<mosaic_0001>
module attributes {stable_mosaic.version = 11 : i64} {
  func.func @_gemm_bias_kernel(%arg0: i32, %arg1: memref<256x256xbf16, #tpu.memory_space<vmem>>, %arg2: memref<256x128xbf16, #tpu.memory_space<vmem>>, %arg3: memref<1x128xf32, #tpu.memory_space<vmem>>, %arg4: memref<256x128xbf16, #tpu.memory_space<vmem>>) attributes {dimension_semantics = [#tpu.dimension_semantics<parallel>], iteration_bounds = array<i64: 2>, scalar_prefetch = 0 : i64, scratch_operands = 0 : i64, tpu.core_type = #tpu.core_type<tc>, window_params = [{transform_indices = @transform_0, window_bounds = array<i64: 256, 256>}, {pipeline_mode = #tpu.pipeline_mode<synchronous>, transform_indices = @transform_1, window_bounds = array<i64: 256, 128>}, {pipeline_mode = #tpu.pipeline_mode<synchronous>, transform_indices = @transform_2, window_bounds = array<i64: 1, 128>}, {transform_indices = @transform_3, window_bounds = array<i64: 256, 128>}]} {
    %c0 = arith.constant 0 : index
    %c0_0 = arith.constant 0 : index
    %0 = vector.load %arg1[%c0, %c0_0] : memref<256x256xbf16, #tpu.memory_space<vmem>>, vector<256x256xbf16>
    %c0_1 = arith.constant 0 : index
    %c0_2 = arith.constant 0 : index
    %1 = vector.load %arg2[%c0_1, %c0_2] : memref<256x128xbf16, #tpu.memory_space<vmem>>, vector<256x128xbf16>
    %cst = arith.constant dense<0.000000e+00> : vector<256x128xf32>
    %2 = tpu.matmul %0, %1, %cst {dimension_numbers = #tpu.dot_dimension_numbers<[1], [0], [0], [1], [0, 0, 1, 1], [], []>} : vector<256x256xbf16>, vector<256x128xbf16>, vector<256x128xf32> -> vector<256x128xf32>
    %c0_3 = arith.constant 0 : index
    %c0_4 = arith.constant 0 : index
    %3 = vector.load %arg3[%c0_3, %c0_4] : memref<1x128xf32, #tpu.memory_space<vmem>>, vector<1x128xf32>
    %4 = vector.broadcast %3 : vector<1x128xf32> to vector<256x128xf32>
    %5 = arith.addf %2, %4 : vector<256x128xf32>
    %6 = arith.truncf %5 : vector<256x128xf32> to vector<256x128xbf16>
    %c0_5 = arith.constant 0 : index
    %c0_6 = arith.constant 0 : index
    %7 = vector.load %arg4[%c0_5, %c0_6] : memref<256x128xbf16, #tpu.memory_space<vmem>>, vector<256x128xbf16>
    tpu.vector_store %arg4[%c0_5, %c0_6], %6 {strides = array<i32>} : memref<256x128xbf16, #tpu.memory_space<vmem>>, vector<256x128xbf16>,
    return
  }
  func.func @transform_0(%arg0: i32) -> (i32, i32) {
    %c0_i32 = arith.constant 0 : i32
    %c0_i32_0 = arith.constant 0 : i32
    return %arg0, %c0_i32 : i32, i32
  }
  func.func @transform_1(%arg0: i32) -> (i32, i32) {
    %c0_i32 = arith.constant 0 : i32
    %c0_i32_0 = arith.constant 0 : i32
    %c0_i32_1 = arith.constant 0 : i32
    return %c0_i32, %c0_i32_0 : i32, i32
  }
  func.func @transform_2(%arg0: i32) -> (i32, i32) {
    %c0_i32 = arith.constant 0 : i32
    %c0_i32_0 = arith.constant 0 : i32
    %c0_i32_1 = arith.constant 0 : i32
    return %c0_i32, %c0_i32_0 : i32, i32
  }
  func.func @transform_3(%arg0: i32) -> (i32, i32) {
    %c0_i32 = arith.constant 0 : i32
    %c0_i32_0 = arith.constant 0 : i32
    return %arg0, %c0_i32 : i32, i32
  }
}

module attributes {stable_mosaic.version = 11 : i64} {
  func.func @_in_fused_kernel(%arg0: i32, %arg1: i32, %arg2: memref<1x256x64xbf16, #tpu.memory_space<vmem>>, %arg3: memref<1x256x64xbf16, #tpu.memory_space<vmem>>) attributes {dimension_semantics = [#tpu.dimension_semantics<parallel>, #tpu.dimension_semantics<parallel>], iteration_bounds = array<i64: 2, 1>, scalar_prefetch = 0 : i64, scratch_operands = 0 : i64, tpu.core_type = #tpu.core_type<tc>, window_params = [{transform_indices = @transform_0, window_bounds = array<i64: 1, 256, 64>}, {transform_indices = @transform_1, window_bounds = array<i64: 1, 256, 64>}]} {
    %c0 = arith.constant 0 : index
    %c0_0 = arith.constant 0 : index
    %c0_1 = arith.constant 0 : index
    %0 = vector.load %arg2[%c0, %c0_0, %c0_1] : memref<1x256x64xbf16, #tpu.memory_space<vmem>>, vector<1x256x64xbf16>
    %1 = arith.extf %0 : vector<1x256x64xbf16> to vector<1x256x64xf32>
    %cst = arith.constant dense<0.000000e+00> : vector<1x64xf32>
    %2 = vector.multi_reduction <add>, %1, %cst [1] : vector<1x256x64xf32> to vector<1x64xf32>
    %3 = vector.shape_cast %2 : vector<1x64xf32> to vector<1x1x64xf32>
    %cst_2 = arith.constant 3.906250e-03 : f32
    %4 = vector.broadcast %cst_2 : f32 to vector<1x1x64xf32>
    %5 = arith.mulf %3, %4 : vector<1x1x64xf32>
    %6 = vector.broadcast %5 : vector<1x1x64xf32> to vector<1x256x64xf32>
    %7 = arith.subf %1, %6 : vector<1x256x64xf32>
    %8 = arith.mulf %7, %7 : vector<1x256x64xf32>
    %cst_3 = arith.constant dense<0.000000e+00> : vector<1x64xf32>
    %9 = vector.multi_reduction <add>, %8, %cst_3 [1] : vector<1x256x64xf32> to vector<1x64xf32>
    %10 = vector.shape_cast %9 : vector<1x64xf32> to vector<1x1x64xf32>
    %cst_4 = arith.constant 3.906250e-03 : f32
    %11 = vector.broadcast %cst_4 : f32 to vector<1x1x64xf32>
    %12 = arith.mulf %10, %11 : vector<1x1x64xf32>
    %cst_5 = arith.constant 9.99999974E-6 : f32
    %13 = vector.broadcast %cst_5 : f32 to vector<1x1x64xf32>
    %14 = arith.addf %12, %13 : vector<1x1x64xf32>
    %15 = math.rsqrt %14 : vector<1x1x64xf32>
    %16 = vector.broadcast %15 : vector<1x1x64xf32> to vector<1x256x64xf32>
    %17 = arith.mulf %7, %16 : vector<1x256x64xf32>
    %cst_6 = arith.constant 0.000000e+00 : f32
    %18 = vector.broadcast %cst_6 : f32 to vector<1x256x64xf32>
    %19 = arith.maximumf %17, %18 : vector<1x256x64xf32>
    %20 = arith.truncf %19 : vector<1x256x64xf32> to vector<1x256x64xbf16>
    %c0_7 = arith.constant 0 : index
    %c0_8 = arith.constant 0 : index
    %c0_9 = arith.constant 0 : index
    %21 = vector.load %arg3[%c0_7, %c0_8, %c0_9] : memref<1x256x64xbf16, #tpu.memory_space<vmem>>, vector<1x256x64xbf16>
    tpu.vector_store %arg3[%c0_7, %c0_8, %c0_9], %20 {strides = array<i32>} : memref<1x256x64xbf16, #tpu.memory_space<vmem>>, vector<1x256x64xbf16>,
    return
  }
  func.func @transform_0(%arg0: i32, %arg1: i32) -> (i32, i32, i32) {
    %c0_i32 = arith.constant 0 : i32
    %c0_i32_0 = arith.constant 0 : i32
    return %arg0, %c0_i32, %arg1 : i32, i32, i32
  }
  func.func @transform_1(%arg0: i32, %arg1: i32) -> (i32, i32, i32) {
    %c0_i32 = arith.constant 0 : i32
    %c0_i32_0 = arith.constant 0 : i32
    return %arg0, %c0_i32, %arg1 : i32, i32, i32
  }
}

module attributes {stable_mosaic.version = 11 : i64} {
  func.func @_gemm_bias_kernel(%arg0: i32, %arg1: memref<128x640xbf16, #tpu.memory_space<vmem>>, %arg2: memref<640x128xbf16, #tpu.memory_space<vmem>>, %arg3: memref<1x128xf32, #tpu.memory_space<vmem>>, %arg4: memref<128x128xbf16, #tpu.memory_space<vmem>>) attributes {dimension_semantics = [#tpu.dimension_semantics<parallel>], iteration_bounds = array<i64: 1>, scalar_prefetch = 0 : i64, scratch_operands = 0 : i64, tpu.core_type = #tpu.core_type<tc>, window_params = [{transform_indices = @transform_0, window_bounds = array<i64: 128, 640>}, {pipeline_mode = #tpu.pipeline_mode<synchronous>, transform_indices = @transform_1, window_bounds = array<i64: 640, 128>}, {pipeline_mode = #tpu.pipeline_mode<synchronous>, transform_indices = @transform_2, window_bounds = array<i64: 1, 128>}, {transform_indices = @transform_3, window_bounds = array<i64: 128, 128>}]} {
    %c0 = arith.constant 0 : index
    %c0_0 = arith.constant 0 : index
    %0 = vector.load %arg1[%c0, %c0_0] : memref<128x640xbf16, #tpu.memory_space<vmem>>, vector<128x640xbf16>
    %c0_1 = arith.constant 0 : index
    %c0_2 = arith.constant 0 : index
    %1 = vector.load %arg2[%c0_1, %c0_2] : memref<640x128xbf16, #tpu.memory_space<vmem>>, vector<640x128xbf16>
    %cst = arith.constant dense<0.000000e+00> : vector<128x128xf32>
    %2 = tpu.matmul %0, %1, %cst {dimension_numbers = #tpu.dot_dimension_numbers<[1], [0], [0], [1], [0, 0, 1, 1], [], []>} : vector<128x640xbf16>, vector<640x128xbf16>, vector<128x128xf32> -> vector<128x128xf32>
    %c0_3 = arith.constant 0 : index
    %c0_4 = arith.constant 0 : index
    %3 = vector.load %arg3[%c0_3, %c0_4] : memref<1x128xf32, #tpu.memory_space<vmem>>, vector<1x128xf32>
    %4 = vector.broadcast %3 : vector<1x128xf32> to vector<128x128xf32>
    %5 = arith.addf %2, %4 : vector<128x128xf32>
    %6 = arith.truncf %5 : vector<128x128xf32> to vector<128x128xbf16>
    %c0_5 = arith.constant 0 : index
    %c0_6 = arith.constant 0 : index
    %7 = vector.load %arg4[%c0_5, %c0_6] : memref<128x128xbf16, #tpu.memory_space<vmem>>, vector<128x128xbf16>
    tpu.vector_store %arg4[%c0_5, %c0_6], %6 {strides = array<i32>} : memref<128x128xbf16, #tpu.memory_space<vmem>>, vector<128x128xbf16>,
    return
  }
  func.func @transform_0(%arg0: i32) -> (i32, i32) {
    %c0_i32 = arith.constant 0 : i32
    %c0_i32_0 = arith.constant 0 : i32
    return %arg0, %c0_i32 : i32, i32
  }
  func.func @transform_1(%arg0: i32) -> (i32, i32) {
    %c0_i32 = arith.constant 0 : i32
    %c0_i32_0 = arith.constant 0 : i32
    %c0_i32_1 = arith.constant 0 : i32
    return %c0_i32, %c0_i32_0 : i32, i32
  }
  func.func @transform_2(%arg0: i32) -> (i32, i32) {
    %c0_i32 = arith.constant 0 : i32
    %c0_i32_0 = arith.constant 0 : i32
    %c0_i32_1 = arith.constant 0 : i32
    return %c0_i32, %c0_i32_0 : i32, i32
  }
  func.func @transform_3(%arg0: i32) -> (i32, i32) {
    %c0_i32 = arith.constant 0 : i32
    %c0_i32_0 = arith.constant 0 : i32
    return %arg0, %c0_i32 : i32, i32
  }
}

module attributes {stable_mosaic.version = 11 : i64} {
  func.func @_in_fused_kernel(%arg0: i32, %arg1: i32, %arg2: memref<1x64x128xbf16, #tpu.memory_space<vmem>>, %arg3: memref<1x64x128xbf16, #tpu.memory_space<vmem>>) attributes {dimension_semantics = [#tpu.dimension_semantics<parallel>, #tpu.dimension_semantics<parallel>], iteration_bounds = array<i64: 2, 1>, scalar_prefetch = 0 : i64, scratch_operands = 0 : i64, tpu.core_type = #tpu.core_type<tc>, window_params = [{transform_indices = @transform_0, window_bounds = array<i64: 1, 64, 128>}, {transform_indices = @transform_1, window_bounds = array<i64: 1, 64, 128>}]} {
    %c0 = arith.constant 0 : index
    %c0_0 = arith.constant 0 : index
    %c0_1 = arith.constant 0 : index
    %0 = vector.load %arg2[%c0, %c0_0, %c0_1] : memref<1x64x128xbf16, #tpu.memory_space<vmem>>, vector<1x64x128xbf16>
    %1 = arith.extf %0 : vector<1x64x128xbf16> to vector<1x64x128xf32>
    %cst = arith.constant dense<0.000000e+00> : vector<1x128xf32>
    %2 = vector.multi_reduction <add>, %1, %cst [1] : vector<1x64x128xf32> to vector<1x128xf32>
    %3 = vector.shape_cast %2 : vector<1x128xf32> to vector<1x1x128xf32>
    %cst_2 = arith.constant 1.562500e-02 : f32
    %4 = vector.broadcast %cst_2 : f32 to vector<1x1x128xf32>
    %5 = arith.mulf %3, %4 : vector<1x1x128xf32>
    %6 = vector.broadcast %5 : vector<1x1x128xf32> to vector<1x64x128xf32>
    %7 = arith.subf %1, %6 : vector<1x64x128xf32>
    %8 = arith.mulf %7, %7 : vector<1x64x128xf32>
    %cst_3 = arith.constant dense<0.000000e+00> : vector<1x128xf32>
    %9 = vector.multi_reduction <add>, %8, %cst_3 [1] : vector<1x64x128xf32> to vector<1x128xf32>
    %10 = vector.shape_cast %9 : vector<1x128xf32> to vector<1x1x128xf32>
    %cst_4 = arith.constant 1.562500e-02 : f32
    %11 = vector.broadcast %cst_4 : f32 to vector<1x1x128xf32>
    %12 = arith.mulf %10, %11 : vector<1x1x128xf32>
    %cst_5 = arith.constant 9.99999974E-6 : f32
    %13 = vector.broadcast %cst_5 : f32 to vector<1x1x128xf32>
    %14 = arith.addf %12, %13 : vector<1x1x128xf32>
    %15 = math.rsqrt %14 : vector<1x1x128xf32>
    %16 = vector.broadcast %15 : vector<1x1x128xf32> to vector<1x64x128xf32>
    %17 = arith.mulf %7, %16 : vector<1x64x128xf32>
    %cst_6 = arith.constant 0.000000e+00 : f32
    %18 = vector.broadcast %cst_6 : f32 to vector<1x64x128xf32>
    %19 = arith.maximumf %17, %18 : vector<1x64x128xf32>
    %20 = arith.truncf %19 : vector<1x64x128xf32> to vector<1x64x128xbf16>
    %c0_7 = arith.constant 0 : index
    %c0_8 = arith.constant 0 : index
    %c0_9 = arith.constant 0 : index
    %21 = vector.load %arg3[%c0_7, %c0_8, %c0_9] : memref<1x64x128xbf16, #tpu.memory_space<vmem>>, vector<1x64x128xbf16>
    tpu.vector_store %arg3[%c0_7, %c0_8, %c0_9], %20 {strides = array<i32>} : memref<1x64x128xbf16, #tpu.memory_space<vmem>>, vector<1x64x128xbf16>,
    return
  }
  func.func @transform_0(%arg0: i32, %arg1: i32) -> (i32, i32, i32) {
    %c0_i32 = arith.constant 0 : i32
    %c0_i32_0 = arith.constant 0 : i32
    return %arg0, %c0_i32, %arg1 : i32, i32, i32
  }
  func.func @transform_1(%arg0: i32, %arg1: i32) -> (i32, i32, i32) {
    %c0_i32 = arith.constant 0 : i32
    %c0_i32_0 = arith.constant 0 : i32
    return %arg0, %c0_i32, %arg1 : i32, i32, i32
  }
}

module attributes {stable_mosaic.version = 11 : i64} {
  func.func @_gemm_bias_kernel(%arg0: i32, %arg1: memref<32x1152xbf16, #tpu.memory_space<vmem>>, %arg2: memref<1152x256xbf16, #tpu.memory_space<vmem>>, %arg3: memref<1x256xf32, #tpu.memory_space<vmem>>, %arg4: memref<32x256xbf16, #tpu.memory_space<vmem>>) attributes {dimension_semantics = [#tpu.dimension_semantics<parallel>], iteration_bounds = array<i64: 1>, scalar_prefetch = 0 : i64, scratch_operands = 0 : i64, tpu.core_type = #tpu.core_type<tc>, window_params = [{transform_indices = @transform_0, window_bounds = array<i64: 32, 1152>}, {pipeline_mode = #tpu.pipeline_mode<synchronous>, transform_indices = @transform_1, window_bounds = array<i64: 1152, 256>}, {pipeline_mode = #tpu.pipeline_mode<synchronous>, transform_indices = @transform_2, window_bounds = array<i64: 1, 256>}, {transform_indices = @transform_3, window_bounds = array<i64: 32, 256>}]} {
    %c0 = arith.constant 0 : index
    %c0_0 = arith.constant 0 : index
    %0 = vector.load %arg1[%c0, %c0_0] : memref<32x1152xbf16, #tpu.memory_space<vmem>>, vector<32x1152xbf16>
    %c0_1 = arith.constant 0 : index
    %c0_2 = arith.constant 0 : index
    %1 = vector.load %arg2[%c0_1, %c0_2] : memref<1152x256xbf16, #tpu.memory_space<vmem>>, vector<1152x256xbf16>
    %cst = arith.constant dense<0.000000e+00> : vector<32x256xf32>
    %2 = tpu.matmul %0, %1, %cst {dimension_numbers = #tpu.dot_dimension_numbers<[1], [0], [0], [1], [0, 0, 1, 1], [], []>} : vector<32x1152xbf16>, vector<1152x256xbf16>, vector<32x256xf32> -> vector<32x256xf32>
    %c0_3 = arith.constant 0 : index
    %c0_4 = arith.constant 0 : index
    %3 = vector.load %arg3[%c0_3, %c0_4] : memref<1x256xf32, #tpu.memory_space<vmem>>, vector<1x256xf32>
    %4 = vector.broadcast %3 : vector<1x256xf32> to vector<32x256xf32>
    %5 = arith.addf %2, %4 : vector<32x256xf32>
    %6 = arith.truncf %5 : vector<32x256xf32> to vector<32x256xbf16>
    %c0_5 = arith.constant 0 : index
    %c0_6 = arith.constant 0 : index
    %7 = vector.load %arg4[%c0_5, %c0_6] : memref<32x256xbf16, #tpu.memory_space<vmem>>, vector<32x256xbf16>
    tpu.vector_store %arg4[%c0_5, %c0_6], %6 {strides = array<i32>} : memref<32x256xbf16, #tpu.memory_space<vmem>>, vector<32x256xbf16>,
    return
  }
  func.func @transform_0(%arg0: i32) -> (i32, i32) {
    %c0_i32 = arith.constant 0 : i32
    %c0_i32_0 = arith.constant 0 : i32
    return %arg0, %c0_i32 : i32, i32
  }
  func.func @transform_1(%arg0: i32) -> (i32, i32) {
    %c0_i32 = arith.constant 0 : i32
    %c0_i32_0 = arith.constant 0 : i32
    %c0_i32_1 = arith.constant 0 : i32
    return %c0_i32, %c0_i32_0 : i32, i32
  }
  func.func @transform_2(%arg0: i32) -> (i32, i32) {
    %c0_i32 = arith.constant 0 : i32
    %c0_i32_0 = arith.constant 0 : i32
    %c0_i32_1 = arith.constant 0 : i32
    return %c0_i32, %c0_i32_0 : i32, i32
  }
  func.func @transform_3(%arg0: i32) -> (i32, i32) {
    %c0_i32 = arith.constant 0 : i32
    %c0_i32_0 = arith.constant 0 : i32
    return %arg0, %c0_i32 : i32, i32
  }
}

module attributes {stable_mosaic.version = 11 : i64} {
  func.func @_in_fused_kernel(%arg0: i32, %arg1: i32, %arg2: memref<1x16x128xbf16, #tpu.memory_space<vmem>>, %arg3: memref<1x16x128xbf16, #tpu.memory_space<vmem>>) attributes {dimension_semantics = [#tpu.dimension_semantics<parallel>, #tpu.dimension_semantics<parallel>], iteration_bounds = array<i64: 2, 2>, scalar_prefetch = 0 : i64, scratch_operands = 0 : i64, tpu.core_type = #tpu.core_type<tc>, window_params = [{transform_indices = @transform_0, window_bounds = array<i64: 1, 16, 128>}, {transform_indices = @transform_1, window_bounds = array<i64: 1, 16, 128>}]} {
    %c0 = arith.constant 0 : index
    %c0_0 = arith.constant 0 : index
    %c0_1 = arith.constant 0 : index
    %0 = vector.load %arg2[%c0, %c0_0, %c0_1] : memref<1x16x128xbf16, #tpu.memory_space<vmem>>, vector<1x16x128xbf16>
    %1 = arith.extf %0 : vector<1x16x128xbf16> to vector<1x16x128xf32>
    %cst = arith.constant dense<0.000000e+00> : vector<1x128xf32>
    %2 = vector.multi_reduction <add>, %1, %cst [1] : vector<1x16x128xf32> to vector<1x128xf32>
    %3 = vector.shape_cast %2 : vector<1x128xf32> to vector<1x1x128xf32>
    %cst_2 = arith.constant 6.250000e-02 : f32
    %4 = vector.broadcast %cst_2 : f32 to vector<1x1x128xf32>
    %5 = arith.mulf %3, %4 : vector<1x1x128xf32>
    %6 = vector.broadcast %5 : vector<1x1x128xf32> to vector<1x16x128xf32>
    %7 = arith.subf %1, %6 : vector<1x16x128xf32>
    %8 = arith.mulf %7, %7 : vector<1x16x128xf32>
    %cst_3 = arith.constant dense<0.000000e+00> : vector<1x128xf32>
    %9 = vector.multi_reduction <add>, %8, %cst_3 [1] : vector<1x16x128xf32> to vector<1x128xf32>
    %10 = vector.shape_cast %9 : vector<1x128xf32> to vector<1x1x128xf32>
    %cst_4 = arith.constant 6.250000e-02 : f32
    %11 = vector.broadcast %cst_4 : f32 to vector<1x1x128xf32>
    %12 = arith.mulf %10, %11 : vector<1x1x128xf32>
    %cst_5 = arith.constant 9.99999974E-6 : f32
    %13 = vector.broadcast %cst_5 : f32 to vector<1x1x128xf32>
    %14 = arith.addf %12, %13 : vector<1x1x128xf32>
    %15 = math.rsqrt %14 : vector<1x1x128xf32>
    %16 = vector.broadcast %15 : vector<1x1x128xf32> to vector<1x16x128xf32>
    %17 = arith.mulf %7, %16 : vector<1x16x128xf32>
    %cst_6 = arith.constant 0.000000e+00 : f32
    %18 = vector.broadcast %cst_6 : f32 to vector<1x16x128xf32>
    %19 = arith.maximumf %17, %18 : vector<1x16x128xf32>
    %20 = arith.truncf %19 : vector<1x16x128xf32> to vector<1x16x128xbf16>
    %c0_7 = arith.constant 0 : index
    %c0_8 = arith.constant 0 : index
    %c0_9 = arith.constant 0 : index
    %21 = vector.load %arg3[%c0_7, %c0_8, %c0_9] : memref<1x16x128xbf16, #tpu.memory_space<vmem>>, vector<1x16x128xbf16>
    tpu.vector_store %arg3[%c0_7, %c0_8, %c0_9], %20 {strides = array<i32>} : memref<1x16x128xbf16, #tpu.memory_space<vmem>>, vector<1x16x128xbf16>,
    return
  }
  func.func @transform_0(%arg0: i32, %arg1: i32) -> (i32, i32, i32) {
    %c0_i32 = arith.constant 0 : i32
    %c0_i32_0 = arith.constant 0 : i32
    return %arg0, %c0_i32, %arg1 : i32, i32, i32
  }
  func.func @transform_1(%arg0: i32, %arg1: i32) -> (i32, i32, i32) {
    %c0_i32 = arith.constant 0 : i32
    %c0_i32_0 = arith.constant 0 : i32
    return %arg0, %c0_i32, %arg1 : i32, i32, i32
  }
}

module attributes {stable_mosaic.version = 11 : i64} {
  func.func @_gemm_bias_kernel(%arg0: i32, %arg1: memref<32x2304xbf16, #tpu.memory_space<vmem>>, %arg2: memref<2304x256xbf16, #tpu.memory_space<vmem>>, %arg3: memref<1x256xf32, #tpu.memory_space<vmem>>, %arg4: memref<32x256xbf16, #tpu.memory_space<vmem>>) attributes {dimension_semantics = [#tpu.dimension_semantics<parallel>], iteration_bounds = array<i64: 1>, scalar_prefetch = 0 : i64, scratch_operands = 0 : i64, tpu.core_type = #tpu.core_type<tc>, window_params = [{transform_indices = @transform_0, window_bounds = array<i64: 32, 2304>}, {pipeline_mode = #tpu.pipeline_mode<synchronous>, transform_indices = @transform_1, window_bounds = array<i64: 2304, 256>}, {pipeline_mode = #tpu.pipeline_mode<synchronous>, transform_indices = @transform_2, window_bounds = array<i64: 1, 256>}, {transform_indices = @transform_3, window_bounds = array<i64: 32, 256>}]} {
    %c0 = arith.constant 0 : index
    %c0_0 = arith.constant 0 : index
    %0 = vector.load %arg1[%c0, %c0_0] : memref<32x2304xbf16, #tpu.memory_space<vmem>>, vector<32x2304xbf16>
    %c0_1 = arith.constant 0 : index
    %c0_2 = arith.constant 0 : index
    %1 = vector.load %arg2[%c0_1, %c0_2] : memref<2304x256xbf16, #tpu.memory_space<vmem>>, vector<2304x256xbf16>
    %cst = arith.constant dense<0.000000e+00> : vector<32x256xf32>
    %2 = tpu.matmul %0, %1, %cst {dimension_numbers = #tpu.dot_dimension_numbers<[1], [0], [0], [1], [0, 0, 1, 1], [], []>} : vector<32x2304xbf16>, vector<2304x256xbf16>, vector<32x256xf32> -> vector<32x256xf32>
    %c0_3 = arith.constant 0 : index
    %c0_4 = arith.constant 0 : index
    %3 = vector.load %arg3[%c0_3, %c0_4] : memref<1x256xf32, #tpu.memory_space<vmem>>, vector<1x256xf32>
    %4 = vector.broadcast %3 : vector<1x256xf32> to vector<32x256xf32>
    %5 = arith.addf %2, %4 : vector<32x256xf32>
    %6 = arith.truncf %5 : vector<32x256xf32> to vector<32x256xbf16>
    %c0_5 = arith.constant 0 : index
    %c0_6 = arith.constant 0 : index
    %7 = vector.load %arg4[%c0_5, %c0_6] : memref<32x256xbf16, #tpu.memory_space<vmem>>, vector<32x256xbf16>
    tpu.vector_store %arg4[%c0_5, %c0_6], %6 {strides = array<i32>} : memref<32x256xbf16, #tpu.memory_space<vmem>>, vector<32x256xbf16>,
    return
  }
  func.func @transform_0(%arg0: i32) -> (i32, i32) {
    %c0_i32 = arith.constant 0 : i32
    %c0_i32_0 = arith.constant 0 : i32
    return %arg0, %c0_i32 : i32, i32
  }
  func.func @transform_1(%arg0: i32) -> (i32, i32) {
    %c0_i32 = arith.constant 0 : i32
    %c0_i32_0 = arith.constant 0 : i32
    %c0_i32_1 = arith.constant 0 : i32
    return %c0_i32, %c0_i32_0 : i32, i32
  }
  func.func @transform_2(%arg0: i32) -> (i32, i32) {
    %c0_i32 = arith.constant 0 : i32
    %c0_i32_0 = arith.constant 0 : i32
    %c0_i32_1 = arith.constant 0 : i32
    return %c0_i32, %c0_i32_0 : i32, i32
  }
  func.func @transform_3(%arg0: i32) -> (i32, i32) {
    %c0_i32 = arith.constant 0 : i32
    %c0_i32_0 = arith.constant 0 : i32
    return %arg0, %c0_i32 : i32, i32
  }
}

module attributes {stable_mosaic.version = 11 : i64} {
  func.func @_in_fused_add_kernel(%arg0: i32, %arg1: i32, %arg2: memref<1x16x128xbf16, #tpu.memory_space<vmem>>, %arg3: memref<1x16x128xbf16, #tpu.memory_space<vmem>>, %arg4: memref<1x16x128xbf16, #tpu.memory_space<vmem>>) attributes {dimension_semantics = [#tpu.dimension_semantics<parallel>, #tpu.dimension_semantics<parallel>], iteration_bounds = array<i64: 2, 2>, scalar_prefetch = 0 : i64, scratch_operands = 0 : i64, tpu.core_type = #tpu.core_type<tc>, window_params = [{transform_indices = @transform_0, window_bounds = array<i64: 1, 16, 128>}, {transform_indices = @transform_1, window_bounds = array<i64: 1, 16, 128>}, {transform_indices = @transform_2, window_bounds = array<i64: 1, 16, 128>}]} {
    %c0 = arith.constant 0 : index
    %c0_0 = arith.constant 0 : index
    %c0_1 = arith.constant 0 : index
    %0 = vector.load %arg2[%c0, %c0_0, %c0_1] : memref<1x16x128xbf16, #tpu.memory_space<vmem>>, vector<1x16x128xbf16>
    %1 = arith.extf %0 : vector<1x16x128xbf16> to vector<1x16x128xf32>
    %cst = arith.constant dense<0.000000e+00> : vector<1x128xf32>
    %2 = vector.multi_reduction <add>, %1, %cst [1] : vector<1x16x128xf32> to vector<1x128xf32>
    %3 = vector.shape_cast %2 : vector<1x128xf32> to vector<1x1x128xf32>
    %cst_2 = arith.constant 6.250000e-02 : f32
    %4 = vector.broadcast %cst_2 : f32 to vector<1x1x128xf32>
    %5 = arith.mulf %3, %4 : vector<1x1x128xf32>
    %6 = vector.broadcast %5 : vector<1x1x128xf32> to vector<1x16x128xf32>
    %7 = arith.subf %1, %6 : vector<1x16x128xf32>
    %8 = arith.mulf %7, %7 : vector<1x16x128xf32>
    %cst_3 = arith.constant dense<0.000000e+00> : vector<1x128xf32>
    %9 = vector.multi_reduction <add>, %8, %cst_3 [1] : vector<1x16x128xf32> to vector<1x128xf32>
    %10 = vector.shape_cast %9 : vector<1x128xf32> to vector<1x1x128xf32>
    %cst_4 = arith.constant 6.250000e-02 : f32
    %11 = vector.broadcast %cst_4 : f32 to vector<1x1x128xf32>
    %12 = arith.mulf %10, %11 : vector<1x1x128xf32>
    %cst_5 = arith.constant 9.99999974E-6 : f32
    %13 = vector.broadcast %cst_5 : f32 to vector<1x1x128xf32>
    %14 = arith.addf %12, %13 : vector<1x1x128xf32>
    %15 = math.rsqrt %14 : vector<1x1x128xf32>
    %16 = vector.broadcast %15 : vector<1x1x128xf32> to vector<1x16x128xf32>
    %17 = arith.mulf %7, %16 : vector<1x16x128xf32>
    %c0_6 = arith.constant 0 : index
    %c0_7 = arith.constant 0 : index
    %c0_8 = arith.constant 0 : index
    %18 = vector.load %arg3[%c0_6, %c0_7, %c0_8] : memref<1x16x128xbf16, #tpu.memory_space<vmem>>, vector<1x16x128xbf16>
    %19 = arith.extf %18 : vector<1x16x128xbf16> to vector<1x16x128xf32>
    %20 = arith.addf %17, %19 : vector<1x16x128xf32>
    %21 = arith.truncf %20 : vector<1x16x128xf32> to vector<1x16x128xbf16>
    %c0_9 = arith.constant 0 : index
    %c0_10 = arith.constant 0 : index
    %c0_11 = arith.constant 0 : index
    %22 = vector.load %arg4[%c0_9, %c0_10, %c0_11] : memref<1x16x128xbf16, #tpu.memory_space<vmem>>, vector<1x16x128xbf16>
    tpu.vector_store %arg4[%c0_9, %c0_10, %c0_11], %21 {strides = array<i32>} : memref<1x16x128xbf16, #tpu.memory_space<vmem>>, vector<1x16x128xbf16>,
    return
  }
  func.func @transform_0(%arg0: i32, %arg1: i32) -> (i32, i32, i32) {
    %c0_i32 = arith.constant 0 : i32
    %c0_i32_0 = arith.constant 0 : i32
    return %arg0, %c0_i32, %arg1 : i32, i32, i32
  }
  func.func @transform_1(%arg0: i32, %arg1: i32) -> (i32, i32, i32) {
    %c0_i32 = arith.constant 0 : i32
    %c0_i32_0 = arith.constant 0 : i32
    return %arg0, %c0_i32, %arg1 : i32, i32, i32
  }
  func.func @transform_2(%arg0: i32, %arg1: i32) -> (i32, i32, i32) {
    %c0_i32 = arith.constant 0 : i32
    %c0_i32_0 = arith.constant 0 : i32
    return %arg0, %c0_i32, %arg1 : i32, i32, i32
  }
}

module attributes {stable_mosaic.version = 11 : i64} {
  func.func @_gemm_bias_kernel(%arg0: i32, %arg1: memref<32x1024xbf16, #tpu.memory_space<vmem>>, %arg2: memref<1024x512xbf16, #tpu.memory_space<vmem>>, %arg3: memref<1x512xf32, #tpu.memory_space<vmem>>, %arg4: memref<32x512xbf16, #tpu.memory_space<vmem>>) attributes {dimension_semantics = [#tpu.dimension_semantics<parallel>], iteration_bounds = array<i64: 1>, scalar_prefetch = 0 : i64, scratch_operands = 0 : i64, tpu.core_type = #tpu.core_type<tc>, window_params = [{transform_indices = @transform_0, window_bounds = array<i64: 32, 1024>}, {pipeline_mode = #tpu.pipeline_mode<synchronous>, transform_indices = @transform_1, window_bounds = array<i64: 1024, 512>}, {pipeline_mode = #tpu.pipeline_mode<synchronous>, transform_indices = @transform_2, window_bounds = array<i64: 1, 512>}, {transform_indices = @transform_3, window_bounds = array<i64: 32, 512>}]} {
    %c0 = arith.constant 0 : index
    %c0_0 = arith.constant 0 : index
    %0 = vector.load %arg1[%c0, %c0_0] : memref<32x1024xbf16, #tpu.memory_space<vmem>>, vector<32x1024xbf16>
    %c0_1 = arith.constant 0 : index
    %c0_2 = arith.constant 0 : index
    %1 = vector.load %arg2[%c0_1, %c0_2] : memref<1024x512xbf16, #tpu.memory_space<vmem>>, vector<1024x512xbf16>
    %cst = arith.constant dense<0.000000e+00> : vector<32x512xf32>
    %2 = tpu.matmul %0, %1, %cst {dimension_numbers = #tpu.dot_dimension_numbers<[1], [0], [0], [1], [0, 0, 1, 1], [], []>} : vector<32x1024xbf16>, vector<1024x512xbf16>, vector<32x512xf32> -> vector<32x512xf32>
    %c0_3 = arith.constant 0 : index
    %c0_4 = arith.constant 0 : index
    %3 = vector.load %arg3[%c0_3, %c0_4] : memref<1x512xf32, #tpu.memory_space<vmem>>, vector<1x512xf32>
    %4 = vector.broadcast %3 : vector<1x512xf32> to vector<32x512xf32>
    %5 = arith.addf %2, %4 : vector<32x512xf32>
    %6 = arith.truncf %5 : vector<32x512xf32> to vector<32x512xbf16>
    %c0_5 = arith.constant 0 : index
    %c0_6 = arith.constant 0 : index
    %7 = vector.load %arg4[%c0_5, %c0_6] : memref<32x512xbf16, #tpu.memory_space<vmem>>, vector<32x512xbf16>
    tpu.vector_store %arg4[%c0_5, %c0_6], %6 {strides = array<i32>} : memref<32x512xbf16, #tpu.memory_space<vmem>>, vector<32x512xbf16>,
    return
  }
  func.func @transform_0(%arg0: i32) -> (i32, i32) {
    %c0_i32 = arith.constant 0 : i32
    %c0_i32_0 = arith.constant 0 : i32
    return %arg0, %c0_i32 : i32, i32
  }
  func.func @transform_1(%arg0: i32) -> (i32, i32) {
    %c0_i32 = arith.constant 0 : i32
    %c0_i32_0 = arith.constant 0 : i32
    %c0_i32_1 = arith.constant 0 : i32
    return %c0_i32, %c0_i32_0 : i32, i32
  }
  func.func @transform_2(%arg0: i32) -> (i32, i32) {
    %c0_i32 = arith.constant 0 : i32
    %c0_i32_0 = arith.constant 0 : i32
    %c0_i32_1 = arith.constant 0 : i32
    return %c0_i32, %c0_i32_0 : i32, i32
  }
  func.func @transform_3(%arg0: i32) -> (i32, i32) {
    %c0_i32 = arith.constant 0 : i32
    %c0_i32_0 = arith.constant 0 : i32
    return %arg0, %c0_i32 : i32, i32
  }
}

module attributes {stable_mosaic.version = 11 : i64} {
  func.func @_gemm_bias_kernel(%arg0: i32, %arg1: memref<128x512xbf16, #tpu.memory_space<vmem>>, %arg2: memref<512x256xbf16, #tpu.memory_space<vmem>>, %arg3: memref<1x256xf32, #tpu.memory_space<vmem>>, %arg4: memref<128x256xbf16, #tpu.memory_space<vmem>>) attributes {dimension_semantics = [#tpu.dimension_semantics<parallel>], iteration_bounds = array<i64: 1>, scalar_prefetch = 0 : i64, scratch_operands = 0 : i64, tpu.core_type = #tpu.core_type<tc>, window_params = [{transform_indices = @transform_0, window_bounds = array<i64: 128, 512>}, {pipeline_mode = #tpu.pipeline_mode<synchronous>, transform_indices = @transform_1, window_bounds = array<i64: 512, 256>}, {pipeline_mode = #tpu.pipeline_mode<synchronous>, transform_indices = @transform_2, window_bounds = array<i64: 1, 256>}, {transform_indices = @transform_3, window_bounds = array<i64: 128, 256>}]} {
    %c0 = arith.constant 0 : index
    %c0_0 = arith.constant 0 : index
    %0 = vector.load %arg1[%c0, %c0_0] : memref<128x512xbf16, #tpu.memory_space<vmem>>, vector<128x512xbf16>
    %c0_1 = arith.constant 0 : index
    %c0_2 = arith.constant 0 : index
    %1 = vector.load %arg2[%c0_1, %c0_2] : memref<512x256xbf16, #tpu.memory_space<vmem>>, vector<512x256xbf16>
    %cst = arith.constant dense<0.000000e+00> : vector<128x256xf32>
    %2 = tpu.matmul %0, %1, %cst {dimension_numbers = #tpu.dot_dimension_numbers<[1], [0], [0], [1], [0, 0, 1, 1], [], []>} : vector<128x512xbf16>, vector<512x256xbf16>, vector<128x256xf32> -> vector<128x256xf32>
    %c0_3 = arith.constant 0 : index
    %c0_4 = arith.constant 0 : index
    %3 = vector.load %arg3[%c0_3, %c0_4] : memref<1x256xf32, #tpu.memory_space<vmem>>, vector<1x256xf32>
    %4 = vector.broadcast %3 : vector<1x256xf32> to vector<128x256xf32>
    %5 = arith.addf %2, %4 : vector<128x256xf32>
    %6 = arith.truncf %5 : vector<128x256xf32> to vector<128x256xbf16>
    %c0_5 = arith.constant 0 : index
    %c0_6 = arith.constant 0 : index
    %7 = vector.load %arg4[%c0_5, %c0_6] : memref<128x256xbf16, #tpu.memory_space<vmem>>, vector<128x256xbf16>
    tpu.vector_store %arg4[%c0_5, %c0_6], %6 {strides = array<i32>} : memref<128x256xbf16, #tpu.memory_space<vmem>>, vector<128x256xbf16>,
    return
  }
  func.func @transform_0(%arg0: i32) -> (i32, i32) {
    %c0_i32 = arith.constant 0 : i32
    %c0_i32_0 = arith.constant 0 : i32
    return %arg0, %c0_i32 : i32, i32
  }
  func.func @transform_1(%arg0: i32) -> (i32, i32) {
    %c0_i32 = arith.constant 0 : i32
    %c0_i32_0 = arith.constant 0 : i32
    %c0_i32_1 = arith.constant 0 : i32
    return %c0_i32, %c0_i32_0 : i32, i32
  }
  func.func @transform_2(%arg0: i32) -> (i32, i32) {
    %c0_i32 = arith.constant 0 : i32
    %c0_i32_0 = arith.constant 0 : i32
    %c0_i32_1 = arith.constant 0 : i32
    return %c0_i32, %c0_i32_0 : i32, i32
  }
  func.func @transform_3(%arg0: i32) -> (i32, i32) {
    %c0_i32 = arith.constant 0 : i32
    %c0_i32_0 = arith.constant 0 : i32
    return %arg0, %c0_i32 : i32, i32
  }
}

module attributes {stable_mosaic.version = 11 : i64} {
  func.func @_gemm_bias_kernel(%arg0: i32, %arg1: memref<256x3200xbf16, #tpu.memory_space<vmem>>, %arg2: memref<3200x128xbf16, #tpu.memory_space<vmem>>, %arg3: memref<1x128xf32, #tpu.memory_space<vmem>>, %arg4: memref<256x128xf32, #tpu.memory_space<vmem>>) attributes {dimension_semantics = [#tpu.dimension_semantics<parallel>], iteration_bounds = array<i64: 2>, scalar_prefetch = 0 : i64, scratch_operands = 0 : i64, tpu.core_type = #tpu.core_type<tc>, window_params = [{transform_indices = @transform_0, window_bounds = array<i64: 256, 3200>}, {pipeline_mode = #tpu.pipeline_mode<synchronous>, transform_indices = @transform_1, window_bounds = array<i64: 3200, 128>}, {pipeline_mode = #tpu.pipeline_mode<synchronous>, transform_indices = @transform_2, window_bounds = array<i64: 1, 128>}, {transform_indices = @transform_3, window_bounds = array<i64: 256, 128>}]} {
    %c0 = arith.constant 0 : index
    %c0_0 = arith.constant 0 : index
    %0 = vector.load %arg1[%c0, %c0_0] : memref<256x3200xbf16, #tpu.memory_space<vmem>>, vector<256x3200xbf16>
    %c0_1 = arith.constant 0 : index
    %c0_2 = arith.constant 0 : index
    %1 = vector.load %arg2[%c0_1, %c0_2] : memref<3200x128xbf16, #tpu.memory_space<vmem>>, vector<3200x128xbf16>
    %cst = arith.constant dense<0.000000e+00> : vector<256x128xf32>
    %2 = tpu.matmul %0, %1, %cst {dimension_numbers = #tpu.dot_dimension_numbers<[1], [0], [0], [1], [0, 0, 1, 1], [], []>} : vector<256x3200xbf16>, vector<3200x128xbf16>, vector<256x128xf32> -> vector<256x128xf32>
    %c0_3 = arith.constant 0 : index
    %c0_4 = arith.constant 0 : index
    %3 = vector.load %arg3[%c0_3, %c0_4] : memref<1x128xf32, #tpu.memory_space<vmem>>, vector<1x128xf32>
    %4 = vector.broadcast %3 : vector<1x128xf32> to vector<256x128xf32>
    %5 = arith.addf %2, %4 : vector<256x128xf32>
    %6 = math.tanh %5 : vector<256x128xf32>
    %c0_5 = arith.constant 0 : index
    %c0_6 = arith.constant 0 : index
    %7 = vector.load %arg4[%c0_5, %c0_6] : memref<256x128xf32, #tpu.memory_space<vmem>>, vector<256x128xf32>
    tpu.vector_store %arg4[%c0_5, %c0_6], %6 {strides = array<i32>} : memref<256x128xf32, #tpu.memory_space<vmem>>, vector<256x128xf32>,
    return
  }
  func.func @transform_0(%arg0: i32) -> (i32, i32) {
    %c0_i32 = arith.constant 0 : i32
    %c0_i32_0 = arith.constant 0 : i32
    return %arg0, %c0_i32 : i32, i32
  }
  func.func @transform_1(%arg0: i32) -> (i32, i32) {
    %c0_i32 = arith.constant 0 : i32
    %c0_i32_0 = arith.constant 0 : i32
    %c0_i32_1 = arith.constant 0 : i32
    return %c0_i32, %c0_i32_0 : i32, i32
  }
  func.func @transform_2(%arg0: i32) -> (i32, i32) {
    %c0_i32 = arith.constant 0 : i32
    %c0_i32_0 = arith.constant 0 : i32
    %c0_i32_1 = arith.constant 0 : i32
    return %c0_i32, %c0_i32_0 : i32, i32
  }
  func.func @transform_3(%arg0: i32) -> (i32, i32) {
    %c0_i32 = arith.constant 0 : i32
    %c0_i32_0 = arith.constant 0 : i32
    return %arg0, %c0_i32 : i32, i32
  }
}

</mosaic_0001>

<bundles_post_ra>
// kernel: generator_a2b.47
= control target key start
LH: loop header
LB: loop body
LE: loop exit
PB: predicated region body
PF: predicated region fallthrough
CT: control target
= control target key end

     0   :  { %s1331_s12 = smov 0   ;;  %s1489_s0 = inlined_call_operand.vmem [shape: bf16[512,256], index: 0, kind: input, shape index: {}]   ;;  %s1490_s1 = inlined_call_operand.vmem [shape: bf16[256,128], index: 1, kind: input, shape index: {}]   ;;  %s1491_s2 = inlined_call_operand.vmem [shape: f32[1,128], index: 2, kind: input, shape index: {}]   ;;  %s1492_s3 = inlined_call_operand.vmem [shape: bf16[512,128], index: 3, kind: output, shape index: {}]  }
   0x1 LB: > { %s882_s13 = sadd.s32 4294967295, %s1309_s12   ;;  %p886_p0 = scmp.ge.s32.totalorder %s1309_s12, 1  ;;  %s1309_s12 = sphi %s1331_s12, %s13_s12  }
   0x2   : > { %p139_p1 = scmp.lt.s32.totalorder %s1309_s12, 3 }
   0x4   : > { %p140_p2 = pnand %p886_p0, %p139_p1 }
   0x5   : > { %v1239_v0 = vld [vmem:[%s1490_s1 + $0x40] sm:$0xff] (!%p140_p2)   ;;  %s887_s16 = sshll.u32 (!%p140_p2), %s882_s13, 5  ;;  %v1241_v2 = vld [vmem:[%s1490_s1 + $0x48] sm:$0xff] (!%p140_p2)   ;;  %v1243_v4 = vld [vmem:[%s1490_s1 + $0x50] sm:$0xff] (!%p140_p2)  }
   0x6   : > { %143 = sbr.rel (%p140_p2) target bundleno = 316 (0x13c), region = 32  ;;  %v1240_v1 = vld [vmem:[%s1490_s1] sm:$0xff] (!%p140_p2)   ;;  %1103 = vmatprep.subr.bf16.mxu0 (!%p140_p2), %v1239_v0  ;;  %1215 = vmatprep.subr.bf16.mxu1 (!%p140_p2), %v1239_v0  ;;  %v1242_v3 = vld [vmem:[%s1490_s1 + $0x8] sm:$0xff] (!%p140_p2)   ;;  %p165_p3 = scmp.lt.s32.totalorder (!%p140_p2), %s887_s16, 63  ;;  %v1244_v5 = vld [vmem:[%s1490_s1 + $0x10] sm:$0xff] (!%p140_p2)  }
   0x7   : > { %1104 = vmatpush3.bf16.msra.mxu0 (!%p140_p2), %v1240_v1  ;;  %1223 = vmatpush3.bf16.msra.mxu1 (!%p140_p2), %v1240_v1  ;;  %v1245_v6 = vld [vmem:[%s1490_s1 + $0x58] sm:$0xff] (!%p140_p2)   ;;  %v1247_v8 = vld [vmem:[%s1490_s1 + $0x60] sm:$0xff] (!%p140_p2)   ;;  %v1249_v10 = vld [vmem:[%s1490_s1 + $0x68] sm:$0xff] (!%p140_p2)  }
   0x8   : > { %1105 = vmatprep.subr.bf16.mxu0 (!%p140_p2), %v1241_v2  ;;  %1216 = vmatprep.subr.bf16.mxu1 (!%p140_p2), %v1241_v2  ;;  %v1246_v7 = vld [vmem:[%s1490_s1 + $0x18] sm:$0xff] (!%p140_p2)   ;;  %v1248_v9 = vld [vmem:[%s1490_s1 + $0x20] sm:$0xff] (!%p140_p2)   ;;  %v1250_v13 = vld [vmem:[%s1490_s1 + $0x28] sm:$0xff] (!%p140_p2)  }
   0x9   : > { %v1251_v14 = vld [vmem:[%s1490_s1 + $0x70] sm:$0xff] (!%p140_p2)   ;;  %v1253_v16 = vld [vmem:[%s1490_s1 + $0x78] sm:$0xff] (!%p140_p2)   ;;  %v1430_v56 = vld [vmem:[%s1491_s2] ss:$0 sm:$0xff] (!%p140_p2) }
   0xa   : > { %v1252_v15 = vld [vmem:[%s1490_s1 + $0x30] sm:$0xff] (!%p140_p2)   ;;  %v1254_v17 = vld [vmem:[%s1490_s1 + $0x38] sm:$0xff] (!%p140_p2)  }
   0xb   : > { %1106 = vmatpush3.bf16.msra.mxu0 (!%p140_p2), %v1242_v3  ;;  %1224 = vmatpush3.bf16.msra.mxu1 (!%p140_p2), %v1242_v3 }
   0xc   : > { %1107 = vmatprep.subr.bf16.mxu0 (!%p140_p2), %v1243_v4  ;;  %1217 = vmatprep.subr.bf16.mxu1 (!%p140_p2), %v1243_v4 }
   0xd   : > { %s1494_s16 = smov (!%p165_p3, %s887_s16), 63 }
   0xe   : > { %s975_s4 = sshll.u32 %s1494_s16, 3  ;;  %s891_s28 = sshll.u32 %s1494_s16, 2 }
   0xf   : > { %1108 = vmatpush3.bf16.msra.mxu0 %v1244_v5  ;;  %1225 = vmatpush3.bf16.msra.mxu1 %v1244_v5  ;;  %s1372_s9 = scalar_lea.vmem %s1489_s0, %s975_s4  ;;  %s1440_s4 = scalar_lea.vmem %s1492_s3, %s891_s28 }
  0x10   : > { %1109 = vmatprep.subr.bf16.mxu0 %v1245_v6  ;;  %1218 = vmatprep.subr.bf16.mxu1 %v1245_v6  ;;  %v1257_v11 = vld [vmem:[%s1372_s9 + $0x4] ss:$8 sps:$4 sm:$0xff]   ;;  %v1255_v18 = vld [vmem:[%s1372_s9] ss:$8 sps:$4 sm:$0xff]   ;;  %v1261_v20 = vld [vmem:[%s1372_s9 + $0x14] ss:$8 sps:$4 sm:$0xff]  }
  0x11   : > { %v1260_v12 = vld [vmem:[%s1372_s9 + $0x84] ss:$8 sps:$4 sm:$0xff]   ;;  %537 = vmatprep.mubr.bf16.mxu0 %v1257_v11  ;;  %v1258_v19 = vld [vmem:[%s1372_s9 + $0x80] ss:$8 sps:$4 sm:$0xff]   ;;  %v1263_v21 = vld [vmem:[%s1372_s9 + $0x94] ss:$8 sps:$4 sm:$0xff]  }
  0x12   : > { %601 = vmatprep.mubr.bf16.mxu1 %v1260_v12  ;;  %v1265_v22 = vld [vmem:[%s1372_s9 + $0x10] ss:$8 sps:$4 sm:$0xff]   ;;  %v1267_v24 = vld [vmem:[%s1372_s9 + $0x24] ss:$8 sps:$4 sm:$0xff]   ;;  %v1271_v26 = vld [vmem:[%s1372_s9 + $0x20] ss:$8 sps:$4 sm:$0xff]  }
  0x13   : > { %1110 = vmatpush3.bf16.msra.mxu0 %v1246_v7  ;;  %1226 = vmatpush3.bf16.msra.mxu1 %v1246_v7  ;;  %v1266_v23 = vld [vmem:[%s1372_s9 + $0x90] ss:$8 sps:$4 sm:$0xff]   ;;  %v1269_v25 = vld [vmem:[%s1372_s9 + $0xa4] ss:$8 sps:$4 sm:$0xff]   ;;  %v1272_v27 = vld [vmem:[%s1372_s9 + $0xa0] ss:$8 sps:$4 sm:$0xff]  }
  0x14   : > { %1111 = vmatprep.subr.bf16.mxu0 %v1247_v8  ;;  %1219 = vmatprep.subr.bf16.mxu1 %v1247_v8  ;;  %v1273_v28 = vld [vmem:[%s1372_s9 + $0x34] ss:$8 sps:$4 sm:$0xff]   ;;  %v1277_v30 = vld [vmem:[%s1372_s9 + $0x30] ss:$8 sps:$4 sm:$0xff]   ;;  %v1279_v32 = vld [vmem:[%s1372_s9 + $0x44] ss:$8 sps:$4 sm:$0xff]  }
  0x15   : > { %v1275_v29 = vld [vmem:[%s1372_s9 + $0xb4] ss:$8 sps:$4 sm:$0xff]   ;;  %v1278_v31 = vld [vmem:[%s1372_s9 + $0xb0] ss:$8 sps:$4 sm:$0xff]   ;;  %v1281_v33 = vld [vmem:[%s1372_s9 + $0xc4] ss:$8 sps:$4 sm:$0xff]  }
  0x16   : > { %v1283_v34 = vld [vmem:[%s1372_s9 + $0x40] ss:$8 sps:$4 sm:$0xff]   ;;  %v1285_v36 = vld [vmem:[%s1372_s9 + $0x54] ss:$8 sps:$4 sm:$0xff]   ;;  %v1289_v38 = vld [vmem:[%s1372_s9 + $0x50] ss:$8 sps:$4 sm:$0xff]  }
  0x17   : > { %1112 = vmatpush3.bf16.msra.mxu0 %v1248_v9  ;;  %1227 = vmatpush3.bf16.msra.mxu1 %v1248_v9  ;;  %v1284_v35 = vld [vmem:[%s1372_s9 + $0xc0] ss:$8 sps:$4 sm:$0xff]   ;;  %v1287_v37 = vld [vmem:[%s1372_s9 + $0xd4] ss:$8 sps:$4 sm:$0xff]   ;;  %v1290_v39 = vld [vmem:[%s1372_s9 + $0xd0] ss:$8 sps:$4 sm:$0xff]  }
  0x18   : > { %1113 = vmatprep.subr.bf16.mxu0 %v1249_v10  ;;  %1220 = vmatprep.subr.bf16.mxu1 %v1249_v10  ;;  %v1291_v40 = vld [vmem:[%s1372_s9 + $0x64] ss:$8 sps:$4 sm:$0xff]   ;;  %v1295_v42 = vld [vmem:[%s1372_s9 + $0x60] ss:$8 sps:$4 sm:$0xff]   ;;  %v1297_v44 = vld [vmem:[%s1372_s9 + $0x74] ss:$8 sps:$4 sm:$0xff]  }
  0x19   : > { %v1293_v41 = vld [vmem:[%s1372_s9 + $0xe4] ss:$8 sps:$4 sm:$0xff]   ;;  %v1296_v43 = vld [vmem:[%s1372_s9 + $0xe0] ss:$8 sps:$4 sm:$0xff]   ;;  %v1299_v45 = vld [vmem:[%s1372_s9 + $0xf4] ss:$8 sps:$4 sm:$0xff]  }
  0x1a   : > { %v1301_v46 = vld [vmem:[%s1372_s9 + $0x70] ss:$8 sps:$4 sm:$0xff]  }
  0x1b   : > { %1114 = vmatpush3.bf16.msra.mxu0 %v1250_v13  ;;  %1228 = vmatpush3.bf16.msra.mxu1 %v1250_v13  ;;  %v1302_v47 = vld [vmem:[%s1372_s9 + $0xf0] ss:$8 sps:$4 sm:$0xff]  }
  0x1c   : > { %1115 = vmatprep.subr.bf16.mxu0 %v1251_v14  ;;  %1221 = vmatprep.subr.bf16.mxu1 %v1251_v14 }
  0x1f   : > { %1116 = vmatpush3.bf16.msra.mxu0 %v1252_v15  ;;  %1229 = vmatpush3.bf16.msra.mxu1 %v1252_v15 }
  0x20   : > { %1117 = vmatprep.subr.bf16.mxu0 %v1253_v16  ;;  %1222 = vmatprep.subr.bf16.mxu1 %v1253_v16 }
  0x23   : > { %1118 = vmatpush3.bf16.msra.mxu0 %v1254_v17  ;;  %1230 = vmatpush3.bf16.msra.mxu1 %v1254_v17 }
  0x26   : > { %538 = vmatmul.mubr.bf16.vlgmr.msra.gmra.mrb[0].mxu0 %v1255_v18  ;;  %602 = vmatmul.mubr.bf16.vlgmr.msra.gmra.mrb[0].mxu1 %v1258_v19 }
  0x27   : > { %545 = vmatprep.mubr.bf16.mxu0 %v1261_v20  ;;  %609 = vmatprep.mubr.bf16.mxu1 %v1263_v21 }
  0x2e   : > { %546 = vmatmul.mubr.bf16.gmra.mrb[4].mxu0 %v1265_v22  ;;  %610 = vmatmul.mubr.bf16.gmra.mrb[4].mxu1 %v1266_v23 }
  0x2f   : > { %553 = vmatprep.mubr.bf16.mxu0 %v1267_v24  ;;  %617 = vmatprep.mubr.bf16.mxu1 %v1269_v25 }
  0x36   : > { %554 = vmatmul.mubr.bf16.gmra.mrb[8].mxu0 %v1271_v26  ;;  %618 = vmatmul.mubr.bf16.gmra.mrb[8].mxu1 %v1272_v27 }
  0x37   : > { %561 = vmatprep.mubr.bf16.mxu0 %v1273_v28  ;;  %625 = vmatprep.mubr.bf16.mxu1 %v1275_v29 }
  0x3e   : > { %562 = vmatmul.mubr.bf16.gmra.mrb[12].mxu0 %v1277_v30  ;;  %626 = vmatmul.mubr.bf16.gmra.mrb[12].mxu1 %v1278_v31 }
  0x3f   : > { %569 = vmatprep.mubr.bf16.mxu0 %v1279_v32  ;;  %633 = vmatprep.mubr.bf16.mxu1 %v1281_v33 }
  0x46   : > { %570 = vmatmul.mubr.bf16.gmra.mrb[16].mxu0 %v1283_v34  ;;  %634 = vmatmul.mubr.bf16.gmra.mrb[16].mxu1 %v1284_v35 }
  0x47   : > { %577 = vmatprep.mubr.bf16.mxu0 %v1285_v36  ;;  %641 = vmatprep.mubr.bf16.mxu1 %v1287_v37 }
  0x4e   : > { %578 = vmatmul.mubr.bf16.gmra.mrb[20].mxu0 %v1289_v38  ;;  %642 = vmatmul.mubr.bf16.gmra.mrb[20].mxu1 %v1290_v39 }
  0x4f   : > { %585 = vmatprep.mubr.bf16.mxu0 %v1291_v40  ;;  %649 = vmatprep.mubr.bf16.mxu1 %v1293_v41 }
  0x56   : > { %586 = vmatmul.mubr.bf16.gmra.mrb[24].mxu0 %v1295_v42  ;;  %650 = vmatmul.mubr.bf16.gmra.mrb[24].mxu1 %v1296_v43 }
  0x57   : > { %593 = vmatprep.mubr.bf16.mxu0 %v1297_v44  ;;  %657 = vmatprep.mubr.bf16.mxu1 %v1299_v45 }
  0x5e   : > { %594 = vmatmul.mubr.bf16.gmra.mrb[28].mxu0 %v1301_v46  ;;  %658 = vmatmul.mubr.bf16.gmra.mrb[28].mxu1 %v1302_v47 }
  0xf9   : > { %v1119_v48 = vpop.f32.mrb[0].mxu0  ;;  %v1167_v49 = vpop.f32.mrb[0].mxu1 }
  0xfa   : > { %v1120_v50 = vpop.f32.mrb[1].mxu0  ;;  %v1168_v51 = vpop.f32.mrb[1].mxu1 }
  0xfb   : > { %v1121_v52 = vadd.f32 %v1120_v50, %v1119_v48  ;;  %v1169_v53 = vadd.f32 %v1168_v51, %v1167_v49  ;;  %v1122_v54 = vpop.f32.mrb[2].mxu0  ;;  %v1170_v55 = vpop.f32.mrb[2].mxu1 }
  0xfc   : > { %v1123_v57 = vpop.f32.mrb[3].mxu0  ;;  %v1171_v58 = vpop.f32.mrb[3].mxu1 }
  0xfd   : > { %v1124_v59 = vadd.f32 %v1123_v57, %v1122_v54  ;;  %v1172_v60 = vadd.f32 %v1171_v58, %v1170_v55  ;;  %v540_v61 = vadd.f32 %v1121_v52, %v1430_v56  ;;  %v604_v62 = vadd.f32 %v1169_v53, %v1430_v56 }
  0xff   : > { %v543_v63 = vadd.f32 %v1124_v59, %v1430_v56  ;;  %v607_v0 = vadd.f32 %v1172_v60, %v1430_v56 }
 0x101   : > { %v1011_v1 = vpack.c.bf16 %v543_v63, %v540_v61  ;;  %v1051_v2 = vpack.c.bf16 %v607_v0, %v604_v62  ;;  %v1125_v3 = vpop.f32.mrb[4].mxu0  ;;  %v1173_v4 = vpop.f32.mrb[4].mxu1 }
 0x102   : > { %v1126_v5 = vpop.f32.mrb[5].mxu0  ;;  %v1174_v6 = vpop.f32.mrb[5].mxu1 }
 0x103   : > { %1012 = vst [vmem:[%s1440_s4] sm:$0xff] %v1011_v1   ;;  %1095 = vst [vmem:[%s1440_s4 + $0x40] sm:$0xff] %v1051_v2   ;;  %v1127_v7 = vadd.f32 %v1126_v5, %v1125_v3  ;;  %v1175_v8 = vadd.f32 %v1174_v6, %v1173_v4  ;;  %v1128_v9 = vpop.f32.mrb[6].mxu0  ;;  %v1176_v10 = vpop.f32.mrb[6].mxu1 }
 0x104   : > { %v1129_v11 = vpop.f32.mrb[7].mxu0  ;;  %v1177_v12 = vpop.f32.mrb[7].mxu1 }
 0x105   : > { %v1130_v13 = vadd.f32 %v1129_v11, %v1128_v9  ;;  %v1178_v14 = vadd.f32 %v1177_v12, %v1176_v10  ;;  %v548_v15 = vadd.f32 %v1127_v7, %v1430_v56  ;;  %v612_v16 = vadd.f32 %v1175_v8, %v1430_v56 }
 0x107   : > { %v551_v17 = vadd.f32 %v1130_v13, %v1430_v56  ;;  %v615_v18 = vadd.f32 %v1178_v14, %v1430_v56 }
 0x109   : > { %v1016_v19 = vpack.c.bf16 %v551_v17, %v548_v15  ;;  %v1056_v20 = vpack.c.bf16 %v615_v18, %v612_v16  ;;  %v1131_v21 = vpop.f32.mrb[8].mxu0  ;;  %v1179_v22 = vpop.f32.mrb[8].mxu1 }
 0x10a   : > { %v1132_v23 = vpop.f32.mrb[9].mxu0  ;;  %v1180_v24 = vpop.f32.mrb[9].mxu1 }
 0x10b   : > { %1088 = vst [vmem:[%s1440_s4 + $0x8] sm:$0xff] %v1016_v19   ;;  %1096 = vst [vmem:[%s1440_s4 + $0x48] sm:$0xff] %v1056_v20   ;;  %v1133_v25 = vadd.f32 %v1132_v23, %v1131_v21  ;;  %v1181_v26 = vadd.f32 %v1180_v24, %v1179_v22  ;;  %v1134_v27 = vpop.f32.mrb[10].mxu0  ;;  %v1182_v28 = vpop.f32.mrb[10].mxu1 }
 0x10c   : > { %v1135_v29 = vpop.f32.mrb[11].mxu0  ;;  %v1183_v30 = vpop.f32.mrb[11].mxu1 }
 0x10d   : > { %v1136_v31 = vadd.f32 %v1135_v29, %v1134_v27  ;;  %v1184_v32 = vadd.f32 %v1183_v30, %v1182_v28  ;;  %v556_v33 = vadd.f32 %v1133_v25, %v1430_v56  ;;  %v620_v34 = vadd.f32 %v1181_v26, %v1430_v56 }
 0x10f   : > { %v559_v35 = vadd.f32 %v1136_v31, %v1430_v56  ;;  %v623_v36 = vadd.f32 %v1184_v32, %v1430_v56 }
 0x111   : > { %v1021_v37 = vpack.c.bf16 %v559_v35, %v556_v33  ;;  %v1061_v38 = vpack.c.bf16 %v623_v36, %v620_v34  ;;  %v1137_v39 = vpop.f32.mrb[12].mxu0  ;;  %v1185_v40 = vpop.f32.mrb[12].mxu1 }
 0x112   : > { %v1138_v41 = vpop.f32.mrb[13].mxu0  ;;  %v1186_v42 = vpop.f32.mrb[13].mxu1 }
 0x113   : > { %1089 = vst [vmem:[%s1440_s4 + $0x10] sm:$0xff] %v1021_v37   ;;  %1097 = vst [vmem:[%s1440_s4 + $0x50] sm:$0xff] %v1061_v38   ;;  %v1139_v43 = vadd.f32 %v1138_v41, %v1137_v39  ;;  %v1187_v44 = vadd.f32 %v1186_v42, %v1185_v40  ;;  %v1140_v45 = vpop.f32.mrb[14].mxu0  ;;  %v1188_v46 = vpop.f32.mrb[14].mxu1 }
 0x114   : > { %v1141_v47 = vpop.f32.mrb[15].mxu0  ;;  %v1189_v48 = vpop.f32.mrb[15].mxu1 }
 0x115   : > { %v1142_v49 = vadd.f32 %v1141_v47, %v1140_v45  ;;  %v1190_v50 = vadd.f32 %v1189_v48, %v1188_v46  ;;  %v564_v51 = vadd.f32 %v1139_v43, %v1430_v56  ;;  %v628_v52 = vadd.f32 %v1187_v44, %v1430_v56 }
 0x117   : > { %v567_v53 = vadd.f32 %v1142_v49, %v1430_v56  ;;  %v631_v54 = vadd.f32 %v1190_v50, %v1430_v56 }
 0x119   : > { %v1026_v55 = vpack.c.bf16 %v567_v53, %v564_v51  ;;  %v1066_v57 = vpack.c.bf16 %v631_v54, %v628_v52  ;;  %v1143_v58 = vpop.f32.mrb[16].mxu0  ;;  %v1191_v59 = vpop.f32.mrb[16].mxu1 }
 0x11a   : > { %v1144_v60 = vpop.f32.mrb[17].mxu0  ;;  %v1192_v61 = vpop.f32.mrb[17].mxu1 }
 0x11b   : > { %1090 = vst [vmem:[%s1440_s4 + $0x18] sm:$0xff] %v1026_v55   ;;  %1098 = vst [vmem:[%s1440_s4 + $0x58] sm:$0xff] %v1066_v57   ;;  %v1145_v62 = vadd.f32 %v1144_v60, %v1143_v58  ;;  %v1193_v63 = vadd.f32 %v1192_v61, %v1191_v59  ;;  %v1146_v0 = vpop.f32.mrb[18].mxu0  ;;  %v1194_v1 = vpop.f32.mrb[18].mxu1 }
 0x11c   : > { %v1147_v2 = vpop.f32.mrb[19].mxu0  ;;  %v1195_v3 = vpop.f32.mrb[19].mxu1 }
 0x11d   : > { %v1148_v4 = vadd.f32 %v1147_v2, %v1146_v0  ;;  %v1196_v5 = vadd.f32 %v1195_v3, %v1194_v1  ;;  %v572_v6 = vadd.f32 %v1145_v62, %v1430_v56  ;;  %v636_v7 = vadd.f32 %v1193_v63, %v1430_v56 }
 0x11f   : > { %v575_v8 = vadd.f32 %v1148_v4, %v1430_v56  ;;  %v639_v9 = vadd.f32 %v1196_v5, %v1430_v56 }
 0x121   : > { %v1031_v10 = vpack.c.bf16 %v575_v8, %v572_v6  ;;  %v1071_v11 = vpack.c.bf16 %v639_v9, %v636_v7  ;;  %v1149_v12 = vpop.f32.mrb[20].mxu0  ;;  %v1197_v13 = vpop.f32.mrb[20].mxu1 }
 0x122   : > { %v1150_v14 = vpop.f32.mrb[21].mxu0  ;;  %v1198_v15 = vpop.f32.mrb[21].mxu1 }
 0x123   : > { %1091 = vst [vmem:[%s1440_s4 + $0x20] sm:$0xff] %v1031_v10   ;;  %1099 = vst [vmem:[%s1440_s4 + $0x60] sm:$0xff] %v1071_v11   ;;  %v1151_v16 = vadd.f32 %v1150_v14, %v1149_v12  ;;  %v1199_v17 = vadd.f32 %v1198_v15, %v1197_v13  ;;  %v1152_v18 = vpop.f32.mrb[22].mxu0  ;;  %v1200_v19 = vpop.f32.mrb[22].mxu1 }
 0x124   : > { %v1153_v20 = vpop.f32.mrb[23].mxu0  ;;  %v1201_v21 = vpop.f32.mrb[23].mxu1 }
 0x125   : > { %v1154_v22 = vadd.f32 %v1153_v20, %v1152_v18  ;;  %v1202_v23 = vadd.f32 %v1201_v21, %v1200_v19  ;;  %v580_v24 = vadd.f32 %v1151_v16, %v1430_v56  ;;  %v644_v25 = vadd.f32 %v1199_v17, %v1430_v56 }
 0x127   : > { %v583_v26 = vadd.f32 %v1154_v22, %v1430_v56  ;;  %v647_v27 = vadd.f32 %v1202_v23, %v1430_v56 }
 0x129   : > { %v1036_v28 = vpack.c.bf16 %v583_v26, %v580_v24  ;;  %v1076_v29 = vpack.c.bf16 %v647_v27, %v644_v25  ;;  %v1155_v30 = vpop.f32.mrb[24].mxu0  ;;  %v1203_v31 = vpop.f32.mrb[24].mxu1 }
 0x12a   : > { %v1156_v32 = vpop.f32.mrb[25].mxu0  ;;  %v1204_v33 = vpop.f32.mrb[25].mxu1 }
 0x12b   : > { %1092 = vst [vmem:[%s1440_s4 + $0x28] sm:$0xff] %v1036_v28   ;;  %1100 = vst [vmem:[%s1440_s4 + $0x68] sm:$0xff] %v1076_v29   ;;  %v1157_v34 = vadd.f32 %v1156_v32, %v1155_v30  ;;  %v1205_v35 = vadd.f32 %v1204_v33, %v1203_v31  ;;  %v1158_v36 = vpop.f32.mrb[26].mxu0  ;;  %v1206_v37 = vpop.f32.mrb[26].mxu1 }
 0x12c   : > { %v1159_v38 = vpop.f32.mrb[27].mxu0  ;;  %v1207_v39 = vpop.f32.mrb[27].mxu1 }
 0x12d   : > { %v1160_v40 = vadd.f32 %v1159_v38, %v1158_v36  ;;  %v1208_v41 = vadd.f32 %v1207_v39, %v1206_v37  ;;  %v588_v42 = vadd.f32 %v1157_v34, %v1430_v56  ;;  %v652_v43 = vadd.f32 %v1205_v35, %v1430_v56 }
 0x12f   : > { %v591_v44 = vadd.f32 %v1160_v40, %v1430_v56  ;;  %v655_v45 = vadd.f32 %v1208_v41, %v1430_v56 }
 0x131   : > { %v1041_v46 = vpack.c.bf16 %v591_v44, %v588_v42  ;;  %v1081_v47 = vpack.c.bf16 %v655_v45, %v652_v43  ;;  %v1161_v48 = vpop.f32.mrb[28].mxu0  ;;  %v1209_v49 = vpop.f32.mrb[28].mxu1 }
 0x132   : > { %v1162_v50 = vpop.f32.mrb[29].mxu0  ;;  %v1210_v51 = vpop.f32.mrb[29].mxu1 }
 0x133   : > { %1093 = vst [vmem:[%s1440_s4 + $0x30] sm:$0xff] %v1041_v46   ;;  %1101 = vst [vmem:[%s1440_s4 + $0x70] sm:$0xff] %v1081_v47   ;;  %v1163_v52 = vadd.f32 %v1162_v50, %v1161_v48  ;;  %v1211_v53 = vadd.f32 %v1210_v51, %v1209_v49  ;;  %v1164_v54 = vpop.f32.mrb[30].mxu0  ;;  %v1212_v55 = vpop.f32.mrb[30].mxu1 }
 0x134   : > { %v1165_v57 = vpop.f32.mrb[31].mxu0  ;;  %v1213_v58 = vpop.f32.mrb[31].mxu1 }
 0x135   : > { %v1166_v59 = vadd.f32 %v1165_v57, %v1164_v54  ;;  %v1214_v60 = vadd.f32 %v1213_v58, %v1212_v55  ;;  %v596_v61 = vadd.f32 %v1163_v52, %v1430_v56  ;;  %v660_v62 = vadd.f32 %v1211_v53, %v1430_v56 }
 0x137   : > { %v599_v63 = vadd.f32 %v1166_v59, %v1430_v56  ;;  %v663_v0 = vadd.f32 %v1214_v60, %v1430_v56 }
 0x139   : > { %v1046_v1 = vpack.c.bf16 %v599_v63, %v596_v61  ;;  %v1086_v2 = vpack.c.bf16 %v663_v0, %v660_v62 }
 0x13b   : > { %1094 = vst [vmem:[%s1440_s4 + $0x38] sm:$0xff] %v1046_v1   ;;  %1102 = vst [vmem:[%s1440_s4 + $0x78] sm:$0xff] %v1086_v2  }
 0x13c PF: > { %s13_s12 = sadd.s32 1, %s1309_s12  }
 0x13d   : > { %p10_p4 = scmp.ge.s32.totalorder %s13_s12, 4  }
 0x13f   :  { %12 = sbr.rel (!%p10_p4) target bundleno = 1 (0x1), region = 62 }

// kernel: generator_a2b.48
= control target key start
LH: loop header
LB: loop body
LE: loop exit
PB: predicated region body
PF: predicated region fallthrough
CT: control target
= control target key end

     0   :  { %s943_s6 = smov 0   ;;  %s945_s7 = smov 0   ;;  %s1551_s0 = inlined_call_operand.vmem [shape: bf16[2,256,64], index: 0, kind: input, shape index: {}]   ;;  %s1552_s1 = inlined_call_operand.vmem [shape: bf16[2,256,64], index: 1, kind: output, shape index: {}]  }
   0x1   :  { %s947_s8 = smov 0  }
   0x2 LB: > { %s23_s9 = sadd.s32 1, %s927_s7  ;;  %p731_p0 = scmp.ge.s32.totalorder %s931_s8, 1  ;;  %s931_s8 = sphi %s947_s8, %s11_s8   ;;  %s927_s7 = sphi %s945_s7, %s1554_s7   ;;  %s923_s6 = sphi %s943_s6, %s1553_s6  }
   0x3   : > { %p25_p1 = scmp.ge.s32.totalorder %s23_s9, 2  ;;  %p106_p2 = scmp.lt.s32.totalorder %s931_s8, 3 }
   0x5   : > { %s1556_s9 = smov (%p25_p1, %s23_s9), 0  ;;  %p107_p3 = pnand %p731_p0, %p106_p2 }
   0x6   : > { %p132_p4 = scmp.lt.s32.totalorder (!%p107_p3), %s923_s6, 1  ;;  %vm212_vm0 = vcmask (!%p107_p3), 523264   ;;  %vm611_vm1 = vcmask (!%p107_p3), 519168  }
   0x7   : > { %110 = sbr.rel (%p107_p3) target bundleno = 220 (0xdc), region = 24 }
   0xe   : > { %s1558_s6 = smov (!%p132_p4, %s923_s6), 1 }
   0xf   : > { %s770_s10 = sshll.u32 %s1558_s6, 7 }
  0x10   : > { %s969_s13 = scalar_lea.vmem %s1551_s0, %s770_s10  ;;  %s1428_s16 = scalar_lea.vmem %s1552_s1, %s770_s10 }
  0x11   : > { %v972_v0 = vld [vmem:[%s969_s13] sm:$0xff]   ;;  %v975_v1 = vld [vmem:[%s969_s13 + $0x8] sm:$0xff]   ;;  %v981_v5 = vld [vmem:[%s969_s13 + $0x10] sm:$0xff]  }
  0x12   : > { %v806_v2 = vunpack.c.l.bf16 %v972_v0  ;;  %v807_v3 = vunpack.c.h.bf16 %v972_v0  ;;  %v810_v4 = vunpack.c.l.bf16 %v975_v1  ;;  %v811_v6 = vunpack.c.h.bf16 %v975_v1  ;;  %v995_v11 = vld [vmem:[%s969_s13 + $0x18] sm:$0xff]   ;;  %v1006_v18 = vld [vmem:[%s969_s13 + $0x20] sm:$0xff]   ;;  %v1017_v25 = vld [vmem:[%s969_s13 + $0x28] sm:$0xff]  }
  0x13   : > { %v814_v7 = vunpack.c.l.bf16 %v981_v5  ;;  %v815_v13 = vunpack.c.h.bf16 %v981_v5  ;;  %v818_v16 = vunpack.c.l.bf16 %v995_v11  ;;  %v819_v20 = vunpack.c.h.bf16 %v995_v11  ;;  %v1028_v32 = vld [vmem:[%s969_s13 + $0x30] sm:$0xff]   ;;  %v1039_v39 = vld [vmem:[%s969_s13 + $0x38] sm:$0xff]   ;;  %v1050_v46 = vld [vmem:[%s969_s13 + $0x40] sm:$0xff]  }
  0x14   : > { %v213_v8 = vsel %vm212_vm0, %v806_v2, 0.0  ;;  %v214_v9 = vsel %vm212_vm0, %v807_v3, 0.0  ;;  %v216_v10 = vsel %vm212_vm0, %v810_v4, 0.0  ;;  %v218_v14 = vsel %vm212_vm0, %v811_v6, 0.0  ;;  %v1061_v53 = vld [vmem:[%s969_s13 + $0x48] sm:$0xff]   ;;  %v1072_v60 = vld [vmem:[%s969_s13 + $0x50] sm:$0xff]  }
  0x15   : > { %v215_v12 = vadd.f32 %v214_v9, %v213_v8  ;;  %v220_v17 = vsel %vm212_vm0, %v814_v7, 0.0  ;;  %v222_v21 = vsel %vm212_vm0, %v815_v13, 0.0  ;;  %v822_v23 = vunpack.c.l.bf16 %v1006_v18 }
  0x16   : > { %v224_v24 = vsel %vm212_vm0, %v818_v16, 0.0  ;;  %v823_v27 = vunpack.c.h.bf16 %v1006_v18  ;;  %v226_v28 = vsel %vm212_vm0, %v819_v20, 0.0  ;;  %v826_v30 = vunpack.c.l.bf16 %v1017_v25 }
  0x17   : > { %v217_v15 = vadd.f32 %v216_v10, %v215_v12  ;;  %v228_v31 = vsel %vm212_vm0, %v822_v23, 0.0  ;;  %v827_v34 = vunpack.c.h.bf16 %v1017_v25  ;;  %v830_v37 = vunpack.c.l.bf16 %v1028_v32  ;;  %v1083_v12 = vld [vmem:[%s969_s13 + $0x58] sm:$0xff]  }
  0x18   : > { %v230_v35 = vsel %vm212_vm0, %v823_v27, 0.0  ;;  %v232_v38 = vsel %vm212_vm0, %v826_v30, 0.0  ;;  %v831_v41 = vunpack.c.h.bf16 %v1028_v32  ;;  %v834_v44 = vunpack.c.l.bf16 %v1039_v39 }
  0x19   : > { %v219_v19 = vadd.f32 %v218_v14, %v217_v15  ;;  %v234_v42 = vsel %vm212_vm0, %v827_v34, 0.0  ;;  %v236_v45 = vsel %vm212_vm0, %v830_v37, 0.0  ;;  %v835_v48 = vunpack.c.h.bf16 %v1039_v39 }
  0x1a   : > { %v238_v49 = vsel %vm212_vm0, %v831_v41, 0.0  ;;  %v838_v51 = vunpack.c.l.bf16 %v1050_v46  ;;  %v240_v52 = vsel %vm212_vm0, %v834_v44, 0.0  ;;  %v839_v55 = vunpack.c.h.bf16 %v1050_v46 }
  0x1b   : > { %v221_v22 = vadd.f32 %v220_v17, %v219_v19  ;;  %v242_v56 = vsel %vm212_vm0, %v835_v48, 0.0  ;;  %v842_v58 = vunpack.c.l.bf16 %v1061_v53  ;;  %v843_v62 = vunpack.c.h.bf16 %v1061_v53 }
  0x1c   : > { %v244_v59 = vsel %vm212_vm0, %v838_v51, 0.0  ;;  %v246_v63 = vsel %vm212_vm0, %v839_v55, 0.0  ;;  %v846_v9 = vunpack.c.l.bf16 %v1072_v60  ;;  %v847_v15 = vunpack.c.h.bf16 %v1072_v60 }
  0x1d   : > { %v223_v26 = vadd.f32 %v222_v21, %v221_v22  ;;  %v248_v10 = vsel %vm212_vm0, %v842_v58, 0.0  ;;  %v250_v17 = vsel %vm212_vm0, %v843_v62, 0.0  ;;  %v850_v21 = vunpack.c.l.bf16 %v1083_v12 }
  0x1e   : > { %v252_v22 = vsel %vm212_vm0, %v846_v9, 0.0 }
  0x1f   : > { %v225_v29 = vadd.f32 %v224_v24, %v223_v26  ;;  %v1094_v24 = vld [vmem:[%s969_s13 + $0x60] sm:$0xff]  }
  0x21   : > { %v227_v33 = vadd.f32 %v226_v28, %v225_v29  ;;  %v851_v28 = vunpack.c.h.bf16 %v1083_v12  ;;  %v254_v29 = vsel %vm212_vm0, %v847_v15, 0.0 }
  0x23   : > { %v229_v36 = vadd.f32 %v228_v31, %v227_v33  ;;  %v854_v33 = vunpack.c.l.bf16 %v1094_v24 }
  0x25   : > { %v231_v40 = vadd.f32 %v230_v35, %v229_v36  ;;  %v256_v35 = vsel %vm212_vm0, %v850_v21, 0.0  ;;  %v1105_v36 = vld [vmem:[%s969_s13 + $0x68] sm:$0xff]  }
  0x27   : > { %v233_v43 = vadd.f32 %v232_v38, %v231_v40  ;;  %v855_v40 = vunpack.c.h.bf16 %v1094_v24 }
  0x29   : > { %v235_v47 = vadd.f32 %v234_v42, %v233_v43  ;;  %v258_v42 = vsel %vm212_vm0, %v851_v28, 0.0 }
  0x2b   : > { %v237_v50 = vadd.f32 %v236_v45, %v235_v47  ;;  %v858_v45 = vunpack.c.l.bf16 %v1105_v36  ;;  %v260_v47 = vsel %vm212_vm0, %v854_v33, 0.0 }
  0x2d   : > { %v239_v54 = vadd.f32 %v238_v49, %v237_v50  ;;  %v1116_v49 = vld [vmem:[%s969_s13 + $0x70] sm:$0xff]  }
  0x2f   : > { %v241_v57 = vadd.f32 %v240_v52, %v239_v54  ;;  %v859_v52 = vunpack.c.h.bf16 %v1105_v36  ;;  %v262_v54 = vsel %vm212_vm0, %v855_v40, 0.0 }
  0x31   : > { %v243_v61 = vadd.f32 %v242_v56, %v241_v57  ;;  %v862_v57 = vunpack.c.l.bf16 %v1116_v49 }
  0x33   : > { %v245_v8 = vadd.f32 %v244_v59, %v243_v61  ;;  %v264_v59 = vsel %vm212_vm0, %v858_v45, 0.0  ;;  %v1127_v61 = vld [vmem:[%s969_s13 + $0x78] sm:$0xff]  }
  0x35   : > { %v247_v14 = vadd.f32 %v246_v63, %v245_v8  ;;  %v863_v8 = vunpack.c.h.bf16 %v1116_v49 }
  0x37   : > { %v249_v19 = vadd.f32 %v248_v10, %v247_v14  ;;  %v266_v10 = vsel %vm212_vm0, %v859_v52, 0.0 }
  0x39   : > { %v251_v26 = vadd.f32 %v250_v17, %v249_v19  ;;  %v866_v17 = vunpack.c.l.bf16 %v1127_v61  ;;  %v268_v19 = vsel %vm212_vm0, %v862_v57, 0.0 }
  0x3b   : > { %v253_v31 = vadd.f32 %v252_v22, %v251_v26  ;;  %v867_v26 = vunpack.c.h.bf16 %v1127_v61 }
  0x3d   : > { %v255_v38 = vadd.f32 %v254_v29, %v253_v31  ;;  %v270_v29 = vsel %vm212_vm0, %v863_v8, 0.0 }
  0x3f   : > { %v257_v43 = vadd.f32 %v256_v35, %v255_v38  ;;  %v272_v35 = vsel %vm212_vm0, %v866_v17, 0.0 }
  0x41   : > { %v259_v50 = vadd.f32 %v258_v42, %v257_v43  ;;  %v274_v42 = vsel %vm212_vm0, %v867_v26, 0.0 }
  0x43   : > { %v261_v56 = vadd.f32 %v260_v47, %v259_v50 }
  0x45   : > { %v263_v63 = vadd.f32 %v262_v54, %v261_v56 }
  0x47   : > { %v265_v14 = vadd.f32 %v264_v59, %v263_v63 }
  0x49   : > { %v267_v22 = vadd.f32 %v266_v10, %v265_v14 }
  0x4b   : > { %v269_v31 = vadd.f32 %v268_v19, %v267_v22 }
  0x4d   : > { %v271_v38 = vadd.f32 %v270_v29, %v269_v31 }
  0x4f   : > { %v273_v43 = vadd.f32 %v272_v35, %v271_v38 }
  0x51   : > { %v275_v47 = vadd.f32 %v274_v42, %v273_v43 }
  0x53   : > { %v276_v50 = vrot.slane %v275_v47, 4 }
  0x55   : > { %v277_v54 = vadd.f32 %v276_v50, %v275_v47 }
  0x57   : > { %v278_v56 = vrot.slane %v277_v54, 2 }
  0x59   : > { %v279_v59 = vadd.f32 %v278_v56, %v277_v54 }
  0x5b   : > { %v280_v63 = vrot.slane %v279_v59, 1 }
  0x5d   : > { %v281_v10 = vadd.f32 %v280_v63, %v279_v59 }
  0x5f   : > { %v1147_v14 = vmul.f32 0.00390625, %v281_v10 }
  0x61   : > { %v1152_v19 = vsub.f32 %v806_v2, %v1147_v14  ;;  %v1157_v22 = vsub.f32 %v807_v3, %v1147_v14  ;;  %v1162_v29 = vsub.f32 %v810_v4, %v1147_v14  ;;  %v1167_v31 = vsub.f32 %v811_v6, %v1147_v14 }
  0x62   : > { %v1172_v2 = vsub.f32 %v814_v7, %v1147_v14  ;;  %v1183_v1 = vsub.f32 %v815_v13, %v1147_v14  ;;  %v1190_v7 = vsub.f32 %v818_v16, %v1147_v14  ;;  %v1200_v13 = vsub.f32 %v819_v20, %v1147_v14 }
  0x63   : > { %v315_v0 = vmul.f32 %v1152_v19, %v1152_v19  ;;  %v316_v3 = vmul.f32 %v1157_v22, %v1157_v22  ;;  %v317_v4 = vmul.f32 %v1162_v29, %v1162_v29  ;;  %v318_v6 = vmul.f32 %v1167_v31, %v1167_v31 }
  0x64   : > { %v319_v35 = vmul.f32 %v1172_v2, %v1172_v2  ;;  %v320_v47 = vmul.f32 %v1183_v1, %v1183_v1  ;;  %v1208_v54 = vsub.f32 %v822_v23, %v1147_v14  ;;  %v321_v56 = vmul.f32 %v1190_v7, %v1190_v7 }
  0x65   : > { %v347_v38 = vsel %vm212_vm0, %v315_v0, 0.0  ;;  %v348_v42 = vsel %vm212_vm0, %v316_v3, 0.0  ;;  %v350_v43 = vsel %vm212_vm0, %v317_v4, 0.0  ;;  %v352_v16 = vsel %vm212_vm0, %v318_v6, 0.0 }
  0x66   : > { %v349_v5 = vadd.f32 %v348_v42, %v347_v38  ;;  %v354_v59 = vsel %vm212_vm0, %v319_v35, 0.0  ;;  %v1216_v11 = vsub.f32 %v823_v27, %v1147_v14  ;;  %v322_v20 = vmul.f32 %v1200_v13, %v1200_v13 }
  0x67   : > { %v356_v10 = vsel %vm212_vm0, %v320_v47, 0.0  ;;  %v1224_v23 = vsub.f32 %v826_v30, %v1147_v14  ;;  %v323_v3 = vmul.f32 %v1208_v54, %v1208_v54  ;;  %v358_v4 = vsel %vm212_vm0, %v321_v56, 0.0 }
  0x68   : > { %v351_v50 = vadd.f32 %v350_v43, %v349_v5  ;;  %v1232_v18 = vsub.f32 %v827_v34, %v1147_v14  ;;  %v324_v27 = vmul.f32 %v1216_v11, %v1216_v11  ;;  %v360_v35 = vsel %vm212_vm0, %v322_v20, 0.0 }
  0x69   : > { %v1240_v30 = vsub.f32 %v830_v37, %v1147_v14  ;;  %v325_v42 = vmul.f32 %v1224_v23, %v1224_v23  ;;  %v362_v43 = vsel %vm212_vm0, %v323_v3, 0.0  ;;  %v1248_v25 = vsub.f32 %v831_v41, %v1147_v14 }
  0x6a   : > { %v353_v63 = vadd.f32 %v352_v16, %v351_v50  ;;  %v326_v34 = vmul.f32 %v1232_v18, %v1232_v18  ;;  %v364_v47 = vsel %vm212_vm0, %v324_v27, 0.0  ;;  %v1256_v37 = vsub.f32 %v834_v44, %v1147_v14 }
  0x6b   : > { %v327_v50 = vmul.f32 %v1240_v30, %v1240_v30  ;;  %v366_v56 = vsel %vm212_vm0, %v325_v42, 0.0  ;;  %v1264_v32 = vsub.f32 %v835_v48, %v1147_v14  ;;  %v328_v41 = vmul.f32 %v1248_v25, %v1248_v25 }
  0x6c   : > { %v355_v0 = vadd.f32 %v354_v59, %v353_v63  ;;  %v368_v63 = vsel %vm212_vm0, %v326_v34, 0.0  ;;  %v1272_v44 = vsub.f32 %v838_v51, %v1147_v14  ;;  %v1280_v39 = vsub.f32 %v839_v55, %v1147_v14 }
  0x6d   : > { %v330_v48 = vmul.f32 %v1264_v32, %v1264_v32  ;;  %v1288_v51 = vsub.f32 %v842_v58, %v1147_v14  ;;  %v1296_v46 = vsub.f32 %v843_v62, %v1147_v14  ;;  %v1304_v58 = vsub.f32 %v846_v9, %v1147_v14 }
  0x6e   : > { %v357_v6 = vadd.f32 %v356_v10, %v355_v0  ;;  %v329_v10 = vmul.f32 %v1256_v37, %v1256_v37  ;;  %v370_v0 = vsel %vm212_vm0, %v327_v50, 0.0  ;;  %v331_v27 = vmul.f32 %v1272_v44, %v1272_v44 }
  0x6f   : > { %v332_v55 = vmul.f32 %v1280_v39, %v1280_v39  ;;  %v376_v42 = vsel %vm212_vm0, %v330_v48, 0.0  ;;  %v1312_v53 = vsub.f32 %v847_v15, %v1147_v14  ;;  %v334_v62 = vmul.f32 %v1296_v46, %v1296_v46 }
  0x70   : > { %v359_v38 = vadd.f32 %v358_v4, %v357_v6  ;;  %v372_v4 = vsel %vm212_vm0, %v328_v41, 0.0  ;;  %v378_v34 = vsel %vm212_vm0, %v331_v27, 0.0  ;;  %v1320_v9 = vsub.f32 %v850_v21, %v1147_v14 }
  0x71   : > { %v1328_v60 = vsub.f32 %v851_v28, %v1147_v14  ;;  %v336_v15 = vmul.f32 %v1312_v53, %v1312_v53  ;;  %v1336_v21 = vsub.f32 %v854_v33, %v1147_v14  ;;  %v1344_v12 = vsub.f32 %v855_v40, %v1147_v14 }
  0x72   : > { %v361_v5 = vadd.f32 %v360_v35, %v359_v38  ;;  %v374_v35 = vsel %vm212_vm0, %v329_v10, 0.0  ;;  %v337_v10 = vmul.f32 %v1320_v9, %v1320_v9  ;;  %v1352_v33 = vsub.f32 %v858_v45, %v1147_v14 }
  0x73   : > { %v338_v28 = vmul.f32 %v1328_v60, %v1328_v60  ;;  %v388_v48 = vsel %vm212_vm0, %v336_v15, 0.0  ;;  %v1360_v24 = vsub.f32 %v859_v52, %v1147_v14  ;;  %v340_v40 = vmul.f32 %v1344_v12, %v1344_v12 }
  0x74   : > { %v363_v16 = vadd.f32 %v362_v43, %v361_v5  ;;  %v333_v5 = vmul.f32 %v1288_v51, %v1288_v51  ;;  %v390_v27 = vsel %vm212_vm0, %v337_v10, 0.0  ;;  %v1368_v45 = vsub.f32 %v862_v57, %v1147_v14 }
  0x75   : > { %v1376_v36 = vsub.f32 %v863_v8, %v1147_v14  ;;  %v342_v52 = vmul.f32 %v1360_v24, %v1360_v24  ;;  %v1384_v57 = vsub.f32 %v866_v17, %v1147_v14  ;;  %v1392_v49 = vsub.f32 %v867_v26, %v1147_v14 }
  0x76   : > { %v365_v59 = vadd.f32 %v364_v47, %v363_v16  ;;  %v380_v16 = vsel %vm212_vm0, %v332_v55, 0.0 }
  0x77   : > { %v344_v8 = vmul.f32 %v1376_v36, %v1376_v36  ;;  %v345_v17 = vmul.f32 %v1384_v57, %v1384_v57 }
  0x78   : > { %v367_v20 = vadd.f32 %v366_v56, %v365_v59  ;;  %v335_v56 = vmul.f32 %v1304_v58, %v1304_v58  ;;  %v382_v59 = vsel %vm212_vm0, %v333_v5, 0.0 }
  0x79   : > { %v406_v26 = vsel %vm212_vm0, %v345_v17, 0.0 }
  0x7a   : > { %v369_v3 = vadd.f32 %v368_v63, %v367_v20  ;;  %v384_v63 = vsel %vm212_vm0, %v334_v62, 0.0  ;;  %v343_v62 = vmul.f32 %v1368_v45, %v1368_v45 }
  0x7c   : > { %v371_v6 = vadd.f32 %v370_v0, %v369_v3  ;;  %v386_v0 = vsel %vm212_vm0, %v335_v56, 0.0  ;;  %v400_v56 = vsel %vm212_vm0, %v342_v52, 0.0 }
  0x7e   : > { %v373_v38 = vadd.f32 %v372_v4, %v371_v6  ;;  %v339_v6 = vmul.f32 %v1336_v21, %v1336_v21 }
  0x80   : > { %v375_v43 = vadd.f32 %v374_v35, %v373_v38  ;;  %v392_v38 = vsel %vm212_vm0, %v338_v28, 0.0 }
  0x82   : > { %v377_v47 = vadd.f32 %v376_v42, %v375_v43  ;;  %v341_v42 = vmul.f32 %v1352_v33, %v1352_v33  ;;  %v394_v43 = vsel %vm212_vm0, %v339_v6, 0.0 }
  0x84   : > { %v379_v50 = vadd.f32 %v378_v34, %v377_v47  ;;  %v396_v34 = vsel %vm212_vm0, %v340_v40, 0.0 }
  0x86   : > { %v381_v41 = vadd.f32 %v380_v16, %v379_v50  ;;  %v398_v16 = vsel %vm212_vm0, %v341_v42, 0.0 }
  0x88   : > { %v383_v20 = vadd.f32 %v382_v59, %v381_v41  ;;  %v402_v41 = vsel %vm212_vm0, %v343_v62, 0.0 }
  0x8a   : > { %v385_v3 = vadd.f32 %v384_v63, %v383_v20  ;;  %v346_v63 = vmul.f32 %v1392_v49, %v1392_v49  ;;  %v404_v20 = vsel %vm212_vm0, %v344_v8, 0.0 }
  0x8c   : > { %v387_v4 = vadd.f32 %v386_v0, %v385_v3  ;;  %v408_v10 = vsel %vm212_vm0, %v346_v63, 0.0 }
  0x8e   : > { %v389_v35 = vadd.f32 %v388_v48, %v387_v4 }
  0x90   : > { %v391_v55 = vadd.f32 %v390_v27, %v389_v35 }
  0x92   : > { %v393_v5 = vadd.f32 %v392_v38, %v391_v55 }
  0x94   : > { %v395_v47 = vadd.f32 %v394_v43, %v393_v5 }
  0x96   : > { %v397_v50 = vadd.f32 %v396_v34, %v395_v47 }
  0x98   : > { %v399_v59 = vadd.f32 %v398_v16, %v397_v50 }
  0x9a   : > { %v401_v15 = vadd.f32 %v400_v56, %v399_v59 }
  0x9c   : > { %v403_v61 = vadd.f32 %v402_v41, %v401_v15 }
  0x9e   : > { %v405_v14 = vadd.f32 %v404_v20, %v403_v61 }
  0xa0   : > { %v407_v0 = vadd.f32 %v406_v26, %v405_v14 }
  0xa2   : > { %v409_v3 = vadd.f32 %v408_v10, %v407_v0 }
  0xa4   : > { %v410_v28 = vrot.slane %v409_v3, 4 }
  0xa6   : > { %v411_v48 = vadd.f32 %v410_v28, %v409_v3 }
  0xa8   : > { %v412_v4 = vrot.slane %v411_v48, 2 }
  0xaa   : > { %v413_v6 = vadd.f32 %v412_v4, %v411_v48 }
  0xac   : > { %v414_v27 = vrot.slane %v413_v6, 1 }
  0xae   : > { %v415_v35 = vadd.f32 %v414_v27, %v413_v6 }
  0xb0   : > { %v416_v40 = vmul.f32 0.00390625, %v415_v35 }
  0xb2   : > { %v417_v38 = vadd.f32 1e-05, %v416_v40 }
  0xb4   : > { %907 = vrsqrt.f32 %v417_v38 }
  0xbe   : > { %v1405_v55 = vpop.eup %907 }
  0xbf   : > { %v419_v42 = vmul.f32 %v1405_v55, %v1152_v19  ;;  %v420_v43 = vmul.f32 %v1405_v55, %v1157_v22  ;;  %v421_v5 = vmul.f32 %v1405_v55, %v1162_v29  ;;  %v422_v52 = vmul.f32 %v1405_v55, %v1167_v31 }
  0xc0   : > { %v423_v34 = vmul.f32 %v1405_v55, %v1172_v2  ;;  %v424_v47 = vmul.f32 %v1405_v55, %v1183_v1  ;;  %v425_v62 = vmul.f32 %v1405_v55, %v1190_v7  ;;  %v426_v19 = vmul.f32 %v1405_v55, %v1200_v13 }
  0xc1   : > { %v451_v16 = vmax.f32 %v419_v42, 0.0  ;;  %v452_v22 = vmax.f32 %v420_v43, 0.0  ;;  %v453_v50 = vmax.f32 %v421_v5, 0.0  ;;  %v454_v8 = vmax.f32 %v422_v52, 0.0 }
  0xc2   : > { %v455_v29 = vmax.f32 %v423_v34, 0.0  ;;  %v456_v31 = vmax.f32 %v424_v47, 0.0  ;;  %v457_v2 = vmax.f32 %v425_v62, 0.0  ;;  %v458_v1 = vmax.f32 %v426_v19, 0.0 }
  0xc3   : > { %v772_v7 = vpack.c.bf16 %v451_v16, %v451_v16  ;;  %v773_v13 = vpack.c.bf16 %v452_v22, %v452_v22  ;;  %v774_v56 = vpack.c.bf16 %v453_v50, %v453_v50  ;;  %v775_v59 = vpack.c.bf16 %v454_v8, %v454_v8 }
  0xc4   : > { %v776_v17 = vpack.c.bf16 %v455_v29, %v455_v29  ;;  %v777_v41 = vpack.c.bf16 %v456_v31, %v456_v31  ;;  %v778_v15 = vpack.c.bf16 %v457_v2, %v457_v2  ;;  %v779_v63 = vpack.c.bf16 %v458_v1, %v458_v1 }
  0xc5   : > { %612 = vst.msk [vmem:[%s1428_s16] sm:$0xf] %vm611_vm1, %v772_v7  ;;  %613 = vst.msk [vmem:[%s1428_s16 + $0x4] sm:$0xf] %vm611_vm1, %v773_v13  ;;  %v427_v20 = vmul.f32 %v1405_v55, %v1208_v54  ;;  %v428_v61 = vmul.f32 %v1405_v55, %v1216_v11  ;;  %v429_v26 = vmul.f32 %v1405_v55, %v1224_v23 }
  0xc6   : > { %614 = vst.msk [vmem:[%s1428_s16 + $0x8] sm:$0xf] %vm611_vm1, %v774_v56  ;;  %615 = vst.msk [vmem:[%s1428_s16 + $0xc] sm:$0xf] %vm611_vm1, %v775_v59  ;;  %v430_v14 = vmul.f32 %v1405_v55, %v1232_v18  ;;  %v431_v54 = vmul.f32 %v1405_v55, %v1240_v30  ;;  %v432_v11 = vmul.f32 %v1405_v55, %v1248_v25 }
  0xc7   : > { %616 = vst.msk [vmem:[%s1428_s16 + $0x10] sm:$0xf] %vm611_vm1, %v776_v17  ;;  %617 = vst.msk [vmem:[%s1428_s16 + $0x14] sm:$0xf] %vm611_vm1, %v777_v41  ;;  %v433_v23 = vmul.f32 %v1405_v55, %v1256_v37  ;;  %v434_v18 = vmul.f32 %v1405_v55, %v1264_v32  ;;  %v459_v10 = vmax.f32 %v427_v20, 0.0  ;;  %v460_v0 = vmax.f32 %v428_v61, 0.0 }
  0xc8   : > { %618 = vst.msk [vmem:[%s1428_s16 + $0x18] sm:$0xf] %vm611_vm1, %v778_v15  ;;  %619 = vst.msk [vmem:[%s1428_s16 + $0x1c] sm:$0xf] %vm611_vm1, %v779_v63  ;;  %v461_v3 = vmax.f32 %v429_v26, 0.0  ;;  %v462_v28 = vmax.f32 %v430_v14, 0.0  ;;  %v435_v43 = vmul.f32 %v1405_v55, %v1272_v44  ;;  %v436_v5 = vmul.f32 %v1405_v55, %v1280_v39 }
  0xc9   : > { %v463_v48 = vmax.f32 %v431_v54, 0.0  ;;  %v464_v4 = vmax.f32 %v432_v11, 0.0  ;;  %v465_v30 = vmax.f32 %v433_v23, 0.0  ;;  %v466_v6 = vmax.f32 %v434_v18, 0.0 }
  0xca   : > { %v780_v27 = vpack.c.bf16 %v459_v10, %v459_v10  ;;  %v781_v25 = vpack.c.bf16 %v460_v0, %v460_v0  ;;  %v782_v37 = vpack.c.bf16 %v461_v3, %v461_v3  ;;  %v783_v35 = vpack.c.bf16 %v462_v28, %v462_v28 }
  0xcb   : > { %v784_v32 = vpack.c.bf16 %v463_v48, %v463_v48  ;;  %v785_v40 = vpack.c.bf16 %v464_v4, %v464_v4  ;;  %v786_v38 = vpack.c.bf16 %v465_v30, %v465_v30  ;;  %v787_v42 = vpack.c.bf16 %v466_v6, %v466_v6 }
  0xcc   : > { %620 = vst.msk [vmem:[%s1428_s16 + $0x20] sm:$0xf] %vm611_vm1, %v780_v27  ;;  %621 = vst.msk [vmem:[%s1428_s16 + $0x24] sm:$0xf] %vm611_vm1, %v781_v25  ;;  %v437_v52 = vmul.f32 %v1405_v55, %v1288_v51  ;;  %v438_v34 = vmul.f32 %v1405_v55, %v1296_v46  ;;  %v439_v44 = vmul.f32 %v1405_v55, %v1304_v58  ;;  %v467_v47 = vmax.f32 %v435_v43, 0.0 }
  0xcd   : > { %622 = vst.msk [vmem:[%s1428_s16 + $0x28] sm:$0xf] %vm611_vm1, %v782_v37  ;;  %623 = vst.msk [vmem:[%s1428_s16 + $0x2c] sm:$0xf] %vm611_vm1, %v783_v35  ;;  %v440_v39 = vmul.f32 %v1405_v55, %v1312_v53  ;;  %v441_v51 = vmul.f32 %v1405_v55, %v1320_v9  ;;  %v442_v46 = vmul.f32 %v1405_v55, %v1328_v60  ;;  %v468_v62 = vmax.f32 %v436_v5, 0.0 }
  0xce   : > { %624 = vst.msk [vmem:[%s1428_s16 + $0x30] sm:$0xf] %vm611_vm1, %v784_v32  ;;  %625 = vst.msk [vmem:[%s1428_s16 + $0x34] sm:$0xf] %vm611_vm1, %v785_v40  ;;  %v469_v19 = vmax.f32 %v437_v52, 0.0  ;;  %v470_v16 = vmax.f32 %v438_v34, 0.0  ;;  %v788_v29 = vpack.c.bf16 %v467_v47, %v467_v47  ;;  %v443_v13 = vmul.f32 %v1405_v55, %v1336_v21 }
  0xcf   : > { %626 = vst.msk [vmem:[%s1428_s16 + $0x38] sm:$0xf] %vm611_vm1, %v786_v38  ;;  %627 = vst.msk [vmem:[%s1428_s16 + $0x3c] sm:$0xf] %vm611_vm1, %v787_v42  ;;  %v471_v22 = vmax.f32 %v439_v44, 0.0  ;;  %v472_v50 = vmax.f32 %v440_v39, 0.0  ;;  %v789_v53 = vpack.c.bf16 %v468_v62, %v468_v62  ;;  %v444_v56 = vmul.f32 %v1405_v55, %v1344_v12 }
  0xd0   : > { %v473_v58 = vmax.f32 %v441_v51, 0.0  ;;  %v474_v8 = vmax.f32 %v442_v46, 0.0  ;;  %v790_v9 = vpack.c.bf16 %v469_v19, %v469_v19  ;;  %v791_v31 = vpack.c.bf16 %v470_v16, %v470_v16  ;;  %628 = vst.msk [vmem:[%s1428_s16 + $0x40] sm:$0xf] %vm611_vm1, %v788_v29 }
  0xd1   : > { %v792_v60 = vpack.c.bf16 %v471_v22, %v471_v22  ;;  %v793_v2 = vpack.c.bf16 %v472_v50, %v472_v50  ;;  %629 = vst.msk [vmem:[%s1428_s16 + $0x44] sm:$0xf] %vm611_vm1, %v789_v53  ;;  %v445_v59 = vmul.f32 %v1405_v55, %v1352_v33  ;;  %v446_v17 = vmul.f32 %v1405_v55, %v1360_v24 }
  0xd2   : > { %v794_v1 = vpack.c.bf16 %v473_v58, %v473_v58  ;;  %v795_v7 = vpack.c.bf16 %v474_v8, %v474_v8  ;;  %630 = vst.msk [vmem:[%s1428_s16 + $0x48] sm:$0xf] %vm611_vm1, %v790_v9  ;;  %631 = vst.msk [vmem:[%s1428_s16 + $0x4c] sm:$0xf] %vm611_vm1, %v791_v31  ;;  %v447_v21 = vmul.f32 %v1405_v55, %v1368_v45  ;;  %v475_v41 = vmax.f32 %v443_v13, 0.0 }
  0xd3   : > { %632 = vst.msk [vmem:[%s1428_s16 + $0x50] sm:$0xf] %vm611_vm1, %v792_v60  ;;  %633 = vst.msk [vmem:[%s1428_s16 + $0x54] sm:$0xf] %vm611_vm1, %v793_v2  ;;  %v448_v12 = vmul.f32 %v1405_v55, %v1376_v36  ;;  %v449_v33 = vmul.f32 %v1405_v55, %v1384_v57  ;;  %v450_v24 = vmul.f32 %v1405_v55, %v1392_v49  ;;  %v476_v15 = vmax.f32 %v444_v56, 0.0 }
  0xd4   : > { %634 = vst.msk [vmem:[%s1428_s16 + $0x58] sm:$0xf] %vm611_vm1, %v794_v1  ;;  %635 = vst.msk [vmem:[%s1428_s16 + $0x5c] sm:$0xf] %vm611_vm1, %v795_v7  ;;  %v477_v63 = vmax.f32 %v445_v59, 0.0  ;;  %v478_v20 = vmax.f32 %v446_v17, 0.0  ;;  %v796_v57 = vpack.c.bf16 %v475_v41, %v475_v41 }
  0xd5   : > { %v479_v61 = vmax.f32 %v447_v21, 0.0  ;;  %v480_v45 = vmax.f32 %v448_v12, 0.0  ;;  %v481_v26 = vmax.f32 %v449_v33, 0.0  ;;  %v482_v36 = vmax.f32 %v450_v24, 0.0 }
  0xd6   : > { %v797_v14 = vpack.c.bf16 %v476_v15, %v476_v15  ;;  %v798_v54 = vpack.c.bf16 %v477_v63, %v477_v63  ;;  %v799_v49 = vpack.c.bf16 %v478_v20, %v478_v20  ;;  %636 = vst.msk [vmem:[%s1428_s16 + $0x60] sm:$0xf] %vm611_vm1, %v796_v57 }
  0xd7   : > { %v800_v55 = vpack.c.bf16 %v479_v61, %v479_v61  ;;  %v801_v11 = vpack.c.bf16 %v480_v45, %v480_v45  ;;  %v802_v23 = vpack.c.bf16 %v481_v26, %v481_v26  ;;  %v803_v18 = vpack.c.bf16 %v482_v36, %v482_v36 }
  0xd8   : > { %637 = vst.msk [vmem:[%s1428_s16 + $0x64] sm:$0xf] %vm611_vm1, %v797_v14  ;;  %638 = vst.msk [vmem:[%s1428_s16 + $0x68] sm:$0xf] %vm611_vm1, %v798_v54 }
  0xd9   : > { %639 = vst.msk [vmem:[%s1428_s16 + $0x6c] sm:$0xf] %vm611_vm1, %v799_v49  ;;  %640 = vst.msk [vmem:[%s1428_s16 + $0x70] sm:$0xf] %vm611_vm1, %v800_v55 }
  0xda   : > { %641 = vst.msk [vmem:[%s1428_s16 + $0x74] sm:$0xf] %vm611_vm1, %v801_v11  ;;  %642 = vst.msk [vmem:[%s1428_s16 + $0x78] sm:$0xf] %vm611_vm1, %v802_v23 }
  0xdb   : > { %643 = vst.msk [vmem:[%s1428_s16 + $0x7c] sm:$0xf] %vm611_vm1, %v803_v18 }
  0xdc PF: > { %s11_s8 = sadd.s32 1, %s931_s8   ;;  %s1553_s6 = smov %s927_s7 }
  0xdd   : > { %p8_p5 = scmp.ge.s32.totalorder %s11_s8, 4   ;;  %s1554_s7 = smov %s1556_s9 }
  0xdf   :  { %10 = sbr.rel (!%p8_p5) target bundleno = 2 (0x2), region = 54 }

// kernel: generator_a2b.50
= control target key start
LH: loop header
LB: loop body
LE: loop exit
PB: predicated region body
PF: predicated region fallthrough
CT: control target
= control target key end

     0   :  { %s480_s6 = smov 0   ;;  %s482_s7 = smov 0   ;;  %s520_s0 = inlined_call_operand.vmem [shape: bf16[2,64,128], index: 0, kind: input, shape index: {}]   ;;  %s521_s1 = inlined_call_operand.vmem [shape: bf16[2,64,128], index: 1, kind: output, shape index: {}]  }
   0x1   :  { %s484_s8 = smov 0  }
   0x2 LB: > { %s23_s9 = sadd.s32 1, %s464_s7  ;;  %p353_p0 = scmp.ge.s32.totalorder %s468_s8, 1  ;;  %s468_s8 = sphi %s484_s8, %s11_s8   ;;  %s464_s7 = sphi %s482_s7, %s523_s7   ;;  %s460_s6 = sphi %s480_s6, %s522_s6  }
   0x3   : > { %p25_p1 = scmp.ge.s32.totalorder %s23_s9, 2  ;;  %p106_p2 = scmp.lt.s32.totalorder %s468_s8, 3 }
   0x5   : > { %s525_s9 = smov (%p25_p1, %s23_s9), 0  ;;  %p107_p3 = pnand %p353_p0, %p106_p2 }
   0x6   : > { %p132_p4 = scmp.lt.s32.totalorder (!%p107_p3), %s460_s6, 1 }
   0x7   : > { %110 = sbr.rel (%p107_p3) target bundleno = 101 (0x65), region = 24 }
   0xe   : > { %s527_s6 = smov (!%p132_p4, %s460_s6), 1 }
   0xf   : > { %s368_s10 = sshll.u32 %s527_s6, 5 }
  0x10   : > { %s139_s13 = scalar_lea.vmem %s520_s0, %s368_s10  ;;  %s147_s16 = scalar_lea.vmem %s521_s1, %s368_s10 }
  0x11   : > { %v379_v0 = vld [vmem:[%s139_s13] sm:$0xff]   ;;  %v414_v1 = vld [vmem:[%s139_s13 + $0x8] sm:$0xff]   ;;  %v415_v5 = vld [vmem:[%s139_s13 + $0x10] sm:$0xff]  }
  0x12   : > { %v380_v2 = vunpack.c.l.bf16 %v379_v0  ;;  %v381_v3 = vunpack.c.h.bf16 %v379_v0  ;;  %v384_v4 = vunpack.c.l.bf16 %v414_v1  ;;  %v385_v6 = vunpack.c.h.bf16 %v414_v1  ;;  %v416_v10 = vld [vmem:[%s139_s13 + $0x18] sm:$0xff]  }
  0x13   : > { %v388_v8 = vunpack.c.l.bf16 %v415_v5  ;;  %v389_v11 = vunpack.c.h.bf16 %v415_v5  ;;  %v392_v13 = vunpack.c.l.bf16 %v416_v10  ;;  %v393_v15 = vunpack.c.h.bf16 %v416_v10 }
  0x14   : > { %v164_v7 = vadd.f32 %v381_v3, %v380_v2 }
  0x16   : > { %v165_v9 = vadd.f32 %v384_v4, %v164_v7 }
  0x18   : > { %v166_v12 = vadd.f32 %v385_v6, %v165_v9 }
  0x1a   : > { %v167_v14 = vadd.f32 %v388_v8, %v166_v12 }
  0x1c   : > { %v168_v16 = vadd.f32 %v389_v11, %v167_v14 }
  0x1e   : > { %v169_v17 = vadd.f32 %v392_v13, %v168_v16 }
  0x20   : > { %v170_v18 = vadd.f32 %v393_v15, %v169_v17 }
  0x22   : > { %v171_v19 = vrot.slane %v170_v18, 4 }
  0x24   : > { %v172_v20 = vadd.f32 %v171_v19, %v170_v18 }
  0x26   : > { %v173_v21 = vrot.slane %v172_v20, 2 }
  0x28   : > { %v174_v22 = vadd.f32 %v173_v21, %v172_v20 }
  0x2a   : > { %v175_v23 = vrot.slane %v174_v22, 1 }
  0x2c   : > { %v176_v24 = vadd.f32 %v175_v23, %v174_v22 }
  0x2e   : > { %v177_v25 = vmul.f32 0.015625, %v176_v24 }
  0x30   : > { %v178_v26 = vsub.f32 %v380_v2, %v177_v25  ;;  %v179_v27 = vsub.f32 %v381_v3, %v177_v25  ;;  %v180_v28 = vsub.f32 %v384_v4, %v177_v25  ;;  %v181_v29 = vsub.f32 %v385_v6, %v177_v25 }
  0x31   : > { %v182_v30 = vsub.f32 %v388_v8, %v177_v25  ;;  %v183_v34 = vsub.f32 %v389_v11, %v177_v25  ;;  %v184_v37 = vsub.f32 %v392_v13, %v177_v25  ;;  %v185_v40 = vsub.f32 %v393_v15, %v177_v25 }
  0x32   : > { %v186_v31 = vmul.f32 %v178_v26, %v178_v26  ;;  %v187_v32 = vmul.f32 %v179_v27, %v179_v27  ;;  %v188_v33 = vmul.f32 %v180_v28, %v180_v28  ;;  %v189_v35 = vmul.f32 %v181_v29, %v181_v29 }
  0x33   : > { %v190_v38 = vmul.f32 %v182_v30, %v182_v30  ;;  %v191_v41 = vmul.f32 %v183_v34, %v183_v34  ;;  %v192_v43 = vmul.f32 %v184_v37, %v184_v37  ;;  %v193_v45 = vmul.f32 %v185_v40, %v185_v40 }
  0x34   : > { %v194_v36 = vadd.f32 %v187_v32, %v186_v31 }
  0x36   : > { %v195_v39 = vadd.f32 %v194_v36, %v188_v33 }
  0x38   : > { %v196_v42 = vadd.f32 %v195_v39, %v189_v35 }
  0x3a   : > { %v197_v44 = vadd.f32 %v196_v42, %v190_v38 }
  0x3c   : > { %v198_v46 = vadd.f32 %v197_v44, %v191_v41 }
  0x3e   : > { %v199_v47 = vadd.f32 %v198_v46, %v192_v43 }
  0x40   : > { %v200_v48 = vadd.f32 %v199_v47, %v193_v45 }
  0x42   : > { %v201_v49 = vrot.slane %v200_v48, 4 }
  0x44   : > { %v202_v50 = vadd.f32 %v201_v49, %v200_v48 }
  0x46   : > { %v203_v51 = vrot.slane %v202_v50, 2 }
  0x48   : > { %v204_v52 = vadd.f32 %v203_v51, %v202_v50 }
  0x4a   : > { %v205_v53 = vrot.slane %v204_v52, 1 }
  0x4c   : > { %v206_v54 = vadd.f32 %v205_v53, %v204_v52 }
  0x4e   : > { %v207_v55 = vmul.f32 0.015625, %v206_v54 }
  0x50   : > { %v208_v56 = vadd.f32 1e-05, %v207_v55 }
  0x52   : > { %444 = vrsqrt.f32 %v208_v56 }
  0x5c   : > { %v445_v57 = vpop.eup %444 }
  0x5d   : > { %v210_v58 = vmul.f32 %v445_v57, %v178_v26  ;;  %v211_v59 = vmul.f32 %v445_v57, %v179_v27  ;;  %v212_v60 = vmul.f32 %v445_v57, %v180_v28  ;;  %v213_v61 = vmul.f32 %v445_v57, %v181_v29 }
  0x5e   : > { %v214_v62 = vmul.f32 %v445_v57, %v182_v30  ;;  %v215_v63 = vmul.f32 %v445_v57, %v183_v34  ;;  %v216_v0 = vmul.f32 %v445_v57, %v184_v37  ;;  %v217_v1 = vmul.f32 %v445_v57, %v185_v40 }
  0x5f   : > { %v218_v2 = vmax.f32 %v210_v58, 0.0  ;;  %v219_v3 = vmax.f32 %v211_v59, 0.0  ;;  %v220_v4 = vmax.f32 %v212_v60, 0.0  ;;  %v221_v5 = vmax.f32 %v213_v61, 0.0 }
  0x60   : > { %v222_v6 = vmax.f32 %v214_v62, 0.0  ;;  %v223_v7 = vmax.f32 %v215_v63, 0.0  ;;  %v224_v8 = vmax.f32 %v216_v0, 0.0  ;;  %v225_v9 = vmax.f32 %v217_v1, 0.0 }
  0x61   : > { %v397_v10 = vpack.c.bf16 %v219_v3, %v218_v2  ;;  %v402_v11 = vpack.c.bf16 %v221_v5, %v220_v4 }
  0x62   : > { %v407_v12 = vpack.c.bf16 %v223_v7, %v222_v6  ;;  %v412_v13 = vpack.c.bf16 %v225_v9, %v224_v8 }
  0x63   : > { %398 = vst [vmem:[%s147_s16] sm:$0xff] %v397_v10   ;;  %417 = vst [vmem:[%s147_s16 + $0x8] sm:$0xff] %v402_v11  }
  0x64   : > { %418 = vst [vmem:[%s147_s16 + $0x10] sm:$0xff] %v407_v12   ;;  %419 = vst [vmem:[%s147_s16 + $0x18] sm:$0xff] %v412_v13  }
  0x65 PF: > { %s11_s8 = sadd.s32 1, %s468_s8   ;;  %s522_s6 = smov %s464_s7 }
  0x66   : > { %p8_p5 = scmp.ge.s32.totalorder %s11_s8, 4   ;;  %s523_s7 = smov %s525_s9 }
  0x68   :  { %10 = sbr.rel (!%p8_p5) target bundleno = 2 (0x2), region = 54 }

// kernel: generator_a2b.49
= control target key start
LH: loop header
LB: loop body
LE: loop exit
PB: predicated region body
PF: predicated region fallthrough
CT: control target
= control target key end

     0   :  { %s1753_s1 = inlined_call_operand.vmem [shape: bf16[640,128], index: 1, kind: input, shape index: {}]   ;;  %s1754_s0 = inlined_call_operand.vmem [shape: bf16[128,640], index: 0, kind: input, shape index: {}]   ;;  %s1755_s2 = inlined_call_operand.vmem [shape: f32[1,128], index: 2, kind: input, shape index: {}]   ;;  %s1756_s3 = inlined_call_operand.vmem [shape: bf16[128,128], index: 3, kind: output, shape index: {}]  }
   0x1   :  { %v1325_v0 = vld [vmem:[%s1753_s1 + $0x40] sm:$0xff]   ;;  %v1329_v4 = vld [vmem:[%s1753_s1 + $0x48] sm:$0xff]   ;;  %v1333_v8 = vld [vmem:[%s1753_s1 + $0x50] sm:$0xff]  }
   0x2   :  { %v1326_v1 = vld [vmem:[%s1753_s1 + $0xc0] sm:$0xff]   ;;  %1133 = vmatprep.subr.bf16.mxu0 %v1325_v0  ;;  %v1330_v5 = vld [vmem:[%s1753_s1 + $0xc8] sm:$0xff]   ;;  %v1334_v9 = vld [vmem:[%s1753_s1 + $0xd0] sm:$0xff]  }
   0x3   :  { %v1327_v2 = vld [vmem:[%s1753_s1] sm:$0xff]   ;;  %1197 = vmatprep.subr.bf16.mxu1 %v1326_v1  ;;  %v1331_v6 = vld [vmem:[%s1753_s1 + $0x8] sm:$0xff]   ;;  %v1335_v10 = vld [vmem:[%s1753_s1 + $0x10] sm:$0xff]  }
   0x4   :  { %v1328_v3 = vld [vmem:[%s1753_s1 + $0x80] sm:$0xff]   ;;  %1134 = vmatpush3.bf16.msra.mxu0 %v1327_v2  ;;  %v1332_v7 = vld [vmem:[%s1753_s1 + $0x88] sm:$0xff]   ;;  %v1336_v11 = vld [vmem:[%s1753_s1 + $0x90] sm:$0xff]  }
   0x5   :  { %1198 = vmatpush3.bf16.msra.mxu1 %v1328_v3  ;;  %1135 = vmatprep.subr.bf16.mxu0 %v1329_v4  ;;  %v1337_v12 = vld [vmem:[%s1753_s1 + $0x58] sm:$0xff]   ;;  %v1341_v16 = vld [vmem:[%s1753_s1 + $0x60] sm:$0xff]   ;;  %v1345_v20 = vld [vmem:[%s1753_s1 + $0x68] sm:$0xff]  }
   0x6   :  { %1199 = vmatprep.subr.bf16.mxu1 %v1330_v5  ;;  %v1338_v13 = vld [vmem:[%s1753_s1 + $0xd8] sm:$0xff]   ;;  %v1342_v17 = vld [vmem:[%s1753_s1 + $0xe0] sm:$0xff]   ;;  %v1346_v21 = vld [vmem:[%s1753_s1 + $0xe8] sm:$0xff]  }
   0x7   :  { %v1339_v14 = vld [vmem:[%s1753_s1 + $0x18] sm:$0xff]   ;;  %v1343_v18 = vld [vmem:[%s1753_s1 + $0x20] sm:$0xff]   ;;  %v1347_v22 = vld [vmem:[%s1753_s1 + $0x28] sm:$0xff]  }
   0x8   :  { %1136 = vmatpush3.bf16.msra.mxu0 %v1331_v6  ;;  %v1340_v15 = vld [vmem:[%s1753_s1 + $0x98] sm:$0xff]   ;;  %v1344_v19 = vld [vmem:[%s1753_s1 + $0xa0] sm:$0xff]   ;;  %v1348_v23 = vld [vmem:[%s1753_s1 + $0xa8] sm:$0xff]  }
   0x9   :  { %1200 = vmatpush3.bf16.msra.mxu1 %v1332_v7  ;;  %1137 = vmatprep.subr.bf16.mxu0 %v1333_v8  ;;  %v1349_v24 = vld [vmem:[%s1753_s1 + $0x70] sm:$0xff]   ;;  %v1353_v28 = vld [vmem:[%s1753_s1 + $0x78] sm:$0xff]   ;;  %v1362_v35 = vld [vmem:[%s1754_s0 + $0xc] ss:$20 sps:$4 sm:$0xff]  }
   0xa   :  { %1201 = vmatprep.subr.bf16.mxu1 %v1334_v9  ;;  %v1350_v25 = vld [vmem:[%s1753_s1 + $0xf0] sm:$0xff]   ;;  %v1354_v29 = vld [vmem:[%s1753_s1 + $0xf8] sm:$0xff]   ;;  %v1363_v36 = vld [vmem:[%s1753_s1 + $0x100] sm:$0xff]   ;;  %727 = vmatprep.mubr.bf16.mxu1 %v1362_v35 }
   0xb   :  { %v1351_v26 = vld [vmem:[%s1753_s1 + $0x30] sm:$0xff]   ;;  %v1355_v30 = vld [vmem:[%s1753_s1 + $0x38] sm:$0xff]   ;;  %v1364_v37 = vld [vmem:[%s1754_s0 + $0x2c] ss:$20 sps:$4 sm:$0xff]  }
   0xc   :  { %1138 = vmatpush3.bf16.msra.mxu0 %v1335_v10  ;;  %v1352_v27 = vld [vmem:[%s1753_s1 + $0xb0] sm:$0xff]   ;;  %v1356_v31 = vld [vmem:[%s1753_s1 + $0xb8] sm:$0xff]   ;;  %v1370_v39 = vld [vmem:[%s1753_s1 + $0x108] sm:$0xff]  }
   0xd   :  { %1202 = vmatpush3.bf16.msra.mxu1 %v1336_v11  ;;  %1139 = vmatprep.subr.bf16.mxu0 %v1337_v12  ;;  %v1357_v32 = vld [vmem:[%s1754_s0] ss:$20 sps:$4 sm:$0xff]   ;;  %v1359_v33 = vld [vmem:[%s1754_s0 + $0x4] ss:$20 sps:$4 sm:$0xff]   ;;  %v1360_v34 = vld [vmem:[%s1754_s0 + $0x8] ss:$20 sps:$4 sm:$0xff]  }
   0xe   :  { %1203 = vmatprep.subr.bf16.mxu1 %v1338_v13  ;;  %630 = vmatprep.mubr.bf16.mxu0 %v1359_v33  ;;  %v1366_v38 = vld [vmem:[%s1754_s0 + $0x34] ss:$20 sps:$4 sm:$0xff]   ;;  %v1369_v41 = vld [vmem:[%s1754_s0 + $0x30] ss:$20 sps:$4 sm:$0xff]   ;;  %v1384_v45 = vld [vmem:[%s1753_s1 + $0x118] sm:$0xff]  }
   0xf   :  { %v1368_v40 = vld [vmem:[%s1754_s0 + $0x28] ss:$20 sps:$4 sm:$0xff]   ;;  %v1377_v44 = vld [vmem:[%s1753_s1 + $0x110] sm:$0xff]   ;;  %v1376_v47 = vld [vmem:[%s1754_s0 + $0x58] ss:$20 sps:$4 sm:$0xff]  }
  0x10   :  { %1140 = vmatpush3.bf16.msra.mxu0 %v1339_v14  ;;  %v1371_v42 = vld [vmem:[%s1754_s0 + $0x54] ss:$20 sps:$4 sm:$0xff]   ;;  %v1373_v43 = vld [vmem:[%s1754_s0 + $0x5c] ss:$20 sps:$4 sm:$0xff]   ;;  %v1380_v49 = vld [vmem:[%s1754_s0 + $0x84] ss:$20 sps:$4 sm:$0xff]  }
  0x11   :  { %1204 = vmatpush3.bf16.msra.mxu1 %v1340_v15  ;;  %1141 = vmatprep.subr.bf16.mxu0 %v1341_v16  ;;  %v1375_v46 = vld [vmem:[%s1754_s0 + $0x50] ss:$20 sps:$4 sm:$0xff]   ;;  %v1398_v51 = vld [vmem:[%s1753_s1 + $0x128] sm:$0xff]   ;;  %v1383_v53 = vld [vmem:[%s1754_s0 + $0x80] ss:$20 sps:$4 sm:$0xff]  }
  0x12   :  { %1205 = vmatprep.subr.bf16.mxu1 %v1342_v17  ;;  %v1378_v48 = vld [vmem:[%s1754_s0 + $0x7c] ss:$20 sps:$4 sm:$0xff]   ;;  %v1391_v50 = vld [vmem:[%s1753_s1 + $0x120] sm:$0xff]   ;;  %v1382_v52 = vld [vmem:[%s1754_s0 + $0x78] ss:$20 sps:$4 sm:$0xff]  }
  0x13   :  { %v1385_v54 = vld [vmem:[%s1754_s0 + $0xa4] ss:$20 sps:$4 sm:$0xff]   ;;  %v1405_v55 = vld [vmem:[%s1753_s1 + $0x130] sm:$0xff]   ;;  %v1387_v56 = vld [vmem:[%s1754_s0 + $0xac] ss:$20 sps:$4 sm:$0xff]  }
  0x14   :  { %1142 = vmatpush3.bf16.msra.mxu0 %v1343_v18  ;;  %v1412_v57 = vld [vmem:[%s1753_s1 + $0x138] sm:$0xff]   ;;  %v1389_v58 = vld [vmem:[%s1754_s0 + $0xa0] ss:$20 sps:$4 sm:$0xff]   ;;  %v1397_v63 = vld [vmem:[%s1754_s0 + $0xd0] ss:$20 sps:$4 sm:$0xff]  }
  0x15   :  { %1206 = vmatpush3.bf16.msra.mxu1 %v1344_v19  ;;  %1143 = vmatprep.subr.bf16.mxu0 %v1345_v20  ;;  %v1390_v59 = vld [vmem:[%s1754_s0 + $0xa8] ss:$20 sps:$4 sm:$0xff]   ;;  %v1392_v60 = vld [vmem:[%s1754_s0 + $0xcc] ss:$20 sps:$4 sm:$0xff]   ;;  %v1403_v2 = vld [vmem:[%s1754_s0 + $0xf0] ss:$20 sps:$4 sm:$0xff]  }
  0x16   :  { %1207 = vmatprep.subr.bf16.mxu1 %v1346_v21  ;;  %v1394_v61 = vld [vmem:[%s1754_s0 + $0xd4] ss:$20 sps:$4 sm:$0xff]   ;;  %v1401_v1 = vld [vmem:[%s1754_s0 + $0xfc] ss:$20 sps:$4 sm:$0xff]   ;;  %v1404_v3 = vld [vmem:[%s1754_s0 + $0xf8] ss:$20 sps:$4 sm:$0xff]  }
  0x17   :  { %v1396_v62 = vld [vmem:[%s1754_s0 + $0xc8] ss:$20 sps:$4 sm:$0xff]   ;;  %v1408_v5 = vld [vmem:[%s1754_s0 + $0x124] ss:$20 sps:$4 sm:$0xff]   ;;  %v1411_v7 = vld [vmem:[%s1754_s0 + $0x120] ss:$20 sps:$4 sm:$0xff]  }
  0x18   :  { %1144 = vmatpush3.bf16.msra.mxu0 %v1347_v22  ;;  %v1399_v0 = vld [vmem:[%s1754_s0 + $0xf4] ss:$20 sps:$4 sm:$0xff]   ;;  %v1406_v4 = vld [vmem:[%s1754_s0 + $0x11c] ss:$20 sps:$4 sm:$0xff]   ;;  %v1410_v6 = vld [vmem:[%s1754_s0 + $0x118] ss:$20 sps:$4 sm:$0xff]  }
  0x19   :  { %1208 = vmatpush3.bf16.msra.mxu1 %v1348_v23  ;;  %1145 = vmatprep.subr.bf16.mxu0 %v1349_v24  ;;  %v1413_v8 = vld [vmem:[%s1754_s0 + $0x10] ss:$20 sps:$4 sm:$0xff]   ;;  %v1415_v10 = vld [vmem:[%s1754_s0 + $0x38] ss:$20 sps:$4 sm:$0xff]   ;;  %v1417_v12 = vld [vmem:[%s1754_s0 + $0x60] ss:$20 sps:$4 sm:$0xff]  }
  0x1a   :  { %1209 = vmatprep.subr.bf16.mxu1 %v1350_v25  ;;  %v1414_v9 = vld [vmem:[%s1754_s0 + $0xb0] ss:$20 sps:$4 sm:$0xff]   ;;  %v1416_v11 = vld [vmem:[%s1754_s0 + $0xd8] ss:$20 sps:$4 sm:$0xff]   ;;  %v1418_v13 = vld [vmem:[%s1754_s0 + $0x100] ss:$20 sps:$4 sm:$0xff]  }
  0x1b   :  { %v1419_v14 = vld [vmem:[%s1754_s0 + $0x88] ss:$20 sps:$4 sm:$0xff]   ;;  %v1684_v18 = vld [vmem:[%s1755_s2] ss:$0 sm:$0xff] }
  0x1c   :  { %1146 = vmatpush3.bf16.msra.mxu0 %v1351_v26  ;;  %v1420_v15 = vld [vmem:[%s1754_s0 + $0x128] ss:$20 sps:$4 sm:$0xff]  }
  0x1d   :  { %1210 = vmatpush3.bf16.msra.mxu1 %v1352_v27  ;;  %1147 = vmatprep.subr.bf16.mxu0 %v1353_v28 }
  0x1e   :  { %1211 = vmatprep.subr.bf16.mxu1 %v1354_v29 }
  0x20   :  { %1148 = vmatpush3.bf16.msra.mxu0 %v1355_v30 }
  0x21   :  { %1212 = vmatpush3.bf16.msra.mxu1 %v1356_v31  ;;  %1277 = vmatprep.subr.bf16.mxu0 %v1363_v36 }
  0x22   :  { %1309 = vmatprep.subr.bf16.mxu1 %v1363_v36 }
  0x23   :  { %631 = vmatmul.mubr.bf16.vlgmr.msra.gmra.mrb[0].mxu0 %v1357_v32 }
  0x24   :  { %728 = vmatmul.mubr.bf16.vlgmr.msra.gmra.mrb[0].mxu1 %v1360_v34  ;;  %1278 = vmatpush3.bf16.msra.mxu0 %v1363_v36 }
  0x25   :  { %1317 = vmatpush3.bf16.msra.mxu1 %v1363_v36  ;;  %638 = vmatprep.mubr.bf16.mxu0 %v1364_v37 }
  0x26   :  { %735 = vmatprep.mubr.bf16.mxu1 %v1366_v38  ;;  %1279 = vmatprep.subr.bf16.mxu0 %v1370_v39 }
  0x27   :  { %1310 = vmatprep.subr.bf16.mxu1 %v1370_v39 }
  0x28   :  { %1280 = vmatpush3.bf16.msra.mxu0 %v1370_v39 }
  0x29   :  { %1318 = vmatpush3.bf16.msra.mxu1 %v1370_v39  ;;  %1281 = vmatprep.subr.bf16.mxu0 %v1377_v44 }
  0x2a   :  { %1311 = vmatprep.subr.bf16.mxu1 %v1377_v44 }
  0x2b   :  { %639 = vmatmul.mubr.bf16.gmra.mrb[4].mxu0 %v1368_v40 }
  0x2c   :  { %736 = vmatmul.mubr.bf16.gmra.mrb[4].mxu1 %v1369_v41  ;;  %646 = vmatprep.mubr.bf16.mxu0 %v1371_v42 }
  0x2d   :  { %743 = vmatprep.mubr.bf16.mxu1 %v1373_v43  ;;  %1282 = vmatpush3.bf16.msra.mxu0 %v1377_v44 }
  0x2e   :  { %1319 = vmatpush3.bf16.msra.mxu1 %v1377_v44  ;;  %1283 = vmatprep.subr.bf16.mxu0 %v1384_v45 }
  0x2f   :  { %1312 = vmatprep.subr.bf16.mxu1 %v1384_v45 }
  0x31   :  { %1284 = vmatpush3.bf16.msra.mxu0 %v1384_v45 }
  0x32   :  { %1320 = vmatpush3.bf16.msra.mxu1 %v1384_v45  ;;  %1285 = vmatprep.subr.bf16.mxu0 %v1391_v50 }
  0x33   :  { %647 = vmatmul.mubr.bf16.gmra.mrb[8].mxu0 %v1375_v46  ;;  %1313 = vmatprep.subr.bf16.mxu1 %v1391_v50 }
  0x34   :  { %744 = vmatmul.mubr.bf16.gmra.mrb[8].mxu1 %v1376_v47  ;;  %654 = vmatprep.mubr.bf16.mxu0 %v1378_v48 }
  0x35   :  { %751 = vmatprep.mubr.bf16.mxu1 %v1380_v49  ;;  %1286 = vmatpush3.bf16.msra.mxu0 %v1391_v50 }
  0x36   :  { %1321 = vmatpush3.bf16.msra.mxu1 %v1391_v50  ;;  %1287 = vmatprep.subr.bf16.mxu0 %v1398_v51 }
  0x37   :  { %1314 = vmatprep.subr.bf16.mxu1 %v1398_v51 }
  0x39   :  { %1288 = vmatpush3.bf16.msra.mxu0 %v1398_v51 }
  0x3a   :  { %1322 = vmatpush3.bf16.msra.mxu1 %v1398_v51  ;;  %1289 = vmatprep.subr.bf16.mxu0 %v1405_v55 }
  0x3b   :  { %655 = vmatmul.mubr.bf16.gmra.mrb[12].mxu0 %v1382_v52  ;;  %1315 = vmatprep.subr.bf16.mxu1 %v1405_v55 }
  0x3c   :  { %752 = vmatmul.mubr.bf16.gmra.mrb[12].mxu1 %v1383_v53  ;;  %662 = vmatprep.mubr.bf16.mxu0 %v1385_v54 }
  0x3d   :  { %759 = vmatprep.mubr.bf16.mxu1 %v1387_v56  ;;  %1290 = vmatpush3.bf16.msra.mxu0 %v1405_v55 }
  0x3e   :  { %1323 = vmatpush3.bf16.msra.mxu1 %v1405_v55  ;;  %1291 = vmatprep.subr.bf16.mxu0 %v1412_v57 }
  0x3f   :  { %1316 = vmatprep.subr.bf16.mxu1 %v1412_v57 }
  0x41   :  { %1292 = vmatpush3.bf16.msra.mxu0 %v1412_v57 }
  0x42   :  { %1324 = vmatpush3.bf16.msra.mxu1 %v1412_v57 }
  0x43   :  { %663 = vmatmul.mubr.bf16.gmra.mrb[16].mxu0 %v1389_v58 }
  0x44   :  { %760 = vmatmul.mubr.bf16.gmra.mrb[16].mxu1 %v1390_v59  ;;  %670 = vmatprep.mubr.bf16.mxu0 %v1392_v60 }
  0x45   :  { %767 = vmatprep.mubr.bf16.mxu1 %v1394_v61 }
  0x4b   :  { %671 = vmatmul.mubr.bf16.gmra.mrb[20].mxu0 %v1396_v62 }
  0x4c   :  { %768 = vmatmul.mubr.bf16.gmra.mrb[20].mxu1 %v1397_v63  ;;  %678 = vmatprep.mubr.bf16.mxu0 %v1399_v0 }
  0x4d   :  { %775 = vmatprep.mubr.bf16.mxu1 %v1401_v1 }
  0x53   :  { %679 = vmatmul.mubr.bf16.gmra.mrb[24].mxu0 %v1403_v2 }
  0x54   :  { %776 = vmatmul.mubr.bf16.gmra.mrb[24].mxu1 %v1404_v3  ;;  %686 = vmatprep.mubr.bf16.mxu0 %v1406_v4 }
  0x55   :  { %783 = vmatprep.mubr.bf16.mxu1 %v1408_v5 }
  0x5b   :  { %687 = vmatmul.mubr.bf16.gmra.mrb[28].mxu0 %v1410_v6 }
  0x5c   :  { %784 = vmatmul.mubr.bf16.gmra.mrb[28].mxu1 %v1411_v7  ;;  %1293 = vmatprep.mubr.bf16.mxu0 %v1413_v8 }
  0x5d   :  { %1301 = vmatprep.mubr.bf16.mxu1 %v1414_v9 }
  0x63   :  { %1294 = vmatmul.mubr.bf16.vlgmr.msra.gmra.mrb[32].mxu0 %v1415_v10 }
  0x64   :  { %1302 = vmatmul.mubr.bf16.vlgmr.msra.gmra.mrb[32].mxu1 %v1416_v11  ;;  %1297 = vmatprep.mubr.bf16.mxu0 %v1417_v12 }
  0x65   :  { %1305 = vmatprep.mubr.bf16.mxu1 %v1418_v13 }
  0x6b   :  { %1298 = vmatmul.mubr.bf16.gmra.mrb[36].mxu0 %v1419_v14 }
  0x6c   :  { %1306 = vmatmul.mubr.bf16.gmra.mrb[36].mxu1 %v1420_v15 }
  0xf6   :  { %v1149_v16 = vpop.f32.mrb[0].mxu0 }
  0xf7   :  { %v1213_v17 = vpop.f32.mrb[0].mxu1  ;;  %v1150_v19 = vpop.f32.mrb[1].mxu0 }
  0xf8   :  { %v1151_v20 = vadd.f32 %v1150_v19, %v1149_v16  ;;  %v1214_v21 = vpop.f32.mrb[1].mxu1  ;;  %v1152_v22 = vpop.f32.mrb[2].mxu0 }
  0xf9   :  { %v1215_v23 = vadd.f32 %v1214_v21, %v1213_v17  ;;  %v1216_v24 = vpop.f32.mrb[2].mxu1  ;;  %v1153_v25 = vpop.f32.mrb[3].mxu0 }
  0xfa   :  { %v633_v26 = vadd.f32 %v1151_v20, %v1684_v18  ;;  %v1154_v27 = vadd.f32 %v1153_v25, %v1152_v22  ;;  %v1217_v28 = vpop.f32.mrb[3].mxu1 }
  0xfb   :  { %v1218_v29 = vadd.f32 %v1217_v28, %v1216_v24 }
  0xfc   :  { %v636_v30 = vadd.f32 %v1154_v27, %v1684_v18  ;;  %v1688_v31 = vadd.f32 %v1215_v23, %v633_v26 }
  0xfe   :  { %v1155_v32 = vpop.f32.mrb[4].mxu0  ;;  %v1690_v33 = vadd.f32 %v1218_v29, %v636_v30 }
  0xff   :  { %v1219_v34 = vpop.f32.mrb[4].mxu1  ;;  %v1156_v35 = vpop.f32.mrb[5].mxu0 }
 0x100   :  { %v1157_v36 = vadd.f32 %v1156_v35, %v1155_v32  ;;  %v1220_v37 = vpop.f32.mrb[5].mxu1  ;;  %v1158_v38 = vpop.f32.mrb[6].mxu0 }
 0x101   :  { %v1221_v39 = vadd.f32 %v1220_v37, %v1219_v34  ;;  %v1222_v40 = vpop.f32.mrb[6].mxu1  ;;  %v1159_v41 = vpop.f32.mrb[7].mxu0 }
 0x102   :  { %v641_v42 = vadd.f32 %v1157_v36, %v1684_v18  ;;  %v1160_v43 = vadd.f32 %v1159_v41, %v1158_v38  ;;  %v1223_v44 = vpop.f32.mrb[7].mxu1 }
 0x103   :  { %v1224_v45 = vadd.f32 %v1223_v44, %v1222_v40 }
 0x104   :  { %v644_v46 = vadd.f32 %v1160_v43, %v1684_v18  ;;  %v1694_v47 = vadd.f32 %v1221_v39, %v641_v42 }
 0x106   :  { %v1161_v48 = vpop.f32.mrb[8].mxu0  ;;  %v1696_v49 = vadd.f32 %v1224_v45, %v644_v46 }
 0x107   :  { %v1225_v50 = vpop.f32.mrb[8].mxu1  ;;  %v1162_v51 = vpop.f32.mrb[9].mxu0 }
 0x108   :  { %v1163_v52 = vadd.f32 %v1162_v51, %v1161_v48  ;;  %v1226_v53 = vpop.f32.mrb[9].mxu1  ;;  %v1164_v54 = vpop.f32.mrb[10].mxu0 }
 0x109   :  { %v1227_v55 = vadd.f32 %v1226_v53, %v1225_v50  ;;  %v1228_v56 = vpop.f32.mrb[10].mxu1  ;;  %v1165_v57 = vpop.f32.mrb[11].mxu0 }
 0x10a   :  { %v649_v58 = vadd.f32 %v1163_v52, %v1684_v18  ;;  %v1166_v59 = vadd.f32 %v1165_v57, %v1164_v54  ;;  %v1229_v60 = vpop.f32.mrb[11].mxu1 }
 0x10b   :  { %v1230_v61 = vadd.f32 %v1229_v60, %v1228_v56 }
 0x10c   :  { %v652_v62 = vadd.f32 %v1166_v59, %v1684_v18  ;;  %v1700_v63 = vadd.f32 %v1227_v55, %v649_v58 }
 0x10e   :  { %v1167_v0 = vpop.f32.mrb[12].mxu0  ;;  %v1702_v1 = vadd.f32 %v1230_v61, %v652_v62 }
 0x10f   :  { %v1231_v2 = vpop.f32.mrb[12].mxu1  ;;  %v1168_v3 = vpop.f32.mrb[13].mxu0 }
 0x110   :  { %v1169_v4 = vadd.f32 %v1168_v3, %v1167_v0  ;;  %v1232_v5 = vpop.f32.mrb[13].mxu1  ;;  %v1170_v6 = vpop.f32.mrb[14].mxu0 }
 0x111   :  { %v1233_v7 = vadd.f32 %v1232_v5, %v1231_v2  ;;  %v1234_v8 = vpop.f32.mrb[14].mxu1  ;;  %v1171_v9 = vpop.f32.mrb[15].mxu0 }
 0x112   :  { %v657_v10 = vadd.f32 %v1169_v4, %v1684_v18  ;;  %v1172_v11 = vadd.f32 %v1171_v9, %v1170_v6  ;;  %v1235_v12 = vpop.f32.mrb[15].mxu1 }
 0x113   :  { %v1236_v13 = vadd.f32 %v1235_v12, %v1234_v8 }
 0x114   :  { %v660_v14 = vadd.f32 %v1172_v11, %v1684_v18  ;;  %v1706_v15 = vadd.f32 %v1233_v7, %v657_v10 }
 0x116   :  { %v1173_v16 = vpop.f32.mrb[16].mxu0  ;;  %v1708_v17 = vadd.f32 %v1236_v13, %v660_v14 }
 0x117   :  { %v1237_v19 = vpop.f32.mrb[16].mxu1  ;;  %v1174_v20 = vpop.f32.mrb[17].mxu0 }
 0x118   :  { %v1175_v21 = vadd.f32 %v1174_v20, %v1173_v16  ;;  %v1238_v22 = vpop.f32.mrb[17].mxu1  ;;  %v1176_v23 = vpop.f32.mrb[18].mxu0 }
 0x119   :  { %v1239_v24 = vadd.f32 %v1238_v22, %v1237_v19  ;;  %v1240_v25 = vpop.f32.mrb[18].mxu1  ;;  %v1177_v26 = vpop.f32.mrb[19].mxu0 }
 0x11a   :  { %v665_v27 = vadd.f32 %v1175_v21, %v1684_v18  ;;  %v1178_v28 = vadd.f32 %v1177_v26, %v1176_v23  ;;  %v1241_v29 = vpop.f32.mrb[19].mxu1 }
 0x11b   :  { %v1242_v30 = vadd.f32 %v1241_v29, %v1240_v25 }
 0x11c   :  { %v668_v32 = vadd.f32 %v1178_v28, %v1684_v18  ;;  %v762_v34 = vadd.f32 %v1239_v24, %v665_v27 }
 0x11e   :  { %v1179_v35 = vpop.f32.mrb[20].mxu0  ;;  %v1712_v36 = vadd.f32 %v1242_v30, %v668_v32 }
 0x11f   :  { %v1243_v37 = vpop.f32.mrb[20].mxu1  ;;  %v1180_v38 = vpop.f32.mrb[21].mxu0 }
 0x120   :  { %v1181_v39 = vadd.f32 %v1180_v38, %v1179_v35  ;;  %v1244_v40 = vpop.f32.mrb[21].mxu1  ;;  %v1182_v41 = vpop.f32.mrb[22].mxu0 }
 0x121   :  { %v1245_v42 = vadd.f32 %v1244_v40, %v1243_v37  ;;  %v1246_v43 = vpop.f32.mrb[22].mxu1  ;;  %v1183_v44 = vpop.f32.mrb[23].mxu0 }
 0x122   :  { %v673_v45 = vadd.f32 %v1181_v39, %v1684_v18  ;;  %v1184_v46 = vadd.f32 %v1183_v44, %v1182_v41  ;;  %v1247_v48 = vpop.f32.mrb[23].mxu1 }
 0x123   :  { %v1248_v50 = vadd.f32 %v1247_v48, %v1246_v43 }
 0x124   :  { %v676_v51 = vadd.f32 %v1184_v46, %v1684_v18  ;;  %v770_v52 = vadd.f32 %v1245_v42, %v673_v45 }
 0x126   :  { %v1185_v53 = vpop.f32.mrb[24].mxu0  ;;  %v773_v54 = vadd.f32 %v1248_v50, %v676_v51 }
 0x127   :  { %v1249_v55 = vpop.f32.mrb[24].mxu1  ;;  %v1186_v56 = vpop.f32.mrb[25].mxu0 }
 0x128   :  { %v1187_v57 = vadd.f32 %v1186_v56, %v1185_v53  ;;  %v1250_v58 = vpop.f32.mrb[25].mxu1  ;;  %v1188_v59 = vpop.f32.mrb[26].mxu0 }
 0x129   :  { %v1251_v60 = vadd.f32 %v1250_v58, %v1249_v55  ;;  %v1252_v61 = vpop.f32.mrb[26].mxu1  ;;  %v1189_v62 = vpop.f32.mrb[27].mxu0 }
 0x12a   :  { %v681_v0 = vadd.f32 %v1187_v57, %v1684_v18  ;;  %v1190_v2 = vadd.f32 %v1189_v62, %v1188_v59  ;;  %v1253_v3 = vpop.f32.mrb[27].mxu1 }
 0x12b   :  { %v1254_v4 = vadd.f32 %v1253_v3, %v1252_v61 }
 0x12c   :  { %v684_v5 = vadd.f32 %v1190_v2, %v1684_v18  ;;  %v778_v6 = vadd.f32 %v1251_v60, %v681_v0 }
 0x12e   :  { %v1191_v7 = vpop.f32.mrb[28].mxu0  ;;  %v781_v8 = vadd.f32 %v1254_v4, %v684_v5 }
 0x12f   :  { %v1255_v9 = vpop.f32.mrb[28].mxu1  ;;  %v1192_v10 = vpop.f32.mrb[29].mxu0 }
 0x130   :  { %v1193_v11 = vadd.f32 %v1192_v10, %v1191_v7  ;;  %v1256_v12 = vpop.f32.mrb[29].mxu1  ;;  %v1194_v13 = vpop.f32.mrb[30].mxu0 }
 0x131   :  { %v1257_v14 = vadd.f32 %v1256_v12, %v1255_v9  ;;  %v1258_v16 = vpop.f32.mrb[30].mxu1  ;;  %v1195_v19 = vpop.f32.mrb[31].mxu0 }
 0x132   :  { %v689_v20 = vadd.f32 %v1193_v11, %v1684_v18  ;;  %v1196_v21 = vadd.f32 %v1195_v19, %v1194_v13  ;;  %v1259_v22 = vpop.f32.mrb[31].mxu1 }
 0x133   :  { %v1260_v23 = vadd.f32 %v1259_v22, %v1258_v16 }
 0x134   :  { %v692_v24 = vadd.f32 %v1196_v21, %v1684_v18  ;;  %v786_v25 = vadd.f32 %v1257_v14, %v689_v20 }
 0x136   :  { %v1295_v26 = vpop.f32.mrb[32].mxu0  ;;  %v789_v27 = vadd.f32 %v1260_v23, %v692_v24 }
 0x137   :  { %v835_v28 = vadd.f32 %v1295_v26, %v1694_v47  ;;  %v1303_v29 = vpop.f32.mrb[32].mxu1  ;;  %v826_v30 = vpop.f32.mrb[33].mxu0 }
 0x138   :  { %v867_v32 = vadd.f32 %v1303_v29, %v770_v52  ;;  %v827_v35 = vadd.f32 %v826_v30, %v1688_v31  ;;  %v858_v37 = vpop.f32.mrb[33].mxu1  ;;  %v1296_v38 = vpop.f32.mrb[34].mxu0 }
 0x139   :  { %v859_v39 = vadd.f32 %v858_v37, %v762_v34  ;;  %v838_v40 = vadd.f32 %v1296_v38, %v1696_v49  ;;  %v1304_v41 = vpop.f32.mrb[34].mxu1  ;;  %v829_v42 = vpop.f32.mrb[35].mxu0 }
 0x13a   :  { %v870_v43 = vadd.f32 %v1304_v41, %v773_v54  ;;  %v830_v18 = vadd.f32 %v829_v42, %v1690_v33  ;;  %v861_v44 = vpop.f32.mrb[35].mxu1 }
 0x13b   :  { %v1094_v45 = vpack.c.bf16 %v838_v40, %v835_v28  ;;  %v862_v46 = vadd.f32 %v861_v44, %v1712_v36 }
 0x13c   :  { %v1114_v47 = vpack.c.bf16 %v870_v43, %v867_v32  ;;  %v1089_v48 = vpack.c.bf16 %v830_v18, %v827_v35 }
 0x13d   :  { %1126 = vst [vmem:[%s1756_s3 + $0x8] sm:$0xff] %v1094_v45   ;;  %v1109_v31 = vpack.c.bf16 %v862_v46, %v859_v39 }
 0x13e   :  { %1130 = vst [vmem:[%s1756_s3 + $0x28] sm:$0xff] %v1114_v47   ;;  %1090 = vst [vmem:[%s1756_s3] sm:$0xff] %v1089_v48   ;;  %v1299_v33 = vpop.f32.mrb[36].mxu0 }
 0x13f   :  { %1129 = vst [vmem:[%s1756_s3 + $0x20] sm:$0xff] %v1109_v31   ;;  %v851_v49 = vadd.f32 %v1299_v33, %v1706_v15  ;;  %v1307_v34 = vpop.f32.mrb[36].mxu1  ;;  %v842_v36 = vpop.f32.mrb[37].mxu0 }
 0x140   :  { %v883_v50 = vadd.f32 %v1307_v34, %v786_v25  ;;  %v843_v51 = vadd.f32 %v842_v36, %v1700_v63  ;;  %v874_v52 = vpop.f32.mrb[37].mxu1  ;;  %v1300_v53 = vpop.f32.mrb[38].mxu0 }
 0x141   :  { %v875_v54 = vadd.f32 %v874_v52, %v778_v6  ;;  %v854_v55 = vadd.f32 %v1300_v53, %v1708_v17  ;;  %v1308_v56 = vpop.f32.mrb[38].mxu1  ;;  %v845_v57 = vpop.f32.mrb[39].mxu0 }
 0x142   :  { %v886_v58 = vadd.f32 %v1308_v56, %v789_v27  ;;  %v846_v59 = vadd.f32 %v845_v57, %v1702_v1  ;;  %v877_v60 = vpop.f32.mrb[39].mxu1 }
 0x143   :  { %v1104_v61 = vpack.c.bf16 %v854_v55, %v851_v49  ;;  %v878_v62 = vadd.f32 %v877_v60, %v781_v8 }
 0x144   :  { %v1124_v0 = vpack.c.bf16 %v886_v58, %v883_v50  ;;  %v1099_v15 = vpack.c.bf16 %v846_v59, %v843_v51 }
 0x145   :  { %1128 = vst [vmem:[%s1756_s3 + $0x18] sm:$0xff] %v1104_v61   ;;  %v1119_v63 = vpack.c.bf16 %v878_v62, %v875_v54 }
 0x146   :  { %1132 = vst [vmem:[%s1756_s3 + $0x38] sm:$0xff] %v1124_v0   ;;  %1127 = vst [vmem:[%s1756_s3 + $0x10] sm:$0xff] %v1099_v15  }
 0x147   :  { %1131 = vst [vmem:[%s1756_s3 + $0x30] sm:$0xff] %v1119_v63  }

// kernel: generator_a2b.52
= control target key start
LH: loop header
LB: loop body
LE: loop exit
PB: predicated region body
PF: predicated region fallthrough
CT: control target
= control target key end

     0   :  { %s492_s6 = smov 0   ;;  %s494_s7 = smov 0   ;;  %s592_s0 = inlined_call_operand.vmem [shape: bf16[2,16,256], index: 0, kind: input, shape index: {}]   ;;  %s593_s1 = inlined_call_operand.vmem [shape: bf16[2,16,256], index: 1, kind: output, shape index: {}]  }
   0x1   :  { %s496_s8 = smov 0   ;;  %s498_s9 = smov 0  }
   0x2   :  { %s500_s10 = smov 0   ;;  %s502_s11 = smov 0  }
   0x3   :  { %s504_s12 = smov 0  }
   0x4 LB: > { %s20_s13 = sadd.s32 1, %s472_s10  ;;  %s23_s14 = sadd.s32 1, %s476_s11  ;;  %s480_s12 = sphi %s504_s12, %s11_s12   ;;  %s476_s11 = sphi %s502_s11, %s600_s11   ;;  %s472_s10 = sphi %s500_s10, %s599_s10   ;;  %s468_s9 = sphi %s498_s9, %s598_s9   ;;  %s464_s8 = sphi %s496_s8, %s597_s8   ;;  %s460_s7 = sphi %s494_s7, %s596_s7   ;;  %s456_s6 = sphi %s492_s6, %s595_s6  }
   0x5   : > { %p21_p0 = scmp.ge.s32.totalorder %s20_s13, 2  ;;  %s340_s15 = sadd.s32 4294967295, %s480_s12  }
   0x6   : > { %p39_p1 = scmp.ne.s32.totalorder %s460_s7, %s456_s6  ;;  %p40_p2 = scmp.eq.s32.totalorder %s480_s12, 0 }
   0x7   : > { %s602_s13 = smov (%p21_p0, %s20_s13), 0  ;;  %s604_s14 = smov (!%p21_p0, %s23_s14), %s476_s11 }
   0x8   : > { %p25_p3 = scmp.ge.s32.totalorder %s604_s14, 2  ;;  %p71_p4 = scmp.eq.s32.totalorder %s340_s15, 3 }
   0x9   : > { %s28_s16 = ssub.s32 %s472_s10, %s602_s13  ;;  %p41_p5 = por %p40_p2, %p39_p1 }
   0xa   : > { %s606_s14 = smov (%p25_p3, %s604_s14), 0  ;;  %p540_p6 = por %p71_p4, %p39_p1 }
   0xb   : > { %s27_s18 = ssub.s32 %s476_s11, %s606_s14  ;;  %s32_s20 = sadd.s32 1, %s460_s7 }
   0xc   : > { %s29_s19 = sor.u32 %s28_s16, %s27_s18  ;;  %p343_p8 = scmp.ge.s32.totalorder %s480_s12, 4 }
   0xd   : > { %p30_p7 = scmp.eq.s32.totalorder %s29_s19, 0 }
   0xe   : > { %93 = sbr.rel (%p343_p8) target bundleno = 28 (0x1c), region = 16 }
   0xf   : > { %s548_s21 = scalar_select %p30_p7, %s460_s7, %s32_s20  }
  0x15   : > { %96 = sbr.rel (!%p41_p5) target bundleno = 28 (0x1c), region = 20  ;;  %s98_s22 = sand.u32 (%p41_p5), 1, %s460_s7  }
  0x16   : > { %s345_s23 = sshll.u32 (%p41_p5), %s476_s11, 2  ;;  %s344_s24 = sshll.u32 (%p41_p5), %s98_s22, 3 }
  0x17   : > { %s102_s25 = sadd.s32 (%p41_p5), %s472_s10, %s345_s23  ;;  %s100_s30 = scalar_lea.vmem (%p41_p5), [#allocation2], %s344_s24 }
  0x18   : > { %s346_s26 = sshll.u32 (%p41_p5), %s102_s25, 2 }
  0x19   : > { %s104_s29 = scalar_lea.vmem (%p41_p5), %s592_s0, %s346_s26 }
  0x1a   : > { %v120_v0 = vld [vmem:[%s104_s29] sm:$0xf] (%p41_p5)  ;;  %v122_v1 = vld [vmem:[%s104_s29 + $0x8] sm:$0xf] (%p41_p5) }
  0x1b   : > { %121 = vst [vmem:[%s100_s30] sm:$0xf] (%p41_p5), %v120_v0  ;;  %123 = vst [vmem:[%s100_s30 + $0x4] sm:$0xf] (%p41_p5), %v122_v1 }
  0x1c PF: > { %p347_p9 = scmp.ge.s32.totalorder %s480_s12, 1  ;;  %p149_p10 = scmp.lt.s32.totalorder %s480_s12, 5 }
  0x1e   : > { %p150_p11 = pnand %p347_p9, %p149_p10 }
  0x1f   : > { %s156_s2 = sand.u32 (!%p150_p11), 1, %s456_s6  }
  0x20   : > { %153 = sbr.rel (%p150_p11) target bundleno = 101 (0x65), region = 61  ;;  %s560_s3 = sshll.u32 (!%p150_p11), %s156_s2, 3 }
  0x21   : > { %s158_s4 = scalar_lea.vmem (!%p150_p11), [#allocation2], %s560_s3  ;;  %s173_s5 = scalar_lea.vmem (!%p150_p11), [#allocation3], %s560_s3 }
  0x22   : > { %v360_v2 = vld [vmem:[%s158_s4] sm:$0xff] (!%p150_p11)  }
  0x23   : > { %v361_v3 = vunpack.c.l.bf16 (!%p150_p11), %v360_v2  ;;  %v362_v4 = vunpack.c.h.bf16 (!%p150_p11), %v360_v2 }
  0x25   : > { %v178_v5 = vadd.f32 (!%p150_p11), %v362_v4, %v361_v3 }
  0x27   : > { %v179_v6 = vrot.slane %v178_v5, 4  ;;  %s353_s6 = sshll.u32 (%p540_p6), %s468_s9, 2 }
  0x28   : > { %s222_s15 = sadd.s32 (%p540_p6), %s464_s8, %s353_s6 }
  0x29   : > { %v180_v7 = vadd.f32 %v179_v6, %v178_v5  ;;  %s354_s16 = sshll.u32 (%p540_p6), %s222_s15, 2 }
  0x2a   : > { %s224_s20 = scalar_lea.vmem (%p540_p6), %s593_s1, %s354_s16 }
  0x2b   : > { %v181_v8 = vrot.slane %v180_v7, 2 }
  0x2d   : > { %v182_v9 = vadd.f32 %v181_v8, %v180_v7 }
  0x2f   : > { %v183_v10 = vrot.slane %v182_v9, 1 }
  0x31   : > { %v184_v11 = vadd.f32 %v183_v10, %v182_v9 }
  0x33   : > { %v185_v12 = vmul.f32 0.0625, %v184_v11 }
  0x35   : > { %v186_v13 = vsub.f32 %v361_v3, %v185_v12  ;;  %v187_v14 = vsub.f32 %v362_v4, %v185_v12 }
  0x37   : > { %v188_v15 = vmul.f32 %v186_v13, %v186_v13  ;;  %v189_v16 = vmul.f32 %v187_v14, %v187_v14 }
  0x39   : > { %v190_v17 = vadd.f32 %v189_v16, %v188_v15 }
  0x3b   : > { %v191_v18 = vrot.slane %v190_v17, 4 }
  0x3d   : > { %v192_v19 = vadd.f32 %v191_v18, %v190_v17 }
  0x3f   : > { %v193_v20 = vrot.slane %v192_v19, 2 }
  0x41   : > { %v194_v21 = vadd.f32 %v193_v20, %v192_v19 }
  0x43   : > { %v195_v22 = vrot.slane %v194_v21, 1 }
  0x45   : > { %v196_v23 = vadd.f32 %v195_v22, %v194_v21 }
  0x47   : > { %v197_v24 = vmul.f32 0.0625, %v196_v23 }
  0x49   : > { %v198_v25 = vadd.f32 1e-05, %v197_v24 }
  0x4b   : > { %424 = vrsqrt.f32 %v198_v25 }
  0x55   : > { %v425_v26 = vpop.eup %424 }
  0x56   : > { %v200_v27 = vmul.f32 %v425_v26, %v186_v13  ;;  %v201_v28 = vmul.f32 %v425_v26, %v187_v14  ;;  %220 = sbr.rel (!%p540_p6) target bundleno = 101 (0x65), region = 69 }
  0x58   : > { %v202_v29 = vmax.f32 %v200_v27, 0.0  ;;  %v203_v30 = vmax.f32 %v201_v28, 0.0 }
  0x5a   : > { %v366_v31 = vpack.c.bf16 %v203_v30, %v202_v29 }
  0x5c   : > { %367 = vst [vmem:[%s173_s5] sm:$0xff] %v366_v31  }
  0x63   : > { %v240_v32 = vld [vmem:[%s173_s5] sm:$0xf]  ;;  %v242_v33 = vld [vmem:[%s173_s5 + $0x4] sm:$0xf] }
  0x64   : > { %241 = vst [vmem:[%s224_s20] sm:$0xf] %v240_v32  ;;  %243 = vst [vmem:[%s224_s20 + $0x8] sm:$0xf] %v242_v33 }
  0x65 PF: > { %s11_s12 = sadd.s32 1, %s480_s12   ;;  %s595_s6 = smov %s460_s7 }
  0x66   : > { %p8_p12 = scmp.ge.s32.totalorder %s11_s12, 6   ;;  %s596_s7 = smov %s548_s21 }
  0x67   : > { %s597_s8 = smov %s472_s10  ;;  %s598_s9 = smov %s476_s11 }
  0x68   : > { %s599_s10 = smov %s602_s13  ;;  %s600_s11 = smov %s606_s14 }
  0x69   :  { %10 = sbr.rel (!%p8_p12) target bundleno = 4 (0x4), region = 141 }

// kernel: generator_a2b.51
= control target key start
LH: loop header
LB: loop body
LE: loop exit
PB: predicated region body
PF: predicated region fallthrough
CT: control target
= control target key end

     0   :  { %s2291_s1 = inlined_call_operand.vmem [shape: bf16[1152,256], index: 1, kind: input, shape index: {}]   ;;  %s2292_s0 = inlined_call_operand.vmem [shape: bf16[32,1152], index: 0, kind: input, shape index: {}]   ;;  %s2293_s2 = inlined_call_operand.vmem [shape: f32[1,256], index: 2, kind: input, shape index: {}]   ;;  %s2294_s3 = inlined_call_operand.vmem [shape: bf16[32,256], index: 3, kind: output, shape index: {}]  }
   0x1   :  { %v1527_v0 = vld [vmem:[%s2291_s1 + $0x4] ss:$8 sps:$4 sm:$0xff]   ;;  %v1531_v2 = vld [vmem:[%s2291_s1] ss:$8 sps:$4 sm:$0xff]   ;;  %v1533_v4 = vld [vmem:[%s2291_s1 + $0x14] ss:$8 sps:$4 sm:$0xff]  }
   0x2   :  { %v1529_v1 = vld [vmem:[%s2291_s1 + $0x204] ss:$8 sps:$4 sm:$0xff]   ;;  %1003 = vmatprep.subr.bf16.mxu1 %v1527_v0  ;;  %v1532_v3 = vld [vmem:[%s2291_s1 + $0x200] ss:$8 sps:$4 sm:$0xff]   ;;  %v1535_v5 = vld [vmem:[%s2291_s1 + $0x214] ss:$8 sps:$4 sm:$0xff]  }
   0x3   :  { %1109 = vmatprep.subr.bf16.mxu0 %v1529_v1  ;;  %1004 = vmatpush1.bf16.msra.mxu1 %v1531_v2  ;;  %v1537_v6 = vld [vmem:[%s2291_s1 + $0x10] ss:$8 sps:$4 sm:$0xff]   ;;  %v1539_v8 = vld [vmem:[%s2291_s1 + $0x24] ss:$8 sps:$4 sm:$0xff]   ;;  %v1543_v10 = vld [vmem:[%s2291_s1 + $0x20] ss:$8 sps:$4 sm:$0xff]  }
   0x4   :  { %1110 = vmatpush1.bf16.msra.mxu0 %v1532_v3  ;;  %1005 = vmatprep.subr.bf16.mxu1 %v1533_v4  ;;  %v1538_v7 = vld [vmem:[%s2291_s1 + $0x210] ss:$8 sps:$4 sm:$0xff]   ;;  %v1541_v9 = vld [vmem:[%s2291_s1 + $0x224] ss:$8 sps:$4 sm:$0xff]   ;;  %v1544_v11 = vld [vmem:[%s2291_s1 + $0x220] ss:$8 sps:$4 sm:$0xff]  }
   0x5   :  { %1111 = vmatprep.subr.bf16.mxu0 %v1535_v5  ;;  %v1545_v12 = vld [vmem:[%s2291_s1 + $0x34] ss:$8 sps:$4 sm:$0xff]   ;;  %v1549_v14 = vld [vmem:[%s2291_s1 + $0x30] ss:$8 sps:$4 sm:$0xff]   ;;  %v1551_v16 = vld [vmem:[%s2291_s1 + $0x44] ss:$8 sps:$4 sm:$0xff]  }
   0x6   :  { %v1547_v13 = vld [vmem:[%s2291_s1 + $0x234] ss:$8 sps:$4 sm:$0xff]   ;;  %v1550_v15 = vld [vmem:[%s2291_s1 + $0x230] ss:$8 sps:$4 sm:$0xff]   ;;  %v1553_v17 = vld [vmem:[%s2291_s1 + $0x244] ss:$8 sps:$4 sm:$0xff]  }
   0x7   :  { %1006 = vmatpush1.bf16.msra.mxu1 %v1537_v6  ;;  %v1555_v18 = vld [vmem:[%s2291_s1 + $0x40] ss:$8 sps:$4 sm:$0xff]   ;;  %v1557_v20 = vld [vmem:[%s2291_s1 + $0x54] ss:$8 sps:$4 sm:$0xff]   ;;  %v1561_v22 = vld [vmem:[%s2291_s1 + $0x50] ss:$8 sps:$4 sm:$0xff]  }
   0x8   :  { %1112 = vmatpush1.bf16.msra.mxu0 %v1538_v7  ;;  %1007 = vmatprep.subr.bf16.mxu1 %v1539_v8  ;;  %v1556_v19 = vld [vmem:[%s2291_s1 + $0x240] ss:$8 sps:$4 sm:$0xff]   ;;  %v1559_v21 = vld [vmem:[%s2291_s1 + $0x254] ss:$8 sps:$4 sm:$0xff]   ;;  %v1562_v23 = vld [vmem:[%s2291_s1 + $0x250] ss:$8 sps:$4 sm:$0xff]  }
   0x9   :  { %1113 = vmatprep.subr.bf16.mxu0 %v1541_v9  ;;  %v1563_v24 = vld [vmem:[%s2291_s1 + $0x64] ss:$8 sps:$4 sm:$0xff]   ;;  %v1567_v26 = vld [vmem:[%s2291_s1 + $0x60] ss:$8 sps:$4 sm:$0xff]   ;;  %v1569_v28 = vld [vmem:[%s2291_s1 + $0x74] ss:$8 sps:$4 sm:$0xff]  }
   0xa   :  { %v1565_v25 = vld [vmem:[%s2291_s1 + $0x264] ss:$8 sps:$4 sm:$0xff]   ;;  %v1568_v27 = vld [vmem:[%s2291_s1 + $0x260] ss:$8 sps:$4 sm:$0xff]   ;;  %v1571_v29 = vld [vmem:[%s2291_s1 + $0x274] ss:$8 sps:$4 sm:$0xff]  }
   0xb   :  { %1008 = vmatpush1.bf16.msra.mxu1 %v1543_v10  ;;  %v1573_v30 = vld [vmem:[%s2291_s1 + $0x70] ss:$8 sps:$4 sm:$0xff]   ;;  %v1575_v32 = vld [vmem:[%s2291_s1 + $0x84] ss:$8 sps:$4 sm:$0xff]   ;;  %v1579_v34 = vld [vmem:[%s2291_s1 + $0x80] ss:$8 sps:$4 sm:$0xff]  }
   0xc   :  { %1114 = vmatpush1.bf16.msra.mxu0 %v1544_v11  ;;  %1009 = vmatprep.subr.bf16.mxu1 %v1545_v12  ;;  %v1574_v31 = vld [vmem:[%s2291_s1 + $0x270] ss:$8 sps:$4 sm:$0xff]   ;;  %v1577_v33 = vld [vmem:[%s2291_s1 + $0x284] ss:$8 sps:$4 sm:$0xff]   ;;  %v1580_v35 = vld [vmem:[%s2291_s1 + $0x280] ss:$8 sps:$4 sm:$0xff]  }
   0xd   :  { %1115 = vmatprep.subr.bf16.mxu0 %v1547_v13  ;;  %v1581_v36 = vld [vmem:[%s2291_s1 + $0x94] ss:$8 sps:$4 sm:$0xff]   ;;  %v1585_v38 = vld [vmem:[%s2291_s1 + $0x90] ss:$8 sps:$4 sm:$0xff]   ;;  %v1587_v40 = vld [vmem:[%s2291_s1 + $0xa4] ss:$8 sps:$4 sm:$0xff]  }
   0xe   :  { %v1583_v37 = vld [vmem:[%s2291_s1 + $0x294] ss:$8 sps:$4 sm:$0xff]   ;;  %v1586_v39 = vld [vmem:[%s2291_s1 + $0x290] ss:$8 sps:$4 sm:$0xff]   ;;  %v1589_v41 = vld [vmem:[%s2291_s1 + $0x2a4] ss:$8 sps:$4 sm:$0xff]  }
   0xf   :  { %1010 = vmatpush1.bf16.msra.mxu1 %v1549_v14  ;;  %v1591_v42 = vld [vmem:[%s2291_s1 + $0xa0] ss:$8 sps:$4 sm:$0xff]   ;;  %v1593_v44 = vld [vmem:[%s2291_s1 + $0xb4] ss:$8 sps:$4 sm:$0xff]   ;;  %v1597_v46 = vld [vmem:[%s2291_s1 + $0xb0] ss:$8 sps:$4 sm:$0xff]  }
  0x10   :  { %1116 = vmatpush1.bf16.msra.mxu0 %v1550_v15  ;;  %1011 = vmatprep.subr.bf16.mxu1 %v1551_v16  ;;  %v1592_v43 = vld [vmem:[%s2291_s1 + $0x2a0] ss:$8 sps:$4 sm:$0xff]   ;;  %v1595_v45 = vld [vmem:[%s2291_s1 + $0x2b4] ss:$8 sps:$4 sm:$0xff]   ;;  %v1598_v47 = vld [vmem:[%s2291_s1 + $0x2b0] ss:$8 sps:$4 sm:$0xff]  }
  0x11   :  { %1117 = vmatprep.subr.bf16.mxu0 %v1553_v17  ;;  %v1625_v48 = vld [vmem:[%s2292_s0 + $0x4] ss:$36 sps:$4 sm:$0xff]   ;;  %v1631_v51 = vld [vmem:[%s2292_s0 + $0x14] ss:$36 sps:$4 sm:$0xff]  }
  0x12   :  { %v1599_v49 = vld [vmem:[%s2291_s1 + $0xc4] ss:$8 sps:$4 sm:$0xff]   ;;  %1035 = vmatprep.mubr.bf16.mxu1 %v1625_v48  ;;  %v1603_v52 = vld [vmem:[%s2291_s1 + $0xc0] ss:$8 sps:$4 sm:$0xff]   ;;  %v1605_v54 = vld [vmem:[%s2291_s1 + $0xd4] ss:$8 sps:$4 sm:$0xff]   ;;  %1141 = vmatprep.mubr.bf16.mxu0 %v1631_v51 }
  0x13   :  { %1012 = vmatpush1.bf16.msra.mxu1 %v1555_v18  ;;  %v1601_v50 = vld [vmem:[%s2291_s1 + $0x2c4] ss:$8 sps:$4 sm:$0xff]   ;;  %v1604_v53 = vld [vmem:[%s2291_s1 + $0x2c0] ss:$8 sps:$4 sm:$0xff]   ;;  %v1607_v55 = vld [vmem:[%s2291_s1 + $0x2d4] ss:$8 sps:$4 sm:$0xff]  }
  0x14   :  { %1118 = vmatpush1.bf16.msra.mxu0 %v1556_v19  ;;  %1013 = vmatprep.subr.bf16.mxu1 %v1557_v20  ;;  %v1609_v56 = vld [vmem:[%s2291_s1 + $0xd0] ss:$8 sps:$4 sm:$0xff]   ;;  %v1611_v58 = vld [vmem:[%s2291_s1 + $0xe4] ss:$8 sps:$4 sm:$0xff]   ;;  %v1615_v60 = vld [vmem:[%s2291_s1 + $0xe0] ss:$8 sps:$4 sm:$0xff]  }
  0x15   :  { %1119 = vmatprep.subr.bf16.mxu0 %v1559_v21  ;;  %v1610_v57 = vld [vmem:[%s2291_s1 + $0x2d0] ss:$8 sps:$4 sm:$0xff]   ;;  %v1613_v59 = vld [vmem:[%s2291_s1 + $0x2e4] ss:$8 sps:$4 sm:$0xff]   ;;  %v1616_v61 = vld [vmem:[%s2291_s1 + $0x2e0] ss:$8 sps:$4 sm:$0xff]  }
  0x16   :  { %v1617_v62 = vld [vmem:[%s2291_s1 + $0xf4] ss:$8 sps:$4 sm:$0xff]   ;;  %v1621_v0 = vld [vmem:[%s2291_s1 + $0xf0] ss:$8 sps:$4 sm:$0xff]   ;;  %v1628_v2 = vld [vmem:[%s2291_s1 + $0x104] ss:$8 sps:$4 sm:$0xff]  }
  0x17   :  { %1014 = vmatpush1.bf16.msra.mxu1 %v1561_v22  ;;  %v1619_v63 = vld [vmem:[%s2291_s1 + $0x2f4] ss:$8 sps:$4 sm:$0xff]   ;;  %v1622_v1 = vld [vmem:[%s2291_s1 + $0x2f0] ss:$8 sps:$4 sm:$0xff]   ;;  %v1634_v3 = vld [vmem:[%s2291_s1 + $0x304] ss:$8 sps:$4 sm:$0xff]  }
  0x18   :  { %1120 = vmatpush1.bf16.msra.mxu0 %v1562_v23  ;;  %1015 = vmatprep.subr.bf16.mxu1 %v1563_v24  ;;  %v1623_v4 = vld [vmem:[%s2292_s0] ss:$36 sps:$4 sm:$0xff]   ;;  %v1629_v6 = vld [vmem:[%s2292_s0 + $0x10] ss:$36 sps:$4 sm:$0xff]  }
  0x19   :  { %1121 = vmatprep.subr.bf16.mxu0 %v1565_v25  ;;  %v1626_v5 = vld [vmem:[%s2291_s1 + $0x100] ss:$8 sps:$4 sm:$0xff]   ;;  %v1637_v8 = vld [vmem:[%s2291_s1 + $0x114] ss:$8 sps:$4 sm:$0xff]   ;;  %v1635_v10 = vld [vmem:[%s2291_s1 + $0x110] ss:$8 sps:$4 sm:$0xff]  }
  0x1a   :  { %v1632_v7 = vld [vmem:[%s2291_s1 + $0x300] ss:$8 sps:$4 sm:$0xff]   ;;  %v1640_v9 = vld [vmem:[%s2291_s1 + $0x314] ss:$8 sps:$4 sm:$0xff]   ;;  %v1638_v11 = vld [vmem:[%s2291_s1 + $0x310] ss:$8 sps:$4 sm:$0xff]  }
  0x1b   :  { %1016 = vmatpush1.bf16.msra.mxu1 %v1567_v26  ;;  %v1643_v12 = vld [vmem:[%s2291_s1 + $0x124] ss:$8 sps:$4 sm:$0xff]   ;;  %v1641_v14 = vld [vmem:[%s2291_s1 + $0x120] ss:$8 sps:$4 sm:$0xff]   ;;  %v1649_v16 = vld [vmem:[%s2291_s1 + $0x134] ss:$8 sps:$4 sm:$0xff]  }
  0x1c   :  { %1122 = vmatpush1.bf16.msra.mxu0 %v1568_v27  ;;  %1017 = vmatprep.subr.bf16.mxu1 %v1569_v28  ;;  %v1646_v13 = vld [vmem:[%s2291_s1 + $0x324] ss:$8 sps:$4 sm:$0xff]   ;;  %v1644_v15 = vld [vmem:[%s2291_s1 + $0x320] ss:$8 sps:$4 sm:$0xff]   ;;  %v1652_v17 = vld [vmem:[%s2291_s1 + $0x334] ss:$8 sps:$4 sm:$0xff]  }
  0x1d   :  { %1123 = vmatprep.subr.bf16.mxu0 %v1571_v29  ;;  %v1647_v18 = vld [vmem:[%s2291_s1 + $0x130] ss:$8 sps:$4 sm:$0xff]   ;;  %v1655_v20 = vld [vmem:[%s2291_s1 + $0x144] ss:$8 sps:$4 sm:$0xff]   ;;  %v1653_v22 = vld [vmem:[%s2291_s1 + $0x140] ss:$8 sps:$4 sm:$0xff]  }
  0x1e   :  { %v1650_v19 = vld [vmem:[%s2291_s1 + $0x330] ss:$8 sps:$4 sm:$0xff]   ;;  %v1658_v21 = vld [vmem:[%s2291_s1 + $0x344] ss:$8 sps:$4 sm:$0xff]   ;;  %v1656_v23 = vld [vmem:[%s2291_s1 + $0x340] ss:$8 sps:$4 sm:$0xff]  }
  0x1f   :  { %1018 = vmatpush1.bf16.msra.mxu1 %v1573_v30  ;;  %v1661_v24 = vld [vmem:[%s2291_s1 + $0x154] ss:$8 sps:$4 sm:$0xff]   ;;  %v1659_v26 = vld [vmem:[%s2291_s1 + $0x150] ss:$8 sps:$4 sm:$0xff]   ;;  %v1667_v28 = vld [vmem:[%s2291_s1 + $0x164] ss:$8 sps:$4 sm:$0xff]  }
  0x20   :  { %1124 = vmatpush1.bf16.msra.mxu0 %v1574_v31  ;;  %1019 = vmatprep.subr.bf16.mxu1 %v1575_v32  ;;  %v1664_v25 = vld [vmem:[%s2291_s1 + $0x354] ss:$8 sps:$4 sm:$0xff]   ;;  %v1662_v27 = vld [vmem:[%s2291_s1 + $0x350] ss:$8 sps:$4 sm:$0xff]   ;;  %v1717_v31 = vld [vmem:[%s2292_s0 + $0x48] ss:$36 sps:$4 sm:$0xff]  }
  0x21   :  { %1125 = vmatprep.subr.bf16.mxu0 %v1577_v33  ;;  %v1713_v29 = vld [vmem:[%s2292_s0 + $0x4c] ss:$36 sps:$4 sm:$0xff]   ;;  %v1715_v30 = vld [vmem:[%s2292_s0 + $0x5c] ss:$36 sps:$4 sm:$0xff]  }
  0x22   :  { %v1670_v32 = vld [vmem:[%s2291_s1 + $0x364] ss:$8 sps:$4 sm:$0xff]   ;;  %v1721_v33 = vld [vmem:[%s2292_s0 + $0x58] ss:$36 sps:$4 sm:$0xff]  }
  0x23   :  { %1020 = vmatpush1.bf16.msra.mxu1 %v1579_v34  ;;  %v1665_v34 = vld [vmem:[%s2291_s1 + $0x160] ss:$8 sps:$4 sm:$0xff]   ;;  %v1683_v48 = vld [vmem:[%s2291_s1 + $0x190] ss:$8 sps:$4 sm:$0xff]   ;;  %v1694_v51 = vld [vmem:[%s2291_s1 + $0x3a4] ss:$8 sps:$4 sm:$0xff]  }
  0x24   :  { %1126 = vmatpush1.bf16.msra.mxu0 %v1580_v35  ;;  %1021 = vmatprep.subr.bf16.mxu1 %v1581_v36  ;;  %v1668_v35 = vld [vmem:[%s2291_s1 + $0x360] ss:$8 sps:$4 sm:$0xff]   ;;  %v1673_v36 = vld [vmem:[%s2291_s1 + $0x174] ss:$8 sps:$4 sm:$0xff]  }
  0x25   :  { %1127 = vmatprep.subr.bf16.mxu0 %v1583_v37  ;;  %v1676_v37 = vld [vmem:[%s2291_s1 + $0x374] ss:$8 sps:$4 sm:$0xff]  }
  0x27   :  { %1022 = vmatpush1.bf16.msra.mxu1 %v1585_v38  ;;  %v1671_v38 = vld [vmem:[%s2291_s1 + $0x170] ss:$8 sps:$4 sm:$0xff]  }
  0x28   :  { %1128 = vmatpush1.bf16.msra.mxu0 %v1586_v39  ;;  %1023 = vmatprep.subr.bf16.mxu1 %v1587_v40  ;;  %v1674_v39 = vld [vmem:[%s2291_s1 + $0x370] ss:$8 sps:$4 sm:$0xff]   ;;  %v1679_v40 = vld [vmem:[%s2291_s1 + $0x184] ss:$8 sps:$4 sm:$0xff]  }
  0x29   :  { %1129 = vmatprep.subr.bf16.mxu0 %v1589_v41  ;;  %v1733_v41 = vld [vmem:[%s2292_s0 + $0xc] ss:$36 sps:$4 sm:$0xff]  }
  0x2b   :  { %1024 = vmatpush1.bf16.msra.mxu1 %v1591_v42  ;;  %v1682_v42 = vld [vmem:[%s2291_s1 + $0x384] ss:$8 sps:$4 sm:$0xff]  }
  0x2c   :  { %1130 = vmatpush1.bf16.msra.mxu0 %v1592_v43  ;;  %1025 = vmatprep.subr.bf16.mxu1 %v1593_v44  ;;  %v1736_v43 = vld [vmem:[%s2292_s0 + $0x1c] ss:$36 sps:$4 sm:$0xff]  }
  0x2d   :  { %1131 = vmatprep.subr.bf16.mxu0 %v1595_v45  ;;  %v1677_v44 = vld [vmem:[%s2291_s1 + $0x180] ss:$8 sps:$4 sm:$0xff]  }
  0x2e   :  { %v1680_v45 = vld [vmem:[%s2291_s1 + $0x380] ss:$8 sps:$4 sm:$0xff]  }
  0x2f   :  { %1026 = vmatpush1.bf16.msra.mxu1 %v1597_v46  ;;  %v1685_v46 = vld [vmem:[%s2291_s1 + $0x194] ss:$8 sps:$4 sm:$0xff]  }
  0x30   :  { %1132 = vmatpush1.bf16.msra.mxu0 %v1598_v47  ;;  %1027 = vmatprep.subr.bf16.mxu1 %v1599_v49  ;;  %v1688_v47 = vld [vmem:[%s2291_s1 + $0x394] ss:$8 sps:$4 sm:$0xff]   ;;  %v1686_v49 = vld [vmem:[%s2291_s1 + $0x390] ss:$8 sps:$4 sm:$0xff]  }
  0x31   :  { %1133 = vmatprep.subr.bf16.mxu0 %v1601_v50  ;;  %v1691_v50 = vld [vmem:[%s2291_s1 + $0x1a4] ss:$8 sps:$4 sm:$0xff]  }
  0x33   :  { %1028 = vmatpush1.bf16.msra.mxu1 %v1603_v52  ;;  %v1689_v52 = vld [vmem:[%s2291_s1 + $0x1a0] ss:$8 sps:$4 sm:$0xff]  }
  0x34   :  { %1134 = vmatpush1.bf16.msra.mxu0 %v1604_v53  ;;  %1029 = vmatprep.subr.bf16.mxu1 %v1605_v54  ;;  %v1692_v53 = vld [vmem:[%s2291_s1 + $0x3a0] ss:$8 sps:$4 sm:$0xff]   ;;  %v1697_v54 = vld [vmem:[%s2291_s1 + $0x1b4] ss:$8 sps:$4 sm:$0xff]  }
  0x35   :  { %1135 = vmatprep.subr.bf16.mxu0 %v1607_v55  ;;  %v1700_v55 = vld [vmem:[%s2291_s1 + $0x3b4] ss:$8 sps:$4 sm:$0xff]  }
  0x37   :  { %1030 = vmatpush1.bf16.msra.mxu1 %v1609_v56  ;;  %v1695_v56 = vld [vmem:[%s2291_s1 + $0x1b0] ss:$8 sps:$4 sm:$0xff]  }
  0x38   :  { %1136 = vmatpush1.bf16.msra.mxu0 %v1610_v57  ;;  %1031 = vmatprep.subr.bf16.mxu1 %v1611_v58  ;;  %v1698_v57 = vld [vmem:[%s2291_s1 + $0x3b0] ss:$8 sps:$4 sm:$0xff]   ;;  %v1703_v58 = vld [vmem:[%s2291_s1 + $0x1c4] ss:$8 sps:$4 sm:$0xff]  }
  0x39   :  { %1137 = vmatprep.subr.bf16.mxu0 %v1613_v59  ;;  %v1706_v59 = vld [vmem:[%s2291_s1 + $0x3c4] ss:$8 sps:$4 sm:$0xff]  }
  0x3b   :  { %1032 = vmatpush1.bf16.msra.mxu1 %v1615_v60  ;;  %v1701_v60 = vld [vmem:[%s2291_s1 + $0x1c0] ss:$8 sps:$4 sm:$0xff]  }
  0x3c   :  { %1138 = vmatpush1.bf16.msra.mxu0 %v1616_v61  ;;  %1033 = vmatprep.subr.bf16.mxu1 %v1617_v62  ;;  %v1704_v61 = vld [vmem:[%s2291_s1 + $0x3c0] ss:$8 sps:$4 sm:$0xff]   ;;  %v1709_v62 = vld [vmem:[%s2291_s1 + $0x1d4] ss:$8 sps:$4 sm:$0xff]  }
  0x3d   :  { %1139 = vmatprep.subr.bf16.mxu0 %v1619_v63  ;;  %v1712_v63 = vld [vmem:[%s2291_s1 + $0x3d4] ss:$8 sps:$4 sm:$0xff]  }
  0x3f   :  { %1034 = vmatpush1.bf16.msra.mxu1 %v1621_v0  ;;  %v1707_v0 = vld [vmem:[%s2291_s1 + $0x1d0] ss:$8 sps:$4 sm:$0xff]  }
  0x40   :  { %1140 = vmatpush1.bf16.msra.mxu0 %v1622_v1  ;;  %1056 = vmatprep.subr.bf16.mxu1 %v1628_v2  ;;  %v1710_v1 = vld [vmem:[%s2291_s1 + $0x3d0] ss:$8 sps:$4 sm:$0xff]   ;;  %v1720_v2 = vld [vmem:[%s2291_s1 + $0x1e4] ss:$8 sps:$4 sm:$0xff]  }
  0x41   :  { %1162 = vmatprep.subr.bf16.mxu0 %v1634_v3  ;;  %v1724_v3 = vld [vmem:[%s2291_s1 + $0x3e4] ss:$8 sps:$4 sm:$0xff]  }
  0x42   :  { %1036 = vmatmul.mubr.bf16.vlgmr.msra.gmra.mrb[0].mxu1 %v1623_v4  ;;  %v1718_v4 = vld [vmem:[%s2291_s1 + $0x1e0] ss:$8 sps:$4 sm:$0xff]  }
  0x43   :  { %1142 = vmatmul.mubr.bf16.vlgmr.msra.gmra.mrb[0].mxu0 %v1629_v6  ;;  %1057 = vmatpush1.bf16.msra.mxu1 %v1626_v5  ;;  %v1722_v5 = vld [vmem:[%s2291_s1 + $0x3e0] ss:$8 sps:$4 sm:$0xff]   ;;  %v1727_v6 = vld [vmem:[%s2291_s1 + $0x1f4] ss:$8 sps:$4 sm:$0xff]  }
  0x44   :  { %1163 = vmatpush1.bf16.msra.mxu0 %v1632_v7  ;;  %1058 = vmatprep.subr.bf16.mxu1 %v1637_v8  ;;  %v1730_v7 = vld [vmem:[%s2291_s1 + $0x3f4] ss:$8 sps:$4 sm:$0xff]   ;;  %v1725_v8 = vld [vmem:[%s2291_s1 + $0x1f0] ss:$8 sps:$4 sm:$0xff]  }
  0x45   :  { %1164 = vmatprep.subr.bf16.mxu0 %v1640_v9  ;;  %1045 = vmatprep.mubr.bf16.mxu1 %v1713_v29  ;;  %v1728_v9 = vld [vmem:[%s2291_s1 + $0x3f0] ss:$8 sps:$4 sm:$0xff]   ;;  %v1763_v29 = vld [vmem:[%s2291_s1 + $0x464] ss:$8 sps:$4 sm:$0xff]  }
  0x46   :  { %1151 = vmatprep.mubr.bf16.mxu0 %v1715_v30  ;;  %v1761_v30 = vld [vmem:[%s2291_s1 + $0x460] ss:$8 sps:$4 sm:$0xff]  }
  0x47   :  { %1059 = vmatpush1.bf16.msra.mxu1 %v1635_v10  ;;  %v1739_v10 = vld [vmem:[%s2291_s1 + $0x404] ss:$8 sps:$4 sm:$0xff]  }
  0x48   :  { %1165 = vmatpush1.bf16.msra.mxu0 %v1638_v11  ;;  %1060 = vmatprep.subr.bf16.mxu1 %v1643_v12  ;;  %v1731_v11 = vld [vmem:[%s2292_s0 + $0x8] ss:$36 sps:$4 sm:$0xff]   ;;  %v1734_v12 = vld [vmem:[%s2292_s0 + $0x18] ss:$36 sps:$4 sm:$0xff]  }
  0x49   :  { %1166 = vmatprep.subr.bf16.mxu0 %v1646_v13  ;;  %v1737_v13 = vld [vmem:[%s2291_s1 + $0x400] ss:$8 sps:$4 sm:$0xff]  }
  0x4a   :  { %1046 = vmatmul.mubr.bf16.gmra.mrb[4].mxu1 %v1717_v31  ;;  %v1766_v31 = vld [vmem:[%s2291_s1 + $0x474] ss:$8 sps:$4 sm:$0xff]  }
  0x4b   :  { %1061 = vmatpush1.bf16.msra.mxu1 %v1641_v14  ;;  %1152 = vmatmul.mubr.bf16.gmra.mrb[4].mxu0 %v1721_v33  ;;  %v1742_v14 = vld [vmem:[%s2291_s1 + $0x414] ss:$8 sps:$4 sm:$0xff]   ;;  %v1767_v33 = vld [vmem:[%s2292_s0 + $0x20] ss:$36 sps:$4 sm:$0xff]  }
  0x4c   :  { %1167 = vmatpush1.bf16.msra.mxu0 %v1644_v15  ;;  %1062 = vmatprep.subr.bf16.mxu1 %v1649_v16  ;;  %v1743_v15 = vld [vmem:[%s2292_s0 + $0x54] ss:$36 sps:$4 sm:$0xff]   ;;  %v1745_v16 = vld [vmem:[%s2292_s0 + $0x64] ss:$36 sps:$4 sm:$0xff]  }
  0x4d   :  { %1168 = vmatprep.subr.bf16.mxu0 %v1652_v17  ;;  %1088 = vmatprep.mubr.bf16.mxu1 %v1733_v41  ;;  %v1740_v17 = vld [vmem:[%s2291_s1 + $0x410] ss:$8 sps:$4 sm:$0xff]  }
  0x4e   :  { %1194 = vmatprep.mubr.bf16.mxu0 %v1736_v43 }
  0x4f   :  { %1063 = vmatpush1.bf16.msra.mxu1 %v1647_v18  ;;  %v1751_v18 = vld [vmem:[%s2291_s1 + $0x424] ss:$8 sps:$4 sm:$0xff]  }
  0x50   :  { %1169 = vmatpush1.bf16.msra.mxu0 %v1650_v19  ;;  %1064 = vmatprep.subr.bf16.mxu1 %v1655_v20  ;;  %v1747_v19 = vld [vmem:[%s2292_s0 + $0x50] ss:$36 sps:$4 sm:$0xff]   ;;  %v1748_v20 = vld [vmem:[%s2292_s0 + $0x60] ss:$36 sps:$4 sm:$0xff]  }
  0x51   :  { %1170 = vmatprep.subr.bf16.mxu0 %v1658_v21  ;;  %v1749_v21 = vld [vmem:[%s2291_s1 + $0x420] ss:$8 sps:$4 sm:$0xff]  }
  0x53   :  { %1065 = vmatpush1.bf16.msra.mxu1 %v1653_v22  ;;  %v1754_v22 = vld [vmem:[%s2291_s1 + $0x434] ss:$8 sps:$4 sm:$0xff]  }
  0x54   :  { %1171 = vmatpush1.bf16.msra.mxu0 %v1656_v23  ;;  %1066 = vmatprep.subr.bf16.mxu1 %v1661_v24  ;;  %v1752_v23 = vld [vmem:[%s2291_s1 + $0x430] ss:$8 sps:$4 sm:$0xff]   ;;  %v1757_v24 = vld [vmem:[%s2291_s1 + $0x444] ss:$8 sps:$4 sm:$0xff]  }
  0x55   :  { %1172 = vmatprep.subr.bf16.mxu0 %v1664_v25  ;;  %v1769_v25 = vmov 0  }
  0x57   :  { %1067 = vmatpush1.bf16.msra.mxu1 %v1659_v26  ;;  %v1755_v26 = vld [vmem:[%s2291_s1 + $0x440] ss:$8 sps:$4 sm:$0xff]  }
  0x58   :  { %1173 = vmatpush1.bf16.msra.mxu0 %v1662_v27  ;;  %1068 = vmatprep.subr.bf16.mxu1 %v1667_v28  ;;  %v1760_v27 = vld [vmem:[%s2291_s1 + $0x454] ss:$8 sps:$4 sm:$0xff]   ;;  %v1758_v28 = vld [vmem:[%s2291_s1 + $0x450] ss:$8 sps:$4 sm:$0xff]  }
  0x59   :  { %1174 = vmatprep.subr.bf16.mxu0 %v1670_v32  ;;  %v1764_v32 = vld [vmem:[%s2291_s1 + $0x470] ss:$8 sps:$4 sm:$0xff]  }
  0x5b   :  { %1069 = vmatpush1.bf16.msra.mxu1 %v1665_v34  ;;  %v1768_v34 = vld [vmem:[%s2292_s0 + $0x68] ss:$36 sps:$4 sm:$0xff]  }
  0x5c   :  { %1175 = vmatpush1.bf16.msra.mxu0 %v1668_v35  ;;  %1070 = vmatprep.subr.bf16.mxu1 %v1673_v36  ;;  %v181_v35 = vlaneseq }
  0x5d   :  { %1176 = vmatprep.subr.bf16.mxu0 %v1676_v37 }
  0x5e   :  { %v182_v36 = vshrl.u32 %v181_v35, 7 }
  0x5f   :  { %1071 = vmatpush1.bf16.msra.mxu1 %v1671_v38 }
  0x60   :  { %1177 = vmatpush1.bf16.msra.mxu0 %v1674_v39  ;;  %1072 = vmatprep.subr.bf16.mxu1 %v1679_v40  ;;  %v183_v40 = vsub.s32 0, %v182_v36  ;;  %v187_v43 = vsub.s32 1, %v182_v36 }
  0x61   :  { %1178 = vmatprep.subr.bf16.mxu0 %v1682_v42  ;;  %v179_v42 = vld [vmem:[%s2293_s2] sm:$0x3] }
  0x63   :  { %1073 = vmatpush1.bf16.msra.mxu1 %v1677_v44  ;;  %v184_v44 = vrot.slane %v179_v42, %v183_v40 }
  0x64   :  { %1179 = vmatpush1.bf16.msra.mxu0 %v1680_v45  ;;  %1074 = vmatprep.subr.bf16.mxu1 %v1685_v46  ;;  %v188_v45 = vrot.slane %v179_v42, %v187_v43 }
  0x65   :  { %1180 = vmatprep.subr.bf16.mxu0 %v1688_v47 }
  0x67   :  { %1075 = vmatpush1.bf16.msra.mxu1 %v1683_v48 }
  0x68   :  { %1181 = vmatpush1.bf16.msra.mxu0 %v1686_v49  ;;  %1076 = vmatprep.subr.bf16.mxu1 %v1691_v50 }
  0x69   :  { %1182 = vmatprep.subr.bf16.mxu0 %v1694_v51 }
  0x6b   :  { %1077 = vmatpush1.bf16.msra.mxu1 %v1689_v52 }
  0x6c   :  { %1183 = vmatpush1.bf16.msra.mxu0 %v1692_v53  ;;  %1078 = vmatprep.subr.bf16.mxu1 %v1697_v54 }
  0x6d   :  { %1184 = vmatprep.subr.bf16.mxu0 %v1700_v55 }
  0x6f   :  { %1079 = vmatpush1.bf16.msra.mxu1 %v1695_v56 }
  0x70   :  { %1185 = vmatpush1.bf16.msra.mxu0 %v1698_v57  ;;  %1080 = vmatprep.subr.bf16.mxu1 %v1703_v58 }
  0x71   :  { %1186 = vmatprep.subr.bf16.mxu0 %v1706_v59 }
  0x73   :  { %1081 = vmatpush1.bf16.msra.mxu1 %v1701_v60 }
  0x74   :  { %1187 = vmatpush1.bf16.msra.mxu0 %v1704_v61  ;;  %1082 = vmatprep.subr.bf16.mxu1 %v1709_v62 }
  0x75   :  { %1188 = vmatprep.subr.bf16.mxu0 %v1712_v63 }
  0x77   :  { %1083 = vmatpush1.bf16.msra.mxu1 %v1707_v0 }
  0x78   :  { %1189 = vmatpush1.bf16.msra.mxu0 %v1710_v1  ;;  %1084 = vmatprep.subr.bf16.mxu1 %v1720_v2 }
  0x79   :  { %1190 = vmatprep.subr.bf16.mxu0 %v1724_v3 }
  0x7b   :  { %1085 = vmatpush1.bf16.msra.mxu1 %v1718_v4 }
  0x7c   :  { %1191 = vmatpush1.bf16.msra.mxu0 %v1722_v5  ;;  %1086 = vmatprep.subr.bf16.mxu1 %v1727_v6 }
  0x7d   :  { %1192 = vmatprep.subr.bf16.mxu0 %v1730_v7 }
  0x7f   :  { %1087 = vmatpush1.bf16.msra.mxu1 %v1725_v8 }
  0x80   :  { %1193 = vmatpush1.bf16.msra.mxu0 %v1728_v9  ;;  %1470 = vmatprep.subr.bf16.mxu1 %v1739_v10 }
  0x81   :  { %1215 = vmatprep.subr.bf16.mxu0 %v1739_v10 }
  0x82   :  { %1089 = vmatmul.mubr.bf16.vlgmr.msra.gmra.mrb[0].mxu1 %v1731_v11 }
  0x83   :  { %1195 = vmatmul.mubr.bf16.vlgmr.msra.gmra.mrb[0].mxu0 %v1734_v12  ;;  %1478 = vmatpush1.bf16.msra.mxu1 %v1737_v13 }
  0x84   :  { %1216 = vmatpush1.bf16.msra.mxu0 %v1737_v13  ;;  %1471 = vmatprep.subr.bf16.mxu1 %v1742_v14 }
  0x85   :  { %1217 = vmatprep.subr.bf16.mxu0 %v1742_v14  ;;  %1098 = vmatprep.mubr.bf16.mxu1 %v1743_v15 }
  0x86   :  { %1204 = vmatprep.mubr.bf16.mxu0 %v1745_v16 }
  0x87   :  { %1479 = vmatpush1.bf16.msra.mxu1 %v1740_v17 }
  0x88   :  { %1218 = vmatpush1.bf16.msra.mxu0 %v1740_v17  ;;  %1472 = vmatprep.subr.bf16.mxu1 %v1751_v18 }
  0x89   :  { %1219 = vmatprep.subr.bf16.mxu0 %v1751_v18 }
  0x8a   :  { %1099 = vmatmul.mubr.bf16.gmra.mrb[4].mxu1 %v1747_v19 }
  0x8b   :  { %1205 = vmatmul.mubr.bf16.gmra.mrb[4].mxu0 %v1748_v20  ;;  %1480 = vmatpush1.bf16.msra.mxu1 %v1749_v21 }
  0x8c   :  { %1220 = vmatpush1.bf16.msra.mxu0 %v1749_v21  ;;  %1473 = vmatprep.subr.bf16.mxu1 %v1754_v22 }
  0x8d   :  { %1221 = vmatprep.subr.bf16.mxu0 %v1754_v22  ;;  %1247 = vmatprep.mubr.bf16.mxu0 %v1769_v25 }
  0x8e   :  { %1257 = vmatprep.mubr.bf16.mxu1 %v1769_v25 }
  0x8f   :  { %1481 = vmatpush1.bf16.msra.mxu1 %v1752_v23 }
  0x90   :  { %1222 = vmatpush1.bf16.msra.mxu0 %v1752_v23  ;;  %1474 = vmatprep.subr.bf16.mxu1 %v1757_v24 }
  0x91   :  { %1223 = vmatprep.subr.bf16.mxu0 %v1757_v24 }
  0x93   :  { %1482 = vmatpush1.bf16.msra.mxu1 %v1755_v26 }
  0x94   :  { %1224 = vmatpush1.bf16.msra.mxu0 %v1755_v26  ;;  %1475 = vmatprep.subr.bf16.mxu1 %v1760_v27 }
  0x95   :  { %1225 = vmatprep.subr.bf16.mxu0 %v1760_v27 }
  0x97   :  { %1483 = vmatpush1.bf16.msra.mxu1 %v1758_v28 }
  0x98   :  { %1226 = vmatpush1.bf16.msra.mxu0 %v1758_v28  ;;  %1476 = vmatprep.subr.bf16.mxu1 %v1763_v29 }
  0x99   :  { %1227 = vmatprep.subr.bf16.mxu0 %v1763_v29 }
  0x9b   :  { %1484 = vmatpush1.bf16.msra.mxu1 %v1761_v30 }
  0x9c   :  { %1228 = vmatpush1.bf16.msra.mxu0 %v1761_v30  ;;  %1477 = vmatprep.subr.bf16.mxu1 %v1766_v31 }
  0x9d   :  { %1229 = vmatprep.subr.bf16.mxu0 %v1766_v31 }
  0x9f   :  { %1485 = vmatpush1.bf16.msra.mxu1 %v1764_v32 }
  0xa0   :  { %1230 = vmatpush1.bf16.msra.mxu0 %v1764_v32 }
  0xa2   :  { %1258 = vmatmul.mubr.bf16.vlgmr.msra.gmra.mrb[8].mxu1 %v1768_v34 }
  0xa3   :  { %1248 = vmatmul.mubr.bf16.vlgmr.msra.gmra.mrb[0].mxu0 %v1767_v33 }
 0x155   :  { %v1090_v37 = vpop.f32.mrb[0].mxu1 }
 0x156   :  { %v1092_v38 = vpop.f32.mrb[1].mxu1  ;;  %v1486_v62 = vadd.f32 %v1090_v37, %v184_v44 }
 0x157   :  { %v1094_v39 = vpop.f32.mrb[2].mxu1  ;;  %v1488_v63 = vadd.f32 %v1092_v38, %v188_v45 }
 0x158   :  { %v1096_v41 = vpop.f32.mrb[3].mxu1  ;;  %v1490_v2 = vadd.f32 %v1094_v39, %v184_v44 }
 0x159   :  { %v1492_v7 = vadd.f32 %v1096_v41, %v188_v45 }
 0x15d   :  { %v1100_v46 = vpop.f32.mrb[4].mxu1 }
 0x15e   :  { %v1206_v47 = vpop.f32.mrb[4].mxu0  ;;  %v1494_v48 = vadd.f32 %v1100_v46, %v184_v44  ;;  %v1102_v49 = vpop.f32.mrb[5].mxu1 }
 0x15f   :  { %v1208_v50 = vpop.f32.mrb[5].mxu0  ;;  %v1497_v51 = vadd.f32 %v1102_v49, %v188_v45  ;;  %v1104_v52 = vpop.f32.mrb[6].mxu1 }
 0x160   :  { %v1210_v53 = vpop.f32.mrb[6].mxu0  ;;  %v1495_v54 = vadd.f32 %v1494_v48, %v1206_v47  ;;  %v1500_v55 = vadd.f32 %v1104_v52, %v184_v44  ;;  %v1106_v56 = vpop.f32.mrb[7].mxu1 }
 0x161   :  { %v1212_v57 = vpop.f32.mrb[7].mxu0  ;;  %v1498_v58 = vadd.f32 %v1497_v51, %v1208_v50  ;;  %v1503_v59 = vadd.f32 %v1106_v56, %v188_v45 }
 0x162   :  { %v1501_v60 = vadd.f32 %v1500_v55, %v1210_v53 }
 0x163   :  { %v1504_v61 = vadd.f32 %v1503_v59, %v1212_v57 }
 0x175   :  { %v1259_v1 = vpop.f32.mrb[8].mxu1 }
 0x176   :  { %v1249_v0 = vpop.f32.mrb[0].mxu0  ;;  %v1496_v4 = vadd.f32 %v1495_v54, %v1259_v1  ;;  %v1261_v6 = vpop.f32.mrb[9].mxu1 }
 0x177   :  { %v1487_v3 = vadd.f32 %v1486_v62, %v1249_v0  ;;  %v1251_v5 = vpop.f32.mrb[1].mxu0  ;;  %v1499_v9 = vadd.f32 %v1498_v58, %v1261_v6  ;;  %v1263_v11 = vpop.f32.mrb[10].mxu1 }
 0x178   :  { %v1489_v8 = vadd.f32 %v1488_v63, %v1251_v5  ;;  %v1253_v10 = vpop.f32.mrb[2].mxu0  ;;  %v1502_v13 = vadd.f32 %v1501_v60, %v1263_v11  ;;  %v1265_v15 = vpop.f32.mrb[11].mxu1 }
 0x179   :  { %v1491_v12 = vadd.f32 %v1490_v2, %v1253_v10  ;;  %v1255_v14 = vpop.f32.mrb[3].mxu0  ;;  %v1468_v17 = vpack.c.bf16 %v1499_v9, %v1496_v4  ;;  %v1505_v19 = vadd.f32 %v1504_v61, %v1265_v15 }
 0x17a   :  { %v1466_v16 = vpack.c.bf16 %v1489_v8, %v1487_v3  ;;  %v1493_v18 = vadd.f32 %v1492_v7, %v1255_v14 }
 0x17b   :  { %1294 = vst [vmem:[%s2294_s3 + $0x10] sm:$0xff] %v1468_v17  ;;  %v1469_v21 = vpack.c.bf16 %v1505_v19, %v1502_v13 }
 0x17c   :  { %1292 = vst [vmem:[%s2294_s3] sm:$0xff] %v1466_v16  ;;  %v1467_v20 = vpack.c.bf16 %v1493_v18, %v1491_v12 }
 0x17d   :  { %1295 = vst [vmem:[%s2294_s3 + $0x18] sm:$0xff] %v1469_v21 }
 0x17e   :  { %1293 = vst [vmem:[%s2294_s3 + $0x8] sm:$0xff] %v1467_v20 }

// kernel: generator_a2b.56
= control target key start
LH: loop header
LB: loop body
LE: loop exit
PB: predicated region body
PF: predicated region fallthrough
CT: control target
= control target key end

     0   :  { %s625_s9 = smov 0   ;;  %s627_s10 = smov 0   ;;  %s740_s0 = inlined_call_operand.vmem [shape: bf16[2,16,256], index: 0, kind: input, shape index: {}]   ;;  %s741_s1 = inlined_call_operand.vmem [shape: bf16[2,16,256], index: 1, kind: input, shape index: {}]   ;;  %s742_s2 = inlined_call_operand.vmem [shape: bf16[2,16,256], index: 2, kind: output, shape index: {}]  }
   0x1   :  { %s629_s11 = smov 0   ;;  %s631_s12 = smov 0  }
   0x2   :  { %s633_s13 = smov 0   ;;  %s635_s14 = smov 0  }
   0x3   :  { %s637_s15 = smov 0  }
   0x4 LB: > { %s21_s16 = sadd.s32 1, %s600_s13  ;;  %s24_s17 = sadd.s32 1, %s604_s14  ;;  %s608_s15 = sphi %s637_s15, %s12_s15   ;;  %s604_s14 = sphi %s635_s14, %s750_s14   ;;  %s600_s13 = sphi %s633_s13, %s749_s13   ;;  %s596_s12 = sphi %s631_s12, %s748_s12   ;;  %s592_s11 = sphi %s629_s11, %s747_s11   ;;  %s588_s10 = sphi %s627_s10, %s746_s10   ;;  %s584_s9 = sphi %s625_s9, %s745_s9  }
   0x5   : > { %p22_p0 = scmp.ge.s32.totalorder %s21_s16, 2  ;;  %s460_s18 = sadd.s32 4294967295, %s608_s15  }
   0x6   : > { %p40_p1 = scmp.ne.s32.totalorder %s588_s10, %s584_s9  ;;  %p41_p2 = scmp.eq.s32.totalorder %s608_s15, 0 }
   0x7   : > { %s752_s16 = smov (%p22_p0, %s21_s16), 0  ;;  %s754_s17 = smov (!%p22_p0, %s24_s17), %s604_s14 }
   0x8   : > { %p26_p3 = scmp.ge.s32.totalorder %s754_s17, 2  ;;  %p100_p4 = scmp.eq.s32.totalorder %s460_s18, 3 }
   0x9   : > { %s29_s19 = ssub.s32 %s600_s13, %s752_s16  ;;  %p671_p5 = por %p41_p2, %p40_p1 }
   0xa   : > { %s756_s17 = smov (%p26_p3, %s754_s17), 0  ;;  %p677_p6 = por %p100_p4, %p40_p1 }
   0xb   : > { %s28_s22 = ssub.s32 %s604_s14, %s756_s17  ;;  %s33_s24 = sadd.s32 1, %s588_s10 }
   0xc   : > { %s30_s23 = sor.u32 %s29_s19, %s28_s22  ;;  %p463_p8 = scmp.ge.s32.totalorder %s608_s15, 4 }
   0xd   : > { %p31_p7 = scmp.eq.s32.totalorder %s30_s23, 0 }
   0xe   : > { %122 = sbr.rel (%p463_p8) target bundleno = 35 (0x23), region = 16 }
   0xf   : > { %s685_s25 = scalar_select %p31_p7, %s588_s10, %s33_s24  }
  0x15   : > { %125 = sbr.rel (!%p671_p5) target bundleno = 28 (0x1c), region = 20  ;;  %s127_s26 = sand.u32 (%p671_p5), 1, %s588_s10  }
  0x16   : > { %s465_s27 = sshll.u32 (%p671_p5), %s604_s14, 2  ;;  %s464_s28 = sshll.u32 (%p671_p5), %s127_s26, 3 }
  0x17   : > { %s131_s29 = sadd.s32 (%p671_p5), %s600_s13, %s465_s27  ;;  %s129_s6 = scalar_lea.vmem (%p671_p5), [#allocation2], %s464_s28 }
  0x18   : > { %s466_s30 = sshll.u32 (%p671_p5), %s131_s29, 2 }
  0x19   : > { %s133_s5 = scalar_lea.vmem (%p671_p5), %s740_s0, %s466_s30 }
  0x1a   : > { %v149_v0 = vld [vmem:[%s133_s5] sm:$0xf] (%p671_p5)  ;;  %v151_v1 = vld [vmem:[%s133_s5 + $0x8] sm:$0xf] (%p671_p5) }
  0x1b   : > { %150 = vst [vmem:[%s129_s6] sm:$0xf] (%p671_p5), %v149_v0  ;;  %152 = vst [vmem:[%s129_s6 + $0x4] sm:$0xf] (%p671_p5), %v151_v1 }
  0x1c PF: > { %179 = sbr.rel (!%p671_p5) target bundleno = 35 (0x23), region = 61  ;;  %s181_s7 = sand.u32 (%p671_p5), 1, %s588_s10  }
  0x1d   : > { %s468_s8 = sshll.u32 (%p671_p5), %s604_s14, 2  ;;  %s467_s18 = sshll.u32 (%p671_p5), %s181_s7, 3 }
  0x1e   : > { %s185_s19 = sadd.s32 (%p671_p5), %s600_s13, %s468_s8  ;;  %s183_s27 = scalar_lea.vmem (%p671_p5), [#allocation3], %s467_s18 }
  0x1f   : > { %s469_s22 = sshll.u32 (%p671_p5), %s185_s19, 2 }
  0x20   : > { %s187_s26 = scalar_lea.vmem (%p671_p5), %s741_s1, %s469_s22 }
  0x21   : > { %v203_v2 = vld [vmem:[%s187_s26] sm:$0xf] (%p671_p5)  ;;  %v205_v3 = vld [vmem:[%s187_s26 + $0x8] sm:$0xf] (%p671_p5) }
  0x22   : > { %204 = vst [vmem:[%s183_s27] sm:$0xf] (%p671_p5), %v203_v2  ;;  %206 = vst [vmem:[%s183_s27 + $0x4] sm:$0xf] (%p671_p5), %v205_v3 }
  0x23 PF: > { %p470_p9 = scmp.ge.s32.totalorder %s608_s15, 1  ;;  %p232_p10 = scmp.lt.s32.totalorder %s608_s15, 5 }
  0x25   : > { %p233_p11 = pnand %p470_p9, %p232_p10 }
  0x26   : > { %s239_s20 = sand.u32 (!%p233_p11), 1, %s584_s9  }
  0x27   : > { %236 = sbr.rel (%p233_p11) target bundleno = 108 (0x6c), region = 102  ;;  %s707_s28 = sshll.u32 (!%p233_p11), %s239_s20, 3 }
  0x28   : > { %s241_s29 = scalar_lea.vmem (!%p233_p11), [#allocation2], %s707_s28  ;;  %s248_s9 = scalar_lea.vmem (!%p233_p11), [#allocation3], %s707_s28 }
  0x29   : > { %v484_v4 = vld [vmem:[%s241_s29] sm:$0xff] (!%p233_p11)   ;;  %v488_v28 = vld [vmem:[%s248_s9] sm:$0xff] (!%p233_p11)   ;;  %s269_s30 = scalar_lea.vmem (!%p233_p11), [#allocation4], %s707_s28 }
  0x2a   : > { %v485_v5 = vunpack.c.l.bf16 (!%p233_p11), %v484_v4  ;;  %v486_v6 = vunpack.c.h.bf16 (!%p233_p11), %v484_v4  ;;  %v489_v29 = vunpack.c.l.bf16 (!%p233_p11), %v488_v28  ;;  %v490_v30 = vunpack.c.h.bf16 (!%p233_p11), %v488_v28 }
  0x2c   : > { %v274_v7 = vadd.f32 (!%p233_p11), %v486_v6, %v485_v5 }
  0x2e   : > { %v275_v8 = vrot.slane %v274_v7, 4  ;;  %s477_s3 = sshll.u32 (%p677_p6), %s596_s12, 2 }
  0x2f   : > { %s322_s4 = sadd.s32 (%p677_p6), %s592_s11, %s477_s3 }
  0x30   : > { %v276_v9 = vadd.f32 %v275_v8, %v274_v7  ;;  %s478_s5 = sshll.u32 (%p677_p6), %s322_s4, 2 }
  0x31   : > { %s324_s8 = scalar_lea.vmem (%p677_p6), %s742_s2, %s478_s5 }
  0x32   : > { %v277_v10 = vrot.slane %v276_v9, 2 }
  0x34   : > { %v278_v11 = vadd.f32 %v277_v10, %v276_v9 }
  0x36   : > { %v279_v12 = vrot.slane %v278_v11, 1 }
  0x38   : > { %v280_v13 = vadd.f32 %v279_v12, %v278_v11 }
  0x3a   : > { %v281_v14 = vmul.f32 0.0625, %v280_v13 }
  0x3c   : > { %v282_v15 = vsub.f32 %v485_v5, %v281_v14  ;;  %v283_v16 = vsub.f32 %v486_v6, %v281_v14 }
  0x3e   : > { %v284_v17 = vmul.f32 %v282_v15, %v282_v15  ;;  %v285_v18 = vmul.f32 %v283_v16, %v283_v16 }
  0x40   : > { %v286_v19 = vadd.f32 %v285_v18, %v284_v17 }
  0x42   : > { %v287_v20 = vrot.slane %v286_v19, 4 }
  0x44   : > { %v288_v21 = vadd.f32 %v287_v20, %v286_v19 }
  0x46   : > { %v289_v22 = vrot.slane %v288_v21, 2 }
  0x48   : > { %v290_v23 = vadd.f32 %v289_v22, %v288_v21 }
  0x4a   : > { %v291_v24 = vrot.slane %v290_v23, 1 }
  0x4c   : > { %v292_v25 = vadd.f32 %v291_v24, %v290_v23 }
  0x4e   : > { %v293_v26 = vmul.f32 0.0625, %v292_v25 }
  0x50   : > { %v294_v27 = vadd.f32 1e-05, %v293_v26 }
  0x52   : > { %552 = vrsqrt.f32 %v294_v27 }
  0x5c   : > { %v553_v31 = vpop.eup %552 }
  0x5d   : > { %v296_v32 = vmul.f32 %v553_v31, %v282_v15  ;;  %v297_v33 = vmul.f32 %v553_v31, %v283_v16  ;;  %320 = sbr.rel (!%p677_p6) target bundleno = 108 (0x6c), region = 114 }
  0x5f   : > { %v302_v34 = vadd.f32 %v489_v29, %v296_v32  ;;  %v303_v35 = vadd.f32 %v490_v30, %v297_v33 }
  0x61   : > { %v494_v36 = vpack.c.bf16 %v303_v35, %v302_v34 }
  0x63   : > { %495 = vst [vmem:[%s269_s30] sm:$0xff] %v494_v36  }
  0x6a   : > { %v340_v37 = vld [vmem:[%s269_s30] sm:$0xf]  ;;  %v342_v38 = vld [vmem:[%s269_s30 + $0x4] sm:$0xf] }
  0x6b   : > { %341 = vst [vmem:[%s324_s8] sm:$0xf] %v340_v37  ;;  %343 = vst [vmem:[%s324_s8 + $0x8] sm:$0xf] %v342_v38 }
  0x6c PF: > { %s12_s15 = sadd.s32 1, %s608_s15   ;;  %s745_s9 = smov %s588_s10 }
  0x6d   : > { %p9_p12 = scmp.ge.s32.totalorder %s12_s15, 6   ;;  %s746_s10 = smov %s685_s25 }
  0x6e   : > { %s747_s11 = smov %s600_s13  ;;  %s748_s12 = smov %s604_s14 }
  0x6f   : > { %s749_s13 = smov %s752_s16  ;;  %s750_s14 = smov %s756_s17 }
  0x70   :  { %11 = sbr.rel (!%p9_p12) target bundleno = 4 (0x4), region = 194 }

// kernel: generator_a2b.53
= control target key start
LH: loop header
LB: loop body
LE: loop exit
PB: predicated region body
PF: predicated region fallthrough
CT: control target
= control target key end

     0   :  { %s4408_s1 = inlined_call_operand.vmem [shape: bf16[2304,256], index: 1, kind: input, shape index: {}]   ;;  %s4409_s0 = inlined_call_operand.vmem [shape: bf16[32,2304], index: 0, kind: input, shape index: {}]   ;;  %s4410_s2 = inlined_call_operand.vmem [shape: f32[1,256], index: 2, kind: input, shape index: {}]   ;;  %s4411_s3 = inlined_call_operand.vmem [shape: bf16[32,256], index: 3, kind: output, shape index: {}]  }
   0x1   :  { %v2915_v0 = vld [vmem:[%s4408_s1 + $0x4] ss:$8 sps:$4 sm:$0xff]   ;;  %v2919_v2 = vld [vmem:[%s4408_s1] ss:$8 sps:$4 sm:$0xff]   ;;  %v2921_v4 = vld [vmem:[%s4408_s1 + $0x14] ss:$8 sps:$4 sm:$0xff]  }
   0x2   :  { %v2917_v1 = vld [vmem:[%s4408_s1 + $0x404] ss:$8 sps:$4 sm:$0xff]   ;;  %1970 = vmatprep.subr.bf16.mxu1 %v2915_v0  ;;  %v2920_v3 = vld [vmem:[%s4408_s1 + $0x400] ss:$8 sps:$4 sm:$0xff]   ;;  %v2923_v5 = vld [vmem:[%s4408_s1 + $0x414] ss:$8 sps:$4 sm:$0xff]  }
   0x3   :  { %2182 = vmatprep.subr.bf16.mxu0 %v2917_v1  ;;  %1971 = vmatpush1.bf16.msra.mxu1 %v2919_v2  ;;  %v2925_v6 = vld [vmem:[%s4408_s1 + $0x10] ss:$8 sps:$4 sm:$0xff]   ;;  %v2927_v8 = vld [vmem:[%s4408_s1 + $0x24] ss:$8 sps:$4 sm:$0xff]   ;;  %v2931_v10 = vld [vmem:[%s4408_s1 + $0x20] ss:$8 sps:$4 sm:$0xff]  }
   0x4   :  { %2183 = vmatpush1.bf16.msra.mxu0 %v2920_v3  ;;  %1972 = vmatprep.subr.bf16.mxu1 %v2921_v4  ;;  %v2926_v7 = vld [vmem:[%s4408_s1 + $0x410] ss:$8 sps:$4 sm:$0xff]   ;;  %v2929_v9 = vld [vmem:[%s4408_s1 + $0x424] ss:$8 sps:$4 sm:$0xff]   ;;  %v2932_v11 = vld [vmem:[%s4408_s1 + $0x420] ss:$8 sps:$4 sm:$0xff]  }
   0x5   :  { %2184 = vmatprep.subr.bf16.mxu0 %v2923_v5  ;;  %v2933_v12 = vld [vmem:[%s4408_s1 + $0x34] ss:$8 sps:$4 sm:$0xff]   ;;  %v2937_v14 = vld [vmem:[%s4408_s1 + $0x30] ss:$8 sps:$4 sm:$0xff]   ;;  %v2939_v16 = vld [vmem:[%s4408_s1 + $0x44] ss:$8 sps:$4 sm:$0xff]  }
   0x6   :  { %v2935_v13 = vld [vmem:[%s4408_s1 + $0x434] ss:$8 sps:$4 sm:$0xff]   ;;  %v2938_v15 = vld [vmem:[%s4408_s1 + $0x430] ss:$8 sps:$4 sm:$0xff]   ;;  %v2941_v17 = vld [vmem:[%s4408_s1 + $0x444] ss:$8 sps:$4 sm:$0xff]  }
   0x7   :  { %1973 = vmatpush1.bf16.msra.mxu1 %v2925_v6  ;;  %v2943_v18 = vld [vmem:[%s4408_s1 + $0x40] ss:$8 sps:$4 sm:$0xff]   ;;  %v2945_v20 = vld [vmem:[%s4408_s1 + $0x54] ss:$8 sps:$4 sm:$0xff]   ;;  %v2949_v22 = vld [vmem:[%s4408_s1 + $0x50] ss:$8 sps:$4 sm:$0xff]  }
   0x8   :  { %2185 = vmatpush1.bf16.msra.mxu0 %v2926_v7  ;;  %1974 = vmatprep.subr.bf16.mxu1 %v2927_v8  ;;  %v2944_v19 = vld [vmem:[%s4408_s1 + $0x440] ss:$8 sps:$4 sm:$0xff]   ;;  %v2947_v21 = vld [vmem:[%s4408_s1 + $0x454] ss:$8 sps:$4 sm:$0xff]   ;;  %v2950_v23 = vld [vmem:[%s4408_s1 + $0x450] ss:$8 sps:$4 sm:$0xff]  }
   0x9   :  { %2186 = vmatprep.subr.bf16.mxu0 %v2929_v9  ;;  %v2951_v24 = vld [vmem:[%s4408_s1 + $0x64] ss:$8 sps:$4 sm:$0xff]   ;;  %v2955_v26 = vld [vmem:[%s4408_s1 + $0x60] ss:$8 sps:$4 sm:$0xff]   ;;  %v2957_v28 = vld [vmem:[%s4408_s1 + $0x74] ss:$8 sps:$4 sm:$0xff]  }
   0xa   :  { %v2953_v25 = vld [vmem:[%s4408_s1 + $0x464] ss:$8 sps:$4 sm:$0xff]   ;;  %v2956_v27 = vld [vmem:[%s4408_s1 + $0x460] ss:$8 sps:$4 sm:$0xff]   ;;  %v2959_v29 = vld [vmem:[%s4408_s1 + $0x474] ss:$8 sps:$4 sm:$0xff]  }
   0xb   :  { %1975 = vmatpush1.bf16.msra.mxu1 %v2931_v10  ;;  %v2961_v30 = vld [vmem:[%s4408_s1 + $0x70] ss:$8 sps:$4 sm:$0xff]   ;;  %v2963_v32 = vld [vmem:[%s4408_s1 + $0x84] ss:$8 sps:$4 sm:$0xff]   ;;  %v2967_v34 = vld [vmem:[%s4408_s1 + $0x80] ss:$8 sps:$4 sm:$0xff]  }
   0xc   :  { %2187 = vmatpush1.bf16.msra.mxu0 %v2932_v11  ;;  %1976 = vmatprep.subr.bf16.mxu1 %v2933_v12  ;;  %v2962_v31 = vld [vmem:[%s4408_s1 + $0x470] ss:$8 sps:$4 sm:$0xff]   ;;  %v2965_v33 = vld [vmem:[%s4408_s1 + $0x484] ss:$8 sps:$4 sm:$0xff]   ;;  %v2968_v35 = vld [vmem:[%s4408_s1 + $0x480] ss:$8 sps:$4 sm:$0xff]  }
   0xd   :  { %2188 = vmatprep.subr.bf16.mxu0 %v2935_v13  ;;  %v2969_v36 = vld [vmem:[%s4408_s1 + $0x94] ss:$8 sps:$4 sm:$0xff]   ;;  %v2973_v38 = vld [vmem:[%s4408_s1 + $0x90] ss:$8 sps:$4 sm:$0xff]   ;;  %v2975_v40 = vld [vmem:[%s4408_s1 + $0xa4] ss:$8 sps:$4 sm:$0xff]  }
   0xe   :  { %v2971_v37 = vld [vmem:[%s4408_s1 + $0x494] ss:$8 sps:$4 sm:$0xff]   ;;  %v2974_v39 = vld [vmem:[%s4408_s1 + $0x490] ss:$8 sps:$4 sm:$0xff]   ;;  %v2977_v41 = vld [vmem:[%s4408_s1 + $0x4a4] ss:$8 sps:$4 sm:$0xff]  }
   0xf   :  { %1977 = vmatpush1.bf16.msra.mxu1 %v2937_v14  ;;  %v2979_v42 = vld [vmem:[%s4408_s1 + $0xa0] ss:$8 sps:$4 sm:$0xff]   ;;  %v2981_v44 = vld [vmem:[%s4408_s1 + $0xb4] ss:$8 sps:$4 sm:$0xff]   ;;  %v2985_v46 = vld [vmem:[%s4408_s1 + $0xb0] ss:$8 sps:$4 sm:$0xff]  }
  0x10   :  { %2189 = vmatpush1.bf16.msra.mxu0 %v2938_v15  ;;  %1978 = vmatprep.subr.bf16.mxu1 %v2939_v16  ;;  %v2980_v43 = vld [vmem:[%s4408_s1 + $0x4a0] ss:$8 sps:$4 sm:$0xff]   ;;  %v2983_v45 = vld [vmem:[%s4408_s1 + $0x4b4] ss:$8 sps:$4 sm:$0xff]   ;;  %v2986_v47 = vld [vmem:[%s4408_s1 + $0x4b0] ss:$8 sps:$4 sm:$0xff]  }
  0x11   :  { %2190 = vmatprep.subr.bf16.mxu0 %v2941_v17  ;;  %v3013_v48 = vld [vmem:[%s4409_s0 + $0x4] ss:$72 sps:$4 sm:$0xff]   ;;  %v2991_v52 = vld [vmem:[%s4408_s1 + $0xc0] ss:$8 sps:$4 sm:$0xff]   ;;  %v2993_v54 = vld [vmem:[%s4408_s1 + $0xd4] ss:$8 sps:$4 sm:$0xff]  }
  0x12   :  { %v2987_v49 = vld [vmem:[%s4408_s1 + $0xc4] ss:$8 sps:$4 sm:$0xff]   ;;  %2002 = vmatprep.mubr.bf16.mxu1 %v3013_v48  ;;  %v2992_v53 = vld [vmem:[%s4408_s1 + $0x4c0] ss:$8 sps:$4 sm:$0xff]   ;;  %v2995_v55 = vld [vmem:[%s4408_s1 + $0x4d4] ss:$8 sps:$4 sm:$0xff]  }
  0x13   :  { %1979 = vmatpush1.bf16.msra.mxu1 %v2943_v18  ;;  %v2989_v50 = vld [vmem:[%s4408_s1 + $0x4c4] ss:$8 sps:$4 sm:$0xff]   ;;  %v2997_v56 = vld [vmem:[%s4408_s1 + $0xd0] ss:$8 sps:$4 sm:$0xff]   ;;  %v3003_v60 = vld [vmem:[%s4408_s1 + $0xe0] ss:$8 sps:$4 sm:$0xff]  }
  0x14   :  { %2191 = vmatpush1.bf16.msra.mxu0 %v2944_v19  ;;  %1980 = vmatprep.subr.bf16.mxu1 %v2945_v20  ;;  %v3019_v51 = vld [vmem:[%s4409_s0 + $0x24] ss:$72 sps:$4 sm:$0xff]   ;;  %v2998_v57 = vld [vmem:[%s4408_s1 + $0x4d0] ss:$8 sps:$4 sm:$0xff]   ;;  %v3004_v61 = vld [vmem:[%s4408_s1 + $0x4e0] ss:$8 sps:$4 sm:$0xff]  }
  0x15   :  { %2192 = vmatprep.subr.bf16.mxu0 %v2947_v21  ;;  %2214 = vmatprep.mubr.bf16.mxu0 %v3019_v51  ;;  %v2999_v58 = vld [vmem:[%s4408_s1 + $0xe4] ss:$8 sps:$4 sm:$0xff]   ;;  %v3005_v62 = vld [vmem:[%s4408_s1 + $0xf4] ss:$8 sps:$4 sm:$0xff]   ;;  %v3009_v0 = vld [vmem:[%s4408_s1 + $0xf0] ss:$8 sps:$4 sm:$0xff]  }
  0x16   :  { %v3001_v59 = vld [vmem:[%s4408_s1 + $0x4e4] ss:$8 sps:$4 sm:$0xff]   ;;  %v3007_v63 = vld [vmem:[%s4408_s1 + $0x4f4] ss:$8 sps:$4 sm:$0xff]   ;;  %v3010_v1 = vld [vmem:[%s4408_s1 + $0x4f0] ss:$8 sps:$4 sm:$0xff]  }
  0x17   :  { %1981 = vmatpush1.bf16.msra.mxu1 %v2949_v22  ;;  %v3016_v2 = vld [vmem:[%s4408_s1 + $0x104] ss:$8 sps:$4 sm:$0xff]   ;;  %v3011_v4 = vld [vmem:[%s4409_s0] ss:$72 sps:$4 sm:$0xff]   ;;  %v3025_v8 = vld [vmem:[%s4408_s1 + $0x114] ss:$8 sps:$4 sm:$0xff]  }
  0x18   :  { %2193 = vmatpush1.bf16.msra.mxu0 %v2950_v23  ;;  %1982 = vmatprep.subr.bf16.mxu1 %v2951_v24  ;;  %v3022_v3 = vld [vmem:[%s4408_s1 + $0x504] ss:$8 sps:$4 sm:$0xff]   ;;  %v3014_v5 = vld [vmem:[%s4408_s1 + $0x100] ss:$8 sps:$4 sm:$0xff]   ;;  %v3028_v9 = vld [vmem:[%s4408_s1 + $0x514] ss:$8 sps:$4 sm:$0xff]  }
  0x19   :  { %2194 = vmatprep.subr.bf16.mxu0 %v2953_v25  ;;  %v3017_v6 = vld [vmem:[%s4409_s0 + $0x20] ss:$72 sps:$4 sm:$0xff]   ;;  %v3023_v10 = vld [vmem:[%s4408_s1 + $0x110] ss:$8 sps:$4 sm:$0xff]   ;;  %v3031_v12 = vld [vmem:[%s4408_s1 + $0x124] ss:$8 sps:$4 sm:$0xff]  }
  0x1a   :  { %v3020_v7 = vld [vmem:[%s4408_s1 + $0x500] ss:$8 sps:$4 sm:$0xff]   ;;  %v3026_v11 = vld [vmem:[%s4408_s1 + $0x510] ss:$8 sps:$4 sm:$0xff]   ;;  %v3034_v13 = vld [vmem:[%s4408_s1 + $0x524] ss:$8 sps:$4 sm:$0xff]  }
  0x1b   :  { %1983 = vmatpush1.bf16.msra.mxu1 %v2955_v26  ;;  %v3029_v14 = vld [vmem:[%s4408_s1 + $0x120] ss:$8 sps:$4 sm:$0xff]   ;;  %v3037_v16 = vld [vmem:[%s4408_s1 + $0x134] ss:$8 sps:$4 sm:$0xff]   ;;  %v3035_v18 = vld [vmem:[%s4408_s1 + $0x130] ss:$8 sps:$4 sm:$0xff]  }
  0x1c   :  { %2195 = vmatpush1.bf16.msra.mxu0 %v2956_v27  ;;  %1984 = vmatprep.subr.bf16.mxu1 %v2957_v28  ;;  %v3032_v15 = vld [vmem:[%s4408_s1 + $0x520] ss:$8 sps:$4 sm:$0xff]   ;;  %v3040_v17 = vld [vmem:[%s4408_s1 + $0x534] ss:$8 sps:$4 sm:$0xff]   ;;  %v3038_v19 = vld [vmem:[%s4408_s1 + $0x530] ss:$8 sps:$4 sm:$0xff]  }
  0x1d   :  { %2196 = vmatprep.subr.bf16.mxu0 %v2959_v29  ;;  %v3043_v20 = vld [vmem:[%s4408_s1 + $0x144] ss:$8 sps:$4 sm:$0xff]   ;;  %v3041_v22 = vld [vmem:[%s4408_s1 + $0x140] ss:$8 sps:$4 sm:$0xff]   ;;  %v3049_v24 = vld [vmem:[%s4408_s1 + $0x154] ss:$8 sps:$4 sm:$0xff]  }
  0x1e   :  { %v3046_v21 = vld [vmem:[%s4408_s1 + $0x544] ss:$8 sps:$4 sm:$0xff]   ;;  %v3044_v23 = vld [vmem:[%s4408_s1 + $0x540] ss:$8 sps:$4 sm:$0xff]   ;;  %v3052_v25 = vld [vmem:[%s4408_s1 + $0x554] ss:$8 sps:$4 sm:$0xff]  }
  0x1f   :  { %1985 = vmatpush1.bf16.msra.mxu1 %v2961_v30  ;;  %v3047_v26 = vld [vmem:[%s4408_s1 + $0x150] ss:$8 sps:$4 sm:$0xff]   ;;  %v3101_v28 = vld [vmem:[%s4409_s0 + $0x94] ss:$72 sps:$4 sm:$0xff]   ;;  %v3055_v29 = vld [vmem:[%s4408_s1 + $0x164] ss:$8 sps:$4 sm:$0xff]  }
  0x20   :  { %2197 = vmatpush1.bf16.msra.mxu0 %v2962_v31  ;;  %1986 = vmatprep.subr.bf16.mxu1 %v2963_v32  ;;  %v3050_v27 = vld [vmem:[%s4408_s1 + $0x550] ss:$8 sps:$4 sm:$0xff]   ;;  %v3058_v30 = vld [vmem:[%s4408_s1 + $0x564] ss:$8 sps:$4 sm:$0xff]   ;;  %v3106_v31 = vld [vmem:[%s4409_s0 + $0xb4] ss:$72 sps:$4 sm:$0xff]  }
  0x21   :  { %2198 = vmatprep.subr.bf16.mxu0 %v2965_v33  ;;  %v3053_v32 = vld [vmem:[%s4408_s1 + $0x160] ss:$8 sps:$4 sm:$0xff]   ;;  %v3071_v48 = vld [vmem:[%s4408_s1 + $0x190] ss:$8 sps:$4 sm:$0xff]   ;;  %v3082_v51 = vld [vmem:[%s4408_s1 + $0x5a4] ss:$8 sps:$4 sm:$0xff]  }
  0x22   :  { %v3056_v33 = vld [vmem:[%s4408_s1 + $0x560] ss:$8 sps:$4 sm:$0xff]  }
  0x23   :  { %1987 = vmatpush1.bf16.msra.mxu1 %v2967_v34  ;;  %v3111_v34 = vld [vmem:[%s4409_s0 + $0x90] ss:$72 sps:$4 sm:$0xff]  }
  0x24   :  { %2199 = vmatpush1.bf16.msra.mxu0 %v2968_v35  ;;  %1988 = vmatprep.subr.bf16.mxu1 %v2969_v36  ;;  %v3112_v35 = vld [vmem:[%s4409_s0 + $0xb0] ss:$72 sps:$4 sm:$0xff]   ;;  %v3061_v36 = vld [vmem:[%s4408_s1 + $0x174] ss:$8 sps:$4 sm:$0xff]  }
  0x25   :  { %2200 = vmatprep.subr.bf16.mxu0 %v2971_v37  ;;  %v3064_v37 = vld [vmem:[%s4408_s1 + $0x574] ss:$8 sps:$4 sm:$0xff]  }
  0x27   :  { %1989 = vmatpush1.bf16.msra.mxu1 %v2973_v38  ;;  %v3059_v38 = vld [vmem:[%s4408_s1 + $0x170] ss:$8 sps:$4 sm:$0xff]  }
  0x28   :  { %2201 = vmatpush1.bf16.msra.mxu0 %v2974_v39  ;;  %1990 = vmatprep.subr.bf16.mxu1 %v2975_v40  ;;  %v3062_v39 = vld [vmem:[%s4408_s1 + $0x570] ss:$8 sps:$4 sm:$0xff]   ;;  %v3121_v40 = vld [vmem:[%s4409_s0 + $0xc] ss:$72 sps:$4 sm:$0xff]  }
  0x29   :  { %2202 = vmatprep.subr.bf16.mxu0 %v2977_v41  ;;  %v3067_v41 = vld [vmem:[%s4408_s1 + $0x184] ss:$8 sps:$4 sm:$0xff]  }
  0x2b   :  { %1991 = vmatpush1.bf16.msra.mxu1 %v2979_v42  ;;  %v3070_v42 = vld [vmem:[%s4408_s1 + $0x584] ss:$8 sps:$4 sm:$0xff]  }
  0x2c   :  { %2203 = vmatpush1.bf16.msra.mxu0 %v2980_v43  ;;  %1992 = vmatprep.subr.bf16.mxu1 %v2981_v44  ;;  %v3127_v43 = vld [vmem:[%s4409_s0 + $0x2c] ss:$72 sps:$4 sm:$0xff]   ;;  %v3065_v44 = vld [vmem:[%s4408_s1 + $0x180] ss:$8 sps:$4 sm:$0xff]  }
  0x2d   :  { %2204 = vmatprep.subr.bf16.mxu0 %v2983_v45  ;;  %v3068_v45 = vld [vmem:[%s4408_s1 + $0x580] ss:$8 sps:$4 sm:$0xff]  }
  0x2f   :  { %1993 = vmatpush1.bf16.msra.mxu1 %v2985_v46  ;;  %v3073_v46 = vld [vmem:[%s4408_s1 + $0x194] ss:$8 sps:$4 sm:$0xff]  }
  0x30   :  { %2205 = vmatpush1.bf16.msra.mxu0 %v2986_v47  ;;  %1994 = vmatprep.subr.bf16.mxu1 %v2987_v49  ;;  %v3076_v47 = vld [vmem:[%s4408_s1 + $0x594] ss:$8 sps:$4 sm:$0xff]   ;;  %v3074_v49 = vld [vmem:[%s4408_s1 + $0x590] ss:$8 sps:$4 sm:$0xff]  }
  0x31   :  { %2206 = vmatprep.subr.bf16.mxu0 %v2989_v50  ;;  %v3079_v50 = vld [vmem:[%s4408_s1 + $0x1a4] ss:$8 sps:$4 sm:$0xff]  }
  0x33   :  { %1995 = vmatpush1.bf16.msra.mxu1 %v2991_v52  ;;  %v3077_v52 = vld [vmem:[%s4408_s1 + $0x1a0] ss:$8 sps:$4 sm:$0xff]  }
  0x34   :  { %2207 = vmatpush1.bf16.msra.mxu0 %v2992_v53  ;;  %1996 = vmatprep.subr.bf16.mxu1 %v2993_v54  ;;  %v3080_v53 = vld [vmem:[%s4408_s1 + $0x5a0] ss:$8 sps:$4 sm:$0xff]   ;;  %v3085_v54 = vld [vmem:[%s4408_s1 + $0x1b4] ss:$8 sps:$4 sm:$0xff]  }
  0x35   :  { %2208 = vmatprep.subr.bf16.mxu0 %v2995_v55  ;;  %v3088_v55 = vld [vmem:[%s4408_s1 + $0x5b4] ss:$8 sps:$4 sm:$0xff]  }
  0x37   :  { %1997 = vmatpush1.bf16.msra.mxu1 %v2997_v56  ;;  %v3083_v56 = vld [vmem:[%s4408_s1 + $0x1b0] ss:$8 sps:$4 sm:$0xff]  }
  0x38   :  { %2209 = vmatpush1.bf16.msra.mxu0 %v2998_v57  ;;  %1998 = vmatprep.subr.bf16.mxu1 %v2999_v58  ;;  %v3086_v57 = vld [vmem:[%s4408_s1 + $0x5b0] ss:$8 sps:$4 sm:$0xff]   ;;  %v3091_v58 = vld [vmem:[%s4408_s1 + $0x1c4] ss:$8 sps:$4 sm:$0xff]  }
  0x39   :  { %2210 = vmatprep.subr.bf16.mxu0 %v3001_v59  ;;  %v3094_v59 = vld [vmem:[%s4408_s1 + $0x5c4] ss:$8 sps:$4 sm:$0xff]  }
  0x3b   :  { %1999 = vmatpush1.bf16.msra.mxu1 %v3003_v60  ;;  %v3089_v60 = vld [vmem:[%s4408_s1 + $0x1c0] ss:$8 sps:$4 sm:$0xff]  }
  0x3c   :  { %2211 = vmatpush1.bf16.msra.mxu0 %v3004_v61  ;;  %2000 = vmatprep.subr.bf16.mxu1 %v3005_v62  ;;  %v3092_v61 = vld [vmem:[%s4408_s1 + $0x5c0] ss:$8 sps:$4 sm:$0xff]   ;;  %v3097_v62 = vld [vmem:[%s4408_s1 + $0x1d4] ss:$8 sps:$4 sm:$0xff]  }
  0x3d   :  { %2212 = vmatprep.subr.bf16.mxu0 %v3007_v63  ;;  %v3100_v63 = vld [vmem:[%s4408_s1 + $0x5d4] ss:$8 sps:$4 sm:$0xff]  }
  0x3f   :  { %2001 = vmatpush1.bf16.msra.mxu1 %v3009_v0  ;;  %v3095_v0 = vld [vmem:[%s4408_s1 + $0x1d0] ss:$8 sps:$4 sm:$0xff]  }
  0x40   :  { %2213 = vmatpush1.bf16.msra.mxu0 %v3010_v1  ;;  %2023 = vmatprep.subr.bf16.mxu1 %v3016_v2  ;;  %v3098_v1 = vld [vmem:[%s4408_s1 + $0x5d0] ss:$8 sps:$4 sm:$0xff]   ;;  %v3105_v2 = vld [vmem:[%s4408_s1 + $0x1e4] ss:$8 sps:$4 sm:$0xff]  }
  0x41   :  { %2235 = vmatprep.subr.bf16.mxu0 %v3022_v3  ;;  %v3110_v3 = vld [vmem:[%s4408_s1 + $0x5e4] ss:$8 sps:$4 sm:$0xff]  }
  0x42   :  { %2003 = vmatmul.mubr.bf16.vlgmr.msra.gmra.mrb[0].mxu1 %v3011_v4  ;;  %v3103_v4 = vld [vmem:[%s4408_s1 + $0x1e0] ss:$8 sps:$4 sm:$0xff]  }
  0x43   :  { %2215 = vmatmul.mubr.bf16.vlgmr.msra.gmra.mrb[0].mxu0 %v3017_v6  ;;  %2024 = vmatpush1.bf16.msra.mxu1 %v3014_v5  ;;  %v3108_v5 = vld [vmem:[%s4408_s1 + $0x5e0] ss:$8 sps:$4 sm:$0xff]   ;;  %v3115_v6 = vld [vmem:[%s4408_s1 + $0x1f4] ss:$8 sps:$4 sm:$0xff]  }
  0x44   :  { %2236 = vmatpush1.bf16.msra.mxu0 %v3020_v7  ;;  %2025 = vmatprep.subr.bf16.mxu1 %v3025_v8  ;;  %v3118_v7 = vld [vmem:[%s4408_s1 + $0x5f4] ss:$8 sps:$4 sm:$0xff]   ;;  %v3113_v8 = vld [vmem:[%s4408_s1 + $0x1f0] ss:$8 sps:$4 sm:$0xff]  }
  0x45   :  { %2237 = vmatprep.subr.bf16.mxu0 %v3028_v9  ;;  %2012 = vmatprep.mubr.bf16.mxu1 %v3101_v28  ;;  %v3116_v9 = vld [vmem:[%s4408_s1 + $0x5f0] ss:$8 sps:$4 sm:$0xff]   ;;  %v3145_v28 = vld [vmem:[%s4408_s1 + $0x234] ss:$8 sps:$4 sm:$0xff]  }
  0x46   :  { %2224 = vmatprep.mubr.bf16.mxu0 %v3106_v31  ;;  %v3146_v31 = vld [vmem:[%s4408_s1 + $0x630] ss:$8 sps:$4 sm:$0xff]  }
  0x47   :  { %2026 = vmatpush1.bf16.msra.mxu1 %v3023_v10  ;;  %v3124_v10 = vld [vmem:[%s4408_s1 + $0x204] ss:$8 sps:$4 sm:$0xff]  }
  0x48   :  { %2238 = vmatpush1.bf16.msra.mxu0 %v3026_v11  ;;  %2027 = vmatprep.subr.bf16.mxu1 %v3031_v12  ;;  %v3130_v11 = vld [vmem:[%s4408_s1 + $0x604] ss:$8 sps:$4 sm:$0xff]   ;;  %v3119_v12 = vld [vmem:[%s4409_s0 + $0x8] ss:$72 sps:$4 sm:$0xff]  }
  0x49   :  { %2239 = vmatprep.subr.bf16.mxu0 %v3034_v13  ;;  %v3122_v13 = vld [vmem:[%s4408_s1 + $0x200] ss:$8 sps:$4 sm:$0xff]  }
  0x4a   :  { %2013 = vmatmul.mubr.bf16.gmra.mrb[4].mxu1 %v3111_v34  ;;  %v3154_v34 = vld [vmem:[%s4408_s1 + $0x644] ss:$8 sps:$4 sm:$0xff]  }
  0x4b   :  { %2028 = vmatpush1.bf16.msra.mxu1 %v3029_v14  ;;  %2225 = vmatmul.mubr.bf16.gmra.mrb[4].mxu0 %v3112_v35  ;;  %v3125_v14 = vld [vmem:[%s4409_s0 + $0x28] ss:$72 sps:$4 sm:$0xff]   ;;  %v3235_v35 = vld [vmem:[%s4409_s0 + $0x34] ss:$72 sps:$4 sm:$0xff]  }
  0x4c   :  { %2240 = vmatpush1.bf16.msra.mxu0 %v3032_v15  ;;  %2029 = vmatprep.subr.bf16.mxu1 %v3037_v16  ;;  %v3128_v15 = vld [vmem:[%s4408_s1 + $0x600] ss:$8 sps:$4 sm:$0xff]   ;;  %v3133_v16 = vld [vmem:[%s4408_s1 + $0x214] ss:$8 sps:$4 sm:$0xff]  }
  0x4d   :  { %2241 = vmatprep.subr.bf16.mxu0 %v3040_v17  ;;  %2055 = vmatprep.mubr.bf16.mxu1 %v3121_v40  ;;  %v3136_v17 = vld [vmem:[%s4408_s1 + $0x614] ss:$8 sps:$4 sm:$0xff]   ;;  %v3155_v40 = vld [vmem:[%s4408_s1 + $0x250] ss:$8 sps:$4 sm:$0xff]  }
  0x4e   :  { %2267 = vmatprep.mubr.bf16.mxu0 %v3127_v43  ;;  %v3166_v43 = vld [vmem:[%s4408_s1 + $0x664] ss:$8 sps:$4 sm:$0xff]  }
  0x4f   :  { %2030 = vmatpush1.bf16.msra.mxu1 %v3035_v18  ;;  %v3131_v18 = vld [vmem:[%s4408_s1 + $0x210] ss:$8 sps:$4 sm:$0xff]  }
  0x50   :  { %2242 = vmatpush1.bf16.msra.mxu0 %v3038_v19  ;;  %2031 = vmatprep.subr.bf16.mxu1 %v3043_v20  ;;  %v3134_v19 = vld [vmem:[%s4408_s1 + $0x610] ss:$8 sps:$4 sm:$0xff]   ;;  %v3209_v20 = vld [vmem:[%s4409_s0 + $0x9c] ss:$72 sps:$4 sm:$0xff]  }
  0x51   :  { %2243 = vmatprep.subr.bf16.mxu0 %v3046_v21  ;;  %v3139_v21 = vld [vmem:[%s4408_s1 + $0x224] ss:$8 sps:$4 sm:$0xff]  }
  0x53   :  { %2032 = vmatpush1.bf16.msra.mxu1 %v3041_v22  ;;  %v3142_v22 = vld [vmem:[%s4408_s1 + $0x624] ss:$8 sps:$4 sm:$0xff]  }
  0x54   :  { %2244 = vmatpush1.bf16.msra.mxu0 %v3044_v23  ;;  %2033 = vmatprep.subr.bf16.mxu1 %v3049_v24  ;;  %v3214_v23 = vld [vmem:[%s4409_s0 + $0xbc] ss:$72 sps:$4 sm:$0xff]   ;;  %v3137_v24 = vld [vmem:[%s4408_s1 + $0x220] ss:$8 sps:$4 sm:$0xff]  }
  0x55   :  { %2245 = vmatprep.subr.bf16.mxu0 %v3052_v25  ;;  %v3140_v25 = vld [vmem:[%s4408_s1 + $0x620] ss:$8 sps:$4 sm:$0xff]  }
  0x57   :  { %2034 = vmatpush1.bf16.msra.mxu1 %v3047_v26  ;;  %v3219_v26 = vld [vmem:[%s4409_s0 + $0x98] ss:$72 sps:$4 sm:$0xff]  }
  0x58   :  { %2246 = vmatpush1.bf16.msra.mxu0 %v3050_v27  ;;  %2035 = vmatprep.subr.bf16.mxu1 %v3055_v29  ;;  %v3220_v27 = vld [vmem:[%s4409_s0 + $0xb8] ss:$72 sps:$4 sm:$0xff]   ;;  %v3148_v29 = vld [vmem:[%s4408_s1 + $0x634] ss:$8 sps:$4 sm:$0xff]  }
  0x59   :  { %2247 = vmatprep.subr.bf16.mxu0 %v3058_v30  ;;  %v3143_v30 = vld [vmem:[%s4408_s1 + $0x230] ss:$8 sps:$4 sm:$0xff]  }
  0x5b   :  { %2036 = vmatpush1.bf16.msra.mxu1 %v3053_v32  ;;  %v3229_v32 = vld [vmem:[%s4409_s0 + $0x14] ss:$72 sps:$4 sm:$0xff]  }
  0x5c   :  { %2248 = vmatpush1.bf16.msra.mxu0 %v3056_v33  ;;  %2037 = vmatprep.subr.bf16.mxu1 %v3061_v36  ;;  %v3151_v33 = vld [vmem:[%s4408_s1 + $0x244] ss:$8 sps:$4 sm:$0xff]   ;;  %v3149_v36 = vld [vmem:[%s4408_s1 + $0x240] ss:$8 sps:$4 sm:$0xff]  }
  0x5d   :  { %2249 = vmatprep.subr.bf16.mxu0 %v3064_v37  ;;  %v3152_v37 = vld [vmem:[%s4408_s1 + $0x640] ss:$8 sps:$4 sm:$0xff]  }
  0x5f   :  { %2038 = vmatpush1.bf16.msra.mxu1 %v3059_v38  ;;  %v3157_v38 = vld [vmem:[%s4408_s1 + $0x254] ss:$8 sps:$4 sm:$0xff]  }
  0x60   :  { %2250 = vmatpush1.bf16.msra.mxu0 %v3062_v39  ;;  %2039 = vmatprep.subr.bf16.mxu1 %v3067_v41  ;;  %v3160_v39 = vld [vmem:[%s4408_s1 + $0x654] ss:$8 sps:$4 sm:$0xff]   ;;  %v3158_v41 = vld [vmem:[%s4408_s1 + $0x650] ss:$8 sps:$4 sm:$0xff]  }
  0x61   :  { %2251 = vmatprep.subr.bf16.mxu0 %v3070_v42  ;;  %v3163_v42 = vld [vmem:[%s4408_s1 + $0x264] ss:$8 sps:$4 sm:$0xff]  }
  0x63   :  { %2040 = vmatpush1.bf16.msra.mxu1 %v3065_v44  ;;  %v3161_v44 = vld [vmem:[%s4408_s1 + $0x260] ss:$8 sps:$4 sm:$0xff]  }
  0x64   :  { %2252 = vmatpush1.bf16.msra.mxu0 %v3068_v45  ;;  %2041 = vmatprep.subr.bf16.mxu1 %v3073_v46  ;;  %v3164_v45 = vld [vmem:[%s4408_s1 + $0x660] ss:$8 sps:$4 sm:$0xff]   ;;  %v3169_v46 = vld [vmem:[%s4408_s1 + $0x274] ss:$8 sps:$4 sm:$0xff]  }
  0x65   :  { %2253 = vmatprep.subr.bf16.mxu0 %v3076_v47  ;;  %v3172_v47 = vld [vmem:[%s4408_s1 + $0x674] ss:$8 sps:$4 sm:$0xff]  }
  0x67   :  { %2042 = vmatpush1.bf16.msra.mxu1 %v3071_v48  ;;  %v3167_v48 = vld [vmem:[%s4408_s1 + $0x270] ss:$8 sps:$4 sm:$0xff]  }
  0x68   :  { %2254 = vmatpush1.bf16.msra.mxu0 %v3074_v49  ;;  %2043 = vmatprep.subr.bf16.mxu1 %v3079_v50  ;;  %v3170_v49 = vld [vmem:[%s4408_s1 + $0x670] ss:$8 sps:$4 sm:$0xff]   ;;  %v3175_v50 = vld [vmem:[%s4408_s1 + $0x284] ss:$8 sps:$4 sm:$0xff]  }
  0x69   :  { %2255 = vmatprep.subr.bf16.mxu0 %v3082_v51  ;;  %v3178_v51 = vld [vmem:[%s4408_s1 + $0x684] ss:$8 sps:$4 sm:$0xff]  }
  0x6b   :  { %2044 = vmatpush1.bf16.msra.mxu1 %v3077_v52  ;;  %v3173_v52 = vld [vmem:[%s4408_s1 + $0x280] ss:$8 sps:$4 sm:$0xff]  }
  0x6c   :  { %2256 = vmatpush1.bf16.msra.mxu0 %v3080_v53  ;;  %2045 = vmatprep.subr.bf16.mxu1 %v3085_v54  ;;  %v3176_v53 = vld [vmem:[%s4408_s1 + $0x680] ss:$8 sps:$4 sm:$0xff]   ;;  %v3181_v54 = vld [vmem:[%s4408_s1 + $0x294] ss:$8 sps:$4 sm:$0xff]  }
  0x6d   :  { %2257 = vmatprep.subr.bf16.mxu0 %v3088_v55  ;;  %v3184_v55 = vld [vmem:[%s4408_s1 + $0x694] ss:$8 sps:$4 sm:$0xff]  }
  0x6f   :  { %2046 = vmatpush1.bf16.msra.mxu1 %v3083_v56  ;;  %v3179_v56 = vld [vmem:[%s4408_s1 + $0x290] ss:$8 sps:$4 sm:$0xff]  }
  0x70   :  { %2258 = vmatpush1.bf16.msra.mxu0 %v3086_v57  ;;  %2047 = vmatprep.subr.bf16.mxu1 %v3091_v58  ;;  %v3182_v57 = vld [vmem:[%s4408_s1 + $0x690] ss:$8 sps:$4 sm:$0xff]   ;;  %v3187_v58 = vld [vmem:[%s4408_s1 + $0x2a4] ss:$8 sps:$4 sm:$0xff]  }
  0x71   :  { %2259 = vmatprep.subr.bf16.mxu0 %v3094_v59  ;;  %v3190_v59 = vld [vmem:[%s4408_s1 + $0x6a4] ss:$8 sps:$4 sm:$0xff]  }
  0x73   :  { %2048 = vmatpush1.bf16.msra.mxu1 %v3089_v60  ;;  %v3185_v60 = vld [vmem:[%s4408_s1 + $0x2a0] ss:$8 sps:$4 sm:$0xff]  }
  0x74   :  { %2260 = vmatpush1.bf16.msra.mxu0 %v3092_v61  ;;  %2049 = vmatprep.subr.bf16.mxu1 %v3097_v62  ;;  %v3188_v61 = vld [vmem:[%s4408_s1 + $0x6a0] ss:$8 sps:$4 sm:$0xff]   ;;  %v3193_v62 = vld [vmem:[%s4408_s1 + $0x2b4] ss:$8 sps:$4 sm:$0xff]  }
  0x75   :  { %2261 = vmatprep.subr.bf16.mxu0 %v3100_v63  ;;  %v3196_v63 = vld [vmem:[%s4408_s1 + $0x6b4] ss:$8 sps:$4 sm:$0xff]  }
  0x77   :  { %2050 = vmatpush1.bf16.msra.mxu1 %v3095_v0  ;;  %v3191_v0 = vld [vmem:[%s4408_s1 + $0x2b0] ss:$8 sps:$4 sm:$0xff]  }
  0x78   :  { %2262 = vmatpush1.bf16.msra.mxu0 %v3098_v1  ;;  %2051 = vmatprep.subr.bf16.mxu1 %v3105_v2  ;;  %v3194_v1 = vld [vmem:[%s4408_s1 + $0x6b0] ss:$8 sps:$4 sm:$0xff]   ;;  %v3199_v2 = vld [vmem:[%s4408_s1 + $0x2c4] ss:$8 sps:$4 sm:$0xff]  }
  0x79   :  { %2263 = vmatprep.subr.bf16.mxu0 %v3110_v3  ;;  %v3202_v3 = vld [vmem:[%s4408_s1 + $0x6c4] ss:$8 sps:$4 sm:$0xff]  }
  0x7b   :  { %2052 = vmatpush1.bf16.msra.mxu1 %v3103_v4  ;;  %v3197_v4 = vld [vmem:[%s4408_s1 + $0x2c0] ss:$8 sps:$4 sm:$0xff]  }
  0x7c   :  { %2264 = vmatpush1.bf16.msra.mxu0 %v3108_v5  ;;  %2053 = vmatprep.subr.bf16.mxu1 %v3115_v6  ;;  %v3200_v5 = vld [vmem:[%s4408_s1 + $0x6c0] ss:$8 sps:$4 sm:$0xff]   ;;  %v3205_v6 = vld [vmem:[%s4408_s1 + $0x2d4] ss:$8 sps:$4 sm:$0xff]  }
  0x7d   :  { %2265 = vmatprep.subr.bf16.mxu0 %v3118_v7  ;;  %v3208_v7 = vld [vmem:[%s4408_s1 + $0x6d4] ss:$8 sps:$4 sm:$0xff]  }
  0x7f   :  { %2054 = vmatpush1.bf16.msra.mxu1 %v3113_v8  ;;  %v3203_v8 = vld [vmem:[%s4408_s1 + $0x2d0] ss:$8 sps:$4 sm:$0xff]  }
  0x80   :  { %2266 = vmatpush1.bf16.msra.mxu0 %v3116_v9  ;;  %2076 = vmatprep.subr.bf16.mxu1 %v3124_v10  ;;  %v3206_v9 = vld [vmem:[%s4408_s1 + $0x6d0] ss:$8 sps:$4 sm:$0xff]   ;;  %v3213_v10 = vld [vmem:[%s4408_s1 + $0x2e4] ss:$8 sps:$4 sm:$0xff]  }
  0x81   :  { %2288 = vmatprep.subr.bf16.mxu0 %v3130_v11  ;;  %v3218_v11 = vld [vmem:[%s4408_s1 + $0x6e4] ss:$8 sps:$4 sm:$0xff]  }
  0x82   :  { %2056 = vmatmul.mubr.bf16.vlgmr.msra.gmra.mrb[0].mxu1 %v3119_v12  ;;  %v3211_v12 = vld [vmem:[%s4408_s1 + $0x2e0] ss:$8 sps:$4 sm:$0xff]  }
  0x83   :  { %2268 = vmatmul.mubr.bf16.vlgmr.msra.gmra.mrb[0].mxu0 %v3125_v14  ;;  %2077 = vmatpush1.bf16.msra.mxu1 %v3122_v13  ;;  %v3216_v13 = vld [vmem:[%s4408_s1 + $0x6e0] ss:$8 sps:$4 sm:$0xff]   ;;  %v3223_v14 = vld [vmem:[%s4408_s1 + $0x2f4] ss:$8 sps:$4 sm:$0xff]  }
  0x84   :  { %2289 = vmatpush1.bf16.msra.mxu0 %v3128_v15  ;;  %2078 = vmatprep.subr.bf16.mxu1 %v3133_v16  ;;  %v3226_v15 = vld [vmem:[%s4408_s1 + $0x6f4] ss:$8 sps:$4 sm:$0xff]   ;;  %v3221_v16 = vld [vmem:[%s4408_s1 + $0x2f0] ss:$8 sps:$4 sm:$0xff]  }
  0x85   :  { %2290 = vmatprep.subr.bf16.mxu0 %v3136_v17  ;;  %2065 = vmatprep.mubr.bf16.mxu1 %v3209_v20  ;;  %v3224_v17 = vld [vmem:[%s4408_s1 + $0x6f0] ss:$8 sps:$4 sm:$0xff]  }
  0x86   :  { %2277 = vmatprep.mubr.bf16.mxu0 %v3214_v23  ;;  %v3227_v20 = vld [vmem:[%s4409_s0 + $0x10] ss:$72 sps:$4 sm:$0xff]   ;;  %v3236_v23 = vld [vmem:[%s4408_s1 + $0x700] ss:$8 sps:$4 sm:$0xff]  }
  0x87   :  { %2079 = vmatpush1.bf16.msra.mxu1 %v3131_v18  ;;  %v3232_v18 = vld [vmem:[%s4408_s1 + $0x304] ss:$8 sps:$4 sm:$0xff]  }
  0x88   :  { %2291 = vmatpush1.bf16.msra.mxu0 %v3134_v19  ;;  %2080 = vmatprep.subr.bf16.mxu1 %v3139_v21  ;;  %v3238_v19 = vld [vmem:[%s4408_s1 + $0x704] ss:$8 sps:$4 sm:$0xff]   ;;  %v3230_v21 = vld [vmem:[%s4408_s1 + $0x300] ss:$8 sps:$4 sm:$0xff]  }
  0x89   :  { %2292 = vmatprep.subr.bf16.mxu0 %v3142_v22  ;;  %v3233_v22 = vld [vmem:[%s4409_s0 + $0x30] ss:$72 sps:$4 sm:$0xff]  }
  0x8a   :  { %2066 = vmatmul.mubr.bf16.gmra.mrb[4].mxu1 %v3219_v26  ;;  %v3317_v26 = vld [vmem:[%s4409_s0 + $0xa4] ss:$72 sps:$4 sm:$0xff]  }
  0x8b   :  { %2278 = vmatmul.mubr.bf16.gmra.mrb[4].mxu0 %v3220_v27  ;;  %2081 = vmatpush1.bf16.msra.mxu1 %v3137_v24  ;;  %v3241_v24 = vld [vmem:[%s4408_s1 + $0x314] ss:$8 sps:$4 sm:$0xff]   ;;  %v3319_v27 = vld [vmem:[%s4409_s0 + $0xc4] ss:$72 sps:$4 sm:$0xff]  }
  0x8c   :  { %2293 = vmatpush1.bf16.msra.mxu0 %v3140_v25  ;;  %2082 = vmatprep.subr.bf16.mxu1 %v3145_v28  ;;  %v3244_v25 = vld [vmem:[%s4408_s1 + $0x714] ss:$8 sps:$4 sm:$0xff]   ;;  %v3239_v28 = vld [vmem:[%s4408_s1 + $0x310] ss:$8 sps:$4 sm:$0xff]  }
  0x8d   :  { %2294 = vmatprep.subr.bf16.mxu0 %v3148_v29  ;;  %2108 = vmatprep.mubr.bf16.mxu1 %v3229_v32  ;;  %v3242_v29 = vld [vmem:[%s4408_s1 + $0x710] ss:$8 sps:$4 sm:$0xff]   ;;  %v3245_v32 = vld [vmem:[%s4408_s1 + $0x320] ss:$8 sps:$4 sm:$0xff]  }
  0x8e   :  { %2320 = vmatprep.mubr.bf16.mxu0 %v3235_v35  ;;  %v3325_v35 = vld [vmem:[%s4409_s0 + $0xc0] ss:$72 sps:$4 sm:$0xff]  }
  0x8f   :  { %2083 = vmatpush1.bf16.msra.mxu1 %v3143_v30  ;;  %v3247_v30 = vld [vmem:[%s4408_s1 + $0x324] ss:$8 sps:$4 sm:$0xff]  }
  0x90   :  { %2295 = vmatpush1.bf16.msra.mxu0 %v3146_v31  ;;  %2084 = vmatprep.subr.bf16.mxu1 %v3151_v33  ;;  %v3250_v31 = vld [vmem:[%s4408_s1 + $0x724] ss:$8 sps:$4 sm:$0xff]   ;;  %v3248_v33 = vld [vmem:[%s4408_s1 + $0x720] ss:$8 sps:$4 sm:$0xff]  }
  0x91   :  { %2296 = vmatprep.subr.bf16.mxu0 %v3154_v34  ;;  %v3321_v34 = vld [vmem:[%s4409_s0 + $0xa0] ss:$72 sps:$4 sm:$0xff]  }
  0x93   :  { %2085 = vmatpush1.bf16.msra.mxu1 %v3149_v36  ;;  %v3253_v36 = vld [vmem:[%s4408_s1 + $0x334] ss:$8 sps:$4 sm:$0xff]  }
  0x94   :  { %2297 = vmatpush1.bf16.msra.mxu0 %v3152_v37  ;;  %2086 = vmatprep.subr.bf16.mxu1 %v3157_v38  ;;  %v3256_v37 = vld [vmem:[%s4408_s1 + $0x734] ss:$8 sps:$4 sm:$0xff]  }
  0x95   :  { %2298 = vmatprep.subr.bf16.mxu0 %v3160_v39  ;;  %v3337_v38 = vld [vmem:[%s4409_s0 + $0x1c] ss:$72 sps:$4 sm:$0xff]  }
  0x96   :  { %v3340_v39 = vld [vmem:[%s4409_s0 + $0x3c] ss:$72 sps:$4 sm:$0xff]  }
  0x97   :  { %2087 = vmatpush1.bf16.msra.mxu1 %v3155_v40  ;;  %v3251_v40 = vld [vmem:[%s4408_s1 + $0x330] ss:$8 sps:$4 sm:$0xff]  }
  0x98   :  { %2299 = vmatpush1.bf16.msra.mxu0 %v3158_v41  ;;  %2088 = vmatprep.subr.bf16.mxu1 %v3163_v42  ;;  %v3254_v41 = vld [vmem:[%s4408_s1 + $0x730] ss:$8 sps:$4 sm:$0xff]   ;;  %v3259_v42 = vld [vmem:[%s4408_s1 + $0x344] ss:$8 sps:$4 sm:$0xff]  }
  0x99   :  { %2300 = vmatprep.subr.bf16.mxu0 %v3166_v43  ;;  %v3262_v43 = vld [vmem:[%s4408_s1 + $0x744] ss:$8 sps:$4 sm:$0xff]  }
  0x9b   :  { %2089 = vmatpush1.bf16.msra.mxu1 %v3161_v44  ;;  %v3257_v44 = vld [vmem:[%s4408_s1 + $0x340] ss:$8 sps:$4 sm:$0xff]  }
  0x9c   :  { %2301 = vmatpush1.bf16.msra.mxu0 %v3164_v45  ;;  %2090 = vmatprep.subr.bf16.mxu1 %v3169_v46  ;;  %v3260_v45 = vld [vmem:[%s4408_s1 + $0x740] ss:$8 sps:$4 sm:$0xff]   ;;  %v3265_v46 = vld [vmem:[%s4408_s1 + $0x354] ss:$8 sps:$4 sm:$0xff]  }
  0x9d   :  { %2302 = vmatprep.subr.bf16.mxu0 %v3172_v47  ;;  %v3268_v47 = vld [vmem:[%s4408_s1 + $0x754] ss:$8 sps:$4 sm:$0xff]  }
  0x9f   :  { %2091 = vmatpush1.bf16.msra.mxu1 %v3167_v48  ;;  %v3263_v48 = vld [vmem:[%s4408_s1 + $0x350] ss:$8 sps:$4 sm:$0xff]  }
  0xa0   :  { %2303 = vmatpush1.bf16.msra.mxu0 %v3170_v49  ;;  %2092 = vmatprep.subr.bf16.mxu1 %v3175_v50  ;;  %v3266_v49 = vld [vmem:[%s4408_s1 + $0x750] ss:$8 sps:$4 sm:$0xff]   ;;  %v3271_v50 = vld [vmem:[%s4408_s1 + $0x364] ss:$8 sps:$4 sm:$0xff]  }
  0xa1   :  { %2304 = vmatprep.subr.bf16.mxu0 %v3178_v51  ;;  %v3274_v51 = vld [vmem:[%s4408_s1 + $0x764] ss:$8 sps:$4 sm:$0xff]  }
  0xa3   :  { %2093 = vmatpush1.bf16.msra.mxu1 %v3173_v52  ;;  %v3269_v52 = vld [vmem:[%s4408_s1 + $0x360] ss:$8 sps:$4 sm:$0xff]  }
  0xa4   :  { %2305 = vmatpush1.bf16.msra.mxu0 %v3176_v53  ;;  %2094 = vmatprep.subr.bf16.mxu1 %v3181_v54  ;;  %v3272_v53 = vld [vmem:[%s4408_s1 + $0x760] ss:$8 sps:$4 sm:$0xff]   ;;  %v3277_v54 = vld [vmem:[%s4408_s1 + $0x374] ss:$8 sps:$4 sm:$0xff]  }
  0xa5   :  { %2306 = vmatprep.subr.bf16.mxu0 %v3184_v55  ;;  %v3280_v55 = vld [vmem:[%s4408_s1 + $0x774] ss:$8 sps:$4 sm:$0xff]  }
  0xa7   :  { %2095 = vmatpush1.bf16.msra.mxu1 %v3179_v56  ;;  %v3275_v56 = vld [vmem:[%s4408_s1 + $0x370] ss:$8 sps:$4 sm:$0xff]  }
  0xa8   :  { %2307 = vmatpush1.bf16.msra.mxu0 %v3182_v57  ;;  %2096 = vmatprep.subr.bf16.mxu1 %v3187_v58  ;;  %v3278_v57 = vld [vmem:[%s4408_s1 + $0x770] ss:$8 sps:$4 sm:$0xff]   ;;  %v3283_v58 = vld [vmem:[%s4408_s1 + $0x384] ss:$8 sps:$4 sm:$0xff]  }
  0xa9   :  { %2308 = vmatprep.subr.bf16.mxu0 %v3190_v59  ;;  %v3286_v59 = vld [vmem:[%s4408_s1 + $0x784] ss:$8 sps:$4 sm:$0xff]  }
  0xab   :  { %2097 = vmatpush1.bf16.msra.mxu1 %v3185_v60  ;;  %v3281_v60 = vld [vmem:[%s4408_s1 + $0x380] ss:$8 sps:$4 sm:$0xff]  }
  0xac   :  { %2309 = vmatpush1.bf16.msra.mxu0 %v3188_v61  ;;  %2098 = vmatprep.subr.bf16.mxu1 %v3193_v62  ;;  %v3284_v61 = vld [vmem:[%s4408_s1 + $0x780] ss:$8 sps:$4 sm:$0xff]   ;;  %v3289_v62 = vld [vmem:[%s4408_s1 + $0x394] ss:$8 sps:$4 sm:$0xff]  }
  0xad   :  { %2310 = vmatprep.subr.bf16.mxu0 %v3196_v63  ;;  %v3292_v63 = vld [vmem:[%s4408_s1 + $0x794] ss:$8 sps:$4 sm:$0xff]  }
  0xaf   :  { %2099 = vmatpush1.bf16.msra.mxu1 %v3191_v0  ;;  %v3287_v0 = vld [vmem:[%s4408_s1 + $0x390] ss:$8 sps:$4 sm:$0xff]  }
  0xb0   :  { %2311 = vmatpush1.bf16.msra.mxu0 %v3194_v1  ;;  %2100 = vmatprep.subr.bf16.mxu1 %v3199_v2  ;;  %v3290_v1 = vld [vmem:[%s4408_s1 + $0x790] ss:$8 sps:$4 sm:$0xff]   ;;  %v3295_v2 = vld [vmem:[%s4408_s1 + $0x3a4] ss:$8 sps:$4 sm:$0xff]  }
  0xb1   :  { %2312 = vmatprep.subr.bf16.mxu0 %v3202_v3  ;;  %v3298_v3 = vld [vmem:[%s4408_s1 + $0x7a4] ss:$8 sps:$4 sm:$0xff]  }
  0xb3   :  { %2101 = vmatpush1.bf16.msra.mxu1 %v3197_v4  ;;  %v3293_v4 = vld [vmem:[%s4408_s1 + $0x3a0] ss:$8 sps:$4 sm:$0xff]  }
  0xb4   :  { %2313 = vmatpush1.bf16.msra.mxu0 %v3200_v5  ;;  %2102 = vmatprep.subr.bf16.mxu1 %v3205_v6  ;;  %v3296_v5 = vld [vmem:[%s4408_s1 + $0x7a0] ss:$8 sps:$4 sm:$0xff]   ;;  %v3301_v6 = vld [vmem:[%s4408_s1 + $0x3b4] ss:$8 sps:$4 sm:$0xff]  }
  0xb5   :  { %2314 = vmatprep.subr.bf16.mxu0 %v3208_v7  ;;  %v3304_v7 = vld [vmem:[%s4408_s1 + $0x7b4] ss:$8 sps:$4 sm:$0xff]  }
  0xb7   :  { %2103 = vmatpush1.bf16.msra.mxu1 %v3203_v8  ;;  %v3299_v8 = vld [vmem:[%s4408_s1 + $0x3b0] ss:$8 sps:$4 sm:$0xff]  }
  0xb8   :  { %2315 = vmatpush1.bf16.msra.mxu0 %v3206_v9  ;;  %2104 = vmatprep.subr.bf16.mxu1 %v3213_v10  ;;  %v3302_v9 = vld [vmem:[%s4408_s1 + $0x7b0] ss:$8 sps:$4 sm:$0xff]   ;;  %v3307_v10 = vld [vmem:[%s4408_s1 + $0x3c4] ss:$8 sps:$4 sm:$0xff]  }
  0xb9   :  { %2316 = vmatprep.subr.bf16.mxu0 %v3218_v11  ;;  %v3310_v11 = vld [vmem:[%s4408_s1 + $0x7c4] ss:$8 sps:$4 sm:$0xff]  }
  0xbb   :  { %2105 = vmatpush1.bf16.msra.mxu1 %v3211_v12  ;;  %v3305_v12 = vld [vmem:[%s4408_s1 + $0x3c0] ss:$8 sps:$4 sm:$0xff]  }
  0xbc   :  { %2317 = vmatpush1.bf16.msra.mxu0 %v3216_v13  ;;  %2106 = vmatprep.subr.bf16.mxu1 %v3223_v14  ;;  %v3308_v13 = vld [vmem:[%s4408_s1 + $0x7c0] ss:$8 sps:$4 sm:$0xff]   ;;  %v3313_v14 = vld [vmem:[%s4408_s1 + $0x3d4] ss:$8 sps:$4 sm:$0xff]  }
  0xbd   :  { %2318 = vmatprep.subr.bf16.mxu0 %v3226_v15  ;;  %v3316_v15 = vld [vmem:[%s4408_s1 + $0x7d4] ss:$8 sps:$4 sm:$0xff]  }
  0xbf   :  { %2107 = vmatpush1.bf16.msra.mxu1 %v3221_v16  ;;  %v3311_v16 = vld [vmem:[%s4408_s1 + $0x3d0] ss:$8 sps:$4 sm:$0xff]  }
  0xc0   :  { %2319 = vmatpush1.bf16.msra.mxu0 %v3224_v17  ;;  %2129 = vmatprep.subr.bf16.mxu1 %v3232_v18  ;;  %v3314_v17 = vld [vmem:[%s4408_s1 + $0x7d0] ss:$8 sps:$4 sm:$0xff]   ;;  %v3324_v18 = vld [vmem:[%s4408_s1 + $0x3e4] ss:$8 sps:$4 sm:$0xff]  }
  0xc1   :  { %2341 = vmatprep.subr.bf16.mxu0 %v3238_v19  ;;  %v3328_v19 = vld [vmem:[%s4408_s1 + $0x7e4] ss:$8 sps:$4 sm:$0xff]  }
  0xc2   :  { %2109 = vmatmul.mubr.bf16.vlgmr.msra.gmra.mrb[0].mxu1 %v3227_v20  ;;  %v3322_v20 = vld [vmem:[%s4408_s1 + $0x3e0] ss:$8 sps:$4 sm:$0xff]  }
  0xc3   :  { %2321 = vmatmul.mubr.bf16.vlgmr.msra.gmra.mrb[0].mxu0 %v3233_v22  ;;  %2130 = vmatpush1.bf16.msra.mxu1 %v3230_v21  ;;  %v3326_v21 = vld [vmem:[%s4408_s1 + $0x7e0] ss:$8 sps:$4 sm:$0xff]   ;;  %v3331_v22 = vld [vmem:[%s4408_s1 + $0x3f4] ss:$8 sps:$4 sm:$0xff]  }
  0xc4   :  { %2342 = vmatpush1.bf16.msra.mxu0 %v3236_v23  ;;  %2131 = vmatprep.subr.bf16.mxu1 %v3241_v24  ;;  %v3334_v23 = vld [vmem:[%s4408_s1 + $0x7f4] ss:$8 sps:$4 sm:$0xff]   ;;  %v3329_v24 = vld [vmem:[%s4408_s1 + $0x3f0] ss:$8 sps:$4 sm:$0xff]  }
  0xc5   :  { %2343 = vmatprep.subr.bf16.mxu0 %v3244_v25  ;;  %2118 = vmatprep.mubr.bf16.mxu1 %v3317_v26  ;;  %v3332_v25 = vld [vmem:[%s4408_s1 + $0x7f0] ss:$8 sps:$4 sm:$0xff]   ;;  %v3343_v26 = vld [vmem:[%s4408_s1 + $0x804] ss:$8 sps:$4 sm:$0xff]  }
  0xc6   :  { %2330 = vmatprep.mubr.bf16.mxu0 %v3319_v27  ;;  %v3335_v27 = vld [vmem:[%s4409_s0 + $0x18] ss:$72 sps:$4 sm:$0xff]  }
  0xc7   :  { %2132 = vmatpush1.bf16.msra.mxu1 %v3239_v28  ;;  %v3338_v28 = vld [vmem:[%s4409_s0 + $0x38] ss:$72 sps:$4 sm:$0xff]  }
  0xc8   :  { %2344 = vmatpush1.bf16.msra.mxu0 %v3242_v29  ;;  %2133 = vmatprep.subr.bf16.mxu1 %v3247_v30  ;;  %v3341_v29 = vld [vmem:[%s4408_s1 + $0x800] ss:$8 sps:$4 sm:$0xff]   ;;  %v3346_v30 = vld [vmem:[%s4408_s1 + $0x814] ss:$8 sps:$4 sm:$0xff]  }
  0xc9   :  { %2345 = vmatprep.subr.bf16.mxu0 %v3250_v31  ;;  %v3347_v31 = vld [vmem:[%s4409_s0 + $0xac] ss:$72 sps:$4 sm:$0xff]  }
  0xca   :  { %2119 = vmatmul.mubr.bf16.gmra.mrb[4].mxu1 %v3321_v34  ;;  %v3355_v34 = vld [vmem:[%s4408_s1 + $0x824] ss:$8 sps:$4 sm:$0xff]  }
  0xcb   :  { %2331 = vmatmul.mubr.bf16.gmra.mrb[4].mxu0 %v3325_v35  ;;  %2134 = vmatpush1.bf16.msra.mxu1 %v3245_v32  ;;  %v3349_v32 = vld [vmem:[%s4409_s0 + $0xcc] ss:$72 sps:$4 sm:$0xff]   ;;  %v3351_v35 = vld [vmem:[%s4409_s0 + $0xa8] ss:$72 sps:$4 sm:$0xff]  }
  0xcc   :  { %2346 = vmatpush1.bf16.msra.mxu0 %v3248_v33  ;;  %2135 = vmatprep.subr.bf16.mxu1 %v3253_v36  ;;  %v3344_v33 = vld [vmem:[%s4408_s1 + $0x810] ss:$8 sps:$4 sm:$0xff]  }
  0xcd   :  { %2347 = vmatprep.subr.bf16.mxu0 %v3256_v37  ;;  %2161 = vmatprep.mubr.bf16.mxu1 %v3337_v38  ;;  %v3352_v36 = vld [vmem:[%s4409_s0 + $0xc8] ss:$72 sps:$4 sm:$0xff]   ;;  %v3358_v38 = vld [vmem:[%s4408_s1 + $0x834] ss:$8 sps:$4 sm:$0xff]  }
  0xce   :  { %2373 = vmatprep.mubr.bf16.mxu0 %v3340_v39  ;;  %v3353_v37 = vld [vmem:[%s4408_s1 + $0x820] ss:$8 sps:$4 sm:$0xff]   ;;  %v3397_v39 = vld [vmem:[%s4409_s0 + $0x44] ss:$72 sps:$4 sm:$0xff]  }
  0xcf   :  { %2136 = vmatpush1.bf16.msra.mxu1 %v3251_v40  ;;  %v3400_v40 = vld [vmem:[%s4409_s0 + $0xd4] ss:$72 sps:$4 sm:$0xff]  }
  0xd0   :  { %2348 = vmatpush1.bf16.msra.mxu0 %v3254_v41  ;;  %2137 = vmatprep.subr.bf16.mxu1 %v3259_v42  ;;  %v3356_v41 = vld [vmem:[%s4408_s1 + $0x830] ss:$8 sps:$4 sm:$0xff]   ;;  %v3361_v42 = vld [vmem:[%s4408_s1 + $0x844] ss:$8 sps:$4 sm:$0xff]  }
  0xd1   :  { %2349 = vmatprep.subr.bf16.mxu0 %v3262_v43  ;;  %v3359_v43 = vld [vmem:[%s4408_s1 + $0x840] ss:$8 sps:$4 sm:$0xff]  }
  0xd3   :  { %2138 = vmatpush1.bf16.msra.mxu1 %v3257_v44  ;;  %v3364_v44 = vld [vmem:[%s4408_s1 + $0x854] ss:$8 sps:$4 sm:$0xff]  }
  0xd4   :  { %2350 = vmatpush1.bf16.msra.mxu0 %v3260_v45  ;;  %2139 = vmatprep.subr.bf16.mxu1 %v3265_v46  ;;  %v3362_v45 = vld [vmem:[%s4408_s1 + $0x850] ss:$8 sps:$4 sm:$0xff]   ;;  %v3367_v46 = vld [vmem:[%s4408_s1 + $0x864] ss:$8 sps:$4 sm:$0xff]  }
  0xd5   :  { %2351 = vmatprep.subr.bf16.mxu0 %v3268_v47  ;;  %v3365_v47 = vld [vmem:[%s4408_s1 + $0x860] ss:$8 sps:$4 sm:$0xff]  }
  0xd7   :  { %2140 = vmatpush1.bf16.msra.mxu1 %v3263_v48  ;;  %v3370_v48 = vld [vmem:[%s4408_s1 + $0x874] ss:$8 sps:$4 sm:$0xff]  }
  0xd8   :  { %2352 = vmatpush1.bf16.msra.mxu0 %v3266_v49  ;;  %2141 = vmatprep.subr.bf16.mxu1 %v3271_v50  ;;  %v3368_v49 = vld [vmem:[%s4408_s1 + $0x870] ss:$8 sps:$4 sm:$0xff]   ;;  %v3373_v50 = vld [vmem:[%s4408_s1 + $0x884] ss:$8 sps:$4 sm:$0xff]  }
  0xd9   :  { %2353 = vmatprep.subr.bf16.mxu0 %v3274_v51  ;;  %v3371_v51 = vld [vmem:[%s4408_s1 + $0x880] ss:$8 sps:$4 sm:$0xff]  }
  0xdb   :  { %2142 = vmatpush1.bf16.msra.mxu1 %v3269_v52  ;;  %v3376_v52 = vld [vmem:[%s4408_s1 + $0x894] ss:$8 sps:$4 sm:$0xff]  }
  0xdc   :  { %2354 = vmatpush1.bf16.msra.mxu0 %v3272_v53  ;;  %2143 = vmatprep.subr.bf16.mxu1 %v3277_v54  ;;  %v3374_v53 = vld [vmem:[%s4408_s1 + $0x890] ss:$8 sps:$4 sm:$0xff]   ;;  %v3379_v54 = vld [vmem:[%s4408_s1 + $0x8a4] ss:$8 sps:$4 sm:$0xff]  }
  0xdd   :  { %2355 = vmatprep.subr.bf16.mxu0 %v3280_v55  ;;  %v3377_v55 = vld [vmem:[%s4408_s1 + $0x8a0] ss:$8 sps:$4 sm:$0xff]  }
  0xdf   :  { %2144 = vmatpush1.bf16.msra.mxu1 %v3275_v56  ;;  %v3382_v56 = vld [vmem:[%s4408_s1 + $0x8b4] ss:$8 sps:$4 sm:$0xff]  }
  0xe0   :  { %2356 = vmatpush1.bf16.msra.mxu0 %v3278_v57  ;;  %2145 = vmatprep.subr.bf16.mxu1 %v3283_v58  ;;  %v3380_v57 = vld [vmem:[%s4408_s1 + $0x8b0] ss:$8 sps:$4 sm:$0xff]   ;;  %v3385_v58 = vld [vmem:[%s4408_s1 + $0x8c4] ss:$8 sps:$4 sm:$0xff]  }
  0xe1   :  { %2357 = vmatprep.subr.bf16.mxu0 %v3286_v59  ;;  %v3383_v59 = vld [vmem:[%s4408_s1 + $0x8c0] ss:$8 sps:$4 sm:$0xff]  }
  0xe3   :  { %2146 = vmatpush1.bf16.msra.mxu1 %v3281_v60  ;;  %v3388_v60 = vld [vmem:[%s4408_s1 + $0x8d4] ss:$8 sps:$4 sm:$0xff]  }
  0xe4   :  { %2358 = vmatpush1.bf16.msra.mxu0 %v3284_v61  ;;  %2147 = vmatprep.subr.bf16.mxu1 %v3289_v62  ;;  %v3386_v61 = vld [vmem:[%s4408_s1 + $0x8d0] ss:$8 sps:$4 sm:$0xff]   ;;  %v3391_v62 = vld [vmem:[%s4408_s1 + $0x8e4] ss:$8 sps:$4 sm:$0xff]  }
  0xe5   :  { %2359 = vmatprep.subr.bf16.mxu0 %v3292_v63  ;;  %v3389_v63 = vld [vmem:[%s4408_s1 + $0x8e0] ss:$8 sps:$4 sm:$0xff]  }
  0xe7   :  { %2148 = vmatpush1.bf16.msra.mxu1 %v3287_v0  ;;  %v3394_v0 = vld [vmem:[%s4408_s1 + $0x8f4] ss:$8 sps:$4 sm:$0xff]  }
  0xe8   :  { %2360 = vmatpush1.bf16.msra.mxu0 %v3290_v1  ;;  %2149 = vmatprep.subr.bf16.mxu1 %v3295_v2  ;;  %v3392_v1 = vld [vmem:[%s4408_s1 + $0x8f0] ss:$8 sps:$4 sm:$0xff]   ;;  %v3395_v2 = vld [vmem:[%s4409_s0 + $0x40] ss:$72 sps:$4 sm:$0xff]  }
  0xe9   :  { %2361 = vmatprep.subr.bf16.mxu0 %v3298_v3  ;;  %v3398_v3 = vld [vmem:[%s4409_s0 + $0xd0] ss:$72 sps:$4 sm:$0xff]  }
  0xeb   :  { %2150 = vmatpush1.bf16.msra.mxu1 %v3293_v4  ;;  %v340_v4 = vlaneseq }
  0xec   :  { %2362 = vmatpush1.bf16.msra.mxu0 %v3296_v5  ;;  %2151 = vmatprep.subr.bf16.mxu1 %v3301_v6 }
  0xed   :  { %2363 = vmatprep.subr.bf16.mxu0 %v3304_v7  ;;  %v341_v5 = vshrl.u32 %v340_v4, 7 }
  0xef   :  { %2152 = vmatpush1.bf16.msra.mxu1 %v3299_v8 }
  0xf0   :  { %2364 = vmatpush1.bf16.msra.mxu0 %v3302_v9  ;;  %2153 = vmatprep.subr.bf16.mxu1 %v3307_v10  ;;  %v342_v9 = vsub.s32 0, %v341_v5 }
  0xf1   :  { %2365 = vmatprep.subr.bf16.mxu0 %v3310_v11  ;;  %v338_v11 = vld [vmem:[%s4410_s2] sm:$0x3] }
  0xf3   :  { %2154 = vmatpush1.bf16.msra.mxu1 %v3305_v12  ;;  %v346_v12 = vsub.s32 1, %v341_v5 }
  0xf4   :  { %2366 = vmatpush1.bf16.msra.mxu0 %v3308_v13  ;;  %2155 = vmatprep.subr.bf16.mxu1 %v3313_v14  ;;  %v343_v13 = vrot.slane %v338_v11, %v342_v9 }
  0xf5   :  { %2367 = vmatprep.subr.bf16.mxu0 %v3316_v15  ;;  %v347_v14 = vrot.slane %v338_v11, %v346_v12 }
  0xf7   :  { %2156 = vmatpush1.bf16.msra.mxu1 %v3311_v16 }
  0xf8   :  { %2368 = vmatpush1.bf16.msra.mxu0 %v3314_v17  ;;  %2157 = vmatprep.subr.bf16.mxu1 %v3324_v18 }
  0xf9   :  { %2369 = vmatprep.subr.bf16.mxu0 %v3328_v19 }
  0xfb   :  { %2158 = vmatpush1.bf16.msra.mxu1 %v3322_v20 }
  0xfc   :  { %2370 = vmatpush1.bf16.msra.mxu0 %v3326_v21  ;;  %2159 = vmatprep.subr.bf16.mxu1 %v3331_v22 }
  0xfd   :  { %2371 = vmatprep.subr.bf16.mxu0 %v3334_v23 }
  0xff   :  { %2160 = vmatpush1.bf16.msra.mxu1 %v3329_v24 }
 0x100   :  { %2372 = vmatpush1.bf16.msra.mxu0 %v3332_v25  ;;  %2811 = vmatprep.subr.bf16.mxu1 %v3343_v26 }
 0x101   :  { %2394 = vmatprep.subr.bf16.mxu0 %v3343_v26 }
 0x102   :  { %2162 = vmatmul.mubr.bf16.vlgmr.msra.gmra.mrb[0].mxu1 %v3335_v27 }
 0x103   :  { %2374 = vmatmul.mubr.bf16.vlgmr.msra.gmra.mrb[0].mxu0 %v3338_v28  ;;  %2827 = vmatpush1.bf16.msra.mxu1 %v3341_v29 }
 0x104   :  { %2395 = vmatpush1.bf16.msra.mxu0 %v3341_v29  ;;  %2812 = vmatprep.subr.bf16.mxu1 %v3346_v30 }
 0x105   :  { %2396 = vmatprep.subr.bf16.mxu0 %v3346_v30  ;;  %2171 = vmatprep.mubr.bf16.mxu1 %v3347_v31 }
 0x106   :  { %2383 = vmatprep.mubr.bf16.mxu0 %v3349_v32 }
 0x107   :  { %2828 = vmatpush1.bf16.msra.mxu1 %v3344_v33 }
 0x108   :  { %2397 = vmatpush1.bf16.msra.mxu0 %v3344_v33  ;;  %2813 = vmatprep.subr.bf16.mxu1 %v3355_v34 }
 0x109   :  { %2398 = vmatprep.subr.bf16.mxu0 %v3355_v34 }
 0x10a   :  { %2172 = vmatmul.mubr.bf16.gmra.mrb[4].mxu1 %v3351_v35 }
 0x10b   :  { %2384 = vmatmul.mubr.bf16.gmra.mrb[4].mxu0 %v3352_v36  ;;  %2829 = vmatpush1.bf16.msra.mxu1 %v3353_v37 }
 0x10c   :  { %2399 = vmatpush1.bf16.msra.mxu0 %v3353_v37  ;;  %2814 = vmatprep.subr.bf16.mxu1 %v3358_v38 }
 0x10d   :  { %2400 = vmatprep.subr.bf16.mxu0 %v3358_v38  ;;  %2426 = vmatprep.mubr.bf16.mxu0 %v3397_v39 }
 0x10e   :  { %2436 = vmatprep.mubr.bf16.mxu1 %v3400_v40 }
 0x10f   :  { %2830 = vmatpush1.bf16.msra.mxu1 %v3356_v41 }
 0x110   :  { %2401 = vmatpush1.bf16.msra.mxu0 %v3356_v41  ;;  %2815 = vmatprep.subr.bf16.mxu1 %v3361_v42 }
 0x111   :  { %2402 = vmatprep.subr.bf16.mxu0 %v3361_v42 }
 0x113   :  { %2831 = vmatpush1.bf16.msra.mxu1 %v3359_v43 }
 0x114   :  { %2403 = vmatpush1.bf16.msra.mxu0 %v3359_v43  ;;  %2816 = vmatprep.subr.bf16.mxu1 %v3364_v44 }
 0x115   :  { %2404 = vmatprep.subr.bf16.mxu0 %v3364_v44 }
 0x117   :  { %2832 = vmatpush1.bf16.msra.mxu1 %v3362_v45 }
 0x118   :  { %2405 = vmatpush1.bf16.msra.mxu0 %v3362_v45  ;;  %2817 = vmatprep.subr.bf16.mxu1 %v3367_v46 }
 0x119   :  { %2406 = vmatprep.subr.bf16.mxu0 %v3367_v46 }
 0x11b   :  { %2833 = vmatpush1.bf16.msra.mxu1 %v3365_v47 }
 0x11c   :  { %2407 = vmatpush1.bf16.msra.mxu0 %v3365_v47  ;;  %2818 = vmatprep.subr.bf16.mxu1 %v3370_v48 }
 0x11d   :  { %2408 = vmatprep.subr.bf16.mxu0 %v3370_v48 }
 0x11f   :  { %2834 = vmatpush1.bf16.msra.mxu1 %v3368_v49 }
 0x120   :  { %2409 = vmatpush1.bf16.msra.mxu0 %v3368_v49  ;;  %2819 = vmatprep.subr.bf16.mxu1 %v3373_v50 }
 0x121   :  { %2410 = vmatprep.subr.bf16.mxu0 %v3373_v50 }
 0x123   :  { %2835 = vmatpush1.bf16.msra.mxu1 %v3371_v51 }
 0x124   :  { %2411 = vmatpush1.bf16.msra.mxu0 %v3371_v51  ;;  %2820 = vmatprep.subr.bf16.mxu1 %v3376_v52 }
 0x125   :  { %2412 = vmatprep.subr.bf16.mxu0 %v3376_v52 }
 0x127   :  { %2836 = vmatpush1.bf16.msra.mxu1 %v3374_v53 }
 0x128   :  { %2413 = vmatpush1.bf16.msra.mxu0 %v3374_v53  ;;  %2821 = vmatprep.subr.bf16.mxu1 %v3379_v54 }
 0x129   :  { %2414 = vmatprep.subr.bf16.mxu0 %v3379_v54 }
 0x12b   :  { %2837 = vmatpush1.bf16.msra.mxu1 %v3377_v55 }
 0x12c   :  { %2415 = vmatpush1.bf16.msra.mxu0 %v3377_v55  ;;  %2822 = vmatprep.subr.bf16.mxu1 %v3382_v56 }
 0x12d   :  { %2416 = vmatprep.subr.bf16.mxu0 %v3382_v56 }
 0x12f   :  { %2838 = vmatpush1.bf16.msra.mxu1 %v3380_v57 }
 0x130   :  { %2417 = vmatpush1.bf16.msra.mxu0 %v3380_v57  ;;  %2823 = vmatprep.subr.bf16.mxu1 %v3385_v58 }
 0x131   :  { %2418 = vmatprep.subr.bf16.mxu0 %v3385_v58 }
 0x133   :  { %2839 = vmatpush1.bf16.msra.mxu1 %v3383_v59 }
 0x134   :  { %2419 = vmatpush1.bf16.msra.mxu0 %v3383_v59  ;;  %2824 = vmatprep.subr.bf16.mxu1 %v3388_v60 }
 0x135   :  { %2420 = vmatprep.subr.bf16.mxu0 %v3388_v60 }
 0x137   :  { %2840 = vmatpush1.bf16.msra.mxu1 %v3386_v61 }
 0x138   :  { %2421 = vmatpush1.bf16.msra.mxu0 %v3386_v61  ;;  %2825 = vmatprep.subr.bf16.mxu1 %v3391_v62 }
 0x139   :  { %2422 = vmatprep.subr.bf16.mxu0 %v3391_v62 }
 0x13b   :  { %2841 = vmatpush1.bf16.msra.mxu1 %v3389_v63 }
 0x13c   :  { %2423 = vmatpush1.bf16.msra.mxu0 %v3389_v63  ;;  %2826 = vmatprep.subr.bf16.mxu1 %v3394_v0 }
 0x13d   :  { %2424 = vmatprep.subr.bf16.mxu0 %v3394_v0 }
 0x13f   :  { %2842 = vmatpush1.bf16.msra.mxu1 %v3392_v1 }
 0x140   :  { %2425 = vmatpush1.bf16.msra.mxu0 %v3392_v1 }
 0x142   :  { %2437 = vmatmul.mubr.bf16.vlgmr.msra.gmra.mrb[8].mxu1 %v3398_v3 }
 0x143   :  { %2427 = vmatmul.mubr.bf16.vlgmr.msra.gmra.mrb[0].mxu0 %v3395_v2 }
 0x1d5   :  { %v2163_v6 = vpop.f32.mrb[0].mxu1 }
 0x1d6   :  { %v2165_v7 = vpop.f32.mrb[1].mxu1  ;;  %v2843_v31 = vadd.f32 %v2163_v6, %v343_v13 }
 0x1d7   :  { %v2167_v8 = vpop.f32.mrb[2].mxu1  ;;  %v2845_v32 = vadd.f32 %v2165_v7, %v347_v14 }
 0x1d8   :  { %v2169_v10 = vpop.f32.mrb[3].mxu1  ;;  %v2847_v35 = vadd.f32 %v2167_v8, %v343_v13 }
 0x1d9   :  { %v2849_v40 = vadd.f32 %v2169_v10, %v347_v14 }
 0x1dd   :  { %v2173_v15 = vpop.f32.mrb[4].mxu1 }
 0x1de   :  { %v2385_v16 = vpop.f32.mrb[4].mxu0  ;;  %v2851_v17 = vadd.f32 %v2173_v15, %v343_v13  ;;  %v2175_v18 = vpop.f32.mrb[5].mxu1 }
 0x1df   :  { %v2387_v19 = vpop.f32.mrb[5].mxu0  ;;  %v2854_v20 = vadd.f32 %v2175_v18, %v347_v14  ;;  %v2177_v21 = vpop.f32.mrb[6].mxu1 }
 0x1e0   :  { %v2389_v22 = vpop.f32.mrb[6].mxu0  ;;  %v2852_v23 = vadd.f32 %v2851_v17, %v2385_v16  ;;  %v2857_v24 = vadd.f32 %v2177_v21, %v343_v13  ;;  %v2179_v25 = vpop.f32.mrb[7].mxu1 }
 0x1e1   :  { %v2391_v26 = vpop.f32.mrb[7].mxu0  ;;  %v2855_v27 = vadd.f32 %v2854_v20, %v2387_v19  ;;  %v2860_v28 = vadd.f32 %v2179_v25, %v347_v14 }
 0x1e2   :  { %v2858_v29 = vadd.f32 %v2857_v24, %v2389_v22 }
 0x1e3   :  { %v2861_v30 = vadd.f32 %v2860_v28, %v2391_v26 }
 0x215   :  { %v2438_v34 = vpop.f32.mrb[8].mxu1 }
 0x216   :  { %v2428_v33 = vpop.f32.mrb[0].mxu0  ;;  %v2853_v37 = vadd.f32 %v2852_v23, %v2438_v34  ;;  %v2440_v39 = vpop.f32.mrb[9].mxu1 }
 0x217   :  { %v2844_v36 = vadd.f32 %v2843_v31, %v2428_v33  ;;  %v2430_v38 = vpop.f32.mrb[1].mxu0  ;;  %v2856_v42 = vadd.f32 %v2855_v27, %v2440_v39  ;;  %v2442_v44 = vpop.f32.mrb[10].mxu1 }
 0x218   :  { %v2846_v41 = vadd.f32 %v2845_v32, %v2430_v38  ;;  %v2432_v43 = vpop.f32.mrb[2].mxu0  ;;  %v2859_v46 = vadd.f32 %v2858_v29, %v2442_v44  ;;  %v2444_v48 = vpop.f32.mrb[11].mxu1 }
 0x219   :  { %v2848_v45 = vadd.f32 %v2847_v35, %v2432_v43  ;;  %v2434_v47 = vpop.f32.mrb[3].mxu0  ;;  %v2809_v50 = vpack.c.bf16 %v2856_v42, %v2853_v37  ;;  %v2862_v52 = vadd.f32 %v2861_v30, %v2444_v48 }
 0x21a   :  { %v2807_v49 = vpack.c.bf16 %v2846_v41, %v2844_v36  ;;  %v2850_v51 = vadd.f32 %v2849_v40, %v2434_v47 }
 0x21b   :  { %2473 = vst [vmem:[%s4411_s3 + $0x10] sm:$0xff] %v2809_v50  ;;  %v2810_v54 = vpack.c.bf16 %v2862_v52, %v2859_v46 }
 0x21c   :  { %2471 = vst [vmem:[%s4411_s3] sm:$0xff] %v2807_v49  ;;  %v2808_v53 = vpack.c.bf16 %v2850_v51, %v2848_v45 }
 0x21d   :  { %2474 = vst [vmem:[%s4411_s3 + $0x18] sm:$0xff] %v2810_v54 }
 0x21e   :  { %2472 = vst [vmem:[%s4411_s3 + $0x8] sm:$0xff] %v2808_v53 }

// kernel: tile.13
= control target key start
LH: loop header
LB: loop body
LE: loop exit
PB: predicated region body
PF: predicated region fallthrough
CT: control target
= control target key end

     0   :  { %s22_s0 = inlined_call_operand.vmem [shape: f32[128], index: 0, kind: input, shape index: {}]   ;;  %s23_s1 = inlined_call_operand.vmem [shape: f32[4,128], index: 1, kind: output, shape index: {}]  }
   0x1   :  { %v4_v0 = vld [vmem:[%s22_s0] ss:$0 sm:$0xff] }
   0x2   :  { %5 = vst [vmem:[%s23_s1] sm:$0xf] %v4_v0 }

// kernel: generator_a2b.89
= control target key start
LH: loop header
LB: loop body
LE: loop exit
PB: predicated region body
PF: predicated region fallthrough
CT: control target
= control target key end

     0   :  { %s3775_s1 = inlined_call_operand.vmem [shape: bf16[1024,512], index: 1, kind: input, shape index: {}]   ;;  %s3776_s0 = inlined_call_operand.vmem [shape: bf16[32,1024], index: 0, kind: input, shape index: {}]   ;;  %s3777_s2 = inlined_call_operand.vmem [shape: f32[1,512], index: 2, kind: input, shape index: {}]   ;;  %s3778_s3 = inlined_call_operand.vmem [shape: bf16[32,512], index: 3, kind: output, shape index: {}]  }
   0x1   :  { %v2504_v0 = vld [vmem:[%s3775_s1 + $0x4] ss:$16 sps:$4 sm:$0xff]   ;;  %v2506_v1 = vld [vmem:[%s3775_s1 + $0xc] ss:$16 sps:$4 sm:$0xff]   ;;  %v2508_v2 = vld [vmem:[%s3775_s1] ss:$16 sps:$4 sm:$0xff]  }
   0x2   :  { %1668 = vmatprep.subr.bf16.mxu0 %v2504_v0  ;;  %v2509_v3 = vld [vmem:[%s3775_s1 + $0x8] ss:$16 sps:$4 sm:$0xff]   ;;  %1880 = vmatprep.subr.bf16.mxu1 %v2506_v1  ;;  %v2510_v4 = vld [vmem:[%s3775_s1 + $0x24] ss:$16 sps:$4 sm:$0xff]   ;;  %v2512_v5 = vld [vmem:[%s3775_s1 + $0x2c] ss:$16 sps:$4 sm:$0xff]  }
   0x3   :  { %1669 = vmatpush1.bf16.msra.mxu0 %v2508_v2  ;;  %1881 = vmatpush1.bf16.msra.mxu1 %v2509_v3  ;;  %v2514_v6 = vld [vmem:[%s3775_s1 + $0x20] ss:$16 sps:$4 sm:$0xff]   ;;  %v2515_v7 = vld [vmem:[%s3775_s1 + $0x28] ss:$16 sps:$4 sm:$0xff]   ;;  %v2516_v8 = vld [vmem:[%s3775_s1 + $0x44] ss:$16 sps:$4 sm:$0xff]  }
   0x4   :  { %1670 = vmatprep.subr.bf16.mxu0 %v2510_v4  ;;  %1882 = vmatprep.subr.bf16.mxu1 %v2512_v5  ;;  %v2518_v9 = vld [vmem:[%s3775_s1 + $0x4c] ss:$16 sps:$4 sm:$0xff]   ;;  %v2520_v10 = vld [vmem:[%s3775_s1 + $0x40] ss:$16 sps:$4 sm:$0xff]   ;;  %v2521_v11 = vld [vmem:[%s3775_s1 + $0x48] ss:$16 sps:$4 sm:$0xff]  }
   0x5   :  { %v2522_v12 = vld [vmem:[%s3775_s1 + $0x64] ss:$16 sps:$4 sm:$0xff]   ;;  %v2524_v13 = vld [vmem:[%s3775_s1 + $0x6c] ss:$16 sps:$4 sm:$0xff]   ;;  %v2526_v14 = vld [vmem:[%s3775_s1 + $0x60] ss:$16 sps:$4 sm:$0xff]  }
   0x6   :  { %v2527_v15 = vld [vmem:[%s3775_s1 + $0x68] ss:$16 sps:$4 sm:$0xff]   ;;  %v2528_v16 = vld [vmem:[%s3775_s1 + $0x84] ss:$16 sps:$4 sm:$0xff]   ;;  %v2530_v17 = vld [vmem:[%s3775_s1 + $0x8c] ss:$16 sps:$4 sm:$0xff]  }
   0x7   :  { %1671 = vmatpush1.bf16.msra.mxu0 %v2514_v6  ;;  %1883 = vmatpush1.bf16.msra.mxu1 %v2515_v7  ;;  %v2532_v18 = vld [vmem:[%s3775_s1 + $0x80] ss:$16 sps:$4 sm:$0xff]   ;;  %v2533_v19 = vld [vmem:[%s3775_s1 + $0x88] ss:$16 sps:$4 sm:$0xff]   ;;  %v2534_v20 = vld [vmem:[%s3775_s1 + $0xa4] ss:$16 sps:$4 sm:$0xff]  }
   0x8   :  { %1672 = vmatprep.subr.bf16.mxu0 %v2516_v8  ;;  %1884 = vmatprep.subr.bf16.mxu1 %v2518_v9  ;;  %v2536_v21 = vld [vmem:[%s3775_s1 + $0xac] ss:$16 sps:$4 sm:$0xff]   ;;  %v2538_v22 = vld [vmem:[%s3775_s1 + $0xa0] ss:$16 sps:$4 sm:$0xff]   ;;  %v2539_v23 = vld [vmem:[%s3775_s1 + $0xa8] ss:$16 sps:$4 sm:$0xff]  }
   0x9   :  { %v2540_v24 = vld [vmem:[%s3775_s1 + $0xc4] ss:$16 sps:$4 sm:$0xff]   ;;  %v2542_v25 = vld [vmem:[%s3775_s1 + $0xcc] ss:$16 sps:$4 sm:$0xff]   ;;  %v2544_v26 = vld [vmem:[%s3775_s1 + $0xc0] ss:$16 sps:$4 sm:$0xff]  }
   0xa   :  { %v2545_v27 = vld [vmem:[%s3775_s1 + $0xc8] ss:$16 sps:$4 sm:$0xff]   ;;  %v2546_v28 = vld [vmem:[%s3775_s1 + $0xe4] ss:$16 sps:$4 sm:$0xff]   ;;  %v2548_v29 = vld [vmem:[%s3775_s1 + $0xec] ss:$16 sps:$4 sm:$0xff]  }
   0xb   :  { %1673 = vmatpush1.bf16.msra.mxu0 %v2520_v10  ;;  %1885 = vmatpush1.bf16.msra.mxu1 %v2521_v11  ;;  %v2550_v30 = vld [vmem:[%s3775_s1 + $0xe0] ss:$16 sps:$4 sm:$0xff]   ;;  %v2551_v31 = vld [vmem:[%s3775_s1 + $0xe8] ss:$16 sps:$4 sm:$0xff]   ;;  %v2552_v32 = vld [vmem:[%s3775_s1 + $0x104] ss:$16 sps:$4 sm:$0xff]  }
   0xc   :  { %1674 = vmatprep.subr.bf16.mxu0 %v2522_v12  ;;  %1886 = vmatprep.subr.bf16.mxu1 %v2524_v13  ;;  %v2554_v33 = vld [vmem:[%s3775_s1 + $0x10c] ss:$16 sps:$4 sm:$0xff]   ;;  %v2556_v34 = vld [vmem:[%s3775_s1 + $0x100] ss:$16 sps:$4 sm:$0xff]   ;;  %v2557_v35 = vld [vmem:[%s3775_s1 + $0x108] ss:$16 sps:$4 sm:$0xff]  }
   0xd   :  { %v2558_v36 = vld [vmem:[%s3775_s1 + $0x124] ss:$16 sps:$4 sm:$0xff]   ;;  %v2560_v37 = vld [vmem:[%s3775_s1 + $0x12c] ss:$16 sps:$4 sm:$0xff]   ;;  %v2562_v38 = vld [vmem:[%s3775_s1 + $0x120] ss:$16 sps:$4 sm:$0xff]  }
   0xe   :  { %v2563_v39 = vld [vmem:[%s3775_s1 + $0x128] ss:$16 sps:$4 sm:$0xff]   ;;  %v2564_v40 = vld [vmem:[%s3775_s1 + $0x144] ss:$16 sps:$4 sm:$0xff]   ;;  %v2566_v41 = vld [vmem:[%s3775_s1 + $0x14c] ss:$16 sps:$4 sm:$0xff]  }
   0xf   :  { %1675 = vmatpush1.bf16.msra.mxu0 %v2526_v14  ;;  %1887 = vmatpush1.bf16.msra.mxu1 %v2527_v15  ;;  %v2568_v42 = vld [vmem:[%s3775_s1 + $0x140] ss:$16 sps:$4 sm:$0xff]   ;;  %v2569_v43 = vld [vmem:[%s3775_s1 + $0x148] ss:$16 sps:$4 sm:$0xff]   ;;  %v2570_v44 = vld [vmem:[%s3775_s1 + $0x164] ss:$16 sps:$4 sm:$0xff]  }
  0x10   :  { %1676 = vmatprep.subr.bf16.mxu0 %v2528_v16  ;;  %1888 = vmatprep.subr.bf16.mxu1 %v2530_v17  ;;  %v2572_v45 = vld [vmem:[%s3775_s1 + $0x16c] ss:$16 sps:$4 sm:$0xff]   ;;  %v14_v46 = vld [vmem:[%s3776_s0] sm:$0xff]  ;;  %v2575_v49 = vld [vmem:[%s3775_s1 + $0x168] ss:$16 sps:$4 sm:$0xff]  }
  0x11   :  { %v18_v47 = vld [vmem:[%s3776_s0 + $0x20] sm:$0xff]  ;;  %v2578_v52 = vld [vmem:[%s3775_s1 + $0x18c] ss:$16 sps:$4 sm:$0xff]   ;;  %v2581_v54 = vld [vmem:[%s3775_s1 + $0x188] ss:$16 sps:$4 sm:$0xff]  }
  0x12   :  { %v2574_v48 = vld [vmem:[%s3775_s1 + $0x160] ss:$16 sps:$4 sm:$0xff]   ;;  %v2153_v50 = vcombine.high %v14_v46, %v18_v47  ;;  %v2576_v51 = vld [vmem:[%s3775_s1 + $0x184] ss:$16 sps:$4 sm:$0xff]   ;;  %v2584_v56 = vld [vmem:[%s3775_s1 + $0x1ac] ss:$16 sps:$4 sm:$0xff]   ;;  %v2152_v5 = vcombine.low %v14_v46, %v18_v47 }
  0x13   :  { %1677 = vmatpush1.bf16.msra.mxu0 %v2532_v18  ;;  %1889 = vmatpush1.bf16.msra.mxu1 %v2533_v19  ;;  %v2580_v53 = vld [vmem:[%s3775_s1 + $0x180] ss:$16 sps:$4 sm:$0xff]   ;;  %v2582_v55 = vld [vmem:[%s3775_s1 + $0x1a4] ss:$16 sps:$4 sm:$0xff]   ;;  %v2587_v58 = vld [vmem:[%s3775_s1 + $0x1a8] ss:$16 sps:$4 sm:$0xff]  }
  0x14   :  { %1678 = vmatprep.subr.bf16.mxu0 %v2534_v20  ;;  %1890 = vmatprep.subr.bf16.mxu1 %v2536_v21  ;;  %v2586_v57 = vld [vmem:[%s3775_s1 + $0x1a0] ss:$16 sps:$4 sm:$0xff]   ;;  %v2588_v59 = vld [vmem:[%s3775_s1 + $0x1c4] ss:$16 sps:$4 sm:$0xff]   ;;  %v2590_v60 = vld [vmem:[%s3775_s1 + $0x1cc] ss:$16 sps:$4 sm:$0xff]  }
  0x15   :  { %1700 = vmatprep.mubr.bf16.mxu0 %v2153_v50  ;;  %1912 = vmatprep.mubr.bf16.mxu1 %v2153_v50  ;;  %v2592_v61 = vld [vmem:[%s3775_s1 + $0x1c0] ss:$16 sps:$4 sm:$0xff]   ;;  %v2593_v62 = vld [vmem:[%s3775_s1 + $0x1c8] ss:$16 sps:$4 sm:$0xff]   ;;  %v2594_v63 = vld [vmem:[%s3775_s1 + $0x1e4] ss:$16 sps:$4 sm:$0xff]  }
  0x16   :  { %v2596_v0 = vld [vmem:[%s3775_s1 + $0x1ec] ss:$16 sps:$4 sm:$0xff]   ;;  %v2598_v1 = vld [vmem:[%s3775_s1 + $0x1e0] ss:$16 sps:$4 sm:$0xff]   ;;  %v2599_v2 = vld [vmem:[%s3775_s1 + $0x1e8] ss:$16 sps:$4 sm:$0xff]  }
  0x17   :  { %1679 = vmatpush1.bf16.msra.mxu0 %v2538_v22  ;;  %1891 = vmatpush1.bf16.msra.mxu1 %v2539_v23  ;;  %v2602_v3 = vld [vmem:[%s3775_s1 + $0x204] ss:$16 sps:$4 sm:$0xff]   ;;  %v2605_v4 = vld [vmem:[%s3775_s1 + $0x20c] ss:$16 sps:$4 sm:$0xff]   ;;  %v2600_v6 = vld [vmem:[%s3775_s1 + $0x200] ss:$16 sps:$4 sm:$0xff]  }
  0x18   :  { %1680 = vmatprep.subr.bf16.mxu0 %v2540_v24  ;;  %1892 = vmatprep.subr.bf16.mxu1 %v2542_v25  ;;  %v2603_v7 = vld [vmem:[%s3775_s1 + $0x208] ss:$16 sps:$4 sm:$0xff]   ;;  %v2608_v8 = vld [vmem:[%s3775_s1 + $0x224] ss:$16 sps:$4 sm:$0xff]   ;;  %v2611_v9 = vld [vmem:[%s3775_s1 + $0x22c] ss:$16 sps:$4 sm:$0xff]  }
  0x19   :  { %v2606_v10 = vld [vmem:[%s3775_s1 + $0x220] ss:$16 sps:$4 sm:$0xff]   ;;  %v2609_v11 = vld [vmem:[%s3775_s1 + $0x228] ss:$16 sps:$4 sm:$0xff]   ;;  %v2614_v12 = vld [vmem:[%s3775_s1 + $0x244] ss:$16 sps:$4 sm:$0xff]  }
  0x1a   :  { %v2617_v13 = vld [vmem:[%s3775_s1 + $0x24c] ss:$16 sps:$4 sm:$0xff]   ;;  %v2612_v14 = vld [vmem:[%s3775_s1 + $0x240] ss:$16 sps:$4 sm:$0xff]   ;;  %v2615_v15 = vld [vmem:[%s3775_s1 + $0x248] ss:$16 sps:$4 sm:$0xff]  }
  0x1b   :  { %1681 = vmatpush1.bf16.msra.mxu0 %v2544_v26  ;;  %1893 = vmatpush1.bf16.msra.mxu1 %v2545_v27  ;;  %v2620_v16 = vld [vmem:[%s3775_s1 + $0x264] ss:$16 sps:$4 sm:$0xff]   ;;  %v2623_v17 = vld [vmem:[%s3775_s1 + $0x26c] ss:$16 sps:$4 sm:$0xff]   ;;  %v2618_v18 = vld [vmem:[%s3775_s1 + $0x260] ss:$16 sps:$4 sm:$0xff]  }
  0x1c   :  { %1682 = vmatprep.subr.bf16.mxu0 %v2546_v28  ;;  %1894 = vmatprep.subr.bf16.mxu1 %v2548_v29  ;;  %v2621_v19 = vld [vmem:[%s3775_s1 + $0x268] ss:$16 sps:$4 sm:$0xff]   ;;  %v2626_v20 = vld [vmem:[%s3775_s1 + $0x284] ss:$16 sps:$4 sm:$0xff]   ;;  %v2629_v21 = vld [vmem:[%s3775_s1 + $0x28c] ss:$16 sps:$4 sm:$0xff]  }
  0x1d   :  { %v2624_v22 = vld [vmem:[%s3775_s1 + $0x280] ss:$16 sps:$4 sm:$0xff]   ;;  %v2627_v23 = vld [vmem:[%s3775_s1 + $0x288] ss:$16 sps:$4 sm:$0xff]   ;;  %v2632_v24 = vld [vmem:[%s3775_s1 + $0x2a4] ss:$16 sps:$4 sm:$0xff]  }
  0x1e   :  { %v2635_v25 = vld [vmem:[%s3775_s1 + $0x2ac] ss:$16 sps:$4 sm:$0xff]   ;;  %v22_v26 = vld [vmem:[%s3776_s0 + $0x40] sm:$0xff]  ;;  %v2651_v46 = vld [vmem:[%s3775_s1 + $0x308] ss:$16 sps:$4 sm:$0xff]  }
  0x1f   :  { %1683 = vmatpush1.bf16.msra.mxu0 %v2550_v30  ;;  %1895 = vmatpush1.bf16.msra.mxu1 %v2551_v31  ;;  %v26_v27 = vld [vmem:[%s3776_s0 + $0x60] sm:$0xff]  ;;  %v2633_v30 = vld [vmem:[%s3775_s1 + $0x2a8] ss:$16 sps:$4 sm:$0xff]  }
  0x20   :  { %1684 = vmatprep.subr.bf16.mxu0 %v2552_v32  ;;  %1896 = vmatprep.subr.bf16.mxu1 %v2554_v33  ;;  %v2161_v28 = vcombine.high %v22_v26, %v26_v27  ;;  %v2630_v29 = vld [vmem:[%s3775_s1 + $0x2a0] ss:$16 sps:$4 sm:$0xff]   ;;  %v2160_v31 = vcombine.low %v22_v26, %v26_v27  ;;  %v2638_v32 = vld [vmem:[%s3775_s1 + $0x2c4] ss:$16 sps:$4 sm:$0xff]   ;;  %v2641_v33 = vld [vmem:[%s3775_s1 + $0x2cc] ss:$16 sps:$4 sm:$0xff]  }
  0x21   :  { %v2656_v47 = vld [vmem:[%s3775_s1 + $0x324] ss:$16 sps:$4 sm:$0xff]   ;;  %v2657_v50 = vld [vmem:[%s3775_s1 + $0x328] ss:$16 sps:$4 sm:$0xff]  }
  0x22   :  { %v3362_v27 = vld [vmem:[%s3776_s0 + $0x30] sm:$0xff] }
  0x23   :  { %1685 = vmatpush1.bf16.msra.mxu0 %v2556_v34  ;;  %1897 = vmatpush1.bf16.msra.mxu1 %v2557_v35  ;;  %v3193_v34 = vld [vmem:[%s3776_s0 + $0x8] sm:$0xff] }
  0x24   :  { %1686 = vmatprep.subr.bf16.mxu0 %v2558_v36  ;;  %1898 = vmatprep.subr.bf16.mxu1 %v2560_v37  ;;  %v3198_v35 = vld [vmem:[%s3776_s0 + $0x28] sm:$0xff]  ;;  %v2636_v36 = vld [vmem:[%s3775_s1 + $0x2c0] ss:$16 sps:$4 sm:$0xff]  }
  0x25   :  { %v2639_v37 = vld [vmem:[%s3775_s1 + $0x2c8] ss:$16 sps:$4 sm:$0xff]  }
  0x27   :  { %1687 = vmatpush1.bf16.msra.mxu0 %v2562_v38  ;;  %1899 = vmatpush1.bf16.msra.mxu1 %v2563_v39  ;;  %v2155_v38 = vcombine.high %v3193_v34, %v3198_v35  ;;  %v2644_v39 = vld [vmem:[%s3775_s1 + $0x2e4] ss:$16 sps:$4 sm:$0xff]  }
  0x28   :  { %1688 = vmatprep.subr.bf16.mxu0 %v2564_v40  ;;  %1900 = vmatprep.subr.bf16.mxu1 %v2566_v41  ;;  %v2647_v40 = vld [vmem:[%s3775_s1 + $0x2ec] ss:$16 sps:$4 sm:$0xff]   ;;  %v2642_v41 = vld [vmem:[%s3775_s1 + $0x2e0] ss:$16 sps:$4 sm:$0xff]  }
  0x2b   :  { %1689 = vmatpush1.bf16.msra.mxu0 %v2568_v42  ;;  %1901 = vmatpush1.bf16.msra.mxu1 %v2569_v43  ;;  %v2645_v42 = vld [vmem:[%s3775_s1 + $0x2e8] ss:$16 sps:$4 sm:$0xff]   ;;  %v2650_v43 = vld [vmem:[%s3775_s1 + $0x304] ss:$16 sps:$4 sm:$0xff]  }
  0x2c   :  { %1690 = vmatprep.subr.bf16.mxu0 %v2570_v44  ;;  %1902 = vmatprep.subr.bf16.mxu1 %v2572_v45  ;;  %v2653_v44 = vld [vmem:[%s3775_s1 + $0x30c] ss:$16 sps:$4 sm:$0xff]   ;;  %v2648_v45 = vld [vmem:[%s3775_s1 + $0x300] ss:$16 sps:$4 sm:$0xff]  }
  0x2f   :  { %1691 = vmatpush1.bf16.msra.mxu0 %v2574_v48  ;;  %1903 = vmatpush1.bf16.msra.mxu1 %v2575_v49  ;;  %v2659_v48 = vld [vmem:[%s3775_s1 + $0x32c] ss:$16 sps:$4 sm:$0xff]   ;;  %v2654_v49 = vld [vmem:[%s3775_s1 + $0x320] ss:$16 sps:$4 sm:$0xff]  }
  0x30   :  { %1692 = vmatprep.subr.bf16.mxu0 %v2576_v51  ;;  %1904 = vmatprep.subr.bf16.mxu1 %v2578_v52  ;;  %v2662_v51 = vld [vmem:[%s3775_s1 + $0x344] ss:$16 sps:$4 sm:$0xff]   ;;  %v2665_v52 = vld [vmem:[%s3775_s1 + $0x34c] ss:$16 sps:$4 sm:$0xff]  }
  0x33   :  { %1693 = vmatpush1.bf16.msra.mxu0 %v2580_v53  ;;  %1905 = vmatpush1.bf16.msra.mxu1 %v2581_v54  ;;  %v2660_v53 = vld [vmem:[%s3775_s1 + $0x340] ss:$16 sps:$4 sm:$0xff]   ;;  %v2663_v54 = vld [vmem:[%s3775_s1 + $0x348] ss:$16 sps:$4 sm:$0xff]  }
  0x34   :  { %1694 = vmatprep.subr.bf16.mxu0 %v2582_v55  ;;  %1906 = vmatprep.subr.bf16.mxu1 %v2584_v56  ;;  %v2668_v55 = vld [vmem:[%s3775_s1 + $0x364] ss:$16 sps:$4 sm:$0xff]   ;;  %v2671_v56 = vld [vmem:[%s3775_s1 + $0x36c] ss:$16 sps:$4 sm:$0xff]  }
  0x37   :  { %1695 = vmatpush1.bf16.msra.mxu0 %v2586_v57  ;;  %1907 = vmatpush1.bf16.msra.mxu1 %v2587_v58  ;;  %v2666_v57 = vld [vmem:[%s3775_s1 + $0x360] ss:$16 sps:$4 sm:$0xff]   ;;  %v2669_v58 = vld [vmem:[%s3775_s1 + $0x368] ss:$16 sps:$4 sm:$0xff]  }
  0x38   :  { %1696 = vmatprep.subr.bf16.mxu0 %v2588_v59  ;;  %1908 = vmatprep.subr.bf16.mxu1 %v2590_v60  ;;  %v2674_v59 = vld [vmem:[%s3775_s1 + $0x384] ss:$16 sps:$4 sm:$0xff]   ;;  %v2677_v60 = vld [vmem:[%s3775_s1 + $0x38c] ss:$16 sps:$4 sm:$0xff]  }
  0x3b   :  { %1697 = vmatpush1.bf16.msra.mxu0 %v2592_v61  ;;  %1909 = vmatpush1.bf16.msra.mxu1 %v2593_v62  ;;  %v2672_v61 = vld [vmem:[%s3775_s1 + $0x380] ss:$16 sps:$4 sm:$0xff]   ;;  %v2675_v62 = vld [vmem:[%s3775_s1 + $0x388] ss:$16 sps:$4 sm:$0xff]  }
  0x3c   :  { %1698 = vmatprep.subr.bf16.mxu0 %v2594_v63  ;;  %1910 = vmatprep.subr.bf16.mxu1 %v2596_v0  ;;  %v2680_v63 = vld [vmem:[%s3775_s1 + $0x3a4] ss:$16 sps:$4 sm:$0xff]   ;;  %v2683_v0 = vld [vmem:[%s3775_s1 + $0x3ac] ss:$16 sps:$4 sm:$0xff]  }
  0x3f   :  { %1699 = vmatpush1.bf16.msra.mxu0 %v2598_v1  ;;  %1911 = vmatpush1.bf16.msra.mxu1 %v2599_v2  ;;  %v2678_v1 = vld [vmem:[%s3775_s1 + $0x3a0] ss:$16 sps:$4 sm:$0xff]   ;;  %v2681_v2 = vld [vmem:[%s3775_s1 + $0x3a8] ss:$16 sps:$4 sm:$0xff]  }
  0x40   :  { %1721 = vmatprep.subr.bf16.mxu0 %v2602_v3  ;;  %1933 = vmatprep.subr.bf16.mxu1 %v2605_v4  ;;  %v2686_v3 = vld [vmem:[%s3775_s1 + $0x3c4] ss:$16 sps:$4 sm:$0xff]   ;;  %v2689_v4 = vld [vmem:[%s3775_s1 + $0x3cc] ss:$16 sps:$4 sm:$0xff]  }
  0x42   :  { %1701 = vmatmul.mubr.bf16.vlgmr.msra.gmra.mrb[0].mxu0 %v2152_v5  ;;  %1913 = vmatmul.mubr.bf16.vlgmr.msra.gmra.mrb[0].mxu1 %v2152_v5  ;;  %v2684_v5 = vld [vmem:[%s3775_s1 + $0x3c0] ss:$16 sps:$4 sm:$0xff]  }
  0x43   :  { %1722 = vmatpush1.bf16.msra.mxu0 %v2600_v6  ;;  %1934 = vmatpush1.bf16.msra.mxu1 %v2603_v7  ;;  %v2687_v6 = vld [vmem:[%s3775_s1 + $0x3c8] ss:$16 sps:$4 sm:$0xff]   ;;  %v2692_v7 = vld [vmem:[%s3775_s1 + $0x3e4] ss:$16 sps:$4 sm:$0xff]  }
  0x44   :  { %1723 = vmatprep.subr.bf16.mxu0 %v2608_v8  ;;  %1935 = vmatprep.subr.bf16.mxu1 %v2611_v9  ;;  %v2695_v8 = vld [vmem:[%s3775_s1 + $0x3ec] ss:$16 sps:$4 sm:$0xff]   ;;  %v2690_v9 = vld [vmem:[%s3775_s1 + $0x3e0] ss:$16 sps:$4 sm:$0xff]  }
  0x45   :  { %1710 = vmatprep.mubr.bf16.mxu0 %v2161_v28  ;;  %1922 = vmatprep.mubr.bf16.mxu1 %v2161_v28  ;;  %v2708_v28 = vld [vmem:[%s3775_s1 + $0x440] ss:$16 sps:$4 sm:$0xff]  }
  0x47   :  { %1724 = vmatpush1.bf16.msra.mxu0 %v2606_v10  ;;  %1936 = vmatpush1.bf16.msra.mxu1 %v2609_v11  ;;  %v2693_v10 = vld [vmem:[%s3775_s1 + $0x3e8] ss:$16 sps:$4 sm:$0xff]   ;;  %v2698_v11 = vld [vmem:[%s3775_s1 + $0x404] ss:$16 sps:$4 sm:$0xff]  }
  0x48   :  { %1725 = vmatprep.subr.bf16.mxu0 %v2614_v12  ;;  %1937 = vmatprep.subr.bf16.mxu1 %v2617_v13  ;;  %v2701_v12 = vld [vmem:[%s3775_s1 + $0x40c] ss:$16 sps:$4 sm:$0xff]   ;;  %v2696_v13 = vld [vmem:[%s3775_s1 + $0x400] ss:$16 sps:$4 sm:$0xff]  }
  0x4a   :  { %1711 = vmatmul.mubr.bf16.gmra.mrb[4].mxu0 %v2160_v31  ;;  %1923 = vmatmul.mubr.bf16.gmra.mrb[4].mxu1 %v2160_v31  ;;  %v2719_v31 = vld [vmem:[%s3775_s1 + $0x46c] ss:$16 sps:$4 sm:$0xff]  }
  0x4b   :  { %1726 = vmatpush1.bf16.msra.mxu0 %v2612_v14  ;;  %1938 = vmatpush1.bf16.msra.mxu1 %v2615_v15  ;;  %v2699_v14 = vld [vmem:[%s3775_s1 + $0x408] ss:$16 sps:$4 sm:$0xff]   ;;  %v2154_v15 = vcombine.low %v3193_v34, %v3198_v35  ;;  %v2722_v35 = vld [vmem:[%s3775_s1 + $0x484] ss:$16 sps:$4 sm:$0xff]  }
  0x4c   :  { %1727 = vmatprep.subr.bf16.mxu0 %v2620_v16  ;;  %1939 = vmatprep.subr.bf16.mxu1 %v2623_v17  ;;  %v23_v16 = vld [vmem:[%s3776_s0 + $0x48] sm:$0xff] }
  0x4d   :  { %1753 = vmatprep.mubr.bf16.mxu0 %v2155_v38  ;;  %1965 = vmatprep.mubr.bf16.mxu1 %v2155_v38  ;;  %v27_v17 = vld [vmem:[%s3776_s0 + $0x68] sm:$0xff] }
  0x4e   :  { %v2162_v26 = vcombine.low %v23_v16, %v27_v17  ;;  %v2717_v34 = vld [vmem:[%s3775_s1 + $0x468] ss:$16 sps:$4 sm:$0xff]  }
  0x4f   :  { %1728 = vmatpush1.bf16.msra.mxu0 %v2618_v18  ;;  %1940 = vmatpush1.bf16.msra.mxu1 %v2621_v19  ;;  %v2704_v18 = vld [vmem:[%s3775_s1 + $0x424] ss:$16 sps:$4 sm:$0xff]   ;;  %v2707_v19 = vld [vmem:[%s3775_s1 + $0x42c] ss:$16 sps:$4 sm:$0xff]   ;;  %v2723_v38 = vld [vmem:[%s3775_s1 + $0x488] ss:$16 sps:$4 sm:$0xff]  }
  0x50   :  { %1729 = vmatprep.subr.bf16.mxu0 %v2626_v20  ;;  %1941 = vmatprep.subr.bf16.mxu1 %v2629_v21  ;;  %v2163_v20 = vcombine.high %v23_v16, %v27_v17  ;;  %v2702_v21 = vld [vmem:[%s3775_s1 + $0x420] ss:$16 sps:$4 sm:$0xff]   ;;  %v2791_v16 = vld [vmem:[%s3775_s1 + $0x5ec] ss:$16 sps:$4 sm:$0xff]  }
  0x51   :  { %v2786_v17 = vld [vmem:[%s3775_s1 + $0x5e0] ss:$16 sps:$4 sm:$0xff]  }
  0x53   :  { %1730 = vmatpush1.bf16.msra.mxu0 %v2624_v22  ;;  %1942 = vmatpush1.bf16.msra.mxu1 %v2627_v23  ;;  %v2705_v22 = vld [vmem:[%s3775_s1 + $0x428] ss:$16 sps:$4 sm:$0xff]   ;;  %v2710_v23 = vld [vmem:[%s3775_s1 + $0x444] ss:$16 sps:$4 sm:$0xff]  }
  0x54   :  { %1731 = vmatprep.subr.bf16.mxu0 %v2632_v24  ;;  %1943 = vmatprep.subr.bf16.mxu1 %v2635_v25  ;;  %v2713_v24 = vld [vmem:[%s3775_s1 + $0x44c] ss:$16 sps:$4 sm:$0xff]   ;;  %v3357_v25 = vld [vmem:[%s3776_s0 + $0x10] sm:$0xff] }
  0x57   :  { %1732 = vmatpush1.bf16.msra.mxu0 %v2630_v29  ;;  %1944 = vmatpush1.bf16.msra.mxu1 %v2633_v30  ;;  %v2711_v29 = vld [vmem:[%s3775_s1 + $0x448] ss:$16 sps:$4 sm:$0xff]   ;;  %v2716_v30 = vld [vmem:[%s3775_s1 + $0x464] ss:$16 sps:$4 sm:$0xff]  }
  0x58   :  { %1733 = vmatprep.subr.bf16.mxu0 %v2638_v32  ;;  %1945 = vmatprep.subr.bf16.mxu1 %v2641_v33  ;;  %v2157_v32 = vcombine.high %v3357_v25, %v3362_v27  ;;  %v2714_v33 = vld [vmem:[%s3775_s1 + $0x460] ss:$16 sps:$4 sm:$0xff]  }
  0x5b   :  { %1734 = vmatpush1.bf16.msra.mxu0 %v2636_v36  ;;  %1946 = vmatpush1.bf16.msra.mxu1 %v2639_v37  ;;  %v2725_v36 = vld [vmem:[%s3775_s1 + $0x48c] ss:$16 sps:$4 sm:$0xff]   ;;  %v2720_v37 = vld [vmem:[%s3775_s1 + $0x480] ss:$16 sps:$4 sm:$0xff]  }
  0x5c   :  { %1735 = vmatprep.subr.bf16.mxu0 %v2644_v39  ;;  %1947 = vmatprep.subr.bf16.mxu1 %v2647_v40  ;;  %v2728_v39 = vld [vmem:[%s3775_s1 + $0x4a4] ss:$16 sps:$4 sm:$0xff]   ;;  %v2731_v40 = vld [vmem:[%s3775_s1 + $0x4ac] ss:$16 sps:$4 sm:$0xff]  }
  0x5f   :  { %1736 = vmatpush1.bf16.msra.mxu0 %v2642_v41  ;;  %1948 = vmatpush1.bf16.msra.mxu1 %v2645_v42  ;;  %v2726_v41 = vld [vmem:[%s3775_s1 + $0x4a0] ss:$16 sps:$4 sm:$0xff]   ;;  %v2729_v42 = vld [vmem:[%s3775_s1 + $0x4a8] ss:$16 sps:$4 sm:$0xff]  }
  0x60   :  { %1737 = vmatprep.subr.bf16.mxu0 %v2650_v43  ;;  %1949 = vmatprep.subr.bf16.mxu1 %v2653_v44  ;;  %v2734_v43 = vld [vmem:[%s3775_s1 + $0x4c4] ss:$16 sps:$4 sm:$0xff]   ;;  %v2737_v44 = vld [vmem:[%s3775_s1 + $0x4cc] ss:$16 sps:$4 sm:$0xff]  }
  0x63   :  { %1738 = vmatpush1.bf16.msra.mxu0 %v2648_v45  ;;  %1950 = vmatpush1.bf16.msra.mxu1 %v2651_v46  ;;  %v2732_v45 = vld [vmem:[%s3775_s1 + $0x4c0] ss:$16 sps:$4 sm:$0xff]   ;;  %v2735_v46 = vld [vmem:[%s3775_s1 + $0x4c8] ss:$16 sps:$4 sm:$0xff]  }
  0x64   :  { %1739 = vmatprep.subr.bf16.mxu0 %v2656_v47  ;;  %1951 = vmatprep.subr.bf16.mxu1 %v2659_v48  ;;  %v2740_v47 = vld [vmem:[%s3775_s1 + $0x4e4] ss:$16 sps:$4 sm:$0xff]   ;;  %v2743_v48 = vld [vmem:[%s3775_s1 + $0x4ec] ss:$16 sps:$4 sm:$0xff]  }
  0x67   :  { %1740 = vmatpush1.bf16.msra.mxu0 %v2654_v49  ;;  %1952 = vmatpush1.bf16.msra.mxu1 %v2657_v50  ;;  %v2738_v49 = vld [vmem:[%s3775_s1 + $0x4e0] ss:$16 sps:$4 sm:$0xff]   ;;  %v2741_v50 = vld [vmem:[%s3775_s1 + $0x4e8] ss:$16 sps:$4 sm:$0xff]  }
  0x68   :  { %1741 = vmatprep.subr.bf16.mxu0 %v2662_v51  ;;  %1953 = vmatprep.subr.bf16.mxu1 %v2665_v52  ;;  %v2746_v51 = vld [vmem:[%s3775_s1 + $0x504] ss:$16 sps:$4 sm:$0xff]   ;;  %v2749_v52 = vld [vmem:[%s3775_s1 + $0x50c] ss:$16 sps:$4 sm:$0xff]  }
  0x6b   :  { %1742 = vmatpush1.bf16.msra.mxu0 %v2660_v53  ;;  %1954 = vmatpush1.bf16.msra.mxu1 %v2663_v54  ;;  %v2744_v53 = vld [vmem:[%s3775_s1 + $0x500] ss:$16 sps:$4 sm:$0xff]   ;;  %v2747_v54 = vld [vmem:[%s3775_s1 + $0x508] ss:$16 sps:$4 sm:$0xff]  }
  0x6c   :  { %1743 = vmatprep.subr.bf16.mxu0 %v2668_v55  ;;  %1955 = vmatprep.subr.bf16.mxu1 %v2671_v56  ;;  %v2752_v55 = vld [vmem:[%s3775_s1 + $0x524] ss:$16 sps:$4 sm:$0xff]   ;;  %v2755_v56 = vld [vmem:[%s3775_s1 + $0x52c] ss:$16 sps:$4 sm:$0xff]  }
  0x6f   :  { %1744 = vmatpush1.bf16.msra.mxu0 %v2666_v57  ;;  %1956 = vmatpush1.bf16.msra.mxu1 %v2669_v58  ;;  %v2750_v57 = vld [vmem:[%s3775_s1 + $0x520] ss:$16 sps:$4 sm:$0xff]   ;;  %v2753_v58 = vld [vmem:[%s3775_s1 + $0x528] ss:$16 sps:$4 sm:$0xff]  }
  0x70   :  { %1745 = vmatprep.subr.bf16.mxu0 %v2674_v59  ;;  %1957 = vmatprep.subr.bf16.mxu1 %v2677_v60  ;;  %v2758_v59 = vld [vmem:[%s3775_s1 + $0x544] ss:$16 sps:$4 sm:$0xff]   ;;  %v2761_v60 = vld [vmem:[%s3775_s1 + $0x54c] ss:$16 sps:$4 sm:$0xff]  }
  0x73   :  { %1746 = vmatpush1.bf16.msra.mxu0 %v2672_v61  ;;  %1958 = vmatpush1.bf16.msra.mxu1 %v2675_v62  ;;  %v2756_v61 = vld [vmem:[%s3775_s1 + $0x540] ss:$16 sps:$4 sm:$0xff]   ;;  %v2759_v62 = vld [vmem:[%s3775_s1 + $0x548] ss:$16 sps:$4 sm:$0xff]  }
  0x74   :  { %1747 = vmatprep.subr.bf16.mxu0 %v2680_v63  ;;  %1959 = vmatprep.subr.bf16.mxu1 %v2683_v0  ;;  %v2764_v63 = vld [vmem:[%s3775_s1 + $0x564] ss:$16 sps:$4 sm:$0xff]   ;;  %v2767_v0 = vld [vmem:[%s3775_s1 + $0x56c] ss:$16 sps:$4 sm:$0xff]  }
  0x77   :  { %1748 = vmatpush1.bf16.msra.mxu0 %v2678_v1  ;;  %1960 = vmatpush1.bf16.msra.mxu1 %v2681_v2  ;;  %v2762_v1 = vld [vmem:[%s3775_s1 + $0x560] ss:$16 sps:$4 sm:$0xff]   ;;  %v2765_v2 = vld [vmem:[%s3775_s1 + $0x568] ss:$16 sps:$4 sm:$0xff]  }
  0x78   :  { %1749 = vmatprep.subr.bf16.mxu0 %v2686_v3  ;;  %1961 = vmatprep.subr.bf16.mxu1 %v2689_v4  ;;  %v2770_v3 = vld [vmem:[%s3775_s1 + $0x584] ss:$16 sps:$4 sm:$0xff]   ;;  %v2773_v4 = vld [vmem:[%s3775_s1 + $0x58c] ss:$16 sps:$4 sm:$0xff]  }
  0x7b   :  { %1750 = vmatpush1.bf16.msra.mxu0 %v2684_v5  ;;  %1962 = vmatpush1.bf16.msra.mxu1 %v2687_v6  ;;  %v2768_v5 = vld [vmem:[%s3775_s1 + $0x580] ss:$16 sps:$4 sm:$0xff]   ;;  %v2771_v6 = vld [vmem:[%s3775_s1 + $0x588] ss:$16 sps:$4 sm:$0xff]  }
  0x7c   :  { %1751 = vmatprep.subr.bf16.mxu0 %v2692_v7  ;;  %1963 = vmatprep.subr.bf16.mxu1 %v2695_v8  ;;  %v2776_v7 = vld [vmem:[%s3775_s1 + $0x5a4] ss:$16 sps:$4 sm:$0xff]   ;;  %v2779_v8 = vld [vmem:[%s3775_s1 + $0x5ac] ss:$16 sps:$4 sm:$0xff]  }
  0x7f   :  { %1752 = vmatpush1.bf16.msra.mxu0 %v2690_v9  ;;  %1964 = vmatpush1.bf16.msra.mxu1 %v2693_v10  ;;  %v2774_v9 = vld [vmem:[%s3775_s1 + $0x5a0] ss:$16 sps:$4 sm:$0xff]   ;;  %v2777_v10 = vld [vmem:[%s3775_s1 + $0x5a8] ss:$16 sps:$4 sm:$0xff]  }
  0x80   :  { %1774 = vmatprep.subr.bf16.mxu0 %v2698_v11  ;;  %1986 = vmatprep.subr.bf16.mxu1 %v2701_v12  ;;  %v2782_v11 = vld [vmem:[%s3775_s1 + $0x5c4] ss:$16 sps:$4 sm:$0xff]   ;;  %v2785_v12 = vld [vmem:[%s3775_s1 + $0x5cc] ss:$16 sps:$4 sm:$0xff]  }
  0x82   :  { %1754 = vmatmul.mubr.bf16.vlgmr.msra.gmra.mrb[0].mxu0 %v2154_v15  ;;  %1966 = vmatmul.mubr.bf16.vlgmr.msra.gmra.mrb[0].mxu1 %v2154_v15  ;;  %v2788_v15 = vld [vmem:[%s3775_s1 + $0x5e4] ss:$16 sps:$4 sm:$0xff]  }
  0x83   :  { %1775 = vmatpush1.bf16.msra.mxu0 %v2696_v13  ;;  %1987 = vmatpush1.bf16.msra.mxu1 %v2699_v14  ;;  %v2780_v13 = vld [vmem:[%s3775_s1 + $0x5c0] ss:$16 sps:$4 sm:$0xff]   ;;  %v2783_v14 = vld [vmem:[%s3775_s1 + $0x5c8] ss:$16 sps:$4 sm:$0xff]  }
  0x84   :  { %1776 = vmatprep.subr.bf16.mxu0 %v2704_v18  ;;  %1988 = vmatprep.subr.bf16.mxu1 %v2707_v19  ;;  %v2789_v18 = vld [vmem:[%s3775_s1 + $0x5e8] ss:$16 sps:$4 sm:$0xff]   ;;  %v2794_v19 = vld [vmem:[%s3775_s1 + $0x604] ss:$16 sps:$4 sm:$0xff]  }
  0x85   :  { %1763 = vmatprep.mubr.bf16.mxu0 %v2163_v20  ;;  %1975 = vmatprep.mubr.bf16.mxu1 %v2163_v20  ;;  %v2797_v20 = vld [vmem:[%s3775_s1 + $0x60c] ss:$16 sps:$4 sm:$0xff]  }
  0x87   :  { %1777 = vmatpush1.bf16.msra.mxu0 %v2702_v21  ;;  %1989 = vmatpush1.bf16.msra.mxu1 %v2705_v22  ;;  %v2156_v21 = vcombine.low %v3357_v25, %v3362_v27  ;;  %v24_v22 = vld [vmem:[%s3776_s0 + $0x50] sm:$0xff]  ;;  %v2803_v27 = vld [vmem:[%s3775_s1 + $0x62c] ss:$16 sps:$4 sm:$0xff]  }
  0x88   :  { %1778 = vmatprep.subr.bf16.mxu0 %v2710_v23  ;;  %1990 = vmatprep.subr.bf16.mxu1 %v2713_v24  ;;  %v28_v23 = vld [vmem:[%s3776_s0 + $0x70] sm:$0xff] }
  0x89   :  { %v2792_v24 = vld [vmem:[%s3775_s1 + $0x600] ss:$16 sps:$4 sm:$0xff]   ;;  %v2800_v25 = vld [vmem:[%s3775_s1 + $0x624] ss:$16 sps:$4 sm:$0xff]  }
  0x8a   :  { %1764 = vmatmul.mubr.bf16.gmra.mrb[4].mxu0 %v2162_v26  ;;  %1976 = vmatmul.mubr.bf16.gmra.mrb[4].mxu1 %v2162_v26  ;;  %v2795_v26 = vld [vmem:[%s3775_s1 + $0x608] ss:$16 sps:$4 sm:$0xff]  }
  0x8b   :  { %1779 = vmatpush1.bf16.msra.mxu0 %v2708_v28  ;;  %1991 = vmatpush1.bf16.msra.mxu1 %v2711_v29  ;;  %v2165_v28 = vcombine.high %v24_v22, %v28_v23  ;;  %v2798_v29 = vld [vmem:[%s3775_s1 + $0x620] ss:$16 sps:$4 sm:$0xff]  }
  0x8c   :  { %1780 = vmatprep.subr.bf16.mxu0 %v2716_v30  ;;  %1992 = vmatprep.subr.bf16.mxu1 %v2719_v31  ;;  %v2801_v30 = vld [vmem:[%s3775_s1 + $0x628] ss:$16 sps:$4 sm:$0xff]   ;;  %v2806_v31 = vld [vmem:[%s3775_s1 + $0x644] ss:$16 sps:$4 sm:$0xff]  }
  0x8d   :  { %1806 = vmatprep.mubr.bf16.mxu0 %v2157_v32  ;;  %2018 = vmatprep.mubr.bf16.mxu1 %v2157_v32  ;;  %v2809_v32 = vld [vmem:[%s3775_s1 + $0x64c] ss:$16 sps:$4 sm:$0xff]  }
  0x8f   :  { %1781 = vmatpush1.bf16.msra.mxu0 %v2714_v33  ;;  %1993 = vmatpush1.bf16.msra.mxu1 %v2717_v34  ;;  %v2164_v33 = vcombine.low %v24_v22, %v28_v23  ;;  %v3569_v34 = vld [vmem:[%s3776_s0 + $0x18] sm:$0xff]  ;;  %v2884_v23 = vld [vmem:[%s3775_s1 + $0x7e4] ss:$16 sps:$4 sm:$0xff]  }
  0x90   :  { %1782 = vmatprep.subr.bf16.mxu0 %v2722_v35  ;;  %1994 = vmatprep.subr.bf16.mxu1 %v2725_v36  ;;  %v3574_v35 = vld [vmem:[%s3776_s0 + $0x38] sm:$0xff]  ;;  %v2804_v36 = vld [vmem:[%s3775_s1 + $0x640] ss:$16 sps:$4 sm:$0xff]  }
  0x91   :  { %v2879_v22 = vld [vmem:[%s3775_s1 + $0x7c8] ss:$16 sps:$4 sm:$0xff]  }
  0x93   :  { %1783 = vmatpush1.bf16.msra.mxu0 %v2720_v37  ;;  %1995 = vmatpush1.bf16.msra.mxu1 %v2723_v38  ;;  %v2807_v37 = vld [vmem:[%s3775_s1 + $0x648] ss:$16 sps:$4 sm:$0xff]   ;;  %v2812_v38 = vld [vmem:[%s3775_s1 + $0x664] ss:$16 sps:$4 sm:$0xff]  }
  0x94   :  { %1784 = vmatprep.subr.bf16.mxu0 %v2728_v39  ;;  %1996 = vmatprep.subr.bf16.mxu1 %v2731_v40  ;;  %v2815_v39 = vld [vmem:[%s3775_s1 + $0x66c] ss:$16 sps:$4 sm:$0xff]   ;;  %v2159_v40 = vcombine.high %v3569_v34, %v3574_v35 }
  0x97   :  { %1785 = vmatpush1.bf16.msra.mxu0 %v2726_v41  ;;  %1997 = vmatpush1.bf16.msra.mxu1 %v2729_v42  ;;  %v2810_v41 = vld [vmem:[%s3775_s1 + $0x660] ss:$16 sps:$4 sm:$0xff]   ;;  %v2813_v42 = vld [vmem:[%s3775_s1 + $0x668] ss:$16 sps:$4 sm:$0xff]  }
  0x98   :  { %1786 = vmatprep.subr.bf16.mxu0 %v2734_v43  ;;  %1998 = vmatprep.subr.bf16.mxu1 %v2737_v44  ;;  %v2818_v43 = vld [vmem:[%s3775_s1 + $0x684] ss:$16 sps:$4 sm:$0xff]   ;;  %v2821_v44 = vld [vmem:[%s3775_s1 + $0x68c] ss:$16 sps:$4 sm:$0xff]  }
  0x9b   :  { %1787 = vmatpush1.bf16.msra.mxu0 %v2732_v45  ;;  %1999 = vmatpush1.bf16.msra.mxu1 %v2735_v46  ;;  %v2816_v45 = vld [vmem:[%s3775_s1 + $0x680] ss:$16 sps:$4 sm:$0xff]   ;;  %v2819_v46 = vld [vmem:[%s3775_s1 + $0x688] ss:$16 sps:$4 sm:$0xff]  }
  0x9c   :  { %1788 = vmatprep.subr.bf16.mxu0 %v2740_v47  ;;  %2000 = vmatprep.subr.bf16.mxu1 %v2743_v48  ;;  %v2824_v47 = vld [vmem:[%s3775_s1 + $0x6a4] ss:$16 sps:$4 sm:$0xff]   ;;  %v2827_v48 = vld [vmem:[%s3775_s1 + $0x6ac] ss:$16 sps:$4 sm:$0xff]  }
  0x9f   :  { %1789 = vmatpush1.bf16.msra.mxu0 %v2738_v49  ;;  %2001 = vmatpush1.bf16.msra.mxu1 %v2741_v50  ;;  %v2822_v49 = vld [vmem:[%s3775_s1 + $0x6a0] ss:$16 sps:$4 sm:$0xff]   ;;  %v2825_v50 = vld [vmem:[%s3775_s1 + $0x6a8] ss:$16 sps:$4 sm:$0xff]  }
  0xa0   :  { %1790 = vmatprep.subr.bf16.mxu0 %v2746_v51  ;;  %2002 = vmatprep.subr.bf16.mxu1 %v2749_v52  ;;  %v2830_v51 = vld [vmem:[%s3775_s1 + $0x6c4] ss:$16 sps:$4 sm:$0xff]   ;;  %v2833_v52 = vld [vmem:[%s3775_s1 + $0x6cc] ss:$16 sps:$4 sm:$0xff]  }
  0xa3   :  { %1791 = vmatpush1.bf16.msra.mxu0 %v2744_v53  ;;  %2003 = vmatpush1.bf16.msra.mxu1 %v2747_v54  ;;  %v2828_v53 = vld [vmem:[%s3775_s1 + $0x6c0] ss:$16 sps:$4 sm:$0xff]   ;;  %v2831_v54 = vld [vmem:[%s3775_s1 + $0x6c8] ss:$16 sps:$4 sm:$0xff]  }
  0xa4   :  { %1792 = vmatprep.subr.bf16.mxu0 %v2752_v55  ;;  %2004 = vmatprep.subr.bf16.mxu1 %v2755_v56  ;;  %v2836_v55 = vld [vmem:[%s3775_s1 + $0x6e4] ss:$16 sps:$4 sm:$0xff]   ;;  %v2839_v56 = vld [vmem:[%s3775_s1 + $0x6ec] ss:$16 sps:$4 sm:$0xff]  }
  0xa7   :  { %1793 = vmatpush1.bf16.msra.mxu0 %v2750_v57  ;;  %2005 = vmatpush1.bf16.msra.mxu1 %v2753_v58  ;;  %v2834_v57 = vld [vmem:[%s3775_s1 + $0x6e0] ss:$16 sps:$4 sm:$0xff]   ;;  %v2837_v58 = vld [vmem:[%s3775_s1 + $0x6e8] ss:$16 sps:$4 sm:$0xff]  }
  0xa8   :  { %1794 = vmatprep.subr.bf16.mxu0 %v2758_v59  ;;  %2006 = vmatprep.subr.bf16.mxu1 %v2761_v60  ;;  %v2842_v59 = vld [vmem:[%s3775_s1 + $0x704] ss:$16 sps:$4 sm:$0xff]   ;;  %v2845_v60 = vld [vmem:[%s3775_s1 + $0x70c] ss:$16 sps:$4 sm:$0xff]  }
  0xab   :  { %1795 = vmatpush1.bf16.msra.mxu0 %v2756_v61  ;;  %2007 = vmatpush1.bf16.msra.mxu1 %v2759_v62  ;;  %v2840_v61 = vld [vmem:[%s3775_s1 + $0x700] ss:$16 sps:$4 sm:$0xff]   ;;  %v2843_v62 = vld [vmem:[%s3775_s1 + $0x708] ss:$16 sps:$4 sm:$0xff]  }
  0xac   :  { %1796 = vmatprep.subr.bf16.mxu0 %v2764_v63  ;;  %2008 = vmatprep.subr.bf16.mxu1 %v2767_v0  ;;  %v2848_v63 = vld [vmem:[%s3775_s1 + $0x724] ss:$16 sps:$4 sm:$0xff]   ;;  %v2851_v0 = vld [vmem:[%s3775_s1 + $0x72c] ss:$16 sps:$4 sm:$0xff]  }
  0xaf   :  { %1797 = vmatpush1.bf16.msra.mxu0 %v2762_v1  ;;  %2009 = vmatpush1.bf16.msra.mxu1 %v2765_v2  ;;  %v2846_v1 = vld [vmem:[%s3775_s1 + $0x720] ss:$16 sps:$4 sm:$0xff]   ;;  %v2849_v2 = vld [vmem:[%s3775_s1 + $0x728] ss:$16 sps:$4 sm:$0xff]  }
  0xb0   :  { %1798 = vmatprep.subr.bf16.mxu0 %v2770_v3  ;;  %2010 = vmatprep.subr.bf16.mxu1 %v2773_v4  ;;  %v2854_v3 = vld [vmem:[%s3775_s1 + $0x744] ss:$16 sps:$4 sm:$0xff]   ;;  %v2857_v4 = vld [vmem:[%s3775_s1 + $0x74c] ss:$16 sps:$4 sm:$0xff]  }
  0xb3   :  { %1799 = vmatpush1.bf16.msra.mxu0 %v2768_v5  ;;  %2011 = vmatpush1.bf16.msra.mxu1 %v2771_v6  ;;  %v2852_v5 = vld [vmem:[%s3775_s1 + $0x740] ss:$16 sps:$4 sm:$0xff]   ;;  %v2855_v6 = vld [vmem:[%s3775_s1 + $0x748] ss:$16 sps:$4 sm:$0xff]  }
  0xb4   :  { %1800 = vmatprep.subr.bf16.mxu0 %v2776_v7  ;;  %2012 = vmatprep.subr.bf16.mxu1 %v2779_v8  ;;  %v2860_v7 = vld [vmem:[%s3775_s1 + $0x764] ss:$16 sps:$4 sm:$0xff]   ;;  %v2863_v8 = vld [vmem:[%s3775_s1 + $0x76c] ss:$16 sps:$4 sm:$0xff]  }
  0xb7   :  { %1801 = vmatpush1.bf16.msra.mxu0 %v2774_v9  ;;  %2013 = vmatpush1.bf16.msra.mxu1 %v2777_v10  ;;  %v2858_v9 = vld [vmem:[%s3775_s1 + $0x760] ss:$16 sps:$4 sm:$0xff]   ;;  %v2861_v10 = vld [vmem:[%s3775_s1 + $0x768] ss:$16 sps:$4 sm:$0xff]  }
  0xb8   :  { %1802 = vmatprep.subr.bf16.mxu0 %v2782_v11  ;;  %2014 = vmatprep.subr.bf16.mxu1 %v2785_v12  ;;  %v2866_v11 = vld [vmem:[%s3775_s1 + $0x784] ss:$16 sps:$4 sm:$0xff]   ;;  %v2869_v12 = vld [vmem:[%s3775_s1 + $0x78c] ss:$16 sps:$4 sm:$0xff]  }
  0xbb   :  { %1803 = vmatpush1.bf16.msra.mxu0 %v2780_v13  ;;  %2015 = vmatpush1.bf16.msra.mxu1 %v2783_v14  ;;  %v2864_v13 = vld [vmem:[%s3775_s1 + $0x780] ss:$16 sps:$4 sm:$0xff]   ;;  %v2867_v14 = vld [vmem:[%s3775_s1 + $0x788] ss:$16 sps:$4 sm:$0xff]  }
  0xbc   :  { %1804 = vmatprep.subr.bf16.mxu0 %v2788_v15  ;;  %2016 = vmatprep.subr.bf16.mxu1 %v2791_v16  ;;  %v2872_v15 = vld [vmem:[%s3775_s1 + $0x7a4] ss:$16 sps:$4 sm:$0xff]   ;;  %v2875_v16 = vld [vmem:[%s3775_s1 + $0x7ac] ss:$16 sps:$4 sm:$0xff]  }
  0xbf   :  { %1805 = vmatpush1.bf16.msra.mxu0 %v2786_v17  ;;  %2017 = vmatpush1.bf16.msra.mxu1 %v2789_v18  ;;  %v2870_v17 = vld [vmem:[%s3775_s1 + $0x7a0] ss:$16 sps:$4 sm:$0xff]   ;;  %v2873_v18 = vld [vmem:[%s3775_s1 + $0x7a8] ss:$16 sps:$4 sm:$0xff]  }
  0xc0   :  { %1827 = vmatprep.subr.bf16.mxu0 %v2794_v19  ;;  %2039 = vmatprep.subr.bf16.mxu1 %v2797_v20  ;;  %v2878_v19 = vld [vmem:[%s3775_s1 + $0x7c4] ss:$16 sps:$4 sm:$0xff]   ;;  %v2881_v20 = vld [vmem:[%s3775_s1 + $0x7cc] ss:$16 sps:$4 sm:$0xff]  }
  0xc2   :  { %1807 = vmatmul.mubr.bf16.vlgmr.msra.gmra.mrb[0].mxu0 %v2156_v21  ;;  %2019 = vmatmul.mubr.bf16.vlgmr.msra.gmra.mrb[0].mxu1 %v2156_v21  ;;  %v2876_v21 = vld [vmem:[%s3775_s1 + $0x7c0] ss:$16 sps:$4 sm:$0xff]  }
  0xc3   :  { %1828 = vmatpush1.bf16.msra.mxu0 %v2792_v24  ;;  %2040 = vmatpush1.bf16.msra.mxu1 %v2795_v26  ;;  %v2887_v24 = vld [vmem:[%s3775_s1 + $0x7ec] ss:$16 sps:$4 sm:$0xff]   ;;  %v2882_v26 = vld [vmem:[%s3775_s1 + $0x7e0] ss:$16 sps:$4 sm:$0xff]  }
  0xc4   :  { %1829 = vmatprep.subr.bf16.mxu0 %v2800_v25  ;;  %2041 = vmatprep.subr.bf16.mxu1 %v2803_v27  ;;  %v2885_v25 = vld [vmem:[%s3775_s1 + $0x7e8] ss:$16 sps:$4 sm:$0xff]  }
  0xc5   :  { %1816 = vmatprep.mubr.bf16.mxu0 %v2165_v28  ;;  %2028 = vmatprep.mubr.bf16.mxu1 %v2165_v28  ;;  %v25_v27 = vld [vmem:[%s3776_s0 + $0x58] sm:$0xff] }
  0xc6   :  { %v29_v28 = vld [vmem:[%s3776_s0 + $0x78] sm:$0xff] }
  0xc7   :  { %1830 = vmatpush1.bf16.msra.mxu0 %v2798_v29  ;;  %2042 = vmatpush1.bf16.msra.mxu1 %v2801_v30  ;;  %v2158_v29 = vcombine.low %v3569_v34, %v3574_v35  ;;  %v2167_v30 = vcombine.high %v25_v27, %v29_v28 }
  0xc8   :  { %1831 = vmatprep.subr.bf16.mxu0 %v2806_v31  ;;  %2043 = vmatprep.subr.bf16.mxu1 %v2809_v32  ;;  %v2166_v31 = vcombine.low %v25_v27, %v29_v28  ;;  %v288_v32 = vlaneseq }
  0xca   :  { %1817 = vmatmul.mubr.bf16.gmra.mrb[4].mxu0 %v2164_v33  ;;  %2029 = vmatmul.mubr.bf16.gmra.mrb[4].mxu1 %v2164_v33  ;;  %v289_v33 = vshrl.u32 %v288_v32, 7 }
  0xcb   :  { %1832 = vmatpush1.bf16.msra.mxu0 %v2804_v36  ;;  %2044 = vmatpush1.bf16.msra.mxu1 %v2807_v37 }
  0xcc   :  { %1833 = vmatprep.subr.bf16.mxu0 %v2812_v38  ;;  %2045 = vmatprep.subr.bf16.mxu1 %v2815_v39  ;;  %v290_v36 = vsub.s32 0, %v289_v33  ;;  %v298_v37 = vsub.s32 2, %v289_v33  ;;  %v286_v38 = vld [vmem:[%s3777_s2] sm:$0xf]  ;;  %v294_v39 = vsub.s32 1, %v289_v33  ;;  %v302_v34 = vsub.s32 3, %v289_v33 }
  0xcd   :  { %1859 = vmatprep.mubr.bf16.mxu0 %v2159_v40  ;;  %2071 = vmatprep.mubr.bf16.mxu1 %v2159_v40 }
  0xce   :  { %v291_v35 = vrot.slane %v286_v38, %v290_v36  ;;  %v299_v40 = vrot.slane %v286_v38, %v298_v37 }
  0xcf   :  { %1834 = vmatpush1.bf16.msra.mxu0 %v2810_v41  ;;  %2046 = vmatpush1.bf16.msra.mxu1 %v2813_v42  ;;  %v295_v41 = vrot.slane %v286_v38, %v294_v39  ;;  %v303_v42 = vrot.slane %v286_v38, %v302_v34 }
  0xd0   :  { %1835 = vmatprep.subr.bf16.mxu0 %v2818_v43  ;;  %2047 = vmatprep.subr.bf16.mxu1 %v2821_v44 }
  0xd3   :  { %1836 = vmatpush1.bf16.msra.mxu0 %v2816_v45  ;;  %2048 = vmatpush1.bf16.msra.mxu1 %v2819_v46 }
  0xd4   :  { %1837 = vmatprep.subr.bf16.mxu0 %v2824_v47  ;;  %2049 = vmatprep.subr.bf16.mxu1 %v2827_v48 }
  0xd7   :  { %1838 = vmatpush1.bf16.msra.mxu0 %v2822_v49  ;;  %2050 = vmatpush1.bf16.msra.mxu1 %v2825_v50 }
  0xd8   :  { %1839 = vmatprep.subr.bf16.mxu0 %v2830_v51  ;;  %2051 = vmatprep.subr.bf16.mxu1 %v2833_v52 }
  0xdb   :  { %1840 = vmatpush1.bf16.msra.mxu0 %v2828_v53  ;;  %2052 = vmatpush1.bf16.msra.mxu1 %v2831_v54 }
  0xdc   :  { %1841 = vmatprep.subr.bf16.mxu0 %v2836_v55  ;;  %2053 = vmatprep.subr.bf16.mxu1 %v2839_v56 }
  0xdf   :  { %1842 = vmatpush1.bf16.msra.mxu0 %v2834_v57  ;;  %2054 = vmatpush1.bf16.msra.mxu1 %v2837_v58 }
  0xe0   :  { %1843 = vmatprep.subr.bf16.mxu0 %v2842_v59  ;;  %2055 = vmatprep.subr.bf16.mxu1 %v2845_v60 }
  0xe3   :  { %1844 = vmatpush1.bf16.msra.mxu0 %v2840_v61  ;;  %2056 = vmatpush1.bf16.msra.mxu1 %v2843_v62 }
  0xe4   :  { %1845 = vmatprep.subr.bf16.mxu0 %v2848_v63  ;;  %2057 = vmatprep.subr.bf16.mxu1 %v2851_v0 }
  0xe7   :  { %1846 = vmatpush1.bf16.msra.mxu0 %v2846_v1  ;;  %2058 = vmatpush1.bf16.msra.mxu1 %v2849_v2 }
  0xe8   :  { %1847 = vmatprep.subr.bf16.mxu0 %v2854_v3  ;;  %2059 = vmatprep.subr.bf16.mxu1 %v2857_v4 }
  0xeb   :  { %1848 = vmatpush1.bf16.msra.mxu0 %v2852_v5  ;;  %2060 = vmatpush1.bf16.msra.mxu1 %v2855_v6 }
  0xec   :  { %1849 = vmatprep.subr.bf16.mxu0 %v2860_v7  ;;  %2061 = vmatprep.subr.bf16.mxu1 %v2863_v8 }
  0xef   :  { %1850 = vmatpush1.bf16.msra.mxu0 %v2858_v9  ;;  %2062 = vmatpush1.bf16.msra.mxu1 %v2861_v10 }
  0xf0   :  { %1851 = vmatprep.subr.bf16.mxu0 %v2866_v11  ;;  %2063 = vmatprep.subr.bf16.mxu1 %v2869_v12 }
  0xf3   :  { %1852 = vmatpush1.bf16.msra.mxu0 %v2864_v13  ;;  %2064 = vmatpush1.bf16.msra.mxu1 %v2867_v14 }
  0xf4   :  { %1853 = vmatprep.subr.bf16.mxu0 %v2872_v15  ;;  %2065 = vmatprep.subr.bf16.mxu1 %v2875_v16 }
  0xf7   :  { %1854 = vmatpush1.bf16.msra.mxu0 %v2870_v17  ;;  %2066 = vmatpush1.bf16.msra.mxu1 %v2873_v18 }
  0xf8   :  { %1855 = vmatprep.subr.bf16.mxu0 %v2878_v19  ;;  %2067 = vmatprep.subr.bf16.mxu1 %v2881_v20 }
  0xfb   :  { %1856 = vmatpush1.bf16.msra.mxu0 %v2876_v21  ;;  %2068 = vmatpush1.bf16.msra.mxu1 %v2879_v22 }
  0xfc   :  { %1857 = vmatprep.subr.bf16.mxu0 %v2884_v23  ;;  %2069 = vmatprep.subr.bf16.mxu1 %v2887_v24 }
  0xff   :  { %1858 = vmatpush1.bf16.msra.mxu0 %v2882_v26  ;;  %2070 = vmatpush1.bf16.msra.mxu1 %v2885_v25 }
 0x102   :  { %1860 = vmatmul.mubr.bf16.vlgmr.msra.gmra.mrb[0].mxu0 %v2158_v29  ;;  %2072 = vmatmul.mubr.bf16.vlgmr.msra.gmra.mrb[0].mxu1 %v2158_v29 }
 0x103   :  { %1869 = vmatprep.mubr.bf16.mxu0 %v2167_v30  ;;  %2081 = vmatprep.mubr.bf16.mxu1 %v2167_v30 }
 0x10a   :  { %1870 = vmatmul.mubr.bf16.gmra.mrb[4].mxu0 %v2166_v31  ;;  %2082 = vmatmul.mubr.bf16.gmra.mrb[4].mxu1 %v2166_v31 }
 0x1d5   :  { %v1861_v43 = vpop.f32.mrb[0].mxu0  ;;  %v2073_v44 = vpop.f32.mrb[0].mxu1 }
 0x1d6   :  { %v2440_v45 = vadd.f32 %v1861_v43, %v291_v35  ;;  %v2448_v46 = vadd.f32 %v2073_v44, %v299_v40  ;;  %v1863_v47 = vpop.f32.mrb[1].mxu0  ;;  %v2075_v48 = vpop.f32.mrb[1].mxu1 }
 0x1d7   :  { %v2441_v49 = vadd.f32 %v1863_v47, %v295_v41  ;;  %v2449_v50 = vadd.f32 %v2075_v48, %v303_v42  ;;  %v1865_v51 = vpop.f32.mrb[2].mxu0  ;;  %v2077_v52 = vpop.f32.mrb[2].mxu1 }
 0x1d8   :  { %v2442_v53 = vadd.f32 %v1865_v51, %v291_v35  ;;  %v2450_v54 = vadd.f32 %v2077_v52, %v299_v40  ;;  %v1867_v55 = vpop.f32.mrb[3].mxu0  ;;  %v2079_v56 = vpop.f32.mrb[3].mxu1 }
 0x1d9   :  { %v2432_v57 = vpack.c.bf16 %v2441_v49, %v2440_v45  ;;  %v2433_v58 = vpack.c.bf16 %v2449_v50, %v2448_v46  ;;  %v2443_v59 = vadd.f32 %v1867_v55, %v295_v41  ;;  %v2451_v60 = vadd.f32 %v2079_v56, %v303_v42 }
 0x1db   :  { %2140 = vst [vmem:[%s3778_s3] sm:$0xff] %v2432_v57  ;;  %2141 = vst [vmem:[%s3778_s3 + $0x8] sm:$0xff] %v2433_v58  ;;  %v2434_v61 = vpack.c.bf16 %v2443_v59, %v2442_v53  ;;  %v2435_v62 = vpack.c.bf16 %v2451_v60, %v2450_v54 }
 0x1dd   :  { %2142 = vst [vmem:[%s3778_s3 + $0x10] sm:$0xff] %v2434_v61  ;;  %2143 = vst [vmem:[%s3778_s3 + $0x18] sm:$0xff] %v2435_v62  ;;  %v1871_v63 = vpop.f32.mrb[4].mxu0  ;;  %v2083_v0 = vpop.f32.mrb[4].mxu1 }
 0x1de   :  { %v2444_v1 = vadd.f32 %v1871_v63, %v291_v35  ;;  %v2452_v2 = vadd.f32 %v2083_v0, %v299_v40  ;;  %v1873_v3 = vpop.f32.mrb[5].mxu0  ;;  %v2085_v4 = vpop.f32.mrb[5].mxu1 }
 0x1df   :  { %v2445_v5 = vadd.f32 %v1873_v3, %v295_v41  ;;  %v2453_v6 = vadd.f32 %v2085_v4, %v303_v42  ;;  %v1875_v7 = vpop.f32.mrb[6].mxu0  ;;  %v2087_v8 = vpop.f32.mrb[6].mxu1 }
 0x1e0   :  { %v2446_v9 = vadd.f32 %v1875_v7, %v291_v35  ;;  %v2454_v10 = vadd.f32 %v2087_v8, %v299_v40  ;;  %v1877_v11 = vpop.f32.mrb[7].mxu0  ;;  %v2089_v12 = vpop.f32.mrb[7].mxu1 }
 0x1e1   :  { %v2436_v13 = vpack.c.bf16 %v2445_v5, %v2444_v1  ;;  %v2437_v14 = vpack.c.bf16 %v2453_v6, %v2452_v2  ;;  %v2447_v15 = vadd.f32 %v1877_v11, %v295_v41  ;;  %v2455_v16 = vadd.f32 %v2089_v12, %v303_v42 }
 0x1e3   :  { %2144 = vst [vmem:[%s3778_s3 + $0x20] sm:$0xff] %v2436_v13  ;;  %2145 = vst [vmem:[%s3778_s3 + $0x28] sm:$0xff] %v2437_v14  ;;  %v2438_v17 = vpack.c.bf16 %v2447_v15, %v2446_v9  ;;  %v2439_v18 = vpack.c.bf16 %v2455_v16, %v2454_v10 }
 0x1e5   :  { %2146 = vst [vmem:[%s3778_s3 + $0x30] sm:$0xff] %v2438_v17  ;;  %2147 = vst [vmem:[%s3778_s3 + $0x38] sm:$0xff] %v2439_v18 }

// kernel: tile.18
= control target key start
LH: loop header
LB: loop body
LE: loop exit
PB: predicated region body
PF: predicated region fallthrough
CT: control target
= control target key end

     0   :  { %s22_s0 = inlined_call_operand.vmem [shape: f32[64], index: 0, kind: input, shape index: {}]   ;;  %s23_s1 = inlined_call_operand.vmem [shape: f32[4,64], index: 1, kind: output, shape index: {}]  }
   0x1   :  { %v4_v0 = vld [vmem:[%s22_s0] ss:$0 sm:$0xff] }
   0x2   :  { %5 = vst [vmem:[%s23_s1] sm:$0xf] %v4_v0 }

// kernel: tile.19
= control target key start
LH: loop header
LB: loop body
LE: loop exit
PB: predicated region body
PF: predicated region fallthrough
CT: control target
= control target key end

     0   :  { %s6_s8 = smov 3  ;;  %vm8_vm0 = vcmask 523264   ;;  %s30_s9 = smov 64   ;;  %vm15_vm1 = vcmask 1048064   ;;  %s50_s0 = inlined_call_operand.vmem [shape: f32[4,64], index: 0, kind: input, shape index: {}]   ;;  %s51_s1 = inlined_call_operand.vmem [shape: f32[1,256], index: 1, kind: output, shape index: {}]  }
   0x1   :  { %v4_v0 = vld [vmem:[%s50_s0] sm:$0xf]  ;;  %s11_s0 = smov 3 }
   0x2   :  { %5 = vst [vmem:[#allocation1] sm:$0xf] %v4_v0 }
   0x9   :  { %v12_v1 = vld [vmem:[#allocation1 + $0x1] ss:$2 sm:%s11_s0]   ;;  %v7_v2 = vld [vmem:[#allocation1] ss:$2 sm:%s6_s8]  }
   0xa   :  { %13 = vrot.lane.b32.xlu0 %v12_v1, %s30_s9  ;;  %9 = vst.msk [vmem:[#allocation0] ss:$8 sm:$0x3] %vm8_vm0, %v7_v2  }
  0x7c   :  { %v14_v3 = vpop.permute.xlu0 %13  }
  0x7d   :  { %16 = vst.msk [vmem:[#allocation0] ss:$8 sm:$0x3] %vm15_vm1, %v14_v3  }
  0x84   :  { %v20_v4 = vld [vmem:[#allocation0] sm:$0x1]  ;;  %v24_v5 = vld [vmem:[#allocation0 + $0x8] sm:$0x1] }
  0x85   :  { %22 = vst [vmem:[%s51_s1] sm:$0x1] %v20_v4  ;;  %28 = vst [vmem:[%s51_s1 + $0x1] sm:$0x1] %v24_v5 }

// kernel: generator_a2b.91
= control target key start
LH: loop header
LB: loop body
LE: loop exit
PB: predicated region body
PF: predicated region fallthrough
CT: control target
= control target key end

     0   :  { %s1675_s1 = inlined_call_operand.vmem [shape: bf16[512,256], index: 1, kind: input, shape index: {}]   ;;  %s1676_s0 = inlined_call_operand.vmem [shape: bf16[128,512], index: 0, kind: input, shape index: {}]   ;;  %s1677_s2 = inlined_call_operand.vmem [shape: f32[1,256], index: 2, kind: input, shape index: {}]   ;;  %s1678_s3 = inlined_call_operand.vmem [shape: bf16[128,256], index: 3, kind: output, shape index: {}]  }
   0x1   :  { %v1136_v0 = vld [vmem:[%s1675_s1 + $0x4] ss:$8 sps:$4 sm:$0xff]   ;;  %v1140_v2 = vld [vmem:[%s1675_s1] ss:$8 sps:$4 sm:$0xff]   ;;  %v1142_v4 = vld [vmem:[%s1675_s1 + $0x14] ss:$8 sps:$4 sm:$0xff]  }
   0x2   :  { %v1138_v1 = vld [vmem:[%s1675_s1 + $0x104] ss:$8 sps:$4 sm:$0xff]   ;;  %602 = vmatprep.subr.bf16.mxu1 %v1136_v0  ;;  %v1141_v3 = vld [vmem:[%s1675_s1 + $0x100] ss:$8 sps:$4 sm:$0xff]   ;;  %v1144_v5 = vld [vmem:[%s1675_s1 + $0x114] ss:$8 sps:$4 sm:$0xff]  }
   0x3   :  { %715 = vmatprep.subr.bf16.mxu0 %v1138_v1  ;;  %603 = vmatpush1.bf16.msra.mxu1 %v1140_v2  ;;  %v1146_v6 = vld [vmem:[%s1675_s1 + $0x10] ss:$8 sps:$4 sm:$0xff]   ;;  %v1148_v8 = vld [vmem:[%s1675_s1 + $0x24] ss:$8 sps:$4 sm:$0xff]   ;;  %v1152_v10 = vld [vmem:[%s1675_s1 + $0x20] ss:$8 sps:$4 sm:$0xff]  }
   0x4   :  { %716 = vmatpush1.bf16.msra.mxu0 %v1141_v3  ;;  %604 = vmatprep.subr.bf16.mxu1 %v1142_v4  ;;  %v1147_v7 = vld [vmem:[%s1675_s1 + $0x110] ss:$8 sps:$4 sm:$0xff]   ;;  %v1150_v9 = vld [vmem:[%s1675_s1 + $0x124] ss:$8 sps:$4 sm:$0xff]   ;;  %v1153_v11 = vld [vmem:[%s1675_s1 + $0x120] ss:$8 sps:$4 sm:$0xff]  }
   0x5   :  { %717 = vmatprep.subr.bf16.mxu0 %v1144_v5  ;;  %v1154_v12 = vld [vmem:[%s1675_s1 + $0x34] ss:$8 sps:$4 sm:$0xff]   ;;  %v1158_v14 = vld [vmem:[%s1675_s1 + $0x30] ss:$8 sps:$4 sm:$0xff]   ;;  %v1160_v16 = vld [vmem:[%s1675_s1 + $0x44] ss:$8 sps:$4 sm:$0xff]  }
   0x6   :  { %v1156_v13 = vld [vmem:[%s1675_s1 + $0x134] ss:$8 sps:$4 sm:$0xff]   ;;  %v1159_v15 = vld [vmem:[%s1675_s1 + $0x130] ss:$8 sps:$4 sm:$0xff]   ;;  %v1162_v17 = vld [vmem:[%s1675_s1 + $0x144] ss:$8 sps:$4 sm:$0xff]  }
   0x7   :  { %605 = vmatpush1.bf16.msra.mxu1 %v1146_v6  ;;  %v1164_v18 = vld [vmem:[%s1675_s1 + $0x40] ss:$8 sps:$4 sm:$0xff]   ;;  %v1166_v20 = vld [vmem:[%s1675_s1 + $0x54] ss:$8 sps:$4 sm:$0xff]   ;;  %v1170_v22 = vld [vmem:[%s1675_s1 + $0x50] ss:$8 sps:$4 sm:$0xff]  }
   0x8   :  { %718 = vmatpush1.bf16.msra.mxu0 %v1147_v7  ;;  %606 = vmatprep.subr.bf16.mxu1 %v1148_v8  ;;  %v1165_v19 = vld [vmem:[%s1675_s1 + $0x140] ss:$8 sps:$4 sm:$0xff]   ;;  %v1168_v21 = vld [vmem:[%s1675_s1 + $0x154] ss:$8 sps:$4 sm:$0xff]   ;;  %v1171_v23 = vld [vmem:[%s1675_s1 + $0x150] ss:$8 sps:$4 sm:$0xff]  }
   0x9   :  { %719 = vmatprep.subr.bf16.mxu0 %v1150_v9  ;;  %v1172_v24 = vld [vmem:[%s1675_s1 + $0x64] ss:$8 sps:$4 sm:$0xff]   ;;  %v1176_v26 = vld [vmem:[%s1675_s1 + $0x60] ss:$8 sps:$4 sm:$0xff]   ;;  %v1178_v28 = vld [vmem:[%s1675_s1 + $0x74] ss:$8 sps:$4 sm:$0xff]  }
   0xa   :  { %v1174_v25 = vld [vmem:[%s1675_s1 + $0x164] ss:$8 sps:$4 sm:$0xff]   ;;  %v1177_v27 = vld [vmem:[%s1675_s1 + $0x160] ss:$8 sps:$4 sm:$0xff]   ;;  %v1180_v29 = vld [vmem:[%s1675_s1 + $0x174] ss:$8 sps:$4 sm:$0xff]  }
   0xb   :  { %607 = vmatpush1.bf16.msra.mxu1 %v1152_v10  ;;  %v1182_v30 = vld [vmem:[%s1675_s1 + $0x70] ss:$8 sps:$4 sm:$0xff]   ;;  %v1184_v32 = vld [vmem:[%s1675_s1 + $0x84] ss:$8 sps:$4 sm:$0xff]   ;;  %v1188_v34 = vld [vmem:[%s1675_s1 + $0x80] ss:$8 sps:$4 sm:$0xff]  }
   0xc   :  { %720 = vmatpush1.bf16.msra.mxu0 %v1153_v11  ;;  %608 = vmatprep.subr.bf16.mxu1 %v1154_v12  ;;  %v1183_v31 = vld [vmem:[%s1675_s1 + $0x170] ss:$8 sps:$4 sm:$0xff]   ;;  %v1186_v33 = vld [vmem:[%s1675_s1 + $0x184] ss:$8 sps:$4 sm:$0xff]   ;;  %v1189_v35 = vld [vmem:[%s1675_s1 + $0x180] ss:$8 sps:$4 sm:$0xff]  }
   0xd   :  { %721 = vmatprep.subr.bf16.mxu0 %v1156_v13  ;;  %v1190_v36 = vld [vmem:[%s1675_s1 + $0x94] ss:$8 sps:$4 sm:$0xff]   ;;  %v1194_v38 = vld [vmem:[%s1675_s1 + $0x90] ss:$8 sps:$4 sm:$0xff]   ;;  %v1196_v40 = vld [vmem:[%s1675_s1 + $0xa4] ss:$8 sps:$4 sm:$0xff]  }
   0xe   :  { %v1192_v37 = vld [vmem:[%s1675_s1 + $0x194] ss:$8 sps:$4 sm:$0xff]   ;;  %v1195_v39 = vld [vmem:[%s1675_s1 + $0x190] ss:$8 sps:$4 sm:$0xff]   ;;  %v1198_v41 = vld [vmem:[%s1675_s1 + $0x1a4] ss:$8 sps:$4 sm:$0xff]  }
   0xf   :  { %609 = vmatpush1.bf16.msra.mxu1 %v1158_v14  ;;  %v1200_v42 = vld [vmem:[%s1675_s1 + $0xa0] ss:$8 sps:$4 sm:$0xff]   ;;  %v1202_v44 = vld [vmem:[%s1675_s1 + $0xb4] ss:$8 sps:$4 sm:$0xff]   ;;  %v1206_v46 = vld [vmem:[%s1675_s1 + $0xb0] ss:$8 sps:$4 sm:$0xff]  }
  0x10   :  { %722 = vmatpush1.bf16.msra.mxu0 %v1159_v15  ;;  %610 = vmatprep.subr.bf16.mxu1 %v1160_v16  ;;  %v1201_v43 = vld [vmem:[%s1675_s1 + $0x1a0] ss:$8 sps:$4 sm:$0xff]   ;;  %v1204_v45 = vld [vmem:[%s1675_s1 + $0x1b4] ss:$8 sps:$4 sm:$0xff]   ;;  %v1207_v47 = vld [vmem:[%s1675_s1 + $0x1b0] ss:$8 sps:$4 sm:$0xff]  }
  0x11   :  { %723 = vmatprep.subr.bf16.mxu0 %v1162_v17  ;;  %v1208_v48 = vld [vmem:[%s1675_s1 + $0xc4] ss:$8 sps:$4 sm:$0xff]   ;;  %v1212_v52 = vld [vmem:[%s1675_s1 + $0xc0] ss:$8 sps:$4 sm:$0xff]   ;;  %v1214_v54 = vld [vmem:[%s1675_s1 + $0xd4] ss:$8 sps:$4 sm:$0xff]  }
  0x12   :  { %v1234_v49 = vld [vmem:[%s1676_s0 + $0x4] ss:$16 sps:$4 sm:$0xff]   ;;  %v1237_v51 = vld [vmem:[%s1676_s0 + $0xc] ss:$16 sps:$4 sm:$0xff]   ;;  %v1213_v53 = vld [vmem:[%s1675_s1 + $0x1c0] ss:$8 sps:$4 sm:$0xff]  }
  0x13   :  { %611 = vmatpush1.bf16.msra.mxu1 %v1164_v18  ;;  %v1210_v50 = vld [vmem:[%s1675_s1 + $0x1c4] ss:$8 sps:$4 sm:$0xff]   ;;  %634 = vmatprep.mubr.bf16.mxu1 %v1234_v49  ;;  %v1216_v55 = vld [vmem:[%s1675_s1 + $0x1d4] ss:$8 sps:$4 sm:$0xff]   ;;  %v1218_v56 = vld [vmem:[%s1675_s1 + $0xd0] ss:$8 sps:$4 sm:$0xff]  }
  0x14   :  { %724 = vmatpush1.bf16.msra.mxu0 %v1165_v19  ;;  %612 = vmatprep.subr.bf16.mxu1 %v1166_v20  ;;  %v1219_v57 = vld [vmem:[%s1675_s1 + $0x1d0] ss:$8 sps:$4 sm:$0xff]   ;;  %v1220_v58 = vld [vmem:[%s1675_s1 + $0xe4] ss:$8 sps:$4 sm:$0xff]   ;;  %v1224_v60 = vld [vmem:[%s1675_s1 + $0xe0] ss:$8 sps:$4 sm:$0xff]  }
  0x15   :  { %725 = vmatprep.subr.bf16.mxu0 %v1168_v21  ;;  %747 = vmatprep.mubr.bf16.mxu0 %v1237_v51  ;;  %v1222_v59 = vld [vmem:[%s1675_s1 + $0x1e4] ss:$8 sps:$4 sm:$0xff]   ;;  %v1225_v61 = vld [vmem:[%s1675_s1 + $0x1e0] ss:$8 sps:$4 sm:$0xff]   ;;  %v1226_v62 = vld [vmem:[%s1675_s1 + $0xf4] ss:$8 sps:$4 sm:$0xff]  }
  0x16   :  { %v1228_v63 = vld [vmem:[%s1675_s1 + $0x1f4] ss:$8 sps:$4 sm:$0xff]   ;;  %v1230_v0 = vld [vmem:[%s1675_s1 + $0xf0] ss:$8 sps:$4 sm:$0xff]  }
  0x17   :  { %613 = vmatpush1.bf16.msra.mxu1 %v1170_v22  ;;  %v1231_v1 = vld [vmem:[%s1675_s1 + $0x1f0] ss:$8 sps:$4 sm:$0xff]   ;;  %v1238_v4 = vld [vmem:[%s1676_s0 + $0x24] ss:$16 sps:$4 sm:$0xff]   ;;  %v1240_v5 = vld [vmem:[%s1676_s0 + $0x2c] ss:$16 sps:$4 sm:$0xff]  }
  0x18   :  { %726 = vmatpush1.bf16.msra.mxu0 %v1171_v23  ;;  %614 = vmatprep.subr.bf16.mxu1 %v1172_v24  ;;  %v1232_v2 = vld [vmem:[%s1676_s0] ss:$16 sps:$4 sm:$0xff]   ;;  %v1235_v3 = vld [vmem:[%s1676_s0 + $0x8] ss:$16 sps:$4 sm:$0xff]   ;;  %v1244_v8 = vld [vmem:[%s1676_s0 + $0x44] ss:$16 sps:$4 sm:$0xff]  }
  0x19   :  { %727 = vmatprep.subr.bf16.mxu0 %v1174_v25  ;;  %v1242_v6 = vld [vmem:[%s1676_s0 + $0x20] ss:$16 sps:$4 sm:$0xff]   ;;  %v1243_v7 = vld [vmem:[%s1676_s0 + $0x28] ss:$16 sps:$4 sm:$0xff]   ;;  %v1246_v9 = vld [vmem:[%s1676_s0 + $0x4c] ss:$16 sps:$4 sm:$0xff]  }
  0x1a   :  { %v1248_v10 = vld [vmem:[%s1676_s0 + $0x40] ss:$16 sps:$4 sm:$0xff]   ;;  %v1249_v11 = vld [vmem:[%s1676_s0 + $0x48] ss:$16 sps:$4 sm:$0xff]   ;;  %v1250_v12 = vld [vmem:[%s1676_s0 + $0x64] ss:$16 sps:$4 sm:$0xff]  }
  0x1b   :  { %615 = vmatpush1.bf16.msra.mxu1 %v1176_v26  ;;  %v1252_v13 = vld [vmem:[%s1676_s0 + $0x6c] ss:$16 sps:$4 sm:$0xff]   ;;  %v1254_v14 = vld [vmem:[%s1676_s0 + $0x60] ss:$16 sps:$4 sm:$0xff]   ;;  %v1255_v15 = vld [vmem:[%s1676_s0 + $0x68] ss:$16 sps:$4 sm:$0xff]  }
  0x1c   :  { %728 = vmatpush1.bf16.msra.mxu0 %v1177_v27  ;;  %616 = vmatprep.subr.bf16.mxu1 %v1178_v28  ;;  %v1256_v16 = vld [vmem:[%s1676_s0 + $0x84] ss:$16 sps:$4 sm:$0xff]   ;;  %v1258_v17 = vld [vmem:[%s1676_s0 + $0x8c] ss:$16 sps:$4 sm:$0xff]   ;;  %v1260_v18 = vld [vmem:[%s1676_s0 + $0x80] ss:$16 sps:$4 sm:$0xff]  }
  0x1d   :  { %729 = vmatprep.subr.bf16.mxu0 %v1180_v29  ;;  %v1261_v19 = vld [vmem:[%s1676_s0 + $0x88] ss:$16 sps:$4 sm:$0xff]   ;;  %v1262_v20 = vld [vmem:[%s1676_s0 + $0xa4] ss:$16 sps:$4 sm:$0xff]   ;;  %v1264_v21 = vld [vmem:[%s1676_s0 + $0xac] ss:$16 sps:$4 sm:$0xff]  }
  0x1e   :  { %v1266_v22 = vld [vmem:[%s1676_s0 + $0xa0] ss:$16 sps:$4 sm:$0xff]   ;;  %v1267_v23 = vld [vmem:[%s1676_s0 + $0xa8] ss:$16 sps:$4 sm:$0xff]   ;;  %v1268_v24 = vld [vmem:[%s1676_s0 + $0xc4] ss:$16 sps:$4 sm:$0xff]  }
  0x1f   :  { %617 = vmatpush1.bf16.msra.mxu1 %v1182_v30  ;;  %v1270_v25 = vld [vmem:[%s1676_s0 + $0xcc] ss:$16 sps:$4 sm:$0xff]   ;;  %v1272_v26 = vld [vmem:[%s1676_s0 + $0xc0] ss:$16 sps:$4 sm:$0xff]   ;;  %v1273_v27 = vld [vmem:[%s1676_s0 + $0xc8] ss:$16 sps:$4 sm:$0xff]  }
  0x20   :  { %730 = vmatpush1.bf16.msra.mxu0 %v1183_v31  ;;  %618 = vmatprep.subr.bf16.mxu1 %v1184_v32  ;;  %v1274_v28 = vld [vmem:[%s1676_s0 + $0xe4] ss:$16 sps:$4 sm:$0xff]   ;;  %v1276_v29 = vld [vmem:[%s1676_s0 + $0xec] ss:$16 sps:$4 sm:$0xff]   ;;  %v1278_v30 = vld [vmem:[%s1676_s0 + $0xe0] ss:$16 sps:$4 sm:$0xff]   ;;  %v112_v32 = vlaneseq }
  0x21   :  { %731 = vmatprep.subr.bf16.mxu0 %v1186_v33  ;;  %v1279_v31 = vld [vmem:[%s1676_s0 + $0xe8] ss:$16 sps:$4 sm:$0xff]  }
  0x22   :  { %v113_v33 = vshrl.u32 %v112_v32, 7 }
  0x23   :  { %619 = vmatpush1.bf16.msra.mxu1 %v1188_v34 }
  0x24   :  { %732 = vmatpush1.bf16.msra.mxu0 %v1189_v35  ;;  %620 = vmatprep.subr.bf16.mxu1 %v1190_v36  ;;  %v114_v34 = vsub.s32 0, %v113_v33  ;;  %v110_v35 = vld [vmem:[%s1677_s2] sm:$0x3]  ;;  %v118_v36 = vsub.s32 1, %v113_v33 }
  0x25   :  { %733 = vmatprep.subr.bf16.mxu0 %v1192_v37 }
  0x26   :  { %v1591_v37 = vrot.slane %v110_v35, %v114_v34 }
  0x27   :  { %621 = vmatpush1.bf16.msra.mxu1 %v1194_v38  ;;  %v1593_v38 = vrot.slane %v110_v35, %v118_v36 }
  0x28   :  { %734 = vmatpush1.bf16.msra.mxu0 %v1195_v39  ;;  %622 = vmatprep.subr.bf16.mxu1 %v1196_v40 }
  0x29   :  { %735 = vmatprep.subr.bf16.mxu0 %v1198_v41 }
  0x2b   :  { %623 = vmatpush1.bf16.msra.mxu1 %v1200_v42 }
  0x2c   :  { %736 = vmatpush1.bf16.msra.mxu0 %v1201_v43  ;;  %624 = vmatprep.subr.bf16.mxu1 %v1202_v44 }
  0x2d   :  { %737 = vmatprep.subr.bf16.mxu0 %v1204_v45 }
  0x2f   :  { %625 = vmatpush1.bf16.msra.mxu1 %v1206_v46 }
  0x30   :  { %738 = vmatpush1.bf16.msra.mxu0 %v1207_v47  ;;  %626 = vmatprep.subr.bf16.mxu1 %v1208_v48 }
  0x31   :  { %739 = vmatprep.subr.bf16.mxu0 %v1210_v50 }
  0x33   :  { %627 = vmatpush1.bf16.msra.mxu1 %v1212_v52 }
  0x34   :  { %740 = vmatpush1.bf16.msra.mxu0 %v1213_v53  ;;  %628 = vmatprep.subr.bf16.mxu1 %v1214_v54 }
  0x35   :  { %741 = vmatprep.subr.bf16.mxu0 %v1216_v55 }
  0x37   :  { %629 = vmatpush1.bf16.msra.mxu1 %v1218_v56 }
  0x38   :  { %742 = vmatpush1.bf16.msra.mxu0 %v1219_v57  ;;  %630 = vmatprep.subr.bf16.mxu1 %v1220_v58 }
  0x39   :  { %743 = vmatprep.subr.bf16.mxu0 %v1222_v59 }
  0x3b   :  { %631 = vmatpush1.bf16.msra.mxu1 %v1224_v60 }
  0x3c   :  { %744 = vmatpush1.bf16.msra.mxu0 %v1225_v61  ;;  %632 = vmatprep.subr.bf16.mxu1 %v1226_v62 }
  0x3d   :  { %745 = vmatprep.subr.bf16.mxu0 %v1228_v63 }
  0x3f   :  { %633 = vmatpush1.bf16.msra.mxu1 %v1230_v0 }
  0x40   :  { %746 = vmatpush1.bf16.msra.mxu0 %v1231_v1 }
  0x42   :  { %635 = vmatmul.mubr.bf16.vlgmr.msra.gmra.mrb[0].mxu1 %v1232_v2 }
  0x43   :  { %748 = vmatmul.mubr.bf16.vlgmr.msra.gmra.mrb[0].mxu0 %v1235_v3  ;;  %644 = vmatprep.mubr.bf16.mxu1 %v1238_v4 }
  0x44   :  { %757 = vmatprep.mubr.bf16.mxu0 %v1240_v5 }
  0x4a   :  { %645 = vmatmul.mubr.bf16.gmra.mrb[4].mxu1 %v1242_v6 }
  0x4b   :  { %758 = vmatmul.mubr.bf16.gmra.mrb[4].mxu0 %v1243_v7  ;;  %654 = vmatprep.mubr.bf16.mxu1 %v1244_v8 }
  0x4c   :  { %767 = vmatprep.mubr.bf16.mxu0 %v1246_v9 }
  0x52   :  { %655 = vmatmul.mubr.bf16.gmra.mrb[8].mxu1 %v1248_v10 }
  0x53   :  { %768 = vmatmul.mubr.bf16.gmra.mrb[8].mxu0 %v1249_v11  ;;  %664 = vmatprep.mubr.bf16.mxu1 %v1250_v12 }
  0x54   :  { %777 = vmatprep.mubr.bf16.mxu0 %v1252_v13 }
  0x5a   :  { %665 = vmatmul.mubr.bf16.gmra.mrb[12].mxu1 %v1254_v14 }
  0x5b   :  { %778 = vmatmul.mubr.bf16.gmra.mrb[12].mxu0 %v1255_v15  ;;  %674 = vmatprep.mubr.bf16.mxu1 %v1256_v16 }
  0x5c   :  { %787 = vmatprep.mubr.bf16.mxu0 %v1258_v17 }
  0x62   :  { %675 = vmatmul.mubr.bf16.gmra.mrb[16].mxu1 %v1260_v18 }
  0x63   :  { %788 = vmatmul.mubr.bf16.gmra.mrb[16].mxu0 %v1261_v19  ;;  %684 = vmatprep.mubr.bf16.mxu1 %v1262_v20 }
  0x64   :  { %797 = vmatprep.mubr.bf16.mxu0 %v1264_v21 }
  0x6a   :  { %685 = vmatmul.mubr.bf16.gmra.mrb[20].mxu1 %v1266_v22 }
  0x6b   :  { %798 = vmatmul.mubr.bf16.gmra.mrb[20].mxu0 %v1267_v23  ;;  %694 = vmatprep.mubr.bf16.mxu1 %v1268_v24 }
  0x6c   :  { %807 = vmatprep.mubr.bf16.mxu0 %v1270_v25 }
  0x72   :  { %695 = vmatmul.mubr.bf16.gmra.mrb[24].mxu1 %v1272_v26 }
  0x73   :  { %808 = vmatmul.mubr.bf16.gmra.mrb[24].mxu0 %v1273_v27  ;;  %704 = vmatprep.mubr.bf16.mxu1 %v1274_v28 }
  0x74   :  { %817 = vmatprep.mubr.bf16.mxu0 %v1276_v29 }
  0x7a   :  { %705 = vmatmul.mubr.bf16.gmra.mrb[28].mxu1 %v1278_v30 }
  0x7b   :  { %818 = vmatmul.mubr.bf16.gmra.mrb[28].mxu0 %v1279_v31 }
 0x115   :  { %v636_v39 = vpop.f32.mrb[0].mxu1 }
 0x116   :  { %v749_v40 = vpop.f32.mrb[0].mxu0  ;;  %v637_v41 = vadd.f32 %v636_v39, %v1591_v37  ;;  %v638_v42 = vpop.f32.mrb[1].mxu1 }
 0x117   :  { %v751_v43 = vpop.f32.mrb[1].mxu0  ;;  %v639_v44 = vadd.f32 %v638_v42, %v1593_v38  ;;  %v640_v45 = vpop.f32.mrb[2].mxu1 }
 0x118   :  { %v753_v46 = vpop.f32.mrb[2].mxu0  ;;  %v750_v47 = vadd.f32 %v749_v40, %v637_v41  ;;  %v641_v48 = vadd.f32 %v640_v45, %v1591_v37  ;;  %v642_v49 = vpop.f32.mrb[3].mxu1 }
 0x119   :  { %v755_v50 = vpop.f32.mrb[3].mxu0  ;;  %v752_v51 = vadd.f32 %v751_v43, %v639_v44  ;;  %v643_v52 = vadd.f32 %v642_v49, %v1593_v38 }
 0x11a   :  { %v754_v53 = vadd.f32 %v753_v46, %v641_v48 }
 0x11b   :  { %v1056_v54 = vpack.c.bf16 %v752_v51, %v750_v47  ;;  %v756_v55 = vadd.f32 %v755_v50, %v643_v52 }
 0x11d   :  { %924 = vst [vmem:[%s1678_s3] sm:$0xff] %v1056_v54  ;;  %v1057_v56 = vpack.c.bf16 %v756_v55, %v754_v53  ;;  %v646_v57 = vpop.f32.mrb[4].mxu1 }
 0x11e   :  { %v759_v58 = vpop.f32.mrb[4].mxu0  ;;  %v647_v59 = vadd.f32 %v646_v57, %v1591_v37  ;;  %v648_v60 = vpop.f32.mrb[5].mxu1 }
 0x11f   :  { %v761_v61 = vpop.f32.mrb[5].mxu0  ;;  %925 = vst [vmem:[%s1678_s3 + $0x8] sm:$0xff] %v1057_v56  ;;  %v649_v62 = vadd.f32 %v648_v60, %v1593_v38  ;;  %v650_v63 = vpop.f32.mrb[6].mxu1 }
 0x120   :  { %v763_v0 = vpop.f32.mrb[6].mxu0  ;;  %v760_v1 = vadd.f32 %v759_v58, %v647_v59  ;;  %v651_v2 = vadd.f32 %v650_v63, %v1591_v37  ;;  %v652_v3 = vpop.f32.mrb[7].mxu1 }
 0x121   :  { %v765_v4 = vpop.f32.mrb[7].mxu0  ;;  %v762_v5 = vadd.f32 %v761_v61, %v649_v62  ;;  %v653_v6 = vadd.f32 %v652_v3, %v1593_v38 }
 0x122   :  { %v764_v7 = vadd.f32 %v763_v0, %v651_v2 }
 0x123   :  { %v1058_v8 = vpack.c.bf16 %v762_v5, %v760_v1  ;;  %v766_v9 = vadd.f32 %v765_v4, %v653_v6 }
 0x125   :  { %926 = vst [vmem:[%s1678_s3 + $0x10] sm:$0xff] %v1058_v8  ;;  %v1059_v10 = vpack.c.bf16 %v766_v9, %v764_v7  ;;  %v656_v11 = vpop.f32.mrb[8].mxu1 }
 0x126   :  { %v769_v12 = vpop.f32.mrb[8].mxu0  ;;  %v657_v13 = vadd.f32 %v656_v11, %v1591_v37  ;;  %v658_v14 = vpop.f32.mrb[9].mxu1 }
 0x127   :  { %v771_v15 = vpop.f32.mrb[9].mxu0  ;;  %927 = vst [vmem:[%s1678_s3 + $0x18] sm:$0xff] %v1059_v10  ;;  %v659_v16 = vadd.f32 %v658_v14, %v1593_v38  ;;  %v660_v17 = vpop.f32.mrb[10].mxu1 }
 0x128   :  { %v773_v18 = vpop.f32.mrb[10].mxu0  ;;  %v770_v19 = vadd.f32 %v769_v12, %v657_v13  ;;  %v661_v20 = vadd.f32 %v660_v17, %v1591_v37  ;;  %v662_v21 = vpop.f32.mrb[11].mxu1 }
 0x129   :  { %v775_v22 = vpop.f32.mrb[11].mxu0  ;;  %v772_v23 = vadd.f32 %v771_v15, %v659_v16  ;;  %v663_v24 = vadd.f32 %v662_v21, %v1593_v38 }
 0x12a   :  { %v774_v25 = vadd.f32 %v773_v18, %v661_v20 }
 0x12b   :  { %v1060_v26 = vpack.c.bf16 %v772_v23, %v770_v19  ;;  %v776_v27 = vadd.f32 %v775_v22, %v663_v24 }
 0x12d   :  { %928 = vst [vmem:[%s1678_s3 + $0x20] sm:$0xff] %v1060_v26  ;;  %v1061_v28 = vpack.c.bf16 %v776_v27, %v774_v25  ;;  %v666_v29 = vpop.f32.mrb[12].mxu1 }
 0x12e   :  { %v779_v30 = vpop.f32.mrb[12].mxu0  ;;  %v667_v31 = vadd.f32 %v666_v29, %v1591_v37  ;;  %v668_v32 = vpop.f32.mrb[13].mxu1 }
 0x12f   :  { %v781_v33 = vpop.f32.mrb[13].mxu0  ;;  %929 = vst [vmem:[%s1678_s3 + $0x28] sm:$0xff] %v1061_v28  ;;  %v669_v34 = vadd.f32 %v668_v32, %v1593_v38  ;;  %v670_v35 = vpop.f32.mrb[14].mxu1 }
 0x130   :  { %v783_v36 = vpop.f32.mrb[14].mxu0  ;;  %v780_v39 = vadd.f32 %v779_v30, %v667_v31  ;;  %v671_v40 = vadd.f32 %v670_v35, %v1591_v37  ;;  %v672_v41 = vpop.f32.mrb[15].mxu1 }
 0x131   :  { %v785_v42 = vpop.f32.mrb[15].mxu0  ;;  %v782_v43 = vadd.f32 %v781_v33, %v669_v34  ;;  %v673_v44 = vadd.f32 %v672_v41, %v1593_v38 }
 0x132   :  { %v784_v45 = vadd.f32 %v783_v36, %v671_v40 }
 0x133   :  { %v1062_v46 = vpack.c.bf16 %v782_v43, %v780_v39  ;;  %v786_v47 = vadd.f32 %v785_v42, %v673_v44 }
 0x135   :  { %930 = vst [vmem:[%s1678_s3 + $0x30] sm:$0xff] %v1062_v46  ;;  %v1063_v48 = vpack.c.bf16 %v786_v47, %v784_v45  ;;  %v676_v49 = vpop.f32.mrb[16].mxu1 }
 0x136   :  { %v789_v50 = vpop.f32.mrb[16].mxu0  ;;  %v677_v51 = vadd.f32 %v676_v49, %v1591_v37  ;;  %v678_v52 = vpop.f32.mrb[17].mxu1 }
 0x137   :  { %v791_v53 = vpop.f32.mrb[17].mxu0  ;;  %931 = vst [vmem:[%s1678_s3 + $0x38] sm:$0xff] %v1063_v48  ;;  %v679_v54 = vadd.f32 %v678_v52, %v1593_v38  ;;  %v680_v55 = vpop.f32.mrb[18].mxu1 }
 0x138   :  { %v793_v56 = vpop.f32.mrb[18].mxu0  ;;  %v790_v57 = vadd.f32 %v789_v50, %v677_v51  ;;  %v681_v58 = vadd.f32 %v680_v55, %v1591_v37  ;;  %v682_v59 = vpop.f32.mrb[19].mxu1 }
 0x139   :  { %v795_v60 = vpop.f32.mrb[19].mxu0  ;;  %v792_v61 = vadd.f32 %v791_v53, %v679_v54  ;;  %v683_v62 = vadd.f32 %v682_v59, %v1593_v38 }
 0x13a   :  { %v794_v63 = vadd.f32 %v793_v56, %v681_v58 }
 0x13b   :  { %v1064_v0 = vpack.c.bf16 %v792_v61, %v790_v57  ;;  %v796_v1 = vadd.f32 %v795_v60, %v683_v62 }
 0x13d   :  { %932 = vst [vmem:[%s1678_s3 + $0x40] sm:$0xff] %v1064_v0  ;;  %v1065_v2 = vpack.c.bf16 %v796_v1, %v794_v63  ;;  %v686_v3 = vpop.f32.mrb[20].mxu1 }
 0x13e   :  { %v799_v4 = vpop.f32.mrb[20].mxu0  ;;  %v687_v5 = vadd.f32 %v686_v3, %v1591_v37  ;;  %v688_v6 = vpop.f32.mrb[21].mxu1 }
 0x13f   :  { %v801_v7 = vpop.f32.mrb[21].mxu0  ;;  %933 = vst [vmem:[%s1678_s3 + $0x48] sm:$0xff] %v1065_v2  ;;  %v689_v8 = vadd.f32 %v688_v6, %v1593_v38  ;;  %v690_v9 = vpop.f32.mrb[22].mxu1 }
 0x140   :  { %v803_v10 = vpop.f32.mrb[22].mxu0  ;;  %v800_v11 = vadd.f32 %v799_v4, %v687_v5  ;;  %v691_v12 = vadd.f32 %v690_v9, %v1591_v37  ;;  %v692_v13 = vpop.f32.mrb[23].mxu1 }
 0x141   :  { %v805_v14 = vpop.f32.mrb[23].mxu0  ;;  %v802_v15 = vadd.f32 %v801_v7, %v689_v8  ;;  %v693_v16 = vadd.f32 %v692_v13, %v1593_v38 }
 0x142   :  { %v804_v17 = vadd.f32 %v803_v10, %v691_v12 }
 0x143   :  { %v1066_v18 = vpack.c.bf16 %v802_v15, %v800_v11  ;;  %v806_v19 = vadd.f32 %v805_v14, %v693_v16 }
 0x145   :  { %934 = vst [vmem:[%s1678_s3 + $0x50] sm:$0xff] %v1066_v18  ;;  %v1067_v20 = vpack.c.bf16 %v806_v19, %v804_v17  ;;  %v696_v21 = vpop.f32.mrb[24].mxu1 }
 0x146   :  { %v809_v22 = vpop.f32.mrb[24].mxu0  ;;  %v697_v23 = vadd.f32 %v696_v21, %v1591_v37  ;;  %v698_v24 = vpop.f32.mrb[25].mxu1 }
 0x147   :  { %v811_v25 = vpop.f32.mrb[25].mxu0  ;;  %935 = vst [vmem:[%s1678_s3 + $0x58] sm:$0xff] %v1067_v20  ;;  %v699_v26 = vadd.f32 %v698_v24, %v1593_v38  ;;  %v700_v27 = vpop.f32.mrb[26].mxu1 }
 0x148   :  { %v813_v28 = vpop.f32.mrb[26].mxu0  ;;  %v810_v29 = vadd.f32 %v809_v22, %v697_v23  ;;  %v701_v30 = vadd.f32 %v700_v27, %v1591_v37  ;;  %v702_v31 = vpop.f32.mrb[27].mxu1 }
 0x149   :  { %v815_v32 = vpop.f32.mrb[27].mxu0  ;;  %v812_v33 = vadd.f32 %v811_v25, %v699_v26  ;;  %v703_v34 = vadd.f32 %v702_v31, %v1593_v38 }
 0x14a   :  { %v814_v35 = vadd.f32 %v813_v28, %v701_v30 }
 0x14b   :  { %v1068_v36 = vpack.c.bf16 %v812_v33, %v810_v29  ;;  %v816_v39 = vadd.f32 %v815_v32, %v703_v34 }
 0x14d   :  { %936 = vst [vmem:[%s1678_s3 + $0x60] sm:$0xff] %v1068_v36  ;;  %v1069_v40 = vpack.c.bf16 %v816_v39, %v814_v35  ;;  %v706_v41 = vpop.f32.mrb[28].mxu1 }
 0x14e   :  { %v819_v42 = vpop.f32.mrb[28].mxu0  ;;  %v707_v43 = vadd.f32 %v706_v41, %v1591_v37  ;;  %v708_v44 = vpop.f32.mrb[29].mxu1 }
 0x14f   :  { %v821_v45 = vpop.f32.mrb[29].mxu0  ;;  %937 = vst [vmem:[%s1678_s3 + $0x68] sm:$0xff] %v1069_v40  ;;  %v709_v46 = vadd.f32 %v708_v44, %v1593_v38  ;;  %v710_v47 = vpop.f32.mrb[30].mxu1 }
 0x150   :  { %v823_v48 = vpop.f32.mrb[30].mxu0  ;;  %v820_v49 = vadd.f32 %v819_v42, %v707_v43  ;;  %v711_v50 = vadd.f32 %v710_v47, %v1591_v37  ;;  %v712_v51 = vpop.f32.mrb[31].mxu1 }
 0x151   :  { %v825_v52 = vpop.f32.mrb[31].mxu0  ;;  %v822_v53 = vadd.f32 %v821_v45, %v709_v46  ;;  %v713_v54 = vadd.f32 %v712_v51, %v1593_v38 }
 0x152   :  { %v824_v55 = vadd.f32 %v823_v48, %v711_v50 }
 0x153   :  { %v1070_v56 = vpack.c.bf16 %v822_v53, %v820_v49  ;;  %v826_v57 = vadd.f32 %v825_v52, %v713_v54 }
 0x155   :  { %938 = vst [vmem:[%s1678_s3 + $0x70] sm:$0xff] %v1070_v56  ;;  %v1071_v58 = vpack.c.bf16 %v826_v57, %v824_v55 }
 0x157   :  { %939 = vst [vmem:[%s1678_s3 + $0x78] sm:$0xff] %v1071_v58 }

// kernel: generator_a2b.93
= control target key start
LH: loop header
LB: loop body
LE: loop exit
PB: predicated region body
PF: predicated region fallthrough
CT: control target
= control target key end

     0   :  { %s9368_s12 = smov 0   ;;  %s11593_s0 = inlined_call_operand.vmem [shape: bf16[512,3200], index: 0, kind: input, shape index: {}]   ;;  %s11594_s1 = inlined_call_operand.vmem [shape: bf16[3200,128], index: 1, kind: input, shape index: {}]   ;;  %s11595_s2 = inlined_call_operand.vmem [shape: f32[1,128], index: 2, kind: input, shape index: {}]   ;;  %s11596_s3 = inlined_call_operand.vmem [shape: f32[512,128], index: 3, kind: output, shape index: {}]  }
   0x1 LB: > { %s6430_s13 = sadd.s32 4294967295, %s9346_s12   ;;  %p6434_p0 = scmp.ge.s32.totalorder %s9346_s12, 1  ;;  %s9346_s12 = sphi %s9368_s12, %s13_s12  }
   0x2   : > { %p139_p1 = scmp.lt.s32.totalorder %s9346_s12, 3 }
   0x4   : > { %p140_p2 = pnand %p6434_p0, %p139_p1 }
   0x5   : > { %v8483_v0 = vld [vmem:[%s11594_s1 + $0x40] sm:$0xff] (!%p140_p2)   ;;  %s6435_s16 = sshll.u32 (!%p140_p2), %s6430_s13, 5  ;;  %v8485_v2 = vld [vmem:[%s11594_s1 + $0x48] sm:$0xff] (!%p140_p2)   ;;  %v8487_v4 = vld [vmem:[%s11594_s1 + $0x50] sm:$0xff] (!%p140_p2)  }
   0x6   : > { %143 = sbr.rel (%p140_p2) target bundleno = 1064 (0x428), region = 32  ;;  %v8484_v1 = vld [vmem:[%s11594_s1] sm:$0xff] (!%p140_p2)   ;;  %7042 = vmatprep.subr.bf16.mxu0 (!%p140_p2), %v8483_v0  ;;  %8458 = vmatprep.subr.bf16.mxu1 (!%p140_p2), %v8483_v0  ;;  %p165_p3 = scmp.lt.s32.totalorder (!%p140_p2), %s6435_s16, 63  ;;  %v8486_v3 = vld [vmem:[%s11594_s1 + $0x8] sm:$0xff] (!%p140_p2)   ;;  %v8488_v5 = vld [vmem:[%s11594_s1 + $0x10] sm:$0xff] (!%p140_p2)  }
   0x7   : > { %7043 = vmatpush3.bf16.msra.mxu0 (!%p140_p2), %v8484_v1  ;;  %8466 = vmatpush3.bf16.msra.mxu1 (!%p140_p2), %v8484_v1  ;;  %v8489_v6 = vld [vmem:[%s11594_s1 + $0x58] sm:$0xff] (!%p140_p2)   ;;  %v8491_v8 = vld [vmem:[%s11594_s1 + $0x60] sm:$0xff] (!%p140_p2)   ;;  %v8493_v10 = vld [vmem:[%s11594_s1 + $0x68] sm:$0xff] (!%p140_p2)  }
   0x8   : > { %7044 = vmatprep.subr.bf16.mxu0 (!%p140_p2), %v8485_v2  ;;  %8459 = vmatprep.subr.bf16.mxu1 (!%p140_p2), %v8485_v2  ;;  %v8490_v7 = vld [vmem:[%s11594_s1 + $0x18] sm:$0xff] (!%p140_p2)   ;;  %v8492_v9 = vld [vmem:[%s11594_s1 + $0x20] sm:$0xff] (!%p140_p2)   ;;  %v8494_v13 = vld [vmem:[%s11594_s1 + $0x28] sm:$0xff] (!%p140_p2)  }
   0x9   : > { %v8495_v14 = vld [vmem:[%s11594_s1 + $0x70] sm:$0xff] (!%p140_p2)   ;;  %v8497_v16 = vld [vmem:[%s11594_s1 + $0x78] sm:$0xff] (!%p140_p2)   ;;  %v8505_v18 = vld [vmem:[%s11594_s1 + $0xc0] sm:$0xff] (!%p140_p2)  }
   0xa   : > { %v8496_v15 = vld [vmem:[%s11594_s1 + $0x30] sm:$0xff] (!%p140_p2)   ;;  %v8498_v17 = vld [vmem:[%s11594_s1 + $0x38] sm:$0xff] (!%p140_p2)   ;;  %v8508_v21 = vld [vmem:[%s11594_s1 + $0x140] sm:$0xff] (!%p140_p2)  }
   0xb   : > { %7045 = vmatpush3.bf16.msra.mxu0 (!%p140_p2), %v8486_v3  ;;  %8467 = vmatpush3.bf16.msra.mxu1 (!%p140_p2), %v8486_v3  ;;  %v8506_v22 = vld [vmem:[%s11594_s1 + $0x80] sm:$0xff] (!%p140_p2)   ;;  %v8507_v23 = vld [vmem:[%s11594_s1 + $0xc8] sm:$0xff] (!%p140_p2)   ;;  %v8517_v31 = vld [vmem:[%s11594_s1 + $0xd0] sm:$0xff] (!%p140_p2)  }
   0xc   : > { %7046 = vmatprep.subr.bf16.mxu0 (!%p140_p2), %v8487_v4  ;;  %8460 = vmatprep.subr.bf16.mxu1 (!%p140_p2), %v8487_v4  ;;  %v8510_v24 = vld [vmem:[%s11594_s1 + $0x100] sm:$0xff] (!%p140_p2)   ;;  %v8509_v27 = vld [vmem:[%s11594_s1 + $0x88] sm:$0xff] (!%p140_p2)   ;;  %v8518_v32 = vld [vmem:[%s11594_s1 + $0x90] sm:$0xff] (!%p140_p2)  }
   0xd   : > { %s11598_s16 = smov (!%p165_p3, %s6435_s16), 63  ;;  %v8528_v28 = vld [vmem:[%s11594_s1 + $0x148] sm:$0xff]   ;;  %v8519_v34 = vld [vmem:[%s11594_s1 + $0xd8] sm:$0xff]   ;;  %v8527_v40 = vld [vmem:[%s11594_s1 + $0xe0] sm:$0xff]  }
   0xe   : > { %s8474_s29 = smul.u32 100, %s11598_s16  ;;  %v8530_v33 = vld [vmem:[%s11594_s1 + $0x108] sm:$0xff]   ;;  %v8520_v37 = vld [vmem:[%s11594_s1 + $0x98] sm:$0xff]   ;;  %v8529_v41 = vld [vmem:[%s11594_s1 + $0xa0] sm:$0xff]  }
   0xf   : > { %7047 = vmatpush3.bf16.msra.mxu0 %v8488_v5  ;;  %8468 = vmatpush3.bf16.msra.mxu1 %v8488_v5  ;;  %v8531_v42 = vld [vmem:[%s11594_s1 + $0xe8] sm:$0xff]   ;;  %v8542_v43 = vld [vmem:[%s11594_s1 + $0x150] sm:$0xff]   ;;  %v8541_v52 = vld [vmem:[%s11594_s1 + $0xf8] sm:$0xff]  }
  0x10   : > { %7048 = vmatprep.subr.bf16.mxu0 %v8489_v6  ;;  %8461 = vmatprep.subr.bf16.mxu1 %v8489_v6  ;;  %s9409_s9 = scalar_lea.vmem %s11593_s0, %s8474_s29  ;;  %v8544_v46 = vld [vmem:[%s11594_s1 + $0x110] sm:$0xff]   ;;  %v8532_v47 = vld [vmem:[%s11594_s1 + $0xa8] sm:$0xff]   ;;  %v8559_v55 = vld [vmem:[%s11594_s1 + $0x158] sm:$0xff]  }
  0x11   : > { %v8501_v11 = vld [vmem:[%s9409_s9 + $0x4] ss:$100 sps:$4 sm:$0xff]   ;;  %v8511_v25 = vld [vmem:[%s9409_s9 + $0xcc] ss:$100 sps:$4 sm:$0xff]   ;;  %v8521_v35 = vld [vmem:[%s9409_s9 + $0x194] ss:$100 sps:$4 sm:$0xff]  }
  0x12   : > { %v8504_v12 = vld [vmem:[%s9409_s9 + $0x964] ss:$100 sps:$4 sm:$0xff]   ;;  %4249 = vmatprep.mubr.bf16.mxu0 %v8501_v11  ;;  %v8513_v26 = vld [vmem:[%s9409_s9 + $0xa2c] ss:$100 sps:$4 sm:$0xff]   ;;  %v8523_v36 = vld [vmem:[%s9409_s9 + $0xaf4] ss:$100 sps:$4 sm:$0xff]  }
  0x13   : > { %7049 = vmatpush3.bf16.msra.mxu0 %v8490_v7  ;;  %8469 = vmatpush3.bf16.msra.mxu1 %v8490_v7  ;;  %v8499_v19 = vld [vmem:[%s9409_s9] ss:$100 sps:$4 sm:$0xff]   ;;  %v8515_v29 = vld [vmem:[%s9409_s9 + $0xc8] ss:$100 sps:$4 sm:$0xff]   ;;  %v8525_v38 = vld [vmem:[%s9409_s9 + $0x190] ss:$100 sps:$4 sm:$0xff]  }
  0x14   : > { %7050 = vmatprep.subr.bf16.mxu0 %v8491_v8  ;;  %8462 = vmatprep.subr.bf16.mxu1 %v8491_v8  ;;  %v8502_v20 = vld [vmem:[%s9409_s9 + $0x960] ss:$100 sps:$4 sm:$0xff]   ;;  %v8516_v30 = vld [vmem:[%s9409_s9 + $0xa28] ss:$100 sps:$4 sm:$0xff]   ;;  %v8526_v39 = vld [vmem:[%s9409_s9 + $0xaf0] ss:$100 sps:$4 sm:$0xff]  }
  0x15   : > { %4345 = vmatprep.mubr.bf16.mxu1 %v8504_v12  ;;  %v8533_v44 = vld [vmem:[%s9409_s9 + $0x25c] ss:$100 sps:$4 sm:$0xff]   ;;  %v8539_v48 = vld [vmem:[%s11594_s1 + $0xf0] sm:$0xff]   ;;  %v8545_v53 = vld [vmem:[%s9409_s9 + $0x324] ss:$100 sps:$4 sm:$0xff]  }
  0x16   : > { %v8535_v45 = vld [vmem:[%s9409_s9 + $0xbbc] ss:$100 sps:$4 sm:$0xff]   ;;  %v8540_v51 = vld [vmem:[%s11594_s1 + $0xb0] sm:$0xff]   ;;  %v8547_v58 = vld [vmem:[%s9409_s9 + $0x8] ss:$100 sps:$4 sm:$0xff]  }
  0x17   : > { %7051 = vmatpush3.bf16.msra.mxu0 %v8492_v9  ;;  %8470 = vmatpush3.bf16.msra.mxu1 %v8492_v9  ;;  %v8537_v49 = vld [vmem:[%s9409_s9 + $0x258] ss:$100 sps:$4 sm:$0xff]   ;;  %v8549_v54 = vld [vmem:[%s9409_s9 + $0xc] ss:$100 sps:$4 sm:$0xff]   ;;  %v8550_v59 = vld [vmem:[%s9409_s9 + $0x320] ss:$100 sps:$4 sm:$0xff]  }
  0x18   : > { %7052 = vmatprep.subr.bf16.mxu0 %v8493_v10  ;;  %8463 = vmatprep.subr.bf16.mxu1 %v8493_v10  ;;  %v8538_v50 = vld [vmem:[%s9409_s9 + $0xbb8] ss:$100 sps:$4 sm:$0xff]   ;;  %v8551_v60 = vld [vmem:[%s11594_s1 + $0x1c0] sm:$0xff]   ;;  %v8553_v62 = vld [vmem:[%s9409_s9 + $0x3ec] ss:$100 sps:$4 sm:$0xff]  }
  0x19   : > { %v8560_v56 = vld [vmem:[%s11594_s1 + $0x118] sm:$0xff]   ;;  %v8552_v61 = vld [vmem:[%s11594_s1 + $0x180] sm:$0xff]   ;;  %v8567_v1 = vld [vmem:[%s11594_s1 + $0x1c8] sm:$0xff]  }
  0x1a   : > { %v8543_v57 = vld [vmem:[%s11594_s1 + $0xb8] sm:$0xff]   ;;  %v8569_v0 = vld [vmem:[%s11594_s1 + $0x160] sm:$0xff]   ;;  %v8568_v3 = vld [vmem:[%s11594_s1 + $0x188] sm:$0xff]  }
  0x1b   : > { %7053 = vmatpush3.bf16.msra.mxu0 %v8494_v13  ;;  %8471 = vmatpush3.bf16.msra.mxu1 %v8494_v13  ;;  %v8555_v63 = vld [vmem:[%s9409_s9 + $0xd4] ss:$100 sps:$4 sm:$0xff]   ;;  %v8570_v2 = vld [vmem:[%s11594_s1 + $0x120] sm:$0xff]   ;;  %v8557_v4 = vld [vmem:[%s9409_s9 + $0x3e8] ss:$100 sps:$4 sm:$0xff]  }
  0x1c   : > { %7054 = vmatprep.subr.bf16.mxu0 %v8495_v14  ;;  %8464 = vmatprep.subr.bf16.mxu1 %v8495_v14  ;;  %v8558_v5 = vld [vmem:[%s9409_s9 + $0xd0] ss:$100 sps:$4 sm:$0xff]   ;;  %v8563_v7 = vld [vmem:[%s9409_s9 + $0x19c] ss:$100 sps:$4 sm:$0xff]   ;;  %v8583_v8 = vld [vmem:[%s11594_s1 + $0x168] sm:$0xff]  }
  0x1d   : > { %v8561_v6 = vld [vmem:[%s9409_s9 + $0x4b4] ss:$100 sps:$4 sm:$0xff]   ;;  %v8585_v10 = vld [vmem:[%s11594_s1 + $0x128] sm:$0xff]   ;;  %v8571_v14 = vld [vmem:[%s9409_s9 + $0x57c] ss:$100 sps:$4 sm:$0xff]  }
  0x1e   : > { %v8584_v9 = vld [vmem:[%s11594_s1 + $0x1d0] sm:$0xff]   ;;  %v8566_v13 = vld [vmem:[%s9409_s9 + $0x198] ss:$100 sps:$4 sm:$0xff]  }
  0x1f   : > { %7055 = vmatpush3.bf16.msra.mxu0 %v8496_v15  ;;  %8472 = vmatpush3.bf16.msra.mxu1 %v8496_v15  ;;  %v8586_v11 = vld [vmem:[%s11594_s1 + $0x190] sm:$0xff]  }
  0x20   : > { %7056 = vmatprep.subr.bf16.mxu0 %v8497_v16  ;;  %8465 = vmatprep.subr.bf16.mxu1 %v8497_v16  ;;  %v8565_v12 = vld [vmem:[%s9409_s9 + $0x4b0] ss:$100 sps:$4 sm:$0xff]  }
  0x21   : > { %v8593_v15 = vld [vmem:[%s11594_s1 + $0x170] sm:$0xff]  }
  0x22   : > { %v8594_v16 = vld [vmem:[%s11594_s1 + $0x130] sm:$0xff]  }
  0x23   : > { %7057 = vmatpush3.bf16.msra.mxu0 %v8498_v17  ;;  %8473 = vmatpush3.bf16.msra.mxu1 %v8498_v17  ;;  %v8573_v17 = vld [vmem:[%s9409_s9 + $0x264] ss:$100 sps:$4 sm:$0xff]  }
  0x24   : > { %7154 = vmatprep.subr.bf16.mxu1 %v8505_v18  ;;  %7266 = vmatprep.subr.bf16.mxu0 %v8508_v21  ;;  %v8601_v18 = vld [vmem:[%s11594_s1 + $0x1d8] sm:$0xff]   ;;  %v8576_v21 = vld [vmem:[%s9409_s9 + $0x260] ss:$100 sps:$4 sm:$0xff]  }
  0x26   : > { %4250 = vmatmul.mubr.bf16.vlgmr.msra.gmra.mrb[0].mxu0 %v8499_v19  ;;  %4346 = vmatmul.mubr.bf16.vlgmr.msra.gmra.mrb[0].mxu1 %v8502_v20  ;;  %v8602_v19 = vld [vmem:[%s11594_s1 + $0x198] sm:$0xff]  }
  0x27   : > { %7155 = vmatpush3.bf16.msra.mxu1 %v8506_v22  ;;  %7267 = vmatpush3.bf16.msra.mxu0 %v8510_v24  ;;  %v8575_v20 = vld [vmem:[%s9409_s9 + $0x578] ss:$100 sps:$4 sm:$0xff]   ;;  %v8577_v22 = vld [vmem:[%s9409_s9 + $0x644] ss:$100 sps:$4 sm:$0xff]  }
  0x28   : > { %7156 = vmatprep.subr.bf16.mxu1 %v8507_v23  ;;  %4257 = vmatprep.mubr.bf16.mxu0 %v8511_v25  ;;  %v8579_v23 = vld [vmem:[%s9409_s9 + $0x32c] ss:$100 sps:$4 sm:$0xff]   ;;  %v8609_v24 = vld [vmem:[%s11594_s1 + $0x178] sm:$0xff]  }
  0x29   : > { %4353 = vmatprep.mubr.bf16.mxu1 %v8513_v26  ;;  %7268 = vmatprep.subr.bf16.mxu0 %v8528_v28  ;;  %v8610_v25 = vld [vmem:[%s11594_s1 + $0x138] sm:$0xff]   ;;  %v8617_v26 = vld [vmem:[%s11594_s1 + $0x1e0] sm:$0xff]   ;;  %v8582_v28 = vld [vmem:[%s9409_s9 + $0x328] ss:$100 sps:$4 sm:$0xff]  }
  0x2b   : > { %7157 = vmatpush3.bf16.msra.mxu1 %v8509_v27  ;;  %7269 = vmatpush3.bf16.msra.mxu0 %v8530_v33  ;;  %v8581_v27 = vld [vmem:[%s9409_s9 + $0x640] ss:$100 sps:$4 sm:$0xff]   ;;  %v8591_v33 = vld [vmem:[%s9409_s9 + $0x708] ss:$100 sps:$4 sm:$0xff]  }
  0x2c   : > { %7158 = vmatprep.subr.bf16.mxu1 %v8517_v31  ;;  %7270 = vmatprep.subr.bf16.mxu0 %v8542_v43  ;;  %v8587_v31 = vld [vmem:[%s9409_s9 + $0x70c] ss:$100 sps:$4 sm:$0xff]  }
  0x2d   : > { %v8649_v43 = vld [vmem:[%s11594_s1 + $0x1f0] sm:$0xff]  }
  0x2e   : > { %4258 = vmatmul.mubr.bf16.gmra.mrb[4].mxu0 %v8515_v29  ;;  %4354 = vmatmul.mubr.bf16.gmra.mrb[4].mxu1 %v8516_v30  ;;  %v8618_v29 = vld [vmem:[%s11594_s1 + $0x1a0] sm:$0xff]  }
  0x2f   : > { %7159 = vmatpush3.bf16.msra.mxu1 %v8518_v32  ;;  %4265 = vmatprep.mubr.bf16.mxu0 %v8521_v35  ;;  %v8619_v30 = vld [vmem:[%s11594_s1 + $0x240] sm:$0xff]   ;;  %v8589_v32 = vld [vmem:[%s9409_s9 + $0x3f4] ss:$100 sps:$4 sm:$0xff]   ;;  %v8633_v35 = vld [vmem:[%s11594_s1 + $0x1e8] sm:$0xff]  }
  0x30   : > { %7160 = vmatprep.subr.bf16.mxu1 %v8519_v34  ;;  %4361 = vmatprep.mubr.bf16.mxu1 %v8523_v36  ;;  %v8592_v34 = vld [vmem:[%s9409_s9 + $0x3f0] ss:$100 sps:$4 sm:$0xff]   ;;  %v8634_v36 = vld [vmem:[%s11594_s1 + $0x1a8] sm:$0xff]  }
  0x31   : > { %7271 = vmatpush3.bf16.msra.mxu0 %v8544_v46  ;;  %v8608_v46 = vld [vmem:[%s9409_s9 + $0x580] ss:$100 sps:$4 sm:$0xff]  }
  0x32   : > { %7272 = vmatprep.subr.bf16.mxu0 %v8559_v55  ;;  %v8623_v55 = vld [vmem:[%s9409_s9 + $0xdc] ss:$100 sps:$4 sm:$0xff]  }
  0x33   : > { %7161 = vmatpush3.bf16.msra.mxu1 %v8520_v37  ;;  %v8595_v37 = vld [vmem:[%s9409_s9 + $0x7d4] ss:$100 sps:$4 sm:$0xff]  }
  0x34   : > { %7162 = vmatprep.subr.bf16.mxu1 %v8527_v40  ;;  %v8600_v40 = vld [vmem:[%s9409_s9 + $0x4b8] ss:$100 sps:$4 sm:$0xff]  }
  0x35   : > { %7273 = vmatpush3.bf16.msra.mxu0 %v8560_v56  ;;  %v8635_v56 = vld [vmem:[%s11594_s1 + $0x248] sm:$0xff]  }
  0x36   : > { %4266 = vmatmul.mubr.bf16.gmra.mrb[8].mxu0 %v8525_v38  ;;  %4362 = vmatmul.mubr.bf16.gmra.mrb[8].mxu1 %v8526_v39  ;;  %v8597_v38 = vld [vmem:[%s9409_s9 + $0x4bc] ss:$100 sps:$4 sm:$0xff]   ;;  %v8599_v39 = vld [vmem:[%s9409_s9 + $0x7d0] ss:$100 sps:$4 sm:$0xff]  }
  0x37   : > { %7163 = vmatpush3.bf16.msra.mxu1 %v8529_v41  ;;  %4273 = vmatprep.mubr.bf16.mxu0 %v8533_v44  ;;  %v8603_v41 = vld [vmem:[%s9409_s9 + $0x89c] ss:$100 sps:$4 sm:$0xff]   ;;  %v8650_v44 = vld [vmem:[%s11594_s1 + $0x1b0] sm:$0xff]  }
  0x38   : > { %7164 = vmatprep.subr.bf16.mxu1 %v8531_v42  ;;  %4369 = vmatprep.mubr.bf16.mxu1 %v8535_v45  ;;  %v8605_v42 = vld [vmem:[%s9409_s9 + $0x584] ss:$100 sps:$4 sm:$0xff]   ;;  %v8607_v45 = vld [vmem:[%s9409_s9 + $0x898] ss:$100 sps:$4 sm:$0xff]  }
  0x39   : > { %7274 = vmatprep.subr.bf16.mxu0 %v8569_v0  ;;  %v8652_v0 = vld [vmem:[%s11594_s1 + $0x210] sm:$0xff]  }
  0x3a   : > { %7275 = vmatpush3.bf16.msra.mxu0 %v8570_v2  ;;  %v8631_v2 = vld [vmem:[%s9409_s9 + $0x7d8] ss:$100 sps:$4 sm:$0xff]  }
  0x3b   : > { %7165 = vmatpush3.bf16.msra.mxu1 %v8532_v47  ;;  %7276 = vmatprep.subr.bf16.mxu0 %v8583_v8  ;;  %v8611_v47 = vld [vmem:[%s9409_s9 + $0x64c] ss:$100 sps:$4 sm:$0xff]   ;;  %v8684_v8 = vld [vmem:[%s11594_s1 + $0x220] sm:$0xff]  }
  0x3c   : > { %7166 = vmatprep.subr.bf16.mxu1 %v8539_v48  ;;  %v8615_v48 = vld [vmem:[%s9409_s9 + $0x14] ss:$100 sps:$4 sm:$0xff]  }
  0x3e   : > { %4274 = vmatmul.mubr.bf16.gmra.mrb[12].mxu0 %v8537_v49  ;;  %4370 = vmatmul.mubr.bf16.gmra.mrb[12].mxu1 %v8538_v50  ;;  %v8665_v49 = vld [vmem:[%s11594_s1 + $0x1f8] sm:$0xff]  }
  0x3f   : > { %7167 = vmatpush3.bf16.msra.mxu1 %v8540_v51  ;;  %4281 = vmatprep.mubr.bf16.mxu0 %v8545_v53  ;;  %v8666_v50 = vld [vmem:[%s11594_s1 + $0x1b8] sm:$0xff]   ;;  %v8613_v51 = vld [vmem:[%s9409_s9 + $0x10] ss:$100 sps:$4 sm:$0xff]   ;;  %v8620_v53 = vld [vmem:[%s11594_s1 + $0x200] sm:$0xff]  }
  0x40   : > { %7168 = vmatprep.subr.bf16.mxu1 %v8541_v52  ;;  %4410 = vmatprep.mubr.bf16.mxu1 %v8549_v54  ;;  %v8616_v52 = vld [vmem:[%s9409_s9 + $0x648] ss:$100 sps:$4 sm:$0xff]   ;;  %v8621_v54 = vld [vmem:[%s9409_s9 + $0x714] ss:$100 sps:$4 sm:$0xff]  }
  0x41   : > { %7277 = vmatpush3.bf16.msra.mxu0 %v8585_v10  ;;  %v8641_v10 = vld [vmem:[%s9409_s9 + $0x8a0] ss:$100 sps:$4 sm:$0xff]  }
  0x42   : > { %7278 = vmatprep.subr.bf16.mxu0 %v8593_v15  ;;  %v8645_v15 = vld [vmem:[%s9409_s9 + $0x334] ss:$100 sps:$4 sm:$0xff]  }
  0x43   : > { %7169 = vmatpush3.bf16.msra.mxu1 %v8543_v57  ;;  %v8681_v57 = vld [vmem:[%s11594_s1 + $0x2c0] sm:$0xff]  }
  0x44   : > { %7378 = vmatprep.subr.bf16.mxu1 %v8551_v60  ;;  %v8625_v60 = vld [vmem:[%s9409_s9 + $0x710] ss:$100 sps:$4 sm:$0xff]  }
  0x45   : > { %7279 = vmatpush3.bf16.msra.mxu0 %v8594_v16  ;;  %v8716_v16 = vld [vmem:[%s11594_s1 + $0x230] sm:$0xff]  }
  0x46   : > { %4282 = vmatmul.mubr.bf16.gmra.mrb[16].mxu0 %v8550_v59  ;;  %4411 = vmatmul.mubr.bf16.vlgmr.msra.gmra.mrb[16].mxu1 %v8547_v58  ;;  %v8636_v58 = vld [vmem:[%s11594_s1 + $0x208] sm:$0xff]   ;;  %v8651_v59 = vld [vmem:[%s11594_s1 + $0x250] sm:$0xff]  }
  0x47   : > { %7379 = vmatpush3.bf16.msra.mxu1 %v8552_v61  ;;  %4289 = vmatprep.mubr.bf16.mxu0 %v8553_v62  ;;  %v8626_v61 = vld [vmem:[%s9409_s9 + $0xd8] ss:$100 sps:$4 sm:$0xff]  }
  0x48   : > { %4418 = vmatprep.mubr.bf16.mxu1 %v8555_v63  ;;  %7380 = vmatprep.subr.bf16.mxu1 %v8567_v1  ;;  %v8627_v62 = vld [vmem:[%s9409_s9 + $0x7dc] ss:$100 sps:$4 sm:$0xff]   ;;  %v8629_v63 = vld [vmem:[%s9409_s9 + $0x1a4] ss:$100 sps:$4 sm:$0xff]  }
  0x49   : > { %7280 = vmatprep.subr.bf16.mxu0 %v8609_v24  ;;  %v8667_v1 = vld [vmem:[%s11594_s1 + $0x258] sm:$0xff]  }
  0x4a   : > { %7281 = vmatpush3.bf16.msra.mxu0 %v8610_v25  ;;  %v8658_v24 = vld [vmem:[%s9409_s9 + $0x3f8] ss:$100 sps:$4 sm:$0xff]  }
  0x4b   : > { %7381 = vmatpush3.bf16.msra.mxu1 %v8568_v3  ;;  %7490 = vmatprep.subr.bf16.mxu0 %v8619_v30  ;;  %v8668_v3 = vld [vmem:[%s11594_s1 + $0x218] sm:$0xff]   ;;  %v8669_v30 = vld [vmem:[%s9409_s9 + $0xbc4] ss:$100 sps:$4 sm:$0xff]  }
  0x4c   : > { %7382 = vmatprep.subr.bf16.mxu1 %v8584_v9  ;;  %v8699_v9 = vld [vmem:[%s11594_s1 + $0x268] sm:$0xff]   ;;  %v8659_v25 = vld [vmem:[%s9409_s9 + $0xafc] ss:$100 sps:$4 sm:$0xff]  }
  0x4e   : > { %4290 = vmatmul.mubr.bf16.gmra.mrb[20].mxu0 %v8557_v4  ;;  %4419 = vmatmul.mubr.bf16.gmra.mrb[20].mxu1 %v8558_v5  ;;  %v8683_v4 = vld [vmem:[%s11594_s1 + $0x260] sm:$0xff]  }
  0x4f   : > { %4297 = vmatprep.mubr.bf16.mxu0 %v8561_v6  ;;  %4426 = vmatprep.mubr.bf16.mxu1 %v8563_v7  ;;  %v8632_v5 = vld [vmem:[%s9409_s9 + $0x1a0] ss:$100 sps:$4 sm:$0xff]   ;;  %v8639_v7 = vld [vmem:[%s9409_s9 + $0x26c] ss:$100 sps:$4 sm:$0xff]  }
  0x50   : > { %7383 = vmatpush3.bf16.msra.mxu1 %v8586_v11  ;;  %v8637_v6 = vld [vmem:[%s9409_s9 + $0x8a4] ss:$100 sps:$4 sm:$0xff]  }
  0x51   : > { %7384 = vmatprep.subr.bf16.mxu1 %v8601_v18  ;;  %v8642_v11 = vld [vmem:[%s9409_s9 + $0x268] ss:$100 sps:$4 sm:$0xff]   ;;  %v8648_v18 = vld [vmem:[%s9409_s9 + $0x330] ss:$100 sps:$4 sm:$0xff]  }
  0x54   : > { %7385 = vmatpush3.bf16.msra.mxu1 %v8602_v19  ;;  %v8653_v19 = vld [vmem:[%s9409_s9 + $0xa34] ss:$100 sps:$4 sm:$0xff]  }
  0x55   : > { %7386 = vmatprep.subr.bf16.mxu1 %v8617_v26  ;;  %v8661_v26 = vld [vmem:[%s9409_s9 + $0x4c4] ss:$100 sps:$4 sm:$0xff]  }
  0x56   : > { %4298 = vmatmul.mubr.bf16.gmra.mrb[24].mxu0 %v8565_v12  ;;  %4427 = vmatmul.mubr.bf16.gmra.mrb[24].mxu1 %v8566_v13  ;;  %v8700_v12 = vld [vmem:[%s11594_s1 + $0x228] sm:$0xff]   ;;  %v8715_v13 = vld [vmem:[%s11594_s1 + $0x270] sm:$0xff]  }
  0x57   : > { %4305 = vmatprep.mubr.bf16.mxu0 %v8571_v14  ;;  %4434 = vmatprep.mubr.bf16.mxu1 %v8573_v17  ;;  %v8643_v14 = vld [vmem:[%s9409_s9 + $0x96c] ss:$100 sps:$4 sm:$0xff]  }
  0x58   : > { %7387 = vmatpush3.bf16.msra.mxu1 %v8618_v29  ;;  %v8647_v17 = vld [vmem:[%s9409_s9 + $0x968] ss:$100 sps:$4 sm:$0xff]   ;;  %v8664_v29 = vld [vmem:[%s9409_s9 + $0x4c0] ss:$100 sps:$4 sm:$0xff]  }
  0x59   : > { %7388 = vmatprep.subr.bf16.mxu1 %v8633_v35  ;;  %v8679_v35 = vld [vmem:[%s9409_s9 + $0x1c] ss:$100 sps:$4 sm:$0xff]  }
  0x5c   : > { %7389 = vmatpush3.bf16.msra.mxu1 %v8634_v36  ;;  %v8677_v36 = vld [vmem:[%s9409_s9 + $0x18] ss:$100 sps:$4 sm:$0xff]  }
  0x5d   : > { %7390 = vmatprep.subr.bf16.mxu1 %v8649_v43  ;;  %v8713_v43 = vld [vmem:[%s11594_s1 + $0x2d0] sm:$0xff]  }
  0x5e   : > { %4306 = vmatmul.mubr.bf16.gmra.mrb[28].mxu0 %v8575_v20  ;;  %4435 = vmatmul.mubr.bf16.gmra.mrb[28].mxu1 %v8576_v21  ;;  %v8655_v20 = vld [vmem:[%s9409_s9 + $0x3fc] ss:$100 sps:$4 sm:$0xff]  }
  0x5f   : > { %4313 = vmatprep.mubr.bf16.mxu0 %v8577_v22  ;;  %4442 = vmatprep.mubr.bf16.mxu1 %v8579_v23  ;;  %v8731_v21 = vld [vmem:[%s11594_s1 + $0x278] sm:$0xff]   ;;  %v8657_v23 = vld [vmem:[%s9409_s9 + $0xa30] ss:$100 sps:$4 sm:$0xff]  }
  0x60   : > { %7391 = vmatpush3.bf16.msra.mxu1 %v8650_v44  ;;  %v8732_v22 = vld [vmem:[%s11594_s1 + $0x238] sm:$0xff]  }
  0x61   : > { %7392 = vmatprep.subr.bf16.mxu1 %v8665_v49  ;;  %v8689_v44 = vld [vmem:[%s9409_s9 + $0x718] ss:$100 sps:$4 sm:$0xff]  }
  0x62   : > { %v8729_v49 = vld [vmem:[%s11594_s1 + $0x2d8] sm:$0xff]  }
  0x64   : > { %7393 = vmatpush3.bf16.msra.mxu1 %v8666_v50  ;;  %v8695_v50 = vld [vmem:[%s9409_s9 + $0x7e0] ss:$100 sps:$4 sm:$0xff]  }
  0x65   : > { %7602 = vmatprep.subr.bf16.mxu1 %v8681_v57  ;;  %v8761_v57 = vld [vmem:[%s11594_s1 + $0x2e8] sm:$0xff]  }
  0x66   : > { %4314 = vmatmul.mubr.bf16.gmra.mrb[32].mxu0 %v8581_v27  ;;  %4443 = vmatmul.mubr.bf16.gmra.mrb[32].mxu1 %v8582_v28  ;;  %v8747_v27 = vld [vmem:[%s11594_s1 + $0x340] sm:$0xff]   ;;  %v8663_v28 = vld [vmem:[%s9409_s9 + $0xaf8] ss:$100 sps:$4 sm:$0xff]  }
  0x67   : > { %4321 = vmatprep.mubr.bf16.mxu0 %v8587_v31  ;;  %4450 = vmatprep.mubr.bf16.mxu1 %v8589_v32  ;;  %v8671_v31 = vld [vmem:[%s9409_s9 + $0x58c] ss:$100 sps:$4 sm:$0xff]   ;;  %v8673_v32 = vld [vmem:[%s9409_s9 + $0xbc0] ss:$100 sps:$4 sm:$0xff]  }
  0x6e   : > { %4322 = vmatmul.mubr.bf16.gmra.mrb[36].mxu0 %v8591_v33  ;;  %4451 = vmatmul.mubr.bf16.gmra.mrb[36].mxu1 %v8592_v34  ;;  %v8674_v33 = vld [vmem:[%s9409_s9 + $0x588] ss:$100 sps:$4 sm:$0xff]   ;;  %v8675_v34 = vld [vmem:[%s9409_s9 + $0x654] ss:$100 sps:$4 sm:$0xff]  }
  0x6f   : > { %4329 = vmatprep.mubr.bf16.mxu0 %v8595_v37  ;;  %4458 = vmatprep.mubr.bf16.mxu1 %v8597_v38  ;;  %v8680_v37 = vld [vmem:[%s9409_s9 + $0x650] ss:$100 sps:$4 sm:$0xff]   ;;  %v8682_v38 = vld [vmem:[%s11594_s1 + $0x280] sm:$0xff]  }
  0x76   : > { %4330 = vmatmul.mubr.bf16.gmra.mrb[40].mxu0 %v8599_v39  ;;  %4459 = vmatmul.mubr.bf16.gmra.mrb[40].mxu1 %v8600_v40  ;;  %v8685_v39 = vld [vmem:[%s9409_s9 + $0x71c] ss:$100 sps:$4 sm:$0xff]   ;;  %v8687_v40 = vld [vmem:[%s9409_s9 + $0xe4] ss:$100 sps:$4 sm:$0xff]  }
  0x77   : > { %4337 = vmatprep.mubr.bf16.mxu0 %v8603_v41  ;;  %4466 = vmatprep.mubr.bf16.mxu1 %v8605_v42  ;;  %v8697_v41 = vld [vmem:[%s11594_s1 + $0x2c8] sm:$0xff]  }
  0x78   : > { %v8698_v42 = vld [vmem:[%s11594_s1 + $0x288] sm:$0xff]  }
  0x7e   : > { %4338 = vmatmul.mubr.bf16.gmra.mrb[44].mxu0 %v8607_v45  ;;  %4467 = vmatmul.mubr.bf16.gmra.mrb[44].mxu1 %v8608_v46  ;;  %v8690_v45 = vld [vmem:[%s9409_s9 + $0xe0] ss:$100 sps:$4 sm:$0xff]  }
  0x7f   : > { %4474 = vmatprep.mubr.bf16.mxu1 %v8611_v47  ;;  %4571 = vmatprep.mubr.bf16.mxu0 %v8615_v48  ;;  %v8691_v46 = vld [vmem:[%s9409_s9 + $0x7e4] ss:$100 sps:$4 sm:$0xff]   ;;  %v8693_v47 = vld [vmem:[%s9409_s9 + $0x1ac] ss:$100 sps:$4 sm:$0xff]  }
  0x80   : > { %v8714_v48 = vld [vmem:[%s11594_s1 + $0x290] sm:$0xff]  }
  0x86   : > { %4475 = vmatmul.mubr.bf16.gmra.mrb[48].mxu1 %v8616_v52  ;;  %4572 = vmatmul.mubr.bf16.vlgmr.msra.gmra.mrb[48].mxu0 %v8613_v51  ;;  %v8696_v51 = vld [vmem:[%s9409_s9 + $0x1a8] ss:$100 sps:$4 sm:$0xff]   ;;  %v8730_v52 = vld [vmem:[%s11594_s1 + $0x298] sm:$0xff]  }
  0x87   : > { %7491 = vmatpush3.bf16.msra.mxu0 %v8620_v53  ;;  %4482 = vmatprep.mubr.bf16.mxu1 %v8621_v54  ;;  %v8745_v53 = vld [vmem:[%s11594_s1 + $0x2e0] sm:$0xff]   ;;  %v8701_v54 = vld [vmem:[%s9409_s9 + $0x8ac] ss:$100 sps:$4 sm:$0xff]  }
  0x88   : > { %4579 = vmatprep.mubr.bf16.mxu0 %v8623_v55  ;;  %7492 = vmatprep.subr.bf16.mxu0 %v8635_v56  ;;  %v8703_v55 = vld [vmem:[%s9409_s9 + $0x274] ss:$100 sps:$4 sm:$0xff]   ;;  %v8746_v56 = vld [vmem:[%s11594_s1 + $0x2a0] sm:$0xff]  }
  0x8b   : > { %7493 = vmatpush3.bf16.msra.mxu0 %v8636_v58  ;;  %v8705_v58 = vld [vmem:[%s9409_s9 + $0x8a8] ss:$100 sps:$4 sm:$0xff]  }
  0x8c   : > { %7494 = vmatprep.subr.bf16.mxu0 %v8651_v59  ;;  %v8706_v59 = vld [vmem:[%s9409_s9 + $0x270] ss:$100 sps:$4 sm:$0xff]  }
  0x8e   : > { %4483 = vmatmul.mubr.bf16.gmra.mrb[52].mxu1 %v8625_v60  ;;  %4580 = vmatmul.mubr.bf16.gmra.mrb[52].mxu0 %v8626_v61  ;;  %v8762_v60 = vld [vmem:[%s11594_s1 + $0x2a8] sm:$0xff]   ;;  %v8707_v61 = vld [vmem:[%s9409_s9 + $0x974] ss:$100 sps:$4 sm:$0xff]  }
  0x8f   : > { %4490 = vmatprep.mubr.bf16.mxu1 %v8627_v62  ;;  %4587 = vmatprep.mubr.bf16.mxu0 %v8629_v63  ;;  %v8777_v62 = vld [vmem:[%s11594_s1 + $0x2f0] sm:$0xff]   ;;  %v8709_v63 = vld [vmem:[%s9409_s9 + $0x33c] ss:$100 sps:$4 sm:$0xff]  }
  0x90   : > { %7495 = vmatpush3.bf16.msra.mxu0 %v8652_v0  ;;  %v8778_v0 = vld [vmem:[%s11594_s1 + $0x2b0] sm:$0xff]  }
  0x91   : > { %7496 = vmatprep.subr.bf16.mxu0 %v8667_v1  ;;  %v8793_v1 = vld [vmem:[%s11594_s1 + $0x2f8] sm:$0xff]  }
  0x94   : > { %7497 = vmatpush3.bf16.msra.mxu0 %v8668_v3  ;;  %v8809_v3 = vld [vmem:[%s11594_s1 + $0x3c0] sm:$0xff]  }
  0x95   : > { %7498 = vmatprep.subr.bf16.mxu0 %v8683_v4  ;;  %v8711_v4 = vld [vmem:[%s9409_s9 + $0x970] ss:$100 sps:$4 sm:$0xff]  }
  0x96   : > { %4491 = vmatmul.mubr.bf16.gmra.mrb[56].mxu1 %v8631_v2  ;;  %4588 = vmatmul.mubr.bf16.gmra.mrb[56].mxu0 %v8632_v5  ;;  %v8794_v2 = vld [vmem:[%s11594_s1 + $0x2b8] sm:$0xff]  }
  0x97   : > { %4498 = vmatprep.mubr.bf16.mxu1 %v8637_v6  ;;  %4595 = vmatprep.mubr.bf16.mxu0 %v8639_v7  ;;  %v8712_v5 = vld [vmem:[%s9409_s9 + $0x338] ss:$100 sps:$4 sm:$0xff]   ;;  %v8719_v7 = vld [vmem:[%s9409_s9 + $0x404] ss:$100 sps:$4 sm:$0xff]  }
  0x98   : > { %7499 = vmatpush3.bf16.msra.mxu0 %v8684_v8  ;;  %v8717_v6 = vld [vmem:[%s9409_s9 + $0xa3c] ss:$100 sps:$4 sm:$0xff]  }
  0x99   : > { %7500 = vmatprep.subr.bf16.mxu0 %v8699_v9  ;;  %v8721_v8 = vld [vmem:[%s9409_s9 + $0xa38] ss:$100 sps:$4 sm:$0xff]   ;;  %v8722_v9 = vld [vmem:[%s9409_s9 + $0x400] ss:$100 sps:$4 sm:$0xff]  }
  0x9c   : > { %7501 = vmatpush3.bf16.msra.mxu0 %v8700_v12  ;;  %v8727_v12 = vld [vmem:[%s9409_s9 + $0xb00] ss:$100 sps:$4 sm:$0xff]  }
  0x9d   : > { %7502 = vmatprep.subr.bf16.mxu0 %v8715_v13  ;;  %v8728_v13 = vld [vmem:[%s9409_s9 + $0x4c8] ss:$100 sps:$4 sm:$0xff]  }
  0x9e   : > { %4499 = vmatmul.mubr.bf16.gmra.mrb[60].mxu1 %v8641_v10  ;;  %4596 = vmatmul.mubr.bf16.gmra.mrb[60].mxu0 %v8642_v11  ;;  %v8723_v10 = vld [vmem:[%s9409_s9 + $0xb04] ss:$100 sps:$4 sm:$0xff]   ;;  %v8725_v11 = vld [vmem:[%s9409_s9 + $0x4cc] ss:$100 sps:$4 sm:$0xff]  }
  0x9f   : > { %4506 = vmatprep.mubr.bf16.mxu1 %v8643_v14  ;;  %4603 = vmatprep.mubr.bf16.mxu0 %v8645_v15  ;;  %v8733_v14 = vld [vmem:[%s9409_s9 + $0xbcc] ss:$100 sps:$4 sm:$0xff]   ;;  %v8735_v15 = vld [vmem:[%s9409_s9 + $0x594] ss:$100 sps:$4 sm:$0xff]  }
  0xa0   : > { %7503 = vmatpush3.bf16.msra.mxu0 %v8716_v16  ;;  %v8737_v16 = vld [vmem:[%s9409_s9 + $0xbc8] ss:$100 sps:$4 sm:$0xff]  }
  0xa1   : > { %7504 = vmatprep.subr.bf16.mxu0 %v8731_v21 }
  0xa4   : > { %7505 = vmatpush3.bf16.msra.mxu0 %v8732_v22 }
  0xa5   : > { %7714 = vmatprep.subr.bf16.mxu0 %v8747_v27  ;;  %v8743_v27 = vld [vmem:[%s9409_s9 + $0x24] ss:$100 sps:$4 sm:$0xff]  }
  0xa6   : > { %4507 = vmatmul.mubr.bf16.gmra.mrb[64].mxu1 %v8647_v17  ;;  %4604 = vmatmul.mubr.bf16.gmra.mrb[64].mxu0 %v8648_v18  ;;  %v8738_v17 = vld [vmem:[%s9409_s9 + $0x590] ss:$100 sps:$4 sm:$0xff]  }
  0xa7   : > { %4514 = vmatprep.mubr.bf16.mxu1 %v8653_v19  ;;  %4611 = vmatprep.mubr.bf16.mxu0 %v8655_v20 }
  0xae   : > { %4515 = vmatmul.mubr.bf16.gmra.mrb[68].mxu1 %v8657_v23  ;;  %4612 = vmatmul.mubr.bf16.gmra.mrb[68].mxu0 %v8658_v24 }
  0xaf   : > { %4522 = vmatprep.mubr.bf16.mxu1 %v8659_v25  ;;  %4619 = vmatprep.mubr.bf16.mxu0 %v8661_v26  ;;  %v8739_v26 = vld [vmem:[%s9409_s9 + $0x65c] ss:$100 sps:$4 sm:$0xff]  }
  0xb6   : > { %4523 = vmatmul.mubr.bf16.gmra.mrb[72].mxu1 %v8663_v28  ;;  %4620 = vmatmul.mubr.bf16.gmra.mrb[72].mxu0 %v8664_v29 }
  0xb7   : > { %4530 = vmatprep.mubr.bf16.mxu1 %v8669_v30  ;;  %4627 = vmatprep.mubr.bf16.mxu0 %v8671_v31 }
  0xbe   : > { %4531 = vmatmul.mubr.bf16.gmra.mrb[76].mxu1 %v8673_v32  ;;  %4628 = vmatmul.mubr.bf16.gmra.mrb[76].mxu0 %v8674_v33  ;;  %v8741_v32 = vld [vmem:[%s9409_s9 + $0x20] ss:$100 sps:$4 sm:$0xff]   ;;  %v8744_v33 = vld [vmem:[%s9409_s9 + $0x658] ss:$100 sps:$4 sm:$0xff]  }
  0xbf   : > { %4635 = vmatprep.mubr.bf16.mxu0 %v8675_v34  ;;  %4732 = vmatprep.mubr.bf16.mxu1 %v8679_v35 }
  0xc6   : > { %4636 = vmatmul.mubr.bf16.gmra.mrb[80].mxu0 %v8680_v37  ;;  %4733 = vmatmul.mubr.bf16.vlgmr.msra.gmra.mrb[80].mxu1 %v8677_v36 }
  0xc7   : > { %7603 = vmatpush3.bf16.msra.mxu1 %v8682_v38  ;;  %4643 = vmatprep.mubr.bf16.mxu0 %v8685_v39 }
  0xc8   : > { %4740 = vmatprep.mubr.bf16.mxu1 %v8687_v40  ;;  %7604 = vmatprep.subr.bf16.mxu1 %v8697_v41 }
  0xcb   : > { %7605 = vmatpush3.bf16.msra.mxu1 %v8698_v42  ;;  %v8748_v42 = vld [vmem:[%s11594_s1 + $0x300] sm:$0xff]  }
  0xcc   : > { %7606 = vmatprep.subr.bf16.mxu1 %v8713_v43  ;;  %v8749_v43 = vld [vmem:[%s9409_s9 + $0x724] ss:$100 sps:$4 sm:$0xff]  }
  0xce   : > { %4644 = vmatmul.mubr.bf16.gmra.mrb[84].mxu0 %v8689_v44  ;;  %4741 = vmatmul.mubr.bf16.gmra.mrb[84].mxu1 %v8690_v45 }
  0xcf   : > { %4651 = vmatprep.mubr.bf16.mxu0 %v8691_v46  ;;  %4748 = vmatprep.mubr.bf16.mxu1 %v8693_v47  ;;  %v8751_v46 = vld [vmem:[%s9409_s9 + $0xec] ss:$100 sps:$4 sm:$0xff]  }
  0xd0   : > { %7607 = vmatpush3.bf16.msra.mxu1 %v8714_v48  ;;  %v8763_v47 = vld [vmem:[%s11594_s1 + $0x348] sm:$0xff]  }
  0xd1   : > { %7608 = vmatprep.subr.bf16.mxu1 %v8729_v49 }
  0xd4   : > { %7609 = vmatpush3.bf16.msra.mxu1 %v8730_v52  ;;  %v8753_v52 = vld [vmem:[%s9409_s9 + $0x720] ss:$100 sps:$4 sm:$0xff]  }
  0xd5   : > { %7610 = vmatprep.subr.bf16.mxu1 %v8745_v53  ;;  %v8754_v53 = vld [vmem:[%s9409_s9 + $0xe8] ss:$100 sps:$4 sm:$0xff]  }
  0xd6   : > { %4652 = vmatmul.mubr.bf16.gmra.mrb[88].mxu0 %v8695_v50  ;;  %4749 = vmatmul.mubr.bf16.gmra.mrb[88].mxu1 %v8696_v51  ;;  %v8764_v50 = vld [vmem:[%s11594_s1 + $0x308] sm:$0xff]   ;;  %v8779_v51 = vld [vmem:[%s11594_s1 + $0x350] sm:$0xff]  }
  0xd7   : > { %4659 = vmatprep.mubr.bf16.mxu0 %v8701_v54  ;;  %4756 = vmatprep.mubr.bf16.mxu1 %v8703_v55 }
  0xd8   : > { %7611 = vmatpush3.bf16.msra.mxu1 %v8746_v56 }
  0xd9   : > { %7612 = vmatprep.subr.bf16.mxu1 %v8761_v57 }
  0xdc   : > { %7613 = vmatpush3.bf16.msra.mxu1 %v8762_v60 }
  0xdd   : > { %7614 = vmatprep.subr.bf16.mxu1 %v8777_v62  ;;  %v8755_v62 = vld [vmem:[%s9409_s9 + $0x7ec] ss:$100 sps:$4 sm:$0xff]  }
  0xde   : > { %4660 = vmatmul.mubr.bf16.gmra.mrb[92].mxu0 %v8705_v58  ;;  %4757 = vmatmul.mubr.bf16.gmra.mrb[92].mxu1 %v8706_v59 }
  0xdf   : > { %4667 = vmatprep.mubr.bf16.mxu0 %v8707_v61  ;;  %4764 = vmatprep.mubr.bf16.mxu1 %v8709_v63  ;;  %v8757_v63 = vld [vmem:[%s9409_s9 + $0x1b4] ss:$100 sps:$4 sm:$0xff]  }
  0xe0   : > { %7615 = vmatpush3.bf16.msra.mxu1 %v8778_v0 }
  0xe1   : > { %7616 = vmatprep.subr.bf16.mxu1 %v8793_v1 }
  0xe4   : > { %7617 = vmatpush3.bf16.msra.mxu1 %v8794_v2  ;;  %v8780_v2 = vld [vmem:[%s11594_s1 + $0x310] sm:$0xff]  }
  0xe5   : > { %7826 = vmatprep.subr.bf16.mxu1 %v8809_v3 }
  0xe6   : > { %4668 = vmatmul.mubr.bf16.gmra.mrb[96].mxu0 %v8711_v4  ;;  %4765 = vmatmul.mubr.bf16.gmra.mrb[96].mxu1 %v8712_v5  ;;  %v8795_v5 = vld [vmem:[%s11594_s1 + $0x358] sm:$0xff]  }
  0xe7   : > { %4675 = vmatprep.mubr.bf16.mxu0 %v8717_v6  ;;  %4772 = vmatprep.mubr.bf16.mxu1 %v8719_v7  ;;  %v8796_v6 = vld [vmem:[%s11594_s1 + $0x318] sm:$0xff]   ;;  %v8811_v7 = vld [vmem:[%s11594_s1 + $0x360] sm:$0xff]  }
  0xee   : > { %4676 = vmatmul.mubr.bf16.gmra.mrb[100].mxu0 %v8721_v8  ;;  %4773 = vmatmul.mubr.bf16.gmra.mrb[100].mxu1 %v8722_v9  ;;  %v8759_v8 = vld [vmem:[%s9409_s9 + $0x7e8] ss:$100 sps:$4 sm:$0xff]   ;;  %v8760_v9 = vld [vmem:[%s9409_s9 + $0x1b0] ss:$100 sps:$4 sm:$0xff]  }
  0xef   : > { %4683 = vmatprep.mubr.bf16.mxu0 %v8723_v10  ;;  %4780 = vmatprep.mubr.bf16.mxu1 %v8725_v11 }
  0xf6   : > { %4684 = vmatmul.mubr.bf16.gmra.mrb[104].mxu0 %v8727_v12  ;;  %4781 = vmatmul.mubr.bf16.gmra.mrb[104].mxu1 %v8728_v13 }
  0xf7   : > { %4691 = vmatprep.mubr.bf16.mxu0 %v8733_v14  ;;  %4788 = vmatprep.mubr.bf16.mxu1 %v8735_v15 }
  0xf9   : > { %v7130_v18 = vpop.f32.mrb[0].mxu1  ;;  %v7058_v19 = vpop.f32.mrb[0].mxu0 }
  0xfa   : > { %v7131_v20 = vpop.f32.mrb[1].mxu1  ;;  %v7059_v21 = vpop.f32.mrb[1].mxu0 }
  0xfb   : > { %v9790_v22 = vadd.f32 %v7131_v20, %v7130_v18  ;;  %v7133_v23 = vpop.f32.mrb[2].mxu1  ;;  %v9792_v24 = vadd.f32 %v7059_v21, %v7058_v19  ;;  %v7061_v25 = vpop.f32.mrb[2].mxu0  ;;  %v8765_v18 = vld [vmem:[%s9409_s9 + $0x8b4] ss:$100 sps:$4 sm:$0xff]   ;;  %v8767_v19 = vld [vmem:[%s9409_s9 + $0x27c] ss:$100 sps:$4 sm:$0xff]  }
  0xfc   : > { %v7134_v28 = vpop.f32.mrb[3].mxu1  ;;  %v7062_v29 = vpop.f32.mrb[3].mxu0 }
  0xfd   : > { %v9796_v30 = vadd.f32 %v7134_v28, %v7133_v23  ;;  %v9798_v31 = vadd.f32 %v7062_v29, %v7061_v25  ;;  %v8812_v23 = vld [vmem:[%s11594_s1 + $0x320] sm:$0xff]   ;;  %v8827_v25 = vld [vmem:[%s11594_s1 + $0x368] sm:$0xff]   ;;  %v8843_v29 = vld [vmem:[%s11594_s1 + $0x370] sm:$0xff]  }
  0xfe   : > { %4692 = vmatmul.mubr.bf16.gmra.mrb[108].mxu0 %v8737_v16  ;;  %4789 = vmatmul.mubr.bf16.gmra.mrb[108].mxu1 %v8738_v17  ;;  %v8828_v28 = vld [vmem:[%s11594_s1 + $0x328] sm:$0xff]  }
  0xff   : > { %4796 = vmatprep.mubr.bf16.mxu1 %v8739_v26  ;;  %4893 = vmatprep.mubr.bf16.mxu0 %v8743_v27 }
 0x101   : > { %v7136_v34 = vpop.f32.mrb[4].mxu1  ;;  %v7064_v35 = vpop.f32.mrb[4].mxu0 }
 0x102   : > { %v7137_v36 = vpop.f32.mrb[5].mxu1  ;;  %v7065_v37 = vpop.f32.mrb[5].mxu0 }
 0x103   : > { %v9802_v38 = vadd.f32 %v7137_v36, %v7136_v34  ;;  %v7139_v39 = vpop.f32.mrb[6].mxu1  ;;  %v9804_v40 = vadd.f32 %v7065_v37, %v7064_v35  ;;  %v7067_v41 = vpop.f32.mrb[6].mxu0  ;;  %v8770_v34 = vld [vmem:[%s9409_s9 + $0x278] ss:$100 sps:$4 sm:$0xff]  }
 0x104   : > { %v7140_v44 = vpop.f32.mrb[7].mxu1  ;;  %v7068_v45 = vpop.f32.mrb[7].mxu0 }
 0x105   : > { %v9814_v48 = vadd.f32 %v7140_v44, %v7139_v39  ;;  %v9816_v49 = vadd.f32 %v7068_v45, %v7067_v41 }
 0x106   : > { %4797 = vmatmul.mubr.bf16.gmra.mrb[112].mxu1 %v8744_v33  ;;  %4894 = vmatmul.mubr.bf16.vlgmr.msra.gmra.mrb[112].mxu0 %v8741_v32  ;;  %v9875_v32 = vld [vmem:[%s11595_s2] ss:$0 sm:$0xff]  ;;  %v8769_v33 = vld [vmem:[%s9409_s9 + $0x8b0] ss:$100 sps:$4 sm:$0xff]  }
 0x107   : > { %7715 = vmatpush3.bf16.msra.mxu0 %v8748_v42  ;;  %4804 = vmatprep.mubr.bf16.mxu1 %v8749_v43  ;;  %v4252_v41 = vadd.f32 %v9792_v24, %v9875_v32 }
 0x108   : > { %4901 = vmatprep.mubr.bf16.mxu0 %v8751_v46  ;;  %7716 = vmatprep.subr.bf16.mxu0 %v8763_v47  ;;  %v8771_v46 = vld [vmem:[%s9409_s9 + $0x97c] ss:$100 sps:$4 sm:$0xff]   ;;  %v8773_v47 = vld [vmem:[%s9409_s9 + $0x344] ss:$100 sps:$4 sm:$0xff]  }
 0x109   : > { %v7142_v54 = vpop.f32.mrb[8].mxu1  ;;  %v7070_v55 = vpop.f32.mrb[8].mxu0 }
 0x10a   : > { %v7143_v56 = vpop.f32.mrb[9].mxu1  ;;  %v7071_v57 = vpop.f32.mrb[9].mxu0 }
 0x10b   : > { %v9826_v58 = vadd.f32 %v7143_v56, %v7142_v54  ;;  %v7145_v59 = vpop.f32.mrb[10].mxu1  ;;  %v9828_v60 = vadd.f32 %v7071_v57, %v7070_v55  ;;  %v7073_v61 = vpop.f32.mrb[10].mxu0  ;;  %7717 = vmatpush3.bf16.msra.mxu0 %v8764_v50  ;;  %v8859_v56 = vld [vmem:[%s11594_s1 + $0x378] sm:$0xff]  }
 0x10c   : > { %v7146_v0 = vpop.f32.mrb[11].mxu1  ;;  %v7074_v1 = vpop.f32.mrb[11].mxu0  ;;  %7718 = vmatprep.subr.bf16.mxu0 %v8779_v51  ;;  %v8860_v57 = vld [vmem:[%s11594_s1 + $0x338] sm:$0xff]  }
 0x10d   : > { %v9835_v3 = vadd.f32 %v7146_v0, %v7145_v59  ;;  %v9837_v4 = vadd.f32 %v7074_v1, %v7073_v61  ;;  %v8775_v61 = vld [vmem:[%s9409_s9 + $0x978] ss:$100 sps:$4 sm:$0xff]  }
 0x10e   : > { %4805 = vmatmul.mubr.bf16.gmra.mrb[116].mxu1 %v8753_v52  ;;  %4902 = vmatmul.mubr.bf16.gmra.mrb[116].mxu0 %v8754_v53  ;;  %v8844_v52 = vld [vmem:[%s11594_s1 + $0x330] sm:$0xff]   ;;  %v4255_v53 = vadd.f32 %v9798_v31, %v9875_v32  ;;  %v8875_v31 = vld [vmem:[%s11594_s1 + $0x440] sm:$0xff]  }
 0x10f   : > { %4812 = vmatprep.mubr.bf16.mxu1 %v8755_v62  ;;  %4909 = vmatprep.mubr.bf16.mxu0 %v8757_v63  ;;  %v8776_v62 = vld [vmem:[%s9409_s9 + $0x340] ss:$100 sps:$4 sm:$0xff]  }
 0x110   : > { %7719 = vmatpush3.bf16.msra.mxu0 %v8780_v2 }
 0x111   : > { %v7148_v10 = vpop.f32.mrb[12].mxu1  ;;  %v7076_v11 = vpop.f32.mrb[12].mxu0  ;;  %7720 = vmatprep.subr.bf16.mxu0 %v8795_v5  ;;  %v4260_v5 = vadd.f32 %v9804_v40, %v9875_v32 }
 0x112   : > { %v7149_v12 = vpop.f32.mrb[13].mxu1  ;;  %v7077_v13 = vpop.f32.mrb[13].mxu0 }
 0x113   : > { %v9850_v14 = vadd.f32 %v7149_v12, %v7148_v10  ;;  %v7151_v15 = vpop.f32.mrb[14].mxu1  ;;  %v9852_v16 = vadd.f32 %v7077_v13, %v7076_v11  ;;  %v7079_v17 = vpop.f32.mrb[14].mxu0  ;;  %v8781_v10 = vld [vmem:[%s9409_s9 + $0xa44] ss:$100 sps:$4 sm:$0xff]   ;;  %v8783_v11 = vld [vmem:[%s9409_s9 + $0x40c] ss:$100 sps:$4 sm:$0xff]  }
 0x114   : > { %v7152_v20 = vpop.f32.mrb[15].mxu1  ;;  %v7080_v21 = vpop.f32.mrb[15].mxu0  ;;  %7721 = vmatpush3.bf16.msra.mxu0 %v8796_v6 }
 0x115   : > { %v9862_v26 = vadd.f32 %v7152_v20, %v7151_v15  ;;  %v9864_v27 = vadd.f32 %v7080_v21, %v7079_v17  ;;  %7722 = vmatprep.subr.bf16.mxu0 %v8811_v7  ;;  %v4263_v15 = vadd.f32 %v9816_v49, %v9875_v32  ;;  %v8785_v20 = vld [vmem:[%s9409_s9 + $0xa40] ss:$100 sps:$4 sm:$0xff]   ;;  %v8786_v21 = vld [vmem:[%s9409_s9 + $0x408] ss:$100 sps:$4 sm:$0xff]  }
 0x116   : > { %4813 = vmatmul.mubr.bf16.gmra.mrb[120].mxu1 %v8759_v8  ;;  %4910 = vmatmul.mubr.bf16.gmra.mrb[120].mxu0 %v8760_v9 }
 0x117   : > { %4820 = vmatprep.mubr.bf16.mxu1 %v8765_v18  ;;  %4917 = vmatprep.mubr.bf16.mxu0 %v8767_v19 }
 0x118   : > { %7723 = vmatpush3.bf16.msra.mxu0 %v8812_v23 }
 0x119   : > { %v7170_v35 = vpop.f32.mrb[16].mxu1  ;;  %v7082_v36 = vpop.f32.mrb[16].mxu0  ;;  %7724 = vmatprep.subr.bf16.mxu0 %v8827_v25 }
 0x11a   : > { %v7171_v37 = vpop.f32.mrb[17].mxu1  ;;  %v7083_v39 = vpop.f32.mrb[17].mxu0 }
 0x11b   : > { %v7172_v42 = vadd.f32 %v7171_v37, %v7170_v35  ;;  %v7173_v43 = vpop.f32.mrb[18].mxu1  ;;  %v9881_v44 = vadd.f32 %v7083_v39, %v7082_v36  ;;  %v7085_v45 = vpop.f32.mrb[18].mxu0  ;;  %v8787_v37 = vld [vmem:[%s9409_s9 + $0xb0c] ss:$100 sps:$4 sm:$0xff]   ;;  %v8789_v39 = vld [vmem:[%s9409_s9 + $0x4d4] ss:$100 sps:$4 sm:$0xff]  }
 0x11c   : > { %v7174_v50 = vpop.f32.mrb[19].mxu1  ;;  %v7086_v51 = vpop.f32.mrb[19].mxu0  ;;  %7725 = vmatpush3.bf16.msra.mxu0 %v8828_v28 }
 0x11d   : > { %v9890_v24 = vadd.f32 %v7172_v42, %v4252_v41  ;;  %v7175_v54 = vadd.f32 %v7174_v50, %v7173_v43  ;;  %v9892_v55 = vadd.f32 %v7086_v51, %v7085_v45  ;;  %7726 = vmatprep.subr.bf16.mxu0 %v8843_v29  ;;  %v4268_v29 = vadd.f32 %v9828_v60, %v9875_v32  ;;  %v8791_v50 = vld [vmem:[%s9409_s9 + $0xb08] ss:$100 sps:$4 sm:$0xff]   ;;  %v8792_v51 = vld [vmem:[%s9409_s9 + $0x4d0] ss:$100 sps:$4 sm:$0xff]  }
 0x11e   : > { %4821 = vmatmul.mubr.bf16.gmra.mrb[124].mxu1 %v8769_v33  ;;  %4918 = vmatmul.mubr.bf16.gmra.mrb[124].mxu0 %v8770_v34  ;;  %v4271_v43 = vadd.f32 %v9837_v4, %v9875_v32  ;;  %v4276_v4 = vadd.f32 %v9852_v16, %v9875_v32 }
 0x11f   : > { %v9900_v59 = vadd.f32 %v7175_v54, %v4255_v53  ;;  %4828 = vmatprep.mubr.bf16.mxu1 %v8771_v46  ;;  %4925 = vmatprep.mubr.bf16.mxu0 %v8773_v47 }
 0x120   : > { %7727 = vmatpush3.bf16.msra.mxu0 %v8844_v52 }
 0x121   : > { %v7176_v63 = vpop.f32.mrb[20].mxu1  ;;  %v7088_v0 = vpop.f32.mrb[20].mxu0  ;;  %7728 = vmatprep.subr.bf16.mxu0 %v8859_v56 }
 0x122   : > { %v7177_v1 = vpop.f32.mrb[21].mxu1  ;;  %v7089_v2 = vpop.f32.mrb[21].mxu0 }
 0x123   : > { %v7178_v6 = vadd.f32 %v7177_v1, %v7176_v63  ;;  %v7179_v7 = vpop.f32.mrb[22].mxu1  ;;  %v9909_v8 = vadd.f32 %v7089_v2, %v7088_v0  ;;  %v7091_v9 = vpop.f32.mrb[22].mxu0  ;;  %v8797_v63 = vld [vmem:[%s9409_s9 + $0xbd4] ss:$100 sps:$4 sm:$0xff]   ;;  %v8799_v0 = vld [vmem:[%s9409_s9 + $0x59c] ss:$100 sps:$4 sm:$0xff]  }
 0x124   : > { %v7180_v12 = vpop.f32.mrb[23].mxu1  ;;  %v7092_v13 = vpop.f32.mrb[23].mxu0  ;;  %7729 = vmatpush3.bf16.msra.mxu0 %v8860_v57 }
 0x125   : > { %v9915_v17 = vadd.f32 %v7178_v6, %v4260_v5  ;;  %v7181_v18 = vadd.f32 %v7180_v12, %v7179_v7  ;;  %v9917_v19 = vadd.f32 %v7092_v13, %v7091_v9  ;;  %7938 = vmatprep.subr.bf16.mxu0 %v8875_v31  ;;  %v4279_v5 = vadd.f32 %v9864_v27, %v9875_v32 }
 0x126   : > { %4829 = vmatmul.mubr.bf16.gmra.mrb[128].mxu1 %v8775_v61  ;;  %4926 = vmatmul.mubr.bf16.gmra.mrb[128].mxu0 %v8776_v62  ;;  %v4284_v27 = vadd.f32 %v9881_v44, %v9875_v32 }
 0x127   : > { %v9919_v40 = vadd.f32 %v7181_v18, %v4263_v15  ;;  %4836 = vmatprep.mubr.bf16.mxu1 %v8781_v10  ;;  %4933 = vmatprep.mubr.bf16.mxu0 %v8783_v11  ;;  %v8801_v10 = vld [vmem:[%s9409_s9 + $0xbd0] ss:$100 sps:$4 sm:$0xff]   ;;  %v8802_v11 = vld [vmem:[%s9409_s9 + $0x598] ss:$100 sps:$4 sm:$0xff]  }
 0x129   : > { %v7182_v23 = vpop.f32.mrb[24].mxu1  ;;  %v7094_v25 = vpop.f32.mrb[24].mxu0 }
 0x12a   : > { %v7183_v28 = vpop.f32.mrb[25].mxu1  ;;  %v7095_v49 = vpop.f32.mrb[25].mxu0 }
 0x12b   : > { %v7184_v33 = vadd.f32 %v7183_v28, %v7182_v23  ;;  %v7185_v34 = vpop.f32.mrb[26].mxu1  ;;  %v9925_v35 = vadd.f32 %v7095_v49, %v7094_v25  ;;  %v7097_v36 = vpop.f32.mrb[26].mxu0  ;;  %v8803_v28 = vld [vmem:[%s9409_s9 + $0x664] ss:$100 sps:$4 sm:$0xff]   ;;  %v8807_v49 = vld [vmem:[%s9409_s9 + $0x2c] ss:$100 sps:$4 sm:$0xff]  }
 0x12c   : > { %v7186_v41 = vpop.f32.mrb[27].mxu1  ;;  %v7098_v42 = vpop.f32.mrb[27].mxu0 }
 0x12d   : > { %v9931_v45 = vadd.f32 %v7184_v33, %v4268_v29  ;;  %v7187_v46 = vadd.f32 %v7186_v41, %v7185_v34  ;;  %v9933_v47 = vadd.f32 %v7098_v42, %v7097_v36  ;;  %v4287_v34 = vadd.f32 %v9892_v55, %v9875_v32  ;;  %v8805_v41 = vld [vmem:[%s9409_s9 + $0x28] ss:$100 sps:$4 sm:$0xff]   ;;  %v8808_v42 = vld [vmem:[%s9409_s9 + $0x660] ss:$100 sps:$4 sm:$0xff]  }
 0x12e   : > { %4837 = vmatmul.mubr.bf16.gmra.mrb[132].mxu1 %v8785_v20  ;;  %4934 = vmatmul.mubr.bf16.gmra.mrb[132].mxu0 %v8786_v21  ;;  %v4292_v55 = vadd.f32 %v9909_v8, %v9875_v32  ;;  %v4295_v8 = vadd.f32 %v9917_v19, %v9875_v32  ;;  %v8841_v19 = vld [vmem:[%s11594_s1 + $0x3d0] sm:$0xff]  }
 0x12f   : > { %v9935_v60 = vadd.f32 %v7187_v46, %v4271_v43  ;;  %4844 = vmatprep.mubr.bf16.mxu1 %v8787_v37  ;;  %4941 = vmatprep.mubr.bf16.mxu0 %v8789_v39 }
 0x131   : > { %v7188_v52 = vpop.f32.mrb[28].mxu1  ;;  %v7100_v53 = vpop.f32.mrb[28].mxu0 }
 0x132   : > { %v7189_v54 = vpop.f32.mrb[29].mxu1  ;;  %v7101_v56 = vpop.f32.mrb[29].mxu0 }
 0x133   : > { %v7190_v57 = vadd.f32 %v7189_v54, %v7188_v52  ;;  %v7191_v31 = vpop.f32.mrb[30].mxu1  ;;  %v9941_v61 = vadd.f32 %v7101_v56, %v7100_v53  ;;  %v7103_v62 = vpop.f32.mrb[30].mxu0 }
 0x134   : > { %v7192_v1 = vpop.f32.mrb[31].mxu1  ;;  %v7104_v2 = vpop.f32.mrb[31].mxu0 }
 0x135   : > { %v9947_v6 = vadd.f32 %v7190_v57, %v4276_v4  ;;  %v7193_v7 = vadd.f32 %v7192_v1, %v7191_v31  ;;  %v9949_v9 = vadd.f32 %v7104_v2, %v7103_v62  ;;  %v8810_v4 = vld [vmem:[%s11594_s1 + $0x380] sm:$0xff]   ;;  %v8813_v57 = vld [vmem:[%s9409_s9 + $0x72c] ss:$100 sps:$4 sm:$0xff]  }
 0x136   : > { %4845 = vmatmul.mubr.bf16.gmra.mrb[136].mxu1 %v8791_v50  ;;  %4942 = vmatmul.mubr.bf16.gmra.mrb[136].mxu0 %v8792_v51 }
 0x137   : > { %v9951_v16 = vadd.f32 %v7193_v7, %v4279_v5  ;;  %4852 = vmatprep.mubr.bf16.mxu1 %v8797_v63  ;;  %4949 = vmatprep.mubr.bf16.mxu0 %v8799_v0  ;;  %v8815_v63 = vld [vmem:[%s9409_s9 + $0xf4] ss:$100 sps:$4 sm:$0xff]   ;;  %v8825_v0 = vld [vmem:[%s11594_s1 + $0x3c8] sm:$0xff]  }
 0x139   : > { %v7194_v12 = vpop.f32.mrb[32].mxu1  ;;  %v7106_v13 = vpop.f32.mrb[32].mxu0 }
 0x13a   : > { %v7195_v15 = vpop.f32.mrb[33].mxu1  ;;  %v7107_v18 = vpop.f32.mrb[33].mxu0 }
 0x13b   : > { %v7196_v20 = vadd.f32 %v7195_v15, %v7194_v12  ;;  %v7197_v21 = vpop.f32.mrb[34].mxu1  ;;  %v9957_v23 = vadd.f32 %v7107_v18, %v7106_v13  ;;  %v7109_v25 = vpop.f32.mrb[34].mxu0  ;;  %v8818_v12 = vld [vmem:[%s9409_s9 + $0xf0] ss:$100 sps:$4 sm:$0xff]  }
 0x13c   : > { %v7198_v29 = vpop.f32.mrb[35].mxu1  ;;  %v7110_v33 = vpop.f32.mrb[35].mxu0 }
 0x13d   : > { %v9963_v36 = vadd.f32 %v7196_v20, %v4284_v27  ;;  %v7199_v37 = vadd.f32 %v7198_v29, %v7197_v21  ;;  %v9965_v39 = vadd.f32 %v7110_v33, %v7109_v25  ;;  %v4300_v20 = vadd.f32 %v9925_v35, %v9875_v32  ;;  %v8819_v29 = vld [vmem:[%s9409_s9 + $0x7f4] ss:$100 sps:$4 sm:$0xff]   ;;  %v8821_v33 = vld [vmem:[%s9409_s9 + $0x1bc] ss:$100 sps:$4 sm:$0xff]  }
 0x13e   : > { %4853 = vmatmul.mubr.bf16.gmra.mrb[140].mxu1 %v8801_v10  ;;  %4950 = vmatmul.mubr.bf16.gmra.mrb[140].mxu0 %v8802_v11  ;;  %v8826_v10 = vld [vmem:[%s11594_s1 + $0x388] sm:$0xff]   ;;  %v4303_v35 = vadd.f32 %v9933_v47, %v9875_v32  ;;  %v8873_v47 = vld [vmem:[%s11594_s1 + $0x3e0] sm:$0xff]  }
 0x13f   : > { %v9967_v44 = vadd.f32 %v7199_v37, %v4287_v34  ;;  %4957 = vmatprep.mubr.bf16.mxu0 %v8803_v28  ;;  %5054 = vmatprep.mubr.bf16.mxu1 %v8807_v49  ;;  %v8817_v11 = vld [vmem:[%s9409_s9 + $0x728] ss:$100 sps:$4 sm:$0xff]  }
 0x141   : > { %v7200_v43 = vpop.f32.mrb[36].mxu1  ;;  %v7112_v46 = vpop.f32.mrb[36].mxu0 }
 0x142   : > { %v7201_v50 = vpop.f32.mrb[37].mxu1  ;;  %v7113_v51 = vpop.f32.mrb[37].mxu0 }
 0x143   : > { %v7202_v52 = vadd.f32 %v7201_v50, %v7200_v43  ;;  %v7203_v53 = vpop.f32.mrb[38].mxu1  ;;  %v9973_v54 = vadd.f32 %v7113_v51, %v7112_v46  ;;  %v7115_v56 = vpop.f32.mrb[38].mxu0  ;;  %v8857_v50 = vld [vmem:[%s11594_s1 + $0x3d8] sm:$0xff]  }
 0x144   : > { %v7204_v31 = vpop.f32.mrb[39].mxu1  ;;  %v7116_v62 = vpop.f32.mrb[39].mxu0  ;;  %v8858_v51 = vld [vmem:[%s11594_s1 + $0x398] sm:$0xff]  }
 0x145   : > { %v9985_v1 = vadd.f32 %v7202_v52, %v4292_v55  ;;  %v7205_v2 = vadd.f32 %v7204_v31, %v7203_v53  ;;  %v9987_v5 = vadd.f32 %v7116_v62, %v7115_v56  ;;  %v8823_v52 = vld [vmem:[%s9409_s9 + $0x7f0] ss:$100 sps:$4 sm:$0xff]   ;;  %v8824_v53 = vld [vmem:[%s9409_s9 + $0x1b8] ss:$100 sps:$4 sm:$0xff]   ;;  %v4308_v62 = vadd.f32 %v9941_v61, %v9875_v32  ;;  %v8889_v61 = vld [vmem:[%s11594_s1 + $0x3e8] sm:$0xff]  }
 0x146   : > { %4958 = vmatmul.mubr.bf16.gmra.mrb[144].mxu0 %v8808_v42  ;;  %5055 = vmatmul.mubr.bf16.vlgmr.msra.gmra.mrb[144].mxu1 %v8805_v41  ;;  %v8842_v41 = vld [vmem:[%s11594_s1 + $0x390] sm:$0xff]  }
 0x147   : > { %v9989_v7 = vadd.f32 %v7205_v2, %v4295_v8  ;;  %7827 = vmatpush3.bf16.msra.mxu1 %v8810_v4  ;;  %4965 = vmatprep.mubr.bf16.mxu0 %v8813_v57 }
 0x148   : > { %5062 = vmatprep.mubr.bf16.mxu1 %v8815_v63  ;;  %7828 = vmatprep.subr.bf16.mxu1 %v8825_v0 }
 0x149   : > { %v7206_v13 = vpop.f32.mrb[40].mxu1  ;;  %v7118_v15 = vpop.f32.mrb[40].mxu0 }
 0x14a   : > { %v7207_v18 = vpop.f32.mrb[41].mxu1  ;;  %v7119_v27 = vpop.f32.mrb[41].mxu0 }
 0x14b   : > { %v7208_v21 = vadd.f32 %v7207_v18, %v7206_v13  ;;  %v7209_v25 = vpop.f32.mrb[42].mxu1  ;;  %v10001_v28 = vadd.f32 %v7119_v27, %v7118_v15  ;;  %v7121_v49 = vpop.f32.mrb[42].mxu0  ;;  %7829 = vmatpush3.bf16.msra.mxu1 %v8826_v10  ;;  %v8829_v10 = vld [vmem:[%s9409_s9 + $0x8bc] ss:$100 sps:$4 sm:$0xff]   ;;  %v4311_v15 = vadd.f32 %v9949_v9, %v9875_v32  ;;  %v8905_v9 = vld [vmem:[%s11594_s1 + $0x3f0] sm:$0xff]  }
 0x14c   : > { %v7210_v34 = vpop.f32.mrb[43].mxu1  ;;  %v7122_v37 = vpop.f32.mrb[43].mxu0  ;;  %7830 = vmatprep.subr.bf16.mxu1 %v8841_v19  ;;  %v8831_v19 = vld [vmem:[%s9409_s9 + $0x284] ss:$100 sps:$4 sm:$0xff]  }
 0x14d   : > { %v10010_v42 = vadd.f32 %v7208_v21, %v4300_v20  ;;  %v7211_v43 = vadd.f32 %v7210_v34, %v7209_v25  ;;  %v10012_v46 = vadd.f32 %v7122_v37, %v7121_v49  ;;  %v8874_v13 = vld [vmem:[%s11594_s1 + $0x3a0] sm:$0xff]   ;;  %v8890_v25 = vld [vmem:[%s11594_s1 + $0x3a8] sm:$0xff]   ;;  %v8833_v49 = vld [vmem:[%s9409_s9 + $0x8b8] ss:$100 sps:$4 sm:$0xff]  }
 0x14e   : > { %4966 = vmatmul.mubr.bf16.gmra.mrb[148].mxu0 %v8817_v11  ;;  %5063 = vmatmul.mubr.bf16.gmra.mrb[148].mxu1 %v8818_v12 }
 0x14f   : > { %v10020_v55 = vadd.f32 %v7211_v43, %v4303_v35  ;;  %4973 = vmatprep.mubr.bf16.mxu0 %v8819_v29  ;;  %5070 = vmatprep.mubr.bf16.mxu1 %v8821_v33  ;;  %v8834_v29 = vld [vmem:[%s9409_s9 + $0x280] ss:$100 sps:$4 sm:$0xff]   ;;  %v4316_v35 = vadd.f32 %v9957_v23, %v9875_v32 }
 0x150   : > { %7831 = vmatpush3.bf16.msra.mxu1 %v8842_v41 }
 0x151   : > { %v7212_v56 = vpop.f32.mrb[44].mxu1  ;;  %v7124_v4 = vpop.f32.mrb[44].mxu0  ;;  %7832 = vmatprep.subr.bf16.mxu1 %v8857_v50 }
 0x152   : > { %v7213_v57 = vpop.f32.mrb[45].mxu1  ;;  %v7125_v31 = vpop.f32.mrb[45].mxu0 }
 0x153   : > { %v7214_v63 = vadd.f32 %v7213_v57, %v7212_v56  ;;  %v7215_v0 = vpop.f32.mrb[46].mxu1  ;;  %v10029_v8 = vadd.f32 %v7125_v31, %v7124_v4  ;;  %v7127_v2 = vpop.f32.mrb[46].mxu0  ;;  %v4319_v56 = vadd.f32 %v9965_v39, %v9875_v32  ;;  %v8906_v31 = vld [vmem:[%s11594_s1 + $0x3b0] sm:$0xff]   ;;  %v8921_v39 = vld [vmem:[%s11594_s1 + $0x3f8] sm:$0xff]  }
 0x154   : > { %v7216_v11 = vpop.f32.mrb[47].mxu1  ;;  %v7128_v12 = vpop.f32.mrb[47].mxu0  ;;  %7833 = vmatpush3.bf16.msra.mxu1 %v8858_v51 }
 0x155   : > { %v10041_v18 = vadd.f32 %v7214_v63, %v4308_v62  ;;  %v7217_v27 = vadd.f32 %v7216_v11, %v7215_v0  ;;  %v10043_v20 = vadd.f32 %v7128_v12, %v7127_v2  ;;  %7834 = vmatprep.subr.bf16.mxu1 %v8873_v47  ;;  %v8922_v2 = vld [vmem:[%s11594_s1 + $0x3b8] sm:$0xff]   ;;  %v8839_v11 = vld [vmem:[%s9409_s9 + $0x980] ss:$100 sps:$4 sm:$0xff]   ;;  %v8840_v12 = vld [vmem:[%s9409_s9 + $0x348] ss:$100 sps:$4 sm:$0xff]  }
 0x156   : > { %4974 = vmatmul.mubr.bf16.gmra.mrb[152].mxu0 %v8823_v52  ;;  %5071 = vmatmul.mubr.bf16.gmra.mrb[152].mxu1 %v8824_v53  ;;  %v8835_v52 = vld [vmem:[%s9409_s9 + $0x984] ss:$100 sps:$4 sm:$0xff]   ;;  %v8837_v53 = vld [vmem:[%s9409_s9 + $0x34c] ss:$100 sps:$4 sm:$0xff]  }
 0x157   : > { %v10045_v21 = vadd.f32 %v7217_v27, %v4311_v15  ;;  %4981 = vmatprep.mubr.bf16.mxu0 %v8829_v10  ;;  %5078 = vmatprep.mubr.bf16.mxu1 %v8831_v19 }
 0x158   : > { %7835 = vmatpush3.bf16.msra.mxu1 %v8874_v13 }
 0x159   : > { %v7218_v33 = vpop.f32.mrb[48].mxu1  ;;  %v7282_v34 = vpop.f32.mrb[48].mxu0  ;;  %7836 = vmatprep.subr.bf16.mxu1 %v8889_v61 }
 0x15a   : > { %v7219_v37 = vpop.f32.mrb[49].mxu1  ;;  %v7283_v41 = vpop.f32.mrb[49].mxu0 }
 0x15b   : > { %v7220_v43 = vadd.f32 %v7219_v37, %v7218_v33  ;;  %v7284_v50 = vadd.f32 %v7283_v41, %v7282_v34  ;;  %v7221_v51 = vpop.f32.mrb[50].mxu1  ;;  %v7285_v47 = vpop.f32.mrb[50].mxu0  ;;  %v8845_v33 = vld [vmem:[%s9409_s9 + $0xa4c] ss:$100 sps:$4 sm:$0xff]   ;;  %v8847_v34 = vld [vmem:[%s9409_s9 + $0x414] ss:$100 sps:$4 sm:$0xff]   ;;  %v4327_v37 = vadd.f32 %v9987_v5, %v9875_v32 }
 0x15c   : > { %v7222_v4 = vpop.f32.mrb[51].mxu1  ;;  %v7286_v57 = vpop.f32.mrb[51].mxu0  ;;  %7837 = vmatpush3.bf16.msra.mxu1 %v8890_v25 }
 0x15d   : > { %v10064_v62 = vadd.f32 %v7220_v43, %v4316_v35  ;;  %v10067_v23 = vadd.f32 %v7284_v50, %v9890_v24  ;;  %v7223_v63 = vadd.f32 %v7222_v4, %v7221_v51  ;;  %v7287_v0 = vadd.f32 %v7286_v57, %v7285_v47  ;;  %7838 = vmatprep.subr.bf16.mxu1 %v8905_v9  ;;  %v8937_v24 = vld [vmem:[%s11594_s1 + $0x4c0] sm:$0xff]  }
 0x15e   : > { %4982 = vmatmul.mubr.bf16.gmra.mrb[156].mxu0 %v8833_v49  ;;  %5079 = vmatmul.mubr.bf16.gmra.mrb[156].mxu1 %v8834_v29 }
 0x15f   : > { %v10075_v10 = vadd.f32 %v7223_v63, %v4319_v56  ;;  %v10078_v19 = vadd.f32 %v7287_v0, %v9900_v59  ;;  %4989 = vmatprep.mubr.bf16.mxu0 %v8835_v52  ;;  %5086 = vmatprep.mubr.bf16.mxu1 %v8837_v53  ;;  %v4324_v59 = vadd.f32 %v9973_v54, %v9875_v32  ;;  %v8849_v52 = vld [vmem:[%s9409_s9 + $0xa48] ss:$100 sps:$4 sm:$0xff]   ;;  %v8850_v53 = vld [vmem:[%s9409_s9 + $0x410] ss:$100 sps:$4 sm:$0xff]  }
 0x160   : > { %7839 = vmatpush3.bf16.msra.mxu1 %v8906_v31  ;;  %v4332_v31 = vadd.f32 %v10001_v28, %v9875_v32 }
 0x161   : > { %v7224_v13 = vpop.f32.mrb[52].mxu1  ;;  %v7288_v61 = vpop.f32.mrb[52].mxu0  ;;  %7840 = vmatprep.subr.bf16.mxu1 %v8921_v39 }
 0x162   : > { %v7225_v15 = vpop.f32.mrb[53].mxu1  ;;  %v7289_v27 = vpop.f32.mrb[53].mxu0 }
 0x163   : > { %v7226_v25 = vadd.f32 %v7225_v15, %v7224_v13  ;;  %v7290_v9 = vadd.f32 %v7289_v27, %v7288_v61  ;;  %v7227_v49 = vpop.f32.mrb[54].mxu1  ;;  %v7291_v29 = vpop.f32.mrb[54].mxu0 }
 0x164   : > { %v7228_v41 = vpop.f32.mrb[55].mxu1  ;;  %v7292_v35 = vpop.f32.mrb[55].mxu0  ;;  %7841 = vmatpush3.bf16.msra.mxu1 %v8922_v2 }
 0x165   : > { %v10091_v43 = vadd.f32 %v7226_v25, %v4324_v59  ;;  %v10094_v50 = vadd.f32 %v7290_v9, %v9915_v17  ;;  %v7229_v54 = vadd.f32 %v7228_v41, %v7227_v49  ;;  %v7293_v51 = vadd.f32 %v7292_v35, %v7291_v29  ;;  %8050 = vmatprep.subr.bf16.mxu1 %v8937_v24  ;;  %v8851_v24 = vld [vmem:[%s9409_s9 + $0xb14] ss:$100 sps:$4 sm:$0xff]  }
 0x166   : > { %4990 = vmatmul.mubr.bf16.gmra.mrb[160].mxu0 %v8839_v11  ;;  %5087 = vmatmul.mubr.bf16.gmra.mrb[160].mxu1 %v8840_v12  ;;  %v4335_v11 = vadd.f32 %v10012_v46, %v9875_v32  ;;  %v8855_v46 = vld [vmem:[%s9409_s9 + $0xb10] ss:$100 sps:$4 sm:$0xff]   ;;  %v8856_v9 = vld [vmem:[%s9409_s9 + $0x4d8] ss:$100 sps:$4 sm:$0xff]  }
 0x167   : > { %v10096_v47 = vadd.f32 %v7229_v54, %v4327_v37  ;;  %v10099_v5 = vadd.f32 %v7293_v51, %v9919_v40  ;;  %4997 = vmatprep.mubr.bf16.mxu0 %v8845_v33  ;;  %5094 = vmatprep.mubr.bf16.mxu1 %v8847_v34  ;;  %v8853_v40 = vld [vmem:[%s9409_s9 + $0x4dc] ss:$100 sps:$4 sm:$0xff]   ;;  %v4340_v34 = vadd.f32 %v10029_v8, %v9875_v32 }
 0x168   : > { %v8861_v51 = vld [vmem:[%s9409_s9 + $0xbdc] ss:$100 sps:$4 sm:$0xff]  }
 0x169   : > { %v7230_v56 = vpop.f32.mrb[56].mxu1  ;;  %v7294_v4 = vpop.f32.mrb[56].mxu0 }
 0x16a   : > { %v7231_v17 = vpop.f32.mrb[57].mxu1  ;;  %v7295_v57 = vpop.f32.mrb[57].mxu0 }
 0x16b   : > { %v7232_v63 = vadd.f32 %v7231_v17, %v7230_v56  ;;  %v7296_v0 = vadd.f32 %v7295_v57, %v7294_v4  ;;  %v7233_v39 = vpop.f32.mrb[58].mxu1  ;;  %v7297_v2 = vpop.f32.mrb[58].mxu0 }
 0x16c   : > { %v7234_v12 = vpop.f32.mrb[59].mxu1  ;;  %v7298_v13 = vpop.f32.mrb[59].mxu0 }
 0x16d   : > { %v10109_v61 = vadd.f32 %v7232_v63, %v4332_v31  ;;  %v10112_v15 = vadd.f32 %v7296_v0, %v9931_v45  ;;  %v7235_v27 = vadd.f32 %v7234_v12, %v7233_v39  ;;  %v7299_v28 = vadd.f32 %v7298_v13, %v7297_v2  ;;  %v8866_v0 = vld [vmem:[%s9409_s9 + $0x5a0] ss:$100 sps:$4 sm:$0xff]  }
 0x16e   : > { %4998 = vmatmul.mubr.bf16.gmra.mrb[164].mxu0 %v8849_v52  ;;  %5095 = vmatmul.mubr.bf16.gmra.mrb[164].mxu1 %v8850_v53  ;;  %v8863_v52 = vld [vmem:[%s9409_s9 + $0x5a4] ss:$100 sps:$4 sm:$0xff]  }
 0x16f   : > { %v10114_v59 = vadd.f32 %v7235_v27, %v4335_v11  ;;  %v10117_v25 = vadd.f32 %v7299_v28, %v9935_v60  ;;  %5005 = vmatprep.mubr.bf16.mxu0 %v8851_v24  ;;  %5102 = vmatprep.mubr.bf16.mxu1 %v8853_v40  ;;  %v10128_v60 = vld [vmem:[%s11595_s2] ss:$0 sm:$0xff]  ;;  %v8867_v28 = vld [vmem:[%s9409_s9 + $0x66c] ss:$100 sps:$4 sm:$0xff]  }
 0x170   : > { %v4343_v53 = vadd.f32 %v10128_v60, %v10043_v20  ;;  %v8865_v20 = vld [vmem:[%s9409_s9 + $0xbd8] ss:$100 sps:$4 sm:$0xff]   ;;  %v4348_v40 = vadd.f32 %v10128_v60, %v9790_v22 }
 0x171   : > { %v7236_v49 = vpop.f32.mrb[60].mxu1  ;;  %v7300_v29 = vpop.f32.mrb[60].mxu0 }
 0x172   : > { %v7237_v33 = vpop.f32.mrb[61].mxu1  ;;  %v7301_v45 = vpop.f32.mrb[61].mxu0 }
 0x173   : > { %v7238_v37 = vadd.f32 %v7237_v33, %v7236_v49  ;;  %v7302_v41 = vadd.f32 %v7301_v45, %v7300_v29  ;;  %v7239_v35 = vpop.f32.mrb[62].mxu1  ;;  %v7303_v54 = vpop.f32.mrb[62].mxu0 }
 0x174   : > { %v7240_v56 = vpop.f32.mrb[63].mxu1  ;;  %v7304_v4 = vpop.f32.mrb[63].mxu0 }
 0x175   : > { %v10132_v17 = vadd.f32 %v7238_v37, %v4340_v34  ;;  %v10135_v32 = vadd.f32 %v7302_v41, %v9947_v6  ;;  %v7241_v8 = vadd.f32 %v7240_v56, %v7239_v35  ;;  %v7305_v57 = vadd.f32 %v7304_v4, %v7303_v54  ;;  %v8872_v41 = vld [vmem:[%s9409_s9 + $0x668] ss:$100 sps:$4 sm:$0xff]  }
 0x176   : > { %5006 = vmatmul.mubr.bf16.gmra.mrb[168].mxu0 %v8855_v46  ;;  %5103 = vmatmul.mubr.bf16.gmra.mrb[168].mxu1 %v8856_v9  ;;  %v4351_v46 = vadd.f32 %v10128_v60, %v9796_v30  ;;  %v8869_v30 = vld [vmem:[%s9409_s9 + $0x30] ss:$100 sps:$4 sm:$0xff]  }
 0x177   : > { %v10137_v31 = vadd.f32 %v7241_v8, %v4343_v53  ;;  %v10140_v63 = vadd.f32 %v7305_v57, %v9951_v16  ;;  %5013 = vmatprep.mubr.bf16.mxu0 %v8861_v51  ;;  %5110 = vmatprep.mubr.bf16.mxu1 %v8863_v52  ;;  %v8871_v16 = vld [vmem:[%s9409_s9 + $0x34] ss:$100 sps:$4 sm:$0xff]   ;;  %v4356_v52 = vadd.f32 %v10128_v60, %v9802_v38  ;;  %v8891_v38 = vld [vmem:[%s11594_s1 + $0x448] sm:$0xff]  }
 0x178   : > { %v8877_v57 = vld [vmem:[%s9409_s9 + $0x734] ss:$100 sps:$4 sm:$0xff]  }
 0x179   : > { %v7242_v39 = vpop.f32.mrb[64].mxu1  ;;  %v7306_v2 = vpop.f32.mrb[64].mxu0 }
 0x17a   : > { %v7243_v24 = vpop.f32.mrb[65].mxu1  ;;  %v7307_v6 = vpop.f32.mrb[65].mxu0 }
 0x17b   : > { %v7244_v11 = vadd.f32 %v7243_v24, %v7242_v39  ;;  %v7308_v12 = vadd.f32 %v7307_v6, %v7306_v2  ;;  %v7245_v13 = vpop.f32.mrb[66].mxu1  ;;  %v7309_v27 = vpop.f32.mrb[66].mxu0  ;;  %v8879_v2 = vld [vmem:[%s9409_s9 + $0xfc] ss:$100 sps:$4 sm:$0xff]  }
 0x17c   : > { %v7246_v9 = vpop.f32.mrb[67].mxu1  ;;  %v7310_v49 = vpop.f32.mrb[67].mxu0 }
 0x17d   : > { %v10150_v29 = vadd.f32 %v7244_v11, %v4348_v40  ;;  %v10153_v33 = vadd.f32 %v7308_v12, %v9963_v36  ;;  %v7247_v45 = vadd.f32 %v7246_v9, %v7245_v13  ;;  %v7311_v22 = vadd.f32 %v7310_v49, %v7309_v27  ;;  %v8907_v12 = vld [vmem:[%s11594_s1 + $0x450] sm:$0xff]  }
 0x17e   : > { %5014 = vmatmul.mubr.bf16.gmra.mrb[172].mxu0 %v8865_v20  ;;  %5111 = vmatmul.mubr.bf16.gmra.mrb[172].mxu1 %v8866_v0  ;;  %v4359_v20 = vadd.f32 %v10128_v60, %v9814_v48  ;;  %v8892_v48 = vld [vmem:[%s11594_s1 + $0x408] sm:$0xff]  }
 0x17f   : > { %v10155_v34 = vadd.f32 %v7247_v45, %v4351_v46  ;;  %v10158_v37 = vadd.f32 %v7311_v22, %v9967_v44  ;;  %5118 = vmatprep.mubr.bf16.mxu1 %v8867_v28  ;;  %5215 = vmatprep.mubr.bf16.mxu0 %v8871_v16  ;;  %v8876_v44 = vld [vmem:[%s11594_s1 + $0x400] sm:$0xff]   ;;  %v8882_v28 = vld [vmem:[%s9409_s9 + $0xf8] ss:$100 sps:$4 sm:$0xff]   ;;  %v4364_v45 = vadd.f32 %v10128_v60, %v9826_v58 }
 0x181   : > { %v7248_v35 = vpop.f32.mrb[68].mxu1  ;;  %v7312_v54 = vpop.f32.mrb[68].mxu0 }
 0x182   : > { %v7249_v51 = vpop.f32.mrb[69].mxu1  ;;  %v7313_v36 = vpop.f32.mrb[69].mxu0 }
 0x183   : > { %v7250_v53 = vadd.f32 %v7249_v51, %v7248_v35  ;;  %v7314_v56 = vadd.f32 %v7313_v36, %v7312_v54  ;;  %v7251_v4 = vpop.f32.mrb[70].mxu1  ;;  %v7315_v8 = vpop.f32.mrb[70].mxu0  ;;  %v8883_v35 = vld [vmem:[%s9409_s9 + $0x7fc] ss:$100 sps:$4 sm:$0xff]   ;;  %v8885_v54 = vld [vmem:[%s9409_s9 + $0x1c4] ss:$100 sps:$4 sm:$0xff]   ;;  %v4367_v51 = vadd.f32 %v10128_v60, %v9835_v3 }
 0x184   : > { %v7252_v0 = vpop.f32.mrb[71].mxu1  ;;  %v7316_v39 = vpop.f32.mrb[71].mxu0  ;;  %v8923_v3 = vld [vmem:[%s11594_s1 + $0x458] sm:$0xff]  }
 0x185   : > { %v10174_v24 = vadd.f32 %v7250_v53, %v4356_v52  ;;  %v10177_v6 = vadd.f32 %v7314_v56, %v9985_v1  ;;  %v7253_v40 = vadd.f32 %v7252_v0, %v7251_v4  ;;  %v7317_v11 = vadd.f32 %v7316_v39, %v7315_v8  ;;  %v8881_v1 = vld [vmem:[%s9409_s9 + $0x730] ss:$100 sps:$4 sm:$0xff]   ;;  %v8887_v0 = vld [vmem:[%s9409_s9 + $0x7f8] ss:$100 sps:$4 sm:$0xff]   ;;  %v8888_v39 = vld [vmem:[%s9409_s9 + $0x1c0] ss:$100 sps:$4 sm:$0xff]  }
 0x186   : > { %5119 = vmatmul.mubr.bf16.gmra.mrb[176].mxu1 %v8872_v41  ;;  %5216 = vmatmul.mubr.bf16.vlgmr.msra.gmra.mrb[176].mxu0 %v8869_v30  ;;  %v8908_v53 = vld [vmem:[%s11594_s1 + $0x410] sm:$0xff]  }
 0x187   : > { %v10185_v13 = vadd.f32 %v7253_v40, %v4359_v20  ;;  %v10188_v27 = vadd.f32 %v7317_v11, %v9989_v7  ;;  %7939 = vmatpush3.bf16.msra.mxu0 %v8876_v44  ;;  %5126 = vmatprep.mubr.bf16.mxu1 %v8877_v57  ;;  %v8924_v44 = vld [vmem:[%s11594_s1 + $0x418] sm:$0xff]  }
 0x188   : > { %5223 = vmatprep.mubr.bf16.mxu0 %v8879_v2  ;;  %7940 = vmatprep.subr.bf16.mxu0 %v8891_v38 }
 0x189   : > { %v7254_v16 = vpop.f32.mrb[72].mxu1  ;;  %v7318_v46 = vpop.f32.mrb[72].mxu0 }
 0x18a   : > { %v7255_v9 = vpop.f32.mrb[73].mxu1  ;;  %v7319_v49 = vpop.f32.mrb[73].mxu0 }
 0x18b   : > { %v7256_v22 = vadd.f32 %v7255_v9, %v7254_v16  ;;  %v7320_v30 = vadd.f32 %v7319_v49, %v7318_v46  ;;  %v7257_v41 = vpop.f32.mrb[74].mxu1  ;;  %v7321_v7 = vpop.f32.mrb[74].mxu0  ;;  %7941 = vmatpush3.bf16.msra.mxu0 %v8892_v48  ;;  %v8893_v16 = vld [vmem:[%s9409_s9 + $0x8c4] ss:$100 sps:$4 sm:$0xff]   ;;  %v8895_v46 = vld [vmem:[%s9409_s9 + $0x28c] ss:$100 sps:$4 sm:$0xff]   ;;  %v4375_v9 = vadd.f32 %v10128_v60, %v9862_v26 }
 0x18c   : > { %v7258_v36 = vpop.f32.mrb[75].mxu1  ;;  %v7322_v52 = vpop.f32.mrb[75].mxu0  ;;  %7942 = vmatprep.subr.bf16.mxu0 %v8907_v12 }
 0x18d   : > { %v10201_v58 = vadd.f32 %v7256_v22, %v4364_v45  ;;  %v10204_v56 = vadd.f32 %v7320_v30, %v10010_v42  ;;  %v7259_v4 = vadd.f32 %v7258_v36, %v7257_v41  ;;  %v7323_v8 = vadd.f32 %v7322_v52, %v7321_v7  ;;  %v8939_v42 = vld [vmem:[%s11594_s1 + $0x460] sm:$0xff]   ;;  %v8898_v36 = vld [vmem:[%s9409_s9 + $0x288] ss:$100 sps:$4 sm:$0xff]  }
 0x18e   : > { %5127 = vmatmul.mubr.bf16.gmra.mrb[180].mxu1 %v8881_v1  ;;  %5224 = vmatmul.mubr.bf16.gmra.mrb[180].mxu0 %v8882_v28  ;;  %v8940_v22 = vld [vmem:[%s11594_s1 + $0x420] sm:$0xff]  }
 0x18f   : > { %v10212_v57 = vadd.f32 %v7259_v4, %v4367_v51  ;;  %v10215_v20 = vadd.f32 %v7323_v8, %v10020_v55  ;;  %5134 = vmatprep.mubr.bf16.mxu1 %v8883_v35  ;;  %5231 = vmatprep.mubr.bf16.mxu0 %v8885_v54  ;;  %v4372_v55 = vadd.f32 %v10128_v60, %v9850_v14  ;;  %v8955_v14 = vld [vmem:[%s11594_s1 + $0x468] sm:$0xff]   ;;  %v8897_v51 = vld [vmem:[%s9409_s9 + $0x8c0] ss:$100 sps:$4 sm:$0xff]  }
 0x190   : > { %7943 = vmatpush3.bf16.msra.mxu0 %v8908_v53  ;;  %v8956_v60 = vld [vmem:[%s11594_s1 + $0x428] sm:$0xff]  }
 0x191   : > { %v7260_v2 = vpop.f32.mrb[76].mxu1  ;;  %v7324_v38 = vpop.f32.mrb[76].mxu0  ;;  %7944 = vmatprep.subr.bf16.mxu0 %v8923_v3 }
 0x192   : > { %v7261_v40 = vpop.f32.mrb[77].mxu1  ;;  %v7325_v11 = vpop.f32.mrb[77].mxu0 }
 0x193   : > { %v7262_v48 = vadd.f32 %v7261_v40, %v7260_v2  ;;  %v7326_v12 = vadd.f32 %v7325_v11, %v7324_v38  ;;  %v7263_v1 = vpop.f32.mrb[78].mxu1  ;;  %v7327_v28 = vpop.f32.mrb[78].mxu0  ;;  %v8972_v40 = vld [vmem:[%s11594_s1 + $0x430] sm:$0xff]  }
 0x194   : > { %v7264_v49 = vpop.f32.mrb[79].mxu1  ;;  %v7328_v45 = vpop.f32.mrb[79].mxu0  ;;  %7945 = vmatpush3.bf16.msra.mxu0 %v8924_v44 }
 0x195   : > { %v10234_v30 = vadd.f32 %v7262_v48, %v4372_v55  ;;  %v10237_v41 = vadd.f32 %v7326_v12, %v10041_v18  ;;  %v7265_v7 = vadd.f32 %v7264_v49, %v7263_v1  ;;  %v7329_v26 = vadd.f32 %v7328_v45, %v7327_v28  ;;  %7946 = vmatprep.subr.bf16.mxu0 %v8939_v42  ;;  %v8971_v18 = vld [vmem:[%s11594_s1 + $0x470] sm:$0xff]   ;;  %v8987_v1 = vld [vmem:[%s11594_s1 + $0x478] sm:$0xff]  }
 0x196   : > { %5135 = vmatmul.mubr.bf16.gmra.mrb[184].mxu1 %v8887_v0  ;;  %5232 = vmatmul.mubr.bf16.gmra.mrb[184].mxu0 %v8888_v39  ;;  %v8899_v0 = vld [vmem:[%s9409_s9 + $0x98c] ss:$100 sps:$4 sm:$0xff]   ;;  %v8901_v39 = vld [vmem:[%s9409_s9 + $0x354] ss:$100 sps:$4 sm:$0xff]  }
 0x197   : > { %v10242_v35 = vadd.f32 %v7265_v7, %v4375_v9  ;;  %v10245_v54 = vadd.f32 %v7329_v26, %v10045_v21  ;;  %5142 = vmatprep.mubr.bf16.mxu1 %v8893_v16  ;;  %5239 = vmatprep.mubr.bf16.mxu0 %v8895_v46  ;;  %v8988_v28 = vld [vmem:[%s11594_s1 + $0x438] sm:$0xff]   ;;  %v8903_v46 = vld [vmem:[%s9409_s9 + $0x988] ss:$100 sps:$4 sm:$0xff]   ;;  %v8904_v9 = vld [vmem:[%s9409_s9 + $0x350] ss:$100 sps:$4 sm:$0xff]  }
 0x198   : > { %7947 = vmatpush3.bf16.msra.mxu0 %v8940_v22 }
 0x199   : > { %v7330_v52 = vpop.f32.mrb[80].mxu0  ;;  %v7394_v53 = vpop.f32.mrb[80].mxu1  ;;  %7948 = vmatprep.subr.bf16.mxu0 %v8955_v14 }
 0x19a   : > { %v7331_v4 = vpop.f32.mrb[81].mxu0  ;;  %v7395_v8 = vpop.f32.mrb[81].mxu1 }
 0x19b   : > { %v7332_v3 = vadd.f32 %v7331_v4, %v7330_v52  ;;  %v7396_v44 = vadd.f32 %v7395_v8, %v7394_v53  ;;  %v7333_v21 = vpop.f32.mrb[82].mxu0  ;;  %v7397_v42 = vpop.f32.mrb[82].mxu1 }
 0x19c   : > { %v7334_v2 = vpop.f32.mrb[83].mxu0  ;;  %v7398_v38 = vpop.f32.mrb[83].mxu1  ;;  %7949 = vmatpush3.bf16.msra.mxu0 %v8956_v60  ;;  %v8909_v60 = vld [vmem:[%s9409_s9 + $0xa54] ss:$100 sps:$4 sm:$0xff]  }
 0x19d   : > { %v10258_v11 = vadd.f32 %v7332_v3, %v10064_v62  ;;  %v10261_v55 = vadd.f32 %v7396_v44, %v10067_v23  ;;  %v7335_v48 = vadd.f32 %v7334_v2, %v7333_v21  ;;  %v7399_v12 = vadd.f32 %v7398_v38, %v7397_v42  ;;  %7950 = vmatprep.subr.bf16.mxu0 %v8971_v18  ;;  %v9003_v23 = vld [vmem:[%s11594_s1 + $0x540] sm:$0xff]   ;;  %v8914_v21 = vld [vmem:[%s9409_s9 + $0x418] ss:$100 sps:$4 sm:$0xff]  }
 0x19e   : > { %5143 = vmatmul.mubr.bf16.gmra.mrb[188].mxu1 %v8897_v51  ;;  %5240 = vmatmul.mubr.bf16.gmra.mrb[188].mxu0 %v8898_v36  ;;  %v8911_v18 = vld [vmem:[%s9409_s9 + $0x41c] ss:$100 sps:$4 sm:$0xff]  }
 0x19f   : > { %v10270_v16 = vadd.f32 %v7335_v48, %v10075_v10  ;;  %v10273_v62 = vadd.f32 %v7399_v12, %v10078_v19  ;;  %5150 = vmatprep.mubr.bf16.mxu1 %v8899_v0  ;;  %5247 = vmatprep.mubr.bf16.mxu0 %v8901_v39  ;;  %v8915_v12 = vld [vmem:[%s9409_s9 + $0xb1c] ss:$100 sps:$4 sm:$0xff]  }
 0x1a0   : > { %7951 = vmatpush3.bf16.msra.mxu0 %v8972_v40 }
 0x1a1   : > { %v7336_v49 = vpop.f32.mrb[84].mxu0  ;;  %v7400_v45 = vpop.f32.mrb[84].mxu1  ;;  %7952 = vmatprep.subr.bf16.mxu0 %v8987_v1 }
 0x1a2   : > { %v7337_v22 = vpop.f32.mrb[85].mxu0  ;;  %v7401_v10 = vpop.f32.mrb[85].mxu1 }
 0x1a3   : > { %v7338_v14 = vadd.f32 %v7337_v22, %v7336_v49  ;;  %v7402_v7 = vadd.f32 %v7401_v10, %v7400_v45  ;;  %v7339_v19 = vpop.f32.mrb[86].mxu0  ;;  %v7403_v26 = vpop.f32.mrb[86].mxu1  ;;  %v8919_v22 = vld [vmem:[%s9409_s9 + $0xb18] ss:$100 sps:$4 sm:$0xff]  }
 0x1a4   : > { %v7340_v51 = vpop.f32.mrb[87].mxu0  ;;  %v7404_v36 = vpop.f32.mrb[87].mxu1  ;;  %7953 = vmatpush3.bf16.msra.mxu0 %v8988_v28 }
 0x1a5   : > { %v10283_v52 = vadd.f32 %v7338_v14, %v10091_v43  ;;  %v10286_v53 = vadd.f32 %v7402_v7, %v10094_v50  ;;  %v7341_v4 = vadd.f32 %v7340_v51, %v7339_v19  ;;  %v7405_v8 = vadd.f32 %v7404_v36, %v7403_v26  ;;  %8162 = vmatprep.subr.bf16.mxu0 %v9003_v23  ;;  %v8913_v43 = vld [vmem:[%s9409_s9 + $0xa50] ss:$100 sps:$4 sm:$0xff]   ;;  %v8925_v51 = vld [vmem:[%s9409_s9 + $0xbe4] ss:$100 sps:$4 sm:$0xff]  }
 0x1a6   : > { %5151 = vmatmul.mubr.bf16.gmra.mrb[192].mxu1 %v8903_v46  ;;  %5248 = vmatmul.mubr.bf16.gmra.mrb[192].mxu0 %v8904_v9  ;;  %v8927_v36 = vld [vmem:[%s9409_s9 + $0x5ac] ss:$100 sps:$4 sm:$0xff]  }
 0x1a7   : > { %v10289_v3 = vadd.f32 %v7341_v4, %v10096_v47  ;;  %v10292_v44 = vadd.f32 %v7405_v8, %v10099_v5  ;;  %5158 = vmatprep.mubr.bf16.mxu1 %v8909_v60  ;;  %5255 = vmatprep.mubr.bf16.mxu0 %v8911_v18  ;;  %v8917_v47 = vld [vmem:[%s9409_s9 + $0x4e4] ss:$100 sps:$4 sm:$0xff]  }
 0x1a9   : > { %v7342_v42 = vpop.f32.mrb[88].mxu0  ;;  %v7406_v50 = vpop.f32.mrb[88].mxu1 }
 0x1aa   : > { %v7343_v0 = vpop.f32.mrb[89].mxu0  ;;  %v7407_v39 = vpop.f32.mrb[89].mxu1 }
 0x1ab   : > { %v7344_v2 = vadd.f32 %v7343_v0, %v7342_v42  ;;  %v7408_v38 = vadd.f32 %v7407_v39, %v7406_v50  ;;  %v7345_v40 = vpop.f32.mrb[90].mxu0  ;;  %v7409_v48 = vpop.f32.mrb[90].mxu1 }
 0x1ac   : > { %v7346_v1 = vpop.f32.mrb[91].mxu0  ;;  %v7410_v28 = vpop.f32.mrb[91].mxu1 }
 0x1ad   : > { %v10299_v5 = vadd.f32 %v7344_v2, %v10109_v61  ;;  %v10302_v23 = vadd.f32 %v7408_v38, %v10112_v15  ;;  %v7347_v46 = vadd.f32 %v7346_v1, %v7345_v40  ;;  %v7411_v9 = vadd.f32 %v7410_v28, %v7409_v48  ;;  %v8920_v61 = vld [vmem:[%s9409_s9 + $0x4e0] ss:$100 sps:$4 sm:$0xff]   ;;  %v8930_v38 = vld [vmem:[%s9409_s9 + $0x5a8] ss:$100 sps:$4 sm:$0xff]   ;;  %v8931_v1 = vld [vmem:[%s9409_s9 + $0x674] ss:$100 sps:$4 sm:$0xff]  }
 0x1ae   : > { %5159 = vmatmul.mubr.bf16.gmra.mrb[196].mxu1 %v8913_v43  ;;  %5256 = vmatmul.mubr.bf16.gmra.mrb[196].mxu0 %v8914_v21  ;;  %v8935_v28 = vld [vmem:[%s9409_s9 + $0x3c] ss:$100 sps:$4 sm:$0xff]  }
 0x1af   : > { %v10305_v49 = vadd.f32 %v7347_v46, %v10114_v59  ;;  %v10308_v45 = vadd.f32 %v7411_v9, %v10117_v25  ;;  %5166 = vmatprep.mubr.bf16.mxu1 %v8915_v12  ;;  %5263 = vmatprep.mubr.bf16.mxu0 %v8917_v47 }
 0x1b1   : > { %v7348_v10 = vpop.f32.mrb[92].mxu0  ;;  %v7412_v14 = vpop.f32.mrb[92].mxu1 }
 0x1b2   : > { %v7349_v15 = vpop.f32.mrb[93].mxu0  ;;  %v7413_v7 = vpop.f32.mrb[93].mxu1 }
 0x1b3   : > { %v7350_v19 = vadd.f32 %v7349_v15, %v7348_v10  ;;  %v7414_v26 = vadd.f32 %v7413_v7, %v7412_v14  ;;  %v7351_v60 = vpop.f32.mrb[94].mxu0  ;;  %v7415_v18 = vpop.f32.mrb[94].mxu1 }
 0x1b4   : > { %v7352_v4 = vpop.f32.mrb[95].mxu0  ;;  %v7416_v59 = vpop.f32.mrb[95].mxu1 }
 0x1b5   : > { %v10315_v25 = vadd.f32 %v7350_v19, %v10132_v17  ;;  %v10318_v8 = vadd.f32 %v7414_v26, %v10135_v32  ;;  %v7353_v43 = vadd.f32 %v7352_v4, %v7351_v60  ;;  %v7417_v21 = vadd.f32 %v7416_v59, %v7415_v18  ;;  %v8929_v32 = vld [vmem:[%s9409_s9 + $0xbe0] ss:$100 sps:$4 sm:$0xff]   ;;  %v8936_v26 = vld [vmem:[%s9409_s9 + $0x670] ss:$100 sps:$4 sm:$0xff]  }
 0x1b6   : > { %5167 = vmatmul.mubr.bf16.gmra.mrb[200].mxu1 %v8919_v22  ;;  %5264 = vmatmul.mubr.bf16.gmra.mrb[200].mxu0 %v8920_v61  ;;  %v8941_v4 = vld [vmem:[%s9409_s9 + $0x73c] ss:$100 sps:$4 sm:$0xff]  }
 0x1b7   : > { %v10321_v42 = vadd.f32 %v7353_v43, %v10137_v31  ;;  %v10324_v50 = vadd.f32 %v7417_v21, %v10140_v63  ;;  %5174 = vmatprep.mubr.bf16.mxu1 %v8925_v51  ;;  %5271 = vmatprep.mubr.bf16.mxu0 %v8927_v36  ;;  %v8943_v43 = vld [vmem:[%s9409_s9 + $0x104] ss:$100 sps:$4 sm:$0xff]  }
 0x1b8   : > { %v8953_v21 = vld [vmem:[%s11594_s1 + $0x4c8] sm:$0xff]  }
 0x1b9   : > { %v7354_v0 = vpop.f32.mrb[96].mxu0  ;;  %v7418_v17 = vpop.f32.mrb[96].mxu1 }
 0x1ba   : > { %v7355_v39 = vpop.f32.mrb[97].mxu0  ;;  %v7419_v2 = vpop.f32.mrb[97].mxu1 }
 0x1bb   : > { %v7356_v40 = vadd.f32 %v7355_v39, %v7354_v0  ;;  %v7420_v48 = vadd.f32 %v7419_v2, %v7418_v17  ;;  %v7357_v12 = vpop.f32.mrb[98].mxu0  ;;  %v7421_v47 = vpop.f32.mrb[98].mxu1 }
 0x1bc   : > { %v7358_v46 = vpop.f32.mrb[99].mxu0  ;;  %v7422_v31 = vpop.f32.mrb[99].mxu1 }
 0x1bd   : > { %v10331_v63 = vadd.f32 %v7356_v40, %v10150_v29  ;;  %v10334_v9 = vadd.f32 %v7420_v48, %v10153_v33  ;;  %v7359_v22 = vadd.f32 %v7358_v46, %v7357_v12  ;;  %v7423_v61 = vadd.f32 %v7422_v31, %v7421_v47  ;;  %v8933_v33 = vld [vmem:[%s9409_s9 + $0x38] ss:$100 sps:$4 sm:$0xff]   ;;  %v8946_v47 = vld [vmem:[%s9409_s9 + $0x100] ss:$100 sps:$4 sm:$0xff]  }
 0x1be   : > { %5175 = vmatmul.mubr.bf16.gmra.mrb[204].mxu1 %v8929_v32  ;;  %5272 = vmatmul.mubr.bf16.gmra.mrb[204].mxu0 %v8930_v38 }
 0x1bf   : > { %v10337_v10 = vadd.f32 %v7359_v22, %v10155_v34  ;;  %v10340_v14 = vadd.f32 %v7423_v61, %v10158_v37  ;;  %5279 = vmatprep.mubr.bf16.mxu0 %v8931_v1  ;;  %5376 = vmatprep.mubr.bf16.mxu1 %v8935_v28  ;;  %v8938_v34 = vld [vmem:[%s11594_s1 + $0x480] sm:$0xff]   ;;  %v8949_v61 = vld [vmem:[%s9409_s9 + $0x1cc] ss:$100 sps:$4 sm:$0xff]  }
 0x1c0   : > { %v8947_v22 = vld [vmem:[%s9409_s9 + $0x804] ss:$100 sps:$4 sm:$0xff]  }
 0x1c1   : > { %v7360_v15 = vpop.f32.mrb[100].mxu0  ;;  %v7424_v29 = vpop.f32.mrb[100].mxu1 }
 0x1c2   : > { %v7361_v7 = vpop.f32.mrb[101].mxu0  ;;  %v7425_v19 = vpop.f32.mrb[101].mxu1 }
 0x1c3   : > { %v7362_v60 = vadd.f32 %v7361_v7, %v7360_v15  ;;  %v7426_v18 = vadd.f32 %v7425_v19, %v7424_v29  ;;  %v7363_v51 = vpop.f32.mrb[102].mxu0  ;;  %v7427_v36 = vpop.f32.mrb[102].mxu1  ;;  %v8970_v7 = vld [vmem:[%s11594_s1 + $0x490] sm:$0xff]  }
 0x1c4   : > { %v7364_v37 = vpop.f32.mrb[103].mxu0  ;;  %v7428_v59 = vpop.f32.mrb[103].mxu1 }
 0x1c5   : > { %v10353_v0 = vadd.f32 %v7362_v60, %v10174_v24  ;;  %v10356_v17 = vadd.f32 %v7426_v18, %v10177_v6  ;;  %v7365_v39 = vadd.f32 %v7364_v37, %v7363_v51  ;;  %v7429_v2 = vadd.f32 %v7428_v59, %v7427_v36  ;;  %v8954_v24 = vld [vmem:[%s11594_s1 + $0x488] sm:$0xff]   ;;  %v8969_v6 = vld [vmem:[%s11594_s1 + $0x4d0] sm:$0xff]   ;;  %v8985_v18 = vld [vmem:[%s11594_s1 + $0x4d8] sm:$0xff]  }
 0x1c6   : > { %5280 = vmatmul.mubr.bf16.gmra.mrb[208].mxu0 %v8936_v26  ;;  %5377 = vmatmul.mubr.bf16.vlgmr.msra.gmra.mrb[208].mxu1 %v8933_v33  ;;  %v8952_v59 = vld [vmem:[%s9409_s9 + $0x1c8] ss:$100 sps:$4 sm:$0xff]  }
 0x1c7   : > { %v10359_v32 = vadd.f32 %v7365_v39, %v10185_v13  ;;  %v10362_v38 = vadd.f32 %v7429_v2, %v10188_v27  ;;  %8051 = vmatpush3.bf16.msra.mxu1 %v8938_v34  ;;  %5287 = vmatprep.mubr.bf16.mxu0 %v8941_v4  ;;  %v8945_v27 = vld [vmem:[%s9409_s9 + $0x738] ss:$100 sps:$4 sm:$0xff]  }
 0x1c8   : > { %5384 = vmatprep.mubr.bf16.mxu1 %v8943_v43  ;;  %8052 = vmatprep.subr.bf16.mxu1 %v8953_v21 }
 0x1c9   : > { %v7366_v40 = vpop.f32.mrb[104].mxu0  ;;  %v7430_v13 = vpop.f32.mrb[104].mxu1 }
 0x1ca   : > { %v7367_v48 = vpop.f32.mrb[105].mxu0  ;;  %v7431_v12 = vpop.f32.mrb[105].mxu1 }
 0x1cb   : > { %v7368_v1 = vadd.f32 %v7367_v48, %v7366_v40  ;;  %v7432_v28 = vadd.f32 %v7431_v12, %v7430_v13  ;;  %v7369_v46 = vpop.f32.mrb[106].mxu0  ;;  %v7433_v31 = vpop.f32.mrb[106].mxu1  ;;  %8053 = vmatpush3.bf16.msra.mxu1 %v8954_v24  ;;  %v8957_v24 = vld [vmem:[%s9409_s9 + $0x8cc] ss:$100 sps:$4 sm:$0xff]   ;;  %v9002_v48 = vld [vmem:[%s11594_s1 + $0x4a0] sm:$0xff]  }
 0x1cc   : > { %v7370_v15 = vpop.f32.mrb[107].mxu0  ;;  %v7434_v29 = vpop.f32.mrb[107].mxu1  ;;  %8054 = vmatprep.subr.bf16.mxu1 %v8969_v6  ;;  %v8959_v6 = vld [vmem:[%s9409_s9 + $0x294] ss:$100 sps:$4 sm:$0xff]  }
 0x1cd   : > { %v10378_v19 = vadd.f32 %v7368_v1, %v10201_v58  ;;  %v10381_v33 = vadd.f32 %v7432_v28, %v10204_v56  ;;  %v7371_v26 = vadd.f32 %v7370_v15, %v7369_v46  ;;  %v7435_v60 = vadd.f32 %v7434_v29, %v7433_v31  ;;  %v8986_v58 = vld [vmem:[%s11594_s1 + $0x498] sm:$0xff]   ;;  %v9017_v28 = vld [vmem:[%s11594_s1 + $0x4e8] sm:$0xff]   ;;  %v8962_v29 = vld [vmem:[%s9409_s9 + $0x290] ss:$100 sps:$4 sm:$0xff]  }
 0x1ce   : > { %5288 = vmatmul.mubr.bf16.gmra.mrb[212].mxu0 %v8945_v27  ;;  %5385 = vmatmul.mubr.bf16.gmra.mrb[212].mxu1 %v8946_v47 }
 0x1cf   : > { %v10387_v51 = vadd.f32 %v7371_v26, %v10212_v57  ;;  %v10390_v36 = vadd.f32 %v7435_v60, %v10215_v20  ;;  %5295 = vmatprep.mubr.bf16.mxu0 %v8947_v22  ;;  %5392 = vmatprep.mubr.bf16.mxu1 %v8949_v61  ;;  %v9001_v57 = vld [vmem:[%s11594_s1 + $0x4e0] sm:$0xff]  }
 0x1d0   : > { %8055 = vmatpush3.bf16.msra.mxu1 %v8970_v7  ;;  %v8951_v20 = vld [vmem:[%s9409_s9 + $0x800] ss:$100 sps:$4 sm:$0xff]  }
 0x1d1   : > { %v7372_v56 = vpop.f32.mrb[108].mxu0  ;;  %v7436_v34 = vpop.f32.mrb[108].mxu1  ;;  %8056 = vmatprep.subr.bf16.mxu1 %v8985_v18 }
 0x1d2   : > { %v7373_v4 = vpop.f32.mrb[109].mxu0  ;;  %v7437_v37 = vpop.f32.mrb[109].mxu1 }
 0x1d3   : > { %v7374_v43 = vadd.f32 %v7373_v4, %v7372_v56  ;;  %v7438_v21 = vadd.f32 %v7437_v37, %v7436_v34  ;;  %v7375_v39 = vpop.f32.mrb[110].mxu0  ;;  %v7439_v2 = vpop.f32.mrb[110].mxu1  ;;  %v8965_v56 = vld [vmem:[%s9409_s9 + $0x35c] ss:$100 sps:$4 sm:$0xff]   ;;  %v9034_v4 = vld [vmem:[%s11594_s1 + $0x4b0] sm:$0xff]  }
 0x1d4   : > { %v7376_v40 = vpop.f32.mrb[111].mxu0  ;;  %v7440_v13 = vpop.f32.mrb[111].mxu1  ;;  %8057 = vmatpush3.bf16.msra.mxu1 %v8986_v58  ;;  %v8963_v58 = vld [vmem:[%s9409_s9 + $0x994] ss:$100 sps:$4 sm:$0xff]  }
 0x1d5   : > { %v10406_v12 = vadd.f32 %v7374_v43, %v10234_v30  ;;  %v10409_v27 = vadd.f32 %v7438_v21, %v10237_v41  ;;  %v7377_v47 = vadd.f32 %v7376_v40, %v7375_v39  ;;  %v7441_v1 = vadd.f32 %v7440_v13, %v7439_v2  ;;  %8058 = vmatprep.subr.bf16.mxu1 %v9001_v57  ;;  %v9018_v41 = vld [vmem:[%s11594_s1 + $0x4a8] sm:$0xff]   ;;  %v9049_v21 = vld [vmem:[%s11594_s1 + $0x4f8] sm:$0xff]   ;;  %v8967_v13 = vld [vmem:[%s9409_s9 + $0x990] ss:$100 sps:$4 sm:$0xff]  }
 0x1d6   : > { %5296 = vmatmul.mubr.bf16.gmra.mrb[216].mxu0 %v8951_v20  ;;  %5393 = vmatmul.mubr.bf16.gmra.mrb[216].mxu1 %v8952_v59 }
 0x1d7   : > { %v10415_v46 = vadd.f32 %v7377_v47, %v10242_v35  ;;  %v10418_v30 = vadd.f32 %v7441_v1, %v10245_v54  ;;  %5303 = vmatprep.mubr.bf16.mxu0 %v8957_v24  ;;  %5400 = vmatprep.mubr.bf16.mxu1 %v8959_v6  ;;  %v9033_v35 = vld [vmem:[%s11594_s1 + $0x4f0] sm:$0xff]   ;;  %v8961_v54 = vld [vmem:[%s9409_s9 + $0x8c8] ss:$100 sps:$4 sm:$0xff]   ;;  %v9065_v6 = vld [vmem:[%s11594_s1 + $0x5c0] sm:$0xff]  }
 0x1d8   : > { %8059 = vmatpush3.bf16.msra.mxu1 %v9002_v48  ;;  %v8968_v48 = vld [vmem:[%s9409_s9 + $0x358] ss:$100 sps:$4 sm:$0xff]  }
 0x1d9   : > { %v7442_v31 = vpop.f32.mrb[112].mxu1  ;;  %v7506_v22 = vpop.f32.mrb[112].mxu0  ;;  %8060 = vmatprep.subr.bf16.mxu1 %v9017_v28 }
 0x1da   : > { %v7443_v61 = vpop.f32.mrb[113].mxu1  ;;  %v7507_v15 = vpop.f32.mrb[113].mxu0 }
 0x1db   : > { %v7444_v7 = vadd.f32 %v7443_v61, %v7442_v31  ;;  %v7508_v26 = vadd.f32 %v7507_v15, %v7506_v22  ;;  %v7445_v60 = vpop.f32.mrb[114].mxu1  ;;  %v7509_v18 = vpop.f32.mrb[114].mxu0  ;;  %v8975_v31 = vld [vmem:[%s9409_s9 + $0x424] ss:$100 sps:$4 sm:$0xff]  }
 0x1dc   : > { %v7446_v34 = vpop.f32.mrb[115].mxu1  ;;  %v7510_v57 = vpop.f32.mrb[115].mxu0  ;;  %8061 = vmatpush3.bf16.msra.mxu1 %v9018_v41  ;;  %v8973_v41 = vld [vmem:[%s9409_s9 + $0xa5c] ss:$100 sps:$4 sm:$0xff]  }
 0x1dd   : > { %v7447_v37 = vadd.f32 %v7446_v34, %v7445_v60  ;;  %v7511_v20 = vadd.f32 %v7510_v57, %v7509_v18  ;;  %v10434_v59 = vadd.f32 %v7444_v7, %v10258_v11  ;;  %v10437_v43 = vadd.f32 %v7508_v26, %v10261_v55  ;;  %8062 = vmatprep.subr.bf16.mxu1 %v9033_v35  ;;  %v9050_v55 = vld [vmem:[%s11594_s1 + $0x4b8] sm:$0xff]  }
 0x1de   : > { %5304 = vmatmul.mubr.bf16.gmra.mrb[220].mxu0 %v8961_v54  ;;  %5401 = vmatmul.mubr.bf16.gmra.mrb[220].mxu1 %v8962_v29 }
 0x1df   : > { %5311 = vmatprep.mubr.bf16.mxu0 %v8963_v58  ;;  %5408 = vmatprep.mubr.bf16.mxu1 %v8965_v56  ;;  %v10443_v39 = vadd.f32 %v7447_v37, %v10270_v16  ;;  %v10446_v11 = vadd.f32 %v7511_v20, %v10273_v62  ;;  %v8977_v56 = vld [vmem:[%s9409_s9 + $0xa58] ss:$100 sps:$4 sm:$0xff]   ;;  %v8979_v20 = vld [vmem:[%s9409_s9 + $0xb24] ss:$100 sps:$4 sm:$0xff]  }
 0x1e0   : > { %8063 = vmatpush3.bf16.msra.mxu1 %v9034_v4 }
 0x1e1   : > { %v7448_v2 = vpop.f32.mrb[116].mxu1  ;;  %v7512_v24 = vpop.f32.mrb[116].mxu0  ;;  %8064 = vmatprep.subr.bf16.mxu1 %v9049_v21  ;;  %v8981_v21 = vld [vmem:[%s9409_s9 + $0x4ec] ss:$100 sps:$4 sm:$0xff]  }
 0x1e2   : > { %v7449_v40 = vpop.f32.mrb[117].mxu1  ;;  %v7513_v16 = vpop.f32.mrb[117].mxu0 }
 0x1e3   : > { %v7450_v47 = vadd.f32 %v7449_v40, %v7448_v2  ;;  %v7514_v62 = vadd.f32 %v7513_v16, %v7512_v24  ;;  %v7451_v1 = vpop.f32.mrb[118].mxu1  ;;  %v7515_v28 = vpop.f32.mrb[118].mxu0 }
 0x1e4   : > { %v7452_v22 = vpop.f32.mrb[119].mxu1  ;;  %v7516_v35 = vpop.f32.mrb[119].mxu0  ;;  %8065 = vmatpush3.bf16.msra.mxu1 %v9050_v55 }
 0x1e5   : > { %v7453_v61 = vadd.f32 %v7452_v22, %v7451_v1  ;;  %v7517_v15 = vadd.f32 %v7516_v35, %v7515_v28  ;;  %v10459_v54 = vadd.f32 %v7450_v47, %v10283_v52  ;;  %v10462_v29 = vadd.f32 %v7514_v62, %v10286_v53  ;;  %8274 = vmatprep.subr.bf16.mxu1 %v9065_v6  ;;  %v8978_v53 = vld [vmem:[%s9409_s9 + $0x420] ss:$100 sps:$4 sm:$0xff]   ;;  %v8984_v1 = vld [vmem:[%s9409_s9 + $0x4e8] ss:$100 sps:$4 sm:$0xff]   ;;  %v8991_v35 = vld [vmem:[%s9409_s9 + $0x5b4] ss:$100 sps:$4 sm:$0xff]  }
 0x1e6   : > { %5312 = vmatmul.mubr.bf16.gmra.mrb[224].mxu0 %v8967_v13  ;;  %5409 = vmatmul.mubr.bf16.gmra.mrb[224].mxu1 %v8968_v48  ;;  %v8983_v62 = vld [vmem:[%s9409_s9 + $0xb20] ss:$100 sps:$4 sm:$0xff]   ;;  %v8989_v22 = vld [vmem:[%s9409_s9 + $0xbec] ss:$100 sps:$4 sm:$0xff]  }
 0x1e7   : > { %5319 = vmatprep.mubr.bf16.mxu0 %v8973_v41  ;;  %5416 = vmatprep.mubr.bf16.mxu1 %v8975_v31  ;;  %v10465_v7 = vadd.f32 %v7453_v61, %v10289_v3  ;;  %v10468_v26 = vadd.f32 %v7517_v15, %v10292_v44 }
 0x1e9   : > { %v7454_v60 = vpop.f32.mrb[120].mxu1  ;;  %v7518_v18 = vpop.f32.mrb[120].mxu0 }
 0x1ea   : > { %v7455_v52 = vpop.f32.mrb[121].mxu1  ;;  %v7519_v58 = vpop.f32.mrb[121].mxu0 }
 0x1eb   : > { %v7456_v34 = vadd.f32 %v7455_v52, %v7454_v60  ;;  %v7520_v57 = vadd.f32 %v7519_v58, %v7518_v18  ;;  %v7457_v4 = vpop.f32.mrb[122].mxu1  ;;  %v7521_v37 = vpop.f32.mrb[122].mxu0 }
 0x1ec   : > { %v7458_v55 = vpop.f32.mrb[123].mxu1  ;;  %v7522_v2 = vpop.f32.mrb[123].mxu0 }
 0x1ed   : > { %v7459_v3 = vadd.f32 %v7458_v55, %v7457_v4  ;;  %v7523_v24 = vadd.f32 %v7522_v2, %v7521_v37  ;;  %v10475_v44 = vadd.f32 %v7456_v34, %v10299_v5  ;;  %v10478_v6 = vadd.f32 %v7520_v57, %v10302_v23  ;;  %v8993_v57 = vld [vmem:[%s9409_s9 + $0xbe8] ss:$100 sps:$4 sm:$0xff]   ;;  %v8994_v4 = vld [vmem:[%s9409_s9 + $0x5b0] ss:$100 sps:$4 sm:$0xff]   ;;  %v8995_v55 = vld [vmem:[%s9409_s9 + $0x67c] ss:$100 sps:$4 sm:$0xff]  }
 0x1ee   : > { %5320 = vmatmul.mubr.bf16.gmra.mrb[228].mxu0 %v8977_v56  ;;  %5417 = vmatmul.mubr.bf16.gmra.mrb[228].mxu1 %v8978_v53  ;;  %v8999_v2 = vld [vmem:[%s9409_s9 + $0x44] ss:$100 sps:$4 sm:$0xff]  }
 0x1ef   : > { %5327 = vmatprep.mubr.bf16.mxu0 %v8979_v20  ;;  %5424 = vmatprep.mubr.bf16.mxu1 %v8981_v21  ;;  %v10481_v40 = vadd.f32 %v7459_v3, %v10305_v49  ;;  %v10484_v16 = vadd.f32 %v7523_v24, %v10308_v45 }
 0x1f1   : > { %v7460_v13 = vpop.f32.mrb[124].mxu1  ;;  %v7524_v48 = vpop.f32.mrb[124].mxu0 }
 0x1f2   : > { %v7461_v47 = vpop.f32.mrb[125].mxu1  ;;  %v7525_v5 = vpop.f32.mrb[125].mxu0 }
 0x1f3   : > { %v7462_v23 = vadd.f32 %v7461_v47, %v7460_v13  ;;  %v7526_v28 = vadd.f32 %v7525_v5, %v7524_v48  ;;  %v7463_v41 = vpop.f32.mrb[126].mxu1  ;;  %v7527_v31 = vpop.f32.mrb[126].mxu0 }
 0x1f4   : > { %v7464_v61 = vpop.f32.mrb[127].mxu1  ;;  %v7528_v15 = vpop.f32.mrb[127].mxu0 }
 0x1f5   : > { %v7465_v49 = vadd.f32 %v7464_v61, %v7463_v41  ;;  %v7529_v60 = vadd.f32 %v7528_v15, %v7527_v31  ;;  %v10491_v45 = vadd.f32 %v7462_v23, %v10315_v25  ;;  %v10494_v18 = vadd.f32 %v7526_v28, %v10318_v8  ;;  %v8997_v28 = vld [vmem:[%s9409_s9 + $0x40] ss:$100 sps:$4 sm:$0xff]   ;;  %v9000_v41 = vld [vmem:[%s9409_s9 + $0x678] ss:$100 sps:$4 sm:$0xff]  }
 0x1f6   : > { %5328 = vmatmul.mubr.bf16.gmra.mrb[232].mxu0 %v8983_v62  ;;  %5425 = vmatmul.mubr.bf16.gmra.mrb[232].mxu1 %v8984_v1  ;;  %v9004_v61 = vld [vmem:[%s11594_s1 + $0x500] sm:$0xff]  }
 0x1f7   : > { %5335 = vmatprep.mubr.bf16.mxu0 %v8989_v22  ;;  %5432 = vmatprep.mubr.bf16.mxu1 %v8991_v35  ;;  %v10497_v52 = vadd.f32 %v7465_v49, %v10321_v42  ;;  %v10500_v58 = vadd.f32 %v7529_v60, %v10324_v50  ;;  %v9007_v60 = vld [vmem:[%s9409_s9 + $0x10c] ss:$100 sps:$4 sm:$0xff]  }
 0x1f9   : > { %v7466_v56 = vpop.f32.mrb[128].mxu1  ;;  %v7530_v53 = vpop.f32.mrb[128].mxu0 }
 0x1fa   : > { %v7467_v34 = vpop.f32.mrb[129].mxu1  ;;  %v7531_v25 = vpop.f32.mrb[129].mxu0 }
 0x1fb   : > { %v7468_v8 = vadd.f32 %v7467_v34, %v7466_v56  ;;  %v7532_v37 = vadd.f32 %v7531_v25, %v7530_v53  ;;  %v7469_v20 = vpop.f32.mrb[130].mxu1  ;;  %v7533_v21 = vpop.f32.mrb[130].mxu0 }
 0x1fc   : > { %v7470_v3 = vpop.f32.mrb[131].mxu1  ;;  %v7534_v24 = vpop.f32.mrb[131].mxu0 }
 0x1fd   : > { %v7471_v42 = vadd.f32 %v7470_v3, %v7469_v20  ;;  %v7535_v13 = vadd.f32 %v7534_v24, %v7533_v21  ;;  %v10507_v50 = vadd.f32 %v7468_v8, %v10331_v63  ;;  %v10510_v48 = vadd.f32 %v7532_v37, %v10334_v9 }
 0x1fe   : > { %5336 = vmatmul.mubr.bf16.gmra.mrb[236].mxu0 %v8993_v57  ;;  %5433 = vmatmul.mubr.bf16.gmra.mrb[236].mxu1 %v8994_v4  ;;  %v9020_v57 = vld [vmem:[%s11594_s1 + $0x508] sm:$0xff]  }
 0x1ff   : > { %5440 = vmatprep.mubr.bf16.mxu1 %v8995_v55  ;;  %5537 = vmatprep.mubr.bf16.mxu0 %v8999_v2  ;;  %v10513_v47 = vadd.f32 %v7471_v42, %v10337_v10  ;;  %v10516_v5 = vadd.f32 %v7535_v13, %v10340_v14  ;;  %v9005_v10 = vld [vmem:[%s9409_s9 + $0x744] ss:$100 sps:$4 sm:$0xff]   ;;  %v9011_v13 = vld [vmem:[%s9409_s9 + $0x80c] ss:$100 sps:$4 sm:$0xff]  }
 0x200   : > { %v9019_v14 = vld [vmem:[%s11594_s1 + $0x548] sm:$0xff]   ;;  %v9009_v55 = vld [vmem:[%s9409_s9 + $0x740] ss:$100 sps:$4 sm:$0xff]  }
 0x201   : > { %v7472_v62 = vpop.f32.mrb[132].mxu1  ;;  %v7536_v1 = vpop.f32.mrb[132].mxu0  ;;  %v9010_v2 = vld [vmem:[%s9409_s9 + $0x108] ss:$100 sps:$4 sm:$0xff]  }
 0x202   : > { %v7473_v23 = vpop.f32.mrb[133].mxu1  ;;  %v7537_v63 = vpop.f32.mrb[133].mxu0 }
 0x203   : > { %v7474_v9 = vadd.f32 %v7473_v23, %v7472_v62  ;;  %v7538_v31 = vadd.f32 %v7537_v63, %v7536_v1  ;;  %v7475_v22 = vpop.f32.mrb[134].mxu1  ;;  %v7539_v35 = vpop.f32.mrb[134].mxu0  ;;  %v9013_v62 = vld [vmem:[%s9409_s9 + $0x1d4] ss:$100 sps:$4 sm:$0xff]  }
 0x204   : > { %v7476_v15 = vpop.f32.mrb[135].mxu1  ;;  %v7540_v49 = vpop.f32.mrb[135].mxu0  ;;  %v9036_v23 = vld [vmem:[%s11594_s1 + $0x510] sm:$0xff]  }
 0x205   : > { %v7477_v56 = vadd.f32 %v7476_v15, %v7475_v22  ;;  %v7541_v53 = vadd.f32 %v7540_v49, %v7539_v35  ;;  %v10529_v34 = vadd.f32 %v7474_v9, %v10353_v0  ;;  %v10532_v25 = vadd.f32 %v7538_v31, %v10356_v17  ;;  %v9035_v17 = vld [vmem:[%s11594_s1 + $0x550] sm:$0xff]   ;;  %v9015_v49 = vld [vmem:[%s9409_s9 + $0x808] ss:$100 sps:$4 sm:$0xff]  }
 0x206   : > { %5441 = vmatmul.mubr.bf16.gmra.mrb[240].mxu1 %v9000_v41  ;;  %5538 = vmatmul.mubr.bf16.vlgmr.msra.gmra.mrb[240].mxu0 %v8997_v28  ;;  %v9051_v41 = vld [vmem:[%s11594_s1 + $0x558] sm:$0xff]  }
 0x207   : > { %8163 = vmatpush3.bf16.msra.mxu0 %v9004_v61  ;;  %5448 = vmatprep.mubr.bf16.mxu1 %v9005_v10  ;;  %v10538_v4 = vadd.f32 %v7477_v56, %v10359_v32  ;;  %v10541_v0 = vadd.f32 %v7541_v53, %v10362_v38  ;;  %v9067_v10 = vld [vmem:[%s11594_s1 + $0x560] sm:$0xff]  }
 0x208   : > { %5545 = vmatprep.mubr.bf16.mxu0 %v9007_v60  ;;  %8164 = vmatprep.subr.bf16.mxu0 %v9019_v14  ;;  %v9016_v60 = vld [vmem:[%s9409_s9 + $0x1d0] ss:$100 sps:$4 sm:$0xff]  }
 0x209   : > { %v7478_v8 = vpop.f32.mrb[136].mxu1  ;;  %v7542_v37 = vpop.f32.mrb[136].mxu0 }
 0x20a   : > { %v7479_v20 = vpop.f32.mrb[137].mxu1  ;;  %v7543_v21 = vpop.f32.mrb[137].mxu0 }
 0x20b   : > { %v7480_v3 = vadd.f32 %v7479_v20, %v7478_v8  ;;  %v7544_v24 = vadd.f32 %v7543_v21, %v7542_v37  ;;  %v7481_v32 = vpop.f32.mrb[138].mxu1  ;;  %v7545_v42 = vpop.f32.mrb[138].mxu0  ;;  %8165 = vmatpush3.bf16.msra.mxu0 %v9020_v57  ;;  %v9021_v57 = vld [vmem:[%s9409_s9 + $0x8d4] ss:$100 sps:$4 sm:$0xff]   ;;  %v9068_v20 = vld [vmem:[%s11594_s1 + $0x520] sm:$0xff]  }
 0x20c   : > { %v7482_v38 = vpop.f32.mrb[139].mxu1  ;;  %v7546_v1 = vpop.f32.mrb[139].mxu0  ;;  %8166 = vmatprep.subr.bf16.mxu0 %v9035_v17  ;;  %v9023_v17 = vld [vmem:[%s9409_s9 + $0x29c] ss:$100 sps:$4 sm:$0xff]  }
 0x20d   : > { %v7483_v63 = vadd.f32 %v7482_v38, %v7481_v32  ;;  %v7547_v28 = vadd.f32 %v7546_v1, %v7545_v42  ;;  %v10557_v9 = vadd.f32 %v7480_v3, %v10378_v19  ;;  %v10560_v31 = vadd.f32 %v7544_v24, %v10381_v33  ;;  %v9052_v19 = vld [vmem:[%s11594_s1 + $0x518] sm:$0xff]   ;;  %v9083_v24 = vld [vmem:[%s11594_s1 + $0x568] sm:$0xff]   ;;  %v9025_v1 = vld [vmem:[%s9409_s9 + $0x8d0] ss:$100 sps:$4 sm:$0xff]  }
 0x20e   : > { %5449 = vmatmul.mubr.bf16.gmra.mrb[244].mxu1 %v9009_v55  ;;  %5546 = vmatmul.mubr.bf16.gmra.mrb[244].mxu0 %v9010_v2 }
 0x20f   : > { %5456 = vmatprep.mubr.bf16.mxu1 %v9011_v13  ;;  %5553 = vmatprep.mubr.bf16.mxu0 %v9013_v62  ;;  %v10563_v22 = vadd.f32 %v7483_v63, %v10387_v51  ;;  %v10566_v35 = vadd.f32 %v7547_v28, %v10390_v36  ;;  %v9099_v62 = vld [vmem:[%s11594_s1 + $0x570] sm:$0xff]  }
 0x210   : > { %8167 = vmatpush3.bf16.msra.mxu0 %v9036_v23  ;;  %v9026_v23 = vld [vmem:[%s9409_s9 + $0x298] ss:$100 sps:$4 sm:$0xff]  }
 0x211   : > { %v7484_v33 = vpop.f32.mrb[140].mxu1  ;;  %v7548_v61 = vpop.f32.mrb[140].mxu0  ;;  %8168 = vmatprep.subr.bf16.mxu0 %v9051_v41 }
 0x212   : > { %v7485_v15 = vpop.f32.mrb[141].mxu1  ;;  %v7549_v51 = vpop.f32.mrb[141].mxu0 }
 0x213   : > { %v7486_v14 = vadd.f32 %v7485_v15, %v7484_v33  ;;  %v7550_v36 = vadd.f32 %v7549_v51, %v7548_v61  ;;  %v7487_v56 = vpop.f32.mrb[142].mxu1  ;;  %v7551_v53 = vpop.f32.mrb[142].mxu0  ;;  %v9032_v33 = vld [vmem:[%s9409_s9 + $0x364] ss:$100 sps:$4 sm:$0xff]   ;;  %v9100_v15 = vld [vmem:[%s11594_s1 + $0x530] sm:$0xff]  }
 0x214   : > { %v7488_v8 = vpop.f32.mrb[143].mxu1  ;;  %v7552_v37 = vpop.f32.mrb[143].mxu0  ;;  %8169 = vmatpush3.bf16.msra.mxu0 %v9052_v19  ;;  %v9029_v19 = vld [vmem:[%s9409_s9 + $0x99c] ss:$100 sps:$4 sm:$0xff]  }
 0x215   : > { %v7489_v21 = vadd.f32 %v7488_v8, %v7487_v56  ;;  %v7553_v55 = vadd.f32 %v7552_v37, %v7551_v53  ;;  %8170 = vmatprep.subr.bf16.mxu0 %v9067_v10  ;;  %v10582_v2 = vadd.f32 %v7486_v14, %v10406_v12  ;;  %v10585_v3 = vadd.f32 %v7550_v36, %v10409_v27  ;;  %v9084_v27 = vld [vmem:[%s11594_s1 + $0x528] sm:$0xff]   ;;  %v9115_v36 = vld [vmem:[%s11594_s1 + $0x578] sm:$0xff]   ;;  %v9030_v37 = vld [vmem:[%s9409_s9 + $0x360] ss:$100 sps:$4 sm:$0xff]  }
 0x216   : > { %5457 = vmatmul.mubr.bf16.gmra.mrb[248].mxu1 %v9015_v49  ;;  %5554 = vmatmul.mubr.bf16.gmra.mrb[248].mxu0 %v9016_v60  ;;  %v9027_v8 = vld [vmem:[%s9409_s9 + $0x998] ss:$100 sps:$4 sm:$0xff]  }
 0x217   : > { %5464 = vmatprep.mubr.bf16.mxu1 %v9021_v57  ;;  %5561 = vmatprep.mubr.bf16.mxu0 %v9023_v17  ;;  %v10591_v32 = vadd.f32 %v7489_v21, %v10415_v46  ;;  %v10594_v12 = vadd.f32 %v7553_v55, %v10418_v30 }
 0x218   : > { %8171 = vmatpush3.bf16.msra.mxu0 %v9068_v20 }
 0x219   : > { %v7554_v42 = vpop.f32.mrb[144].mxu0  ;;  %v7618_v13 = vpop.f32.mrb[144].mxu1  ;;  %8172 = vmatprep.subr.bf16.mxu0 %v9083_v24 }
 0x21a   : > { %v7555_v38 = vpop.f32.mrb[145].mxu0  ;;  %v7619_v46 = vpop.f32.mrb[145].mxu1 }
 0x21b   : > { %v7556_v63 = vadd.f32 %v7555_v38, %v7554_v42  ;;  %v7620_v30 = vadd.f32 %v7619_v46, %v7618_v13  ;;  %v7557_v28 = vpop.f32.mrb[146].mxu0  ;;  %v7621_v41 = vpop.f32.mrb[146].mxu1  ;;  %v9042_v42 = vld [vmem:[%s9409_s9 + $0x42c] ss:$100 sps:$4 sm:$0xff]  }
 0x21c   : > { %v7558_v61 = vpop.f32.mrb[147].mxu0  ;;  %v7622_v10 = vpop.f32.mrb[147].mxu1  ;;  %8173 = vmatpush3.bf16.msra.mxu0 %v9084_v27  ;;  %v9039_v27 = vld [vmem:[%s9409_s9 + $0xa64] ss:$100 sps:$4 sm:$0xff]  }
 0x21d   : > { %v10610_v51 = vadd.f32 %v7556_v63, %v10434_v59  ;;  %v10613_v49 = vadd.f32 %v7620_v30, %v10437_v43  ;;  %v7559_v60 = vadd.f32 %v7558_v61, %v7557_v28  ;;  %v7623_v14 = vadd.f32 %v7622_v10, %v7621_v41  ;;  %8174 = vmatprep.subr.bf16.mxu0 %v9099_v62  ;;  %v9116_v43 = vld [vmem:[%s11594_s1 + $0x538] sm:$0xff]  }
 0x21e   : > { %5465 = vmatmul.mubr.bf16.gmra.mrb[252].mxu1 %v9025_v1  ;;  %5562 = vmatmul.mubr.bf16.gmra.mrb[252].mxu0 %v9026_v23 }
 0x21f   : > { %v10619_v56 = vadd.f32 %v7559_v60, %v10443_v39  ;;  %v10622_v59 = vadd.f32 %v7623_v14, %v10446_v11  ;;  %5472 = vmatprep.mubr.bf16.mxu1 %v9029_v19  ;;  %5569 = vmatprep.mubr.bf16.mxu0 %v9032_v33  ;;  %v10630_v39 = vld [vmem:[%s11594_s1 + $0x600] sm:$0xff]   ;;  %v9040_v33 = vld [vmem:[%s9409_s9 + $0x428] ss:$100 sps:$4 sm:$0xff]  }
 0x220   : > { %8175 = vmatpush3.bf16.msra.mxu0 %v9100_v15  ;;  %v9037_v19 = vld [vmem:[%s9409_s9 + $0xa60] ss:$100 sps:$4 sm:$0xff]   ;;  %v9045_v14 = vld [vmem:[%s9409_s9 + $0xb2c] ss:$100 sps:$4 sm:$0xff]  }
 0x221   : > { %v7560_v53 = vpop.f32.mrb[148].mxu0  ;;  %v7624_v57 = vpop.f32.mrb[148].mxu1  ;;  %8176 = vmatprep.subr.bf16.mxu0 %v9115_v36  ;;  %v9048_v36 = vld [vmem:[%s9409_s9 + $0x4f4] ss:$100 sps:$4 sm:$0xff]  }
 0x222   : > { %v7561_v17 = vpop.f32.mrb[149].mxu0  ;;  %v7625_v11 = vpop.f32.mrb[149].mxu1 }
 0x223   : > { %v7562_v20 = vadd.f32 %v7561_v17, %v7560_v53  ;;  %v7626_v21 = vadd.f32 %v7625_v11, %v7624_v57  ;;  %v7563_v55 = vpop.f32.mrb[150].mxu0  ;;  %v7627_v24 = vpop.f32.mrb[150].mxu1 }
 0x224   : > { %v7564_v13 = vpop.f32.mrb[151].mxu0  ;;  %v7628_v62 = vpop.f32.mrb[151].mxu1  ;;  %8177 = vmatpush3.bf16.msra.mxu0 %v9116_v43 }
 0x225   : > { %v10637_v38 = vadd.f32 %v7562_v20, %v10459_v54  ;;  %v10640_v46 = vadd.f32 %v7626_v21, %v10462_v29  ;;  %v7565_v1 = vadd.f32 %v7564_v13, %v7563_v55  ;;  %v7629_v23 = vadd.f32 %v7628_v62, %v7627_v24  ;;  %8410 = vmatprep.subr.bf16.mxu0 %v10630_v39  ;;  %v9046_v55 = vld [vmem:[%s9409_s9 + $0x4f0] ss:$100 sps:$4 sm:$0xff]  }
 0x226   : > { %5473 = vmatmul.mubr.bf16.gmra.mrb[0].mxu1 %v9027_v8  ;;  %5570 = vmatmul.mubr.bf16.gmra.mrb[0].mxu0 %v9030_v37  ;;  %v9055_v62 = vld [vmem:[%s9409_s9 + $0xbf4] ss:$100 sps:$4 sm:$0xff]  }
 0x227   : > { %v10644_v63 = vadd.f32 %v7565_v1, %v10465_v7  ;;  %v10647_v30 = vadd.f32 %v7629_v23, %v10468_v26  ;;  %5480 = vmatprep.mubr.bf16.mxu1 %v9039_v27  ;;  %5577 = vmatprep.mubr.bf16.mxu0 %v9042_v42  ;;  %v9058_v1 = vld [vmem:[%s9409_s9 + $0x5bc] ss:$100 sps:$4 sm:$0xff]  }
 0x229   : > { %v7566_v54 = vpop.f32.mrb[152].mxu0  ;;  %v7630_v28 = vpop.f32.mrb[152].mxu1 }
 0x22a   : > { %v7567_v29 = vpop.f32.mrb[153].mxu0  ;;  %v7631_v41 = vpop.f32.mrb[153].mxu1 }
 0x22b   : > { %v7568_v61 = vadd.f32 %v7567_v29, %v7566_v54  ;;  %v7632_v10 = vadd.f32 %v7631_v41, %v7630_v28  ;;  %v7569_v15 = vpop.f32.mrb[154].mxu0  ;;  %v7633_v60 = vpop.f32.mrb[154].mxu1 }
 0x22c   : > { %v7570_v43 = vpop.f32.mrb[155].mxu0  ;;  %v7634_v7 = vpop.f32.mrb[155].mxu1 }
 0x22d   : > { %v10654_v26 = vadd.f32 %v7568_v61, %v10475_v44  ;;  %v10657_v53 = vadd.f32 %v7632_v10, %v10478_v6  ;;  %v7571_v57 = vadd.f32 %v7570_v43, %v7569_v15  ;;  %v7635_v17 = vadd.f32 %v7634_v7, %v7633_v60  ;;  %v9043_v6 = vld [vmem:[%s9409_s9 + $0xb28] ss:$100 sps:$4 sm:$0xff]   ;;  %v9056_v15 = vld [vmem:[%s9409_s9 + $0x5b8] ss:$100 sps:$4 sm:$0xff]  }
 0x22e   : > { %5481 = vmatmul.mubr.bf16.gmra.mrb[4].mxu1 %v9037_v19  ;;  %5578 = vmatmul.mubr.bf16.gmra.mrb[4].mxu0 %v9040_v33  ;;  %v9061_v7 = vld [vmem:[%s9409_s9 + $0x684] ss:$100 sps:$4 sm:$0xff]  }
 0x22f   : > { %v10660_v11 = vadd.f32 %v7571_v57, %v10481_v40  ;;  %v10663_v8 = vadd.f32 %v7635_v17, %v10484_v16  ;;  %5488 = vmatprep.mubr.bf16.mxu1 %v9045_v14  ;;  %5585 = vmatprep.mubr.bf16.mxu0 %v9048_v36  ;;  %v9064_v57 = vld [vmem:[%s9409_s9 + $0x4c] ss:$100 sps:$4 sm:$0xff]  }
 0x231   : > { %v7572_v37 = vpop.f32.mrb[156].mxu0  ;;  %v7636_v44 = vpop.f32.mrb[156].mxu1 }
 0x232   : > { %v7573_v20 = vpop.f32.mrb[157].mxu0  ;;  %v7637_v21 = vpop.f32.mrb[157].mxu1 }
 0x233   : > { %v7574_v24 = vadd.f32 %v7573_v20, %v7572_v37  ;;  %v7638_v27 = vadd.f32 %v7637_v21, %v7636_v44  ;;  %v7575_v42 = vpop.f32.mrb[158].mxu0  ;;  %v7639_v13 = vpop.f32.mrb[158].mxu1 }
 0x234   : > { %v7576_v23 = vpop.f32.mrb[159].mxu0  ;;  %v7640_v40 = vpop.f32.mrb[159].mxu1 }
 0x235   : > { %v10670_v16 = vadd.f32 %v7574_v24, %v10491_v45  ;;  %v10673_v54 = vadd.f32 %v7638_v27, %v10494_v18  ;;  %v7577_v28 = vadd.f32 %v7576_v23, %v7575_v42  ;;  %v7641_v29 = vadd.f32 %v7640_v40, %v7639_v13  ;;  %v9053_v18 = vld [vmem:[%s9409_s9 + $0xbf0] ss:$100 sps:$4 sm:$0xff]   ;;  %v9062_v42 = vld [vmem:[%s9409_s9 + $0x48] ss:$100 sps:$4 sm:$0xff]  }
 0x236   : > { %5489 = vmatmul.mubr.bf16.gmra.mrb[8].mxu1 %v9043_v6  ;;  %5586 = vmatmul.mubr.bf16.gmra.mrb[8].mxu0 %v9046_v55  ;;  %v9071_v40 = vld [vmem:[%s9409_s9 + $0x74c] ss:$100 sps:$4 sm:$0xff]  }
 0x237   : > { %v10676_v41 = vadd.f32 %v7577_v28, %v10497_v52  ;;  %v10679_v19 = vadd.f32 %v7641_v29, %v10500_v58  ;;  %5496 = vmatprep.mubr.bf16.mxu1 %v9055_v62  ;;  %5593 = vmatprep.mubr.bf16.mxu0 %v9058_v1  ;;  %v9074_v29 = vld [vmem:[%s9409_s9 + $0x114] ss:$100 sps:$4 sm:$0xff]  }
 0x239   : > { %v7578_v33 = vpop.f32.mrb[160].mxu0  ;;  %v7642_v45 = vpop.f32.mrb[160].mxu1 }
 0x23a   : > { %v7579_v61 = vpop.f32.mrb[161].mxu0  ;;  %v7643_v10 = vpop.f32.mrb[161].mxu1 }
 0x23b   : > { %v7580_v60 = vadd.f32 %v7579_v61, %v7578_v33  ;;  %v7644_v14 = vadd.f32 %v7643_v10, %v7642_v45  ;;  %v7581_v36 = vpop.f32.mrb[162].mxu0  ;;  %v7645_v43 = vpop.f32.mrb[162].mxu1  ;;  %v9081_v33 = vld [vmem:[%s11594_s1 + $0x5c8] sm:$0xff]  }
 0x23c   : > { %v7582_v17 = vpop.f32.mrb[163].mxu0  ;;  %v7646_v52 = vpop.f32.mrb[163].mxu1 }
 0x23d   : > { %v10686_v58 = vadd.f32 %v7580_v60, %v10507_v50  ;;  %v10689_v37 = vadd.f32 %v7644_v14, %v10510_v48  ;;  %v7583_v44 = vadd.f32 %v7582_v17, %v7581_v36  ;;  %v7647_v20 = vadd.f32 %v7646_v52, %v7645_v43  ;;  %v9059_v48 = vld [vmem:[%s9409_s9 + $0x680] ss:$100 sps:$4 sm:$0xff]  }
 0x23e   : > { %5497 = vmatmul.mubr.bf16.gmra.mrb[12].mxu1 %v9053_v18  ;;  %5594 = vmatmul.mubr.bf16.gmra.mrb[12].mxu0 %v9056_v15 }
 0x23f   : > { %v10692_v21 = vadd.f32 %v7583_v44, %v10513_v47  ;;  %v10695_v6 = vadd.f32 %v7647_v20, %v10516_v5  ;;  %5601 = vmatprep.mubr.bf16.mxu0 %v9061_v7  ;;  %5698 = vmatprep.mubr.bf16.mxu1 %v9064_v57  ;;  %v9066_v47 = vld [vmem:[%s11594_s1 + $0x580] sm:$0xff]   ;;  %v9072_v7 = vld [vmem:[%s9409_s9 + $0x110] ss:$100 sps:$4 sm:$0xff]  }
 0x240   : > { %v9077_v20 = vld [vmem:[%s9409_s9 + $0x814] ss:$100 sps:$4 sm:$0xff]  }
 0x241   : > { %v7584_v55 = vpop.f32.mrb[164].mxu0  ;;  %v7648_v50 = vpop.f32.mrb[164].mxu1 }
 0x242   : > { %v7585_v24 = vpop.f32.mrb[165].mxu0  ;;  %v7649_v27 = vpop.f32.mrb[165].mxu1 }
 0x243   : > { %v7586_v13 = vadd.f32 %v7585_v24, %v7584_v55  ;;  %v7650_v62 = vadd.f32 %v7649_v27, %v7648_v50  ;;  %v7587_v1 = vpop.f32.mrb[166].mxu0  ;;  %v7651_v23 = vpop.f32.mrb[166].mxu1  ;;  %v9080_v55 = vld [vmem:[%s9409_s9 + $0x1dc] ss:$100 sps:$4 sm:$0xff]   ;;  %v9098_v27 = vld [vmem:[%s11594_s1 + $0x590] sm:$0xff]  }
 0x244   : > { %v7588_v5 = vpop.f32.mrb[167].mxu0  ;;  %v7652_v28 = vpop.f32.mrb[167].mxu1 }
 0x245   : > { %v10708_v45 = vadd.f32 %v7586_v13, %v10529_v34  ;;  %v10711_v61 = vadd.f32 %v7650_v62, %v10532_v25  ;;  %v7589_v10 = vadd.f32 %v7588_v5, %v7587_v1  ;;  %v7653_v18 = vadd.f32 %v7652_v28, %v7651_v23  ;;  %v9082_v34 = vld [vmem:[%s11594_s1 + $0x588] sm:$0xff]   ;;  %v9097_v25 = vld [vmem:[%s11594_s1 + $0x5d0] sm:$0xff]   ;;  %v9113_v1 = vld [vmem:[%s11594_s1 + $0x5d8] sm:$0xff]  }
 0x246   : > { %5602 = vmatmul.mubr.bf16.gmra.mrb[16].mxu0 %v9059_v48  ;;  %5699 = vmatmul.mubr.bf16.vlgmr.msra.gmra.mrb[16].mxu1 %v9062_v42 }
 0x247   : > { %v10714_v15 = vadd.f32 %v7589_v10, %v10538_v4  ;;  %v10717_v60 = vadd.f32 %v7653_v18, %v10541_v0  ;;  %8275 = vmatpush3.bf16.msra.mxu1 %v9066_v47  ;;  %5609 = vmatprep.mubr.bf16.mxu0 %v9071_v40  ;;  %v9069_v0 = vld [vmem:[%s9409_s9 + $0x748] ss:$100 sps:$4 sm:$0xff]  }
 0x248   : > { %5706 = vmatprep.mubr.bf16.mxu1 %v9074_v29  ;;  %8276 = vmatprep.subr.bf16.mxu1 %v9081_v33  ;;  %v9078_v29 = vld [vmem:[%s9409_s9 + $0x1d8] ss:$100 sps:$4 sm:$0xff]  }
 0x249   : > { %v7590_v14 = vpop.f32.mrb[168].mxu0  ;;  %v7654_v4 = vpop.f32.mrb[168].mxu1 }
 0x24a   : > { %v7591_v36 = vpop.f32.mrb[169].mxu0  ;;  %v7655_v43 = vpop.f32.mrb[169].mxu1 }
 0x24b   : > { %v7592_v57 = vadd.f32 %v7591_v36, %v7590_v14  ;;  %v7656_v17 = vadd.f32 %v7655_v43, %v7654_v4  ;;  %v7593_v52 = vpop.f32.mrb[170].mxu0  ;;  %v7657_v44 = vpop.f32.mrb[170].mxu1  ;;  %8277 = vmatpush3.bf16.msra.mxu1 %v9082_v34  ;;  %v9090_v14 = vld [vmem:[%s9409_s9 + $0x2a4] ss:$100 sps:$4 sm:$0xff]  }
 0x24c   : > { %v7594_v50 = vpop.f32.mrb[171].mxu0  ;;  %v7658_v24 = vpop.f32.mrb[171].mxu1  ;;  %8278 = vmatprep.subr.bf16.mxu1 %v9097_v25  ;;  %v9087_v25 = vld [vmem:[%s9409_s9 + $0x8dc] ss:$100 sps:$4 sm:$0xff]  }
 0x24d   : > { %v10733_v48 = vadd.f32 %v7592_v57, %v10557_v9  ;;  %v10736_v42 = vadd.f32 %v7656_v17, %v10560_v31  ;;  %v7595_v13 = vadd.f32 %v7594_v50, %v7593_v52  ;;  %v7659_v62 = vadd.f32 %v7658_v24, %v7657_v44  ;;  %v9114_v9 = vld [vmem:[%s11594_s1 + $0x598] sm:$0xff]   ;;  %v9130_v43 = vld [vmem:[%s11594_s1 + $0x5a0] sm:$0xff]   ;;  %v9144_v52 = vld [vmem:[%s11594_s1 + $0x5e8] sm:$0xff]  }
 0x24e   : > { %5610 = vmatmul.mubr.bf16.gmra.mrb[20].mxu0 %v9069_v0  ;;  %5707 = vmatmul.mubr.bf16.gmra.mrb[20].mxu1 %v9072_v7 }
 0x24f   : > { %v10742_v23 = vadd.f32 %v7595_v13, %v10563_v22  ;;  %v10745_v47 = vadd.f32 %v7659_v62, %v10566_v35  ;;  %5617 = vmatprep.mubr.bf16.mxu0 %v9077_v20  ;;  %5714 = vmatprep.mubr.bf16.mxu1 %v9080_v55  ;;  %v9129_v22 = vld [vmem:[%s11594_s1 + $0x5e0] sm:$0xff]   ;;  %v9075_v35 = vld [vmem:[%s9409_s9 + $0x810] ss:$100 sps:$4 sm:$0xff]  }
 0x250   : > { %8279 = vmatpush3.bf16.msra.mxu1 %v9098_v27  ;;  %v9088_v27 = vld [vmem:[%s9409_s9 + $0x2a0] ss:$100 sps:$4 sm:$0xff]  }
 0x251   : > { %v7596_v31 = vpop.f32.mrb[172].mxu0  ;;  %v7660_v40 = vpop.f32.mrb[172].mxu1  ;;  %8280 = vmatprep.subr.bf16.mxu1 %v9113_v1 }
 0x252   : > { %v7597_v5 = vpop.f32.mrb[173].mxu0  ;;  %v7661_v28 = vpop.f32.mrb[173].mxu1 }
 0x253   : > { %v7598_v33 = vadd.f32 %v7597_v5, %v7596_v31  ;;  %v7662_v10 = vadd.f32 %v7661_v28, %v7660_v40  ;;  %v7599_v18 = vpop.f32.mrb[174].mxu0  ;;  %v7663_v34 = vpop.f32.mrb[174].mxu1  ;;  %v9093_v31 = vld [vmem:[%s9409_s9 + $0x9a4] ss:$100 sps:$4 sm:$0xff]   ;;  %v9096_v40 = vld [vmem:[%s9409_s9 + $0x36c] ss:$100 sps:$4 sm:$0xff]  }
 0x254   : > { %v7600_v4 = vpop.f32.mrb[175].mxu0  ;;  %v7664_v36 = vpop.f32.mrb[175].mxu1  ;;  %8281 = vmatpush3.bf16.msra.mxu1 %v9114_v9  ;;  %v9160_v28 = vld [vmem:[%s11594_s1 + $0x5b0] sm:$0xff]  }
 0x255   : > { %v10761_v0 = vadd.f32 %v7598_v33, %v10582_v2  ;;  %v10764_v7 = vadd.f32 %v7662_v10, %v10585_v3  ;;  %v7601_v57 = vadd.f32 %v7600_v4, %v7599_v18  ;;  %v7665_v17 = vadd.f32 %v7664_v36, %v7663_v34  ;;  %8282 = vmatprep.subr.bf16.mxu1 %v9129_v22  ;;  %v9145_v3 = vld [vmem:[%s11594_s1 + $0x5a8] sm:$0xff]   ;;  %v9174_v18 = vld [vmem:[%s11594_s1 + $0x5f8] sm:$0xff]  }
 0x256   : > { %5618 = vmatmul.mubr.bf16.gmra.mrb[24].mxu0 %v9075_v35  ;;  %5715 = vmatmul.mubr.bf16.gmra.mrb[24].mxu1 %v9078_v29 }
 0x257   : > { %v10770_v44 = vadd.f32 %v7601_v57, %v10591_v32  ;;  %v10773_v2 = vadd.f32 %v7665_v17, %v10594_v12  ;;  %5625 = vmatprep.mubr.bf16.mxu0 %v9087_v25  ;;  %5722 = vmatprep.mubr.bf16.mxu1 %v9090_v14  ;;  %v9159_v32 = vld [vmem:[%s11594_s1 + $0x5f0] sm:$0xff]   ;;  %v9085_v12 = vld [vmem:[%s9409_s9 + $0x8d8] ss:$100 sps:$4 sm:$0xff]  }
 0x258   : > { %8283 = vmatpush3.bf16.msra.mxu1 %v9130_v43  ;;  %v9091_v43 = vld [vmem:[%s9409_s9 + $0x9a0] ss:$100 sps:$4 sm:$0xff]  }
 0x259   : > { %v7666_v20 = vpop.f32.mrb[176].mxu1  ;;  %v7730_v55 = vpop.f32.mrb[176].mxu0  ;;  %8284 = vmatprep.subr.bf16.mxu1 %v9144_v52 }
 0x25a   : > { %v7667_v50 = vpop.f32.mrb[177].mxu1  ;;  %v7731_v24 = vpop.f32.mrb[177].mxu0 }
 0x25b   : > { %v7668_v13 = vadd.f32 %v7667_v50, %v7666_v20  ;;  %v7732_v62 = vadd.f32 %v7731_v24, %v7730_v55  ;;  %v7669_v1 = vpop.f32.mrb[178].mxu1  ;;  %v7733_v9 = vpop.f32.mrb[178].mxu0  ;;  %v9106_v20 = vld [vmem:[%s9409_s9 + $0x434] ss:$100 sps:$4 sm:$0xff]  }
 0x25c   : > { %v7670_v22 = vpop.f32.mrb[179].mxu1  ;;  %v7734_v5 = vpop.f32.mrb[179].mxu0  ;;  %8285 = vmatpush3.bf16.msra.mxu1 %v9145_v3  ;;  %v9103_v3 = vld [vmem:[%s9409_s9 + $0xa6c] ss:$100 sps:$4 sm:$0xff]  }
 0x25d   : > { %v10789_v35 = vadd.f32 %v7668_v13, %v10610_v51  ;;  %v10792_v29 = vadd.f32 %v7732_v62, %v10613_v49  ;;  %v7671_v33 = vadd.f32 %v7670_v22, %v7669_v1  ;;  %v7735_v10 = vadd.f32 %v7734_v5, %v7733_v9  ;;  %8286 = vmatprep.subr.bf16.mxu1 %v9159_v32  ;;  %v9175_v49 = vld [vmem:[%s11594_s1 + $0x5b8] sm:$0xff]  }
 0x25e   : > { %5626 = vmatmul.mubr.bf16.gmra.mrb[28].mxu0 %v9085_v12  ;;  %5723 = vmatmul.mubr.bf16.gmra.mrb[28].mxu1 %v9088_v27 }
 0x25f   : > { %v10798_v34 = vadd.f32 %v7671_v33, %v10619_v56  ;;  %v10801_v51 = vadd.f32 %v7735_v10, %v10622_v59  ;;  %5633 = vmatprep.mubr.bf16.mxu0 %v9093_v31  ;;  %5730 = vmatprep.mubr.bf16.mxu1 %v9096_v40  ;;  %v9094_v56 = vld [vmem:[%s9409_s9 + $0x368] ss:$100 sps:$4 sm:$0xff]   ;;  %v9104_v40 = vld [vmem:[%s9409_s9 + $0x430] ss:$100 sps:$4 sm:$0xff]  }
 0x260   : > { %8287 = vmatpush3.bf16.msra.mxu1 %v9160_v28  ;;  %v9109_v10 = vld [vmem:[%s9409_s9 + $0xb34] ss:$100 sps:$4 sm:$0xff]  }
 0x261   : > { %v7672_v25 = vpop.f32.mrb[180].mxu1  ;;  %v7736_v14 = vpop.f32.mrb[180].mxu0  ;;  %8288 = vmatprep.subr.bf16.mxu1 %v9174_v18  ;;  %v9112_v18 = vld [vmem:[%s9409_s9 + $0x4fc] ss:$100 sps:$4 sm:$0xff]  }
 0x262   : > { %v7673_v4 = vpop.f32.mrb[181].mxu1  ;;  %v7737_v36 = vpop.f32.mrb[181].mxu0 }
 0x263   : > { %v7674_v57 = vadd.f32 %v7673_v4, %v7672_v25  ;;  %v7738_v17 = vadd.f32 %v7737_v36, %v7736_v14  ;;  %v7675_v59 = vpop.f32.mrb[182].mxu1  ;;  %v7739_v52 = vpop.f32.mrb[182].mxu0 }
 0x264   : > { %v7676_v55 = vpop.f32.mrb[183].mxu1  ;;  %v7740_v32 = vpop.f32.mrb[183].mxu0  ;;  %8289 = vmatpush3.bf16.msra.mxu1 %v9175_v49 }
 0x265   : > { %v10811_v50 = vadd.f32 %v7674_v57, %v10637_v38  ;;  %v10814_v24 = vadd.f32 %v7738_v17, %v10640_v46  ;;  %v7677_v12 = vadd.f32 %v7676_v55, %v7675_v59  ;;  %v7741_v27 = vadd.f32 %v7740_v32, %v7739_v52  ;;  %v9101_v46 = vld [vmem:[%s9409_s9 + $0xa68] ss:$100 sps:$4 sm:$0xff]   ;;  %v9110_v59 = vld [vmem:[%s9409_s9 + $0x4f8] ss:$100 sps:$4 sm:$0xff]  }
 0x266   : > { %5634 = vmatmul.mubr.bf16.gmra.mrb[32].mxu0 %v9091_v43  ;;  %5731 = vmatmul.mubr.bf16.gmra.mrb[32].mxu1 %v9094_v56  ;;  %v9119_v32 = vld [vmem:[%s9409_s9 + $0xbfc] ss:$100 sps:$4 sm:$0xff]  }
 0x267   : > { %v10817_v13 = vadd.f32 %v7677_v12, %v10644_v63  ;;  %v10820_v62 = vadd.f32 %v7741_v27, %v10647_v30  ;;  %5641 = vmatprep.mubr.bf16.mxu0 %v9103_v3  ;;  %5738 = vmatprep.mubr.bf16.mxu1 %v9106_v20  ;;  %v9122_v12 = vld [vmem:[%s9409_s9 + $0x5c4] ss:$100 sps:$4 sm:$0xff]  }
 0x269   : > { %v7678_v1 = vpop.f32.mrb[184].mxu1  ;;  %v7742_v38 = vpop.f32.mrb[184].mxu0 }
 0x26a   : > { %v7679_v9 = vpop.f32.mrb[185].mxu1  ;;  %v7743_v31 = vpop.f32.mrb[185].mxu0 }
 0x26b   : > { %v7680_v22 = vadd.f32 %v7679_v9, %v7678_v1  ;;  %v7744_v5 = vadd.f32 %v7743_v31, %v7742_v38  ;;  %v7681_v28 = vpop.f32.mrb[186].mxu1  ;;  %v7745_v33 = vpop.f32.mrb[186].mxu0 }
 0x26c   : > { %v7682_v49 = vpop.f32.mrb[187].mxu1  ;;  %v7746_v63 = vpop.f32.mrb[187].mxu0 }
 0x26d   : > { %v10827_v30 = vadd.f32 %v7680_v22, %v10654_v26  ;;  %v10830_v25 = vadd.f32 %v7744_v5, %v10657_v53  ;;  %v7683_v14 = vadd.f32 %v7682_v49, %v7681_v28  ;;  %v7747_v4 = vadd.f32 %v7746_v63, %v7745_v33  ;;  %v9107_v53 = vld [vmem:[%s9409_s9 + $0xb30] ss:$100 sps:$4 sm:$0xff]   ;;  %v9120_v28 = vld [vmem:[%s9409_s9 + $0x5c0] ss:$100 sps:$4 sm:$0xff]  }
 0x26e   : > { %5642 = vmatmul.mubr.bf16.gmra.mrb[36].mxu0 %v9101_v46  ;;  %5739 = vmatmul.mubr.bf16.gmra.mrb[36].mxu1 %v9104_v40  ;;  %v9125_v63 = vld [vmem:[%s9409_s9 + $0x68c] ss:$100 sps:$4 sm:$0xff]  }
 0x26f   : > { %v10833_v36 = vadd.f32 %v7683_v14, %v10660_v11  ;;  %v10836_v43 = vadd.f32 %v7747_v4, %v10663_v8  ;;  %5649 = vmatprep.mubr.bf16.mxu0 %v9109_v10  ;;  %5746 = vmatprep.mubr.bf16.mxu1 %v9112_v18  ;;  %v9128_v14 = vld [vmem:[%s9409_s9 + $0x54] ss:$100 sps:$4 sm:$0xff]  }
 0x271   : > { %v7684_v56 = vpop.f32.mrb[188].mxu1  ;;  %v7748_v26 = vpop.f32.mrb[188].mxu0 }
 0x272   : > { %v7685_v57 = vpop.f32.mrb[189].mxu1  ;;  %v7749_v17 = vpop.f32.mrb[189].mxu0 }
 0x273   : > { %v7686_v52 = vadd.f32 %v7685_v57, %v7684_v56  ;;  %v7750_v3 = vadd.f32 %v7749_v17, %v7748_v26  ;;  %v7687_v20 = vpop.f32.mrb[190].mxu1  ;;  %v7751_v55 = vpop.f32.mrb[190].mxu0 }
 0x274   : > { %v7688_v27 = vpop.f32.mrb[191].mxu1  ;;  %v7752_v11 = vpop.f32.mrb[191].mxu0 }
 0x275   : > { %v10843_v8 = vadd.f32 %v7686_v52, %v10670_v16  ;;  %v10846_v1 = vadd.f32 %v7750_v3, %v10673_v54  ;;  %v7689_v38 = vadd.f32 %v7688_v27, %v7687_v20  ;;  %v7753_v9 = vadd.f32 %v7752_v11, %v7751_v55  ;;  %v9117_v54 = vld [vmem:[%s9409_s9 + $0xbf8] ss:$100 sps:$4 sm:$0xff]   ;;  %v9126_v20 = vld [vmem:[%s9409_s9 + $0x50] ss:$100 sps:$4 sm:$0xff]  }
 0x276   : > { %5650 = vmatmul.mubr.bf16.gmra.mrb[40].mxu0 %v9107_v53  ;;  %5747 = vmatmul.mubr.bf16.gmra.mrb[40].mxu1 %v9110_v59  ;;  %v9134_v11 = vld [vmem:[%s9409_s9 + $0x754] ss:$100 sps:$4 sm:$0xff]  }
 0x277   : > { %v10849_v31 = vadd.f32 %v7689_v38, %v10676_v41  ;;  %v10852_v46 = vadd.f32 %v7753_v9, %v10679_v19  ;;  %5657 = vmatprep.mubr.bf16.mxu0 %v9119_v32  ;;  %5754 = vmatprep.mubr.bf16.mxu1 %v9122_v12  ;;  %v9137_v9 = vld [vmem:[%s9409_s9 + $0x11c] ss:$100 sps:$4 sm:$0xff]  }
 0x279   : > { %v7690_v40 = vpop.f32.mrb[192].mxu1  ;;  %v7754_v16 = vpop.f32.mrb[192].mxu0 }
 0x27a   : > { %v7691_v22 = vpop.f32.mrb[193].mxu1  ;;  %v7755_v5 = vpop.f32.mrb[193].mxu0 }
 0x27b   : > { %v7692_v33 = vadd.f32 %v7691_v22, %v7690_v40  ;;  %v7756_v10 = vadd.f32 %v7755_v5, %v7754_v16  ;;  %v7693_v18 = vpop.f32.mrb[194].mxu1  ;;  %v7757_v49 = vpop.f32.mrb[194].mxu0 }
 0x27c   : > { %v7694_v4 = vpop.f32.mrb[195].mxu1  ;;  %v7758_v41 = vpop.f32.mrb[195].mxu0 }
 0x27d   : > { %v10859_v19 = vadd.f32 %v7692_v33, %v10686_v58  ;;  %v10862_v56 = vadd.f32 %v7756_v10, %v10689_v37  ;;  %v7695_v26 = vadd.f32 %v7694_v4, %v7693_v18  ;;  %v7759_v57 = vadd.f32 %v7758_v41, %v7757_v49  ;;  %v9123_v37 = vld [vmem:[%s9409_s9 + $0x688] ss:$100 sps:$4 sm:$0xff]   ;;  %v9135_v49 = vld [vmem:[%s9409_s9 + $0x118] ss:$100 sps:$4 sm:$0xff]  }
 0x27e   : > { %5658 = vmatmul.mubr.bf16.gmra.mrb[44].mxu0 %v9117_v54  ;;  %5755 = vmatmul.mubr.bf16.gmra.mrb[44].mxu1 %v9120_v28  ;;  %v9140_v41 = vld [vmem:[%s9409_s9 + $0x81c] ss:$100 sps:$4 sm:$0xff]  }
 0x27f   : > { %v10865_v17 = vadd.f32 %v7695_v26, %v10692_v21  ;;  %v10868_v53 = vadd.f32 %v7759_v57, %v10695_v6  ;;  %5762 = vmatprep.mubr.bf16.mxu1 %v9125_v63  ;;  %5859 = vmatprep.mubr.bf16.mxu0 %v9128_v14  ;;  %v9146_v6 = vld [vmem:[%s11594_s1 + $0x608] sm:$0xff]  }
 0x281   : > { %v7696_v59 = vpop.f32.mrb[196].mxu1  ;;  %v7760_v58 = vpop.f32.mrb[196].mxu0 }
 0x282   : > { %v7697_v52 = vpop.f32.mrb[197].mxu1  ;;  %v7761_v3 = vpop.f32.mrb[197].mxu0 }
 0x283   : > { %v7698_v55 = vadd.f32 %v7697_v52, %v7696_v59  ;;  %v7762_v32 = vadd.f32 %v7761_v3, %v7760_v58  ;;  %v7699_v12 = vpop.f32.mrb[198].mxu1  ;;  %v7763_v27 = vpop.f32.mrb[198].mxu0 }
 0x284   : > { %v7700_v38 = vpop.f32.mrb[199].mxu1  ;;  %v7764_v21 = vpop.f32.mrb[199].mxu0 }
 0x285   : > { %v10878_v40 = vadd.f32 %v7698_v55, %v10708_v45  ;;  %v10881_v16 = vadd.f32 %v7762_v32, %v10711_v61  ;;  %v7701_v22 = vadd.f32 %v7700_v38, %v7699_v12  ;;  %v7765_v5 = vadd.f32 %v7764_v21, %v7763_v27  ;;  %v9161_v45 = vld [vmem:[%s11594_s1 + $0x610] sm:$0xff]   ;;  %v9189_v32 = vld [vmem:[%s11594_s1 + $0x620] sm:$0xff]  }
 0x286   : > { %5763 = vmatmul.mubr.bf16.gmra.mrb[48].mxu1 %v9123_v37  ;;  %5860 = vmatmul.mubr.bf16.vlgmr.msra.gmra.mrb[48].mxu0 %v9126_v20  ;;  %v9176_v37 = vld [vmem:[%s11594_s1 + $0x618] sm:$0xff]  }
 0x287   : > { %v10884_v54 = vadd.f32 %v7701_v22, %v10714_v15  ;;  %v10887_v28 = vadd.f32 %v7765_v5, %v10717_v60  ;;  %8411 = vmatpush3.bf16.msra.mxu0 %v10630_v39  ;;  %5770 = vmatprep.mubr.bf16.mxu1 %v9134_v11  ;;  %v9132_v15 = vld [vmem:[%s9409_s9 + $0x750] ss:$100 sps:$4 sm:$0xff]   ;;  %v9143_v39 = vld [vmem:[%s9409_s9 + $0x1e4] ss:$100 sps:$4 sm:$0xff]   ;;  %v9138_v11 = vld [vmem:[%s9409_s9 + $0x818] ss:$100 sps:$4 sm:$0xff]  }
 0x288   : > { %5867 = vmatprep.mubr.bf16.mxu0 %v9137_v9  ;;  %8412 = vmatprep.subr.bf16.mxu0 %v9146_v6  ;;  %v9152_v22 = vld [vmem:[%s9409_s9 + $0x2ac] ss:$100 sps:$4 sm:$0xff]  }
 0x289   : > { %v7702_v61 = vpop.f32.mrb[200].mxu1  ;;  %v7766_v33 = vpop.f32.mrb[200].mxu0 }
 0x28a   : > { %v7703_v10 = vpop.f32.mrb[201].mxu1  ;;  %v7767_v18 = vpop.f32.mrb[201].mxu0 }
 0x28b   : > { %v7704_v63 = vadd.f32 %v7703_v10, %v7702_v61  ;;  %v7768_v60 = vadd.f32 %v7767_v18, %v7766_v33  ;;  %v7705_v14 = vpop.f32.mrb[202].mxu1  ;;  %v7769_v4 = vpop.f32.mrb[202].mxu0  ;;  %8413 = vmatpush3.bf16.msra.mxu0 %v9146_v6  ;;  %v9149_v6 = vld [vmem:[%s9409_s9 + $0x8e4] ss:$100 sps:$4 sm:$0xff]  }
 0x28c   : > { %v7706_v26 = vpop.f32.mrb[203].mxu1  ;;  %v7770_v57 = vpop.f32.mrb[203].mxu0  ;;  %8414 = vmatprep.subr.bf16.mxu0 %v9161_v45 }
 0x28d   : > { %v10898_v59 = vadd.f32 %v7704_v63, %v10733_v48  ;;  %v10901_v58 = vadd.f32 %v7768_v60, %v10736_v42  ;;  %v7707_v52 = vadd.f32 %v7706_v26, %v7705_v14  ;;  %v7771_v3 = vadd.f32 %v7770_v57, %v7769_v4  ;;  %v9215_v60 = vld [vmem:[%s11594_s1 + $0x630] sm:$0xff]  }
 0x28e   : > { %5771 = vmatmul.mubr.bf16.gmra.mrb[52].mxu1 %v9132_v15  ;;  %5868 = vmatmul.mubr.bf16.gmra.mrb[52].mxu0 %v9135_v49  ;;  %v9202_v15 = vld [vmem:[%s11594_s1 + $0x628] sm:$0xff]  }
 0x28f   : > { %v10907_v20 = vadd.f32 %v7707_v52, %v10742_v23  ;;  %v10910_v55 = vadd.f32 %v7771_v3, %v10745_v47  ;;  %5778 = vmatprep.mubr.bf16.mxu1 %v9140_v41  ;;  %5875 = vmatprep.mubr.bf16.mxu0 %v9143_v39  ;;  %v9141_v23 = vld [vmem:[%s9409_s9 + $0x1e0] ss:$100 sps:$4 sm:$0xff]   ;;  %v9155_v52 = vld [vmem:[%s9409_s9 + $0x9ac] ss:$100 sps:$4 sm:$0xff]   ;;  %v9158_v3 = vld [vmem:[%s9409_s9 + $0x374] ss:$100 sps:$4 sm:$0xff]  }
 0x290   : > { %8415 = vmatpush3.bf16.msra.mxu0 %v9161_v45  ;;  %v9147_v41 = vld [vmem:[%s9409_s9 + $0x8e0] ss:$100 sps:$4 sm:$0xff]  }
 0x291   : > { %v7708_v48 = vpop.f32.mrb[204].mxu1  ;;  %v7772_v42 = vpop.f32.mrb[204].mxu0  ;;  %8416 = vmatprep.subr.bf16.mxu0 %v9176_v37 }
 0x292   : > { %v7709_v12 = vpop.f32.mrb[205].mxu1  ;;  %v7773_v27 = vpop.f32.mrb[205].mxu0 }
 0x293   : > { %v7710_v38 = vadd.f32 %v7709_v12, %v7708_v48  ;;  %v7774_v21 = vadd.f32 %v7773_v27, %v7772_v42  ;;  %v7711_v47 = vpop.f32.mrb[206].mxu1  ;;  %v7775_v9 = vpop.f32.mrb[206].mxu0 }
 0x294   : > { %v7712_v5 = vpop.f32.mrb[207].mxu1  ;;  %v7776_v61 = vpop.f32.mrb[207].mxu0  ;;  %8417 = vmatpush3.bf16.msra.mxu0 %v9176_v37 }
 0x295   : > { %v10920_v45 = vadd.f32 %v7710_v38, %v10761_v0  ;;  %v10923_v33 = vadd.f32 %v7774_v21, %v10764_v7  ;;  %v7713_v10 = vadd.f32 %v7712_v5, %v7711_v47  ;;  %v7777_v18 = vadd.f32 %v7776_v61, %v7775_v9  ;;  %8418 = vmatprep.subr.bf16.mxu0 %v9189_v32  ;;  %v9153_v9 = vld [vmem:[%s9409_s9 + $0x9a8] ss:$100 sps:$4 sm:$0xff]  }
 0x296   : > { %5779 = vmatmul.mubr.bf16.gmra.mrb[56].mxu1 %v9138_v11  ;;  %5876 = vmatmul.mubr.bf16.gmra.mrb[56].mxu0 %v9141_v23  ;;  %v9228_v11 = vld [vmem:[%s11594_s1 + $0x638] sm:$0xff]  }
 0x297   : > { %v10929_v49 = vadd.f32 %v7713_v10, %v10770_v44  ;;  %v10932_v0 = vadd.f32 %v7777_v18, %v10773_v2  ;;  %5786 = vmatprep.mubr.bf16.mxu1 %v9149_v6  ;;  %5883 = vmatprep.mubr.bf16.mxu0 %v9152_v22  ;;  %v9150_v44 = vld [vmem:[%s9409_s9 + $0x2a8] ss:$100 sps:$4 sm:$0xff]   ;;  %v9156_v6 = vld [vmem:[%s9409_s9 + $0x370] ss:$100 sps:$4 sm:$0xff]   ;;  %v9167_v18 = vld [vmem:[%s9409_s9 + $0x43c] ss:$100 sps:$4 sm:$0xff]  }
 0x298   : > { %8419 = vmatpush3.bf16.msra.mxu0 %v9189_v32  ;;  %v9164_v10 = vld [vmem:[%s9409_s9 + $0xa74] ss:$100 sps:$4 sm:$0xff]  }
 0x299   : > { %v7778_v7 = vpop.f32.mrb[208].mxu0  ;;  %v7842_v63 = vpop.f32.mrb[208].mxu1  ;;  %8420 = vmatprep.subr.bf16.mxu0 %v9202_v15 }
 0x29a   : > { %v7779_v14 = vpop.f32.mrb[209].mxu0  ;;  %v7843_v4 = vpop.f32.mrb[209].mxu1 }
 0x29b   : > { %v7780_v39 = vadd.f32 %v7779_v14, %v7778_v7  ;;  %v7844_v26 = vadd.f32 %v7843_v4, %v7842_v63  ;;  %v7781_v2 = vpop.f32.mrb[210].mxu0  ;;  %v7845_v57 = vpop.f32.mrb[210].mxu1 }
 0x29c   : > { %v7782_v37 = vpop.f32.mrb[211].mxu0  ;;  %v7846_v48 = vpop.f32.mrb[211].mxu1  ;;  %8421 = vmatpush3.bf16.msra.mxu0 %v9202_v15 }
 0x29d   : > { %v10942_v42 = vadd.f32 %v7780_v39, %v10789_v35  ;;  %v10945_v32 = vadd.f32 %v7844_v26, %v10792_v29  ;;  %v7783_v12 = vadd.f32 %v7782_v37, %v7781_v2  ;;  %v7847_v27 = vadd.f32 %v7846_v48, %v7845_v57  ;;  %8422 = vmatprep.subr.bf16.mxu0 %v9215_v60  ;;  %v9165_v2 = vld [vmem:[%s9409_s9 + $0x438] ss:$100 sps:$4 sm:$0xff]  }
 0x29e   : > { %5787 = vmatmul.mubr.bf16.gmra.mrb[60].mxu1 %v9147_v41  ;;  %5884 = vmatmul.mubr.bf16.gmra.mrb[60].mxu0 %v9150_v44  ;;  %v9170_v48 = vld [vmem:[%s9409_s9 + $0xb3c] ss:$100 sps:$4 sm:$0xff]  }
 0x29f   : > { %v10951_v23 = vadd.f32 %v7783_v12, %v10798_v34  ;;  %v10954_v35 = vadd.f32 %v7847_v27, %v10801_v51  ;;  %5794 = vmatprep.mubr.bf16.mxu1 %v9155_v52  ;;  %5891 = vmatprep.mubr.bf16.mxu0 %v9158_v3  ;;  %v9173_v12 = vld [vmem:[%s9409_s9 + $0x504] ss:$100 sps:$4 sm:$0xff]  }
 0x2a0   : > { %8423 = vmatpush3.bf16.msra.mxu0 %v9215_v60 }
 0x2a1   : > { %v7784_v29 = vpop.f32.mrb[212].mxu0  ;;  %v7848_v38 = vpop.f32.mrb[212].mxu1  ;;  %8424 = vmatprep.subr.bf16.mxu0 %v9228_v11 }
 0x2a2   : > { %v7785_v21 = vpop.f32.mrb[213].mxu0  ;;  %v7849_v47 = vpop.f32.mrb[213].mxu1 }
 0x2a3   : > { %v7786_v22 = vadd.f32 %v7785_v21, %v7784_v29  ;;  %v7850_v5 = vadd.f32 %v7849_v47, %v7848_v38  ;;  %v7787_v61 = vpop.f32.mrb[214].mxu0  ;;  %v7851_v34 = vpop.f32.mrb[214].mxu1 }
 0x2a4   : > { %v7788_v15 = vpop.f32.mrb[215].mxu0  ;;  %v7852_v51 = vpop.f32.mrb[215].mxu1  ;;  %8425 = vmatpush3.bf16.msra.mxu0 %v9228_v11 }
 0x2a5   : > { %v10961_v7 = vadd.f32 %v7786_v22, %v10811_v50  ;;  %v10964_v63 = vadd.f32 %v7850_v5, %v10814_v24  ;;  %v7789_v60 = vadd.f32 %v7788_v15, %v7787_v61  ;;  %v7853_v14 = vadd.f32 %v7852_v51, %v7851_v34  ;;  %v9162_v24 = vld [vmem:[%s9409_s9 + $0xa70] ss:$100 sps:$4 sm:$0xff]   ;;  %v9171_v5 = vld [vmem:[%s9409_s9 + $0x500] ss:$100 sps:$4 sm:$0xff]  }
 0x2a6   : > { %5795 = vmatmul.mubr.bf16.gmra.mrb[64].mxu1 %v9153_v9  ;;  %5892 = vmatmul.mubr.bf16.gmra.mrb[64].mxu0 %v9156_v6  ;;  %v9179_v15 = vld [vmem:[%s9409_s9 + $0xc04] ss:$100 sps:$4 sm:$0xff]   ;;  %v9182_v51 = vld [vmem:[%s9409_s9 + $0x5cc] ss:$100 sps:$4 sm:$0xff]  }
 0x2a7   : > { %v10967_v4 = vadd.f32 %v7789_v60, %v10817_v13  ;;  %v10970_v41 = vadd.f32 %v7853_v14, %v10820_v62  ;;  %5802 = vmatprep.mubr.bf16.mxu1 %v9164_v10  ;;  %5899 = vmatprep.mubr.bf16.mxu0 %v9167_v18 }
 0x2a9   : > { %v7790_v44 = vpop.f32.mrb[216].mxu0  ;;  %v7854_v50 = vpop.f32.mrb[216].mxu1 }
 0x2aa   : > { %v7791_v39 = vpop.f32.mrb[217].mxu0  ;;  %v7855_v26 = vpop.f32.mrb[217].mxu1 }
 0x2ab   : > { %v7792_v57 = vadd.f32 %v7791_v39, %v7790_v44  ;;  %v7856_v52 = vadd.f32 %v7855_v26, %v7854_v50  ;;  %v7793_v3 = vpop.f32.mrb[218].mxu0  ;;  %v7857_v37 = vpop.f32.mrb[218].mxu1 }
 0x2ac   : > { %v7794_v27 = vpop.f32.mrb[219].mxu0  ;;  %v7858_v13 = vpop.f32.mrb[219].mxu1 }
 0x2ad   : > { %v10977_v62 = vadd.f32 %v7792_v57, %v10827_v30  ;;  %v10980_v11 = vadd.f32 %v7856_v52, %v10830_v25  ;;  %v7795_v29 = vadd.f32 %v7794_v27, %v7793_v3  ;;  %v7859_v38 = vadd.f32 %v7858_v13, %v7857_v37  ;;  %v9168_v25 = vld [vmem:[%s9409_s9 + $0xb38] ss:$100 sps:$4 sm:$0xff]   ;;  %v9180_v52 = vld [vmem:[%s9409_s9 + $0x5c8] ss:$100 sps:$4 sm:$0xff]  }
 0x2ae   : > { %5803 = vmatmul.mubr.bf16.gmra.mrb[68].mxu1 %v9162_v24  ;;  %5900 = vmatmul.mubr.bf16.gmra.mrb[68].mxu0 %v9165_v2  ;;  %v9185_v27 = vld [vmem:[%s9409_s9 + $0x694] ss:$100 sps:$4 sm:$0xff]   ;;  %v9188_v13 = vld [vmem:[%s9409_s9 + $0x5c] ss:$100 sps:$4 sm:$0xff]  }
 0x2af   : > { %v10983_v21 = vadd.f32 %v7795_v29, %v10833_v36  ;;  %v10986_v47 = vadd.f32 %v7859_v38, %v10836_v43  ;;  %5810 = vmatprep.mubr.bf16.mxu1 %v9170_v48  ;;  %5907 = vmatprep.mubr.bf16.mxu0 %v9173_v12 }
 0x2b1   : > { %v7796_v9 = vpop.f32.mrb[220].mxu0  ;;  %v7860_v30 = vpop.f32.mrb[220].mxu1 }
 0x2b2   : > { %v7797_v6 = vpop.f32.mrb[221].mxu0  ;;  %v7861_v22 = vpop.f32.mrb[221].mxu1 }
 0x2b3   : > { %v7798_v61 = vadd.f32 %v7797_v6, %v7796_v9  ;;  %v7862_v34 = vadd.f32 %v7861_v22, %v7860_v30  ;;  %v7799_v10 = vpop.f32.mrb[222].mxu0  ;;  %v7863_v18 = vpop.f32.mrb[222].mxu1 }
 0x2b4   : > { %v7800_v60 = vpop.f32.mrb[223].mxu0  ;;  %v7864_v36 = vpop.f32.mrb[223].mxu1 }
 0x2b5   : > { %v10993_v43 = vadd.f32 %v7798_v61, %v10843_v8  ;;  %v10996_v14 = vadd.f32 %v7862_v34, %v10846_v1  ;;  %v7801_v44 = vadd.f32 %v7800_v60, %v7799_v10  ;;  %v7865_v50 = vadd.f32 %v7864_v36, %v7863_v18  ;;  %v9177_v1 = vld [vmem:[%s9409_s9 + $0xc00] ss:$100 sps:$4 sm:$0xff]   ;;  %v9186_v34 = vld [vmem:[%s9409_s9 + $0x58] ss:$100 sps:$4 sm:$0xff]  }
 0x2b6   : > { %5811 = vmatmul.mubr.bf16.gmra.mrb[72].mxu1 %v9168_v25  ;;  %5908 = vmatmul.mubr.bf16.gmra.mrb[72].mxu0 %v9171_v5  ;;  %v9192_v60 = vld [vmem:[%s9409_s9 + $0x75c] ss:$100 sps:$4 sm:$0xff]   ;;  %v9195_v36 = vld [vmem:[%s9409_s9 + $0x124] ss:$100 sps:$4 sm:$0xff]  }
 0x2b7   : > { %v10999_v39 = vadd.f32 %v7801_v44, %v10849_v31  ;;  %v11002_v26 = vadd.f32 %v7865_v50, %v10852_v46  ;;  %5818 = vmatprep.mubr.bf16.mxu1 %v9179_v15  ;;  %5915 = vmatprep.mubr.bf16.mxu0 %v9182_v51 }
 0x2b9   : > { %v7802_v24 = vpop.f32.mrb[224].mxu0  ;;  %v7866_v8 = vpop.f32.mrb[224].mxu1 }
 0x2ba   : > { %v7803_v2 = vpop.f32.mrb[225].mxu0  ;;  %v7867_v57 = vpop.f32.mrb[225].mxu1 }
 0x2bb   : > { %v7804_v3 = vadd.f32 %v7803_v2, %v7802_v24  ;;  %v7868_v37 = vadd.f32 %v7867_v57, %v7866_v8  ;;  %v7805_v48 = vpop.f32.mrb[226].mxu0  ;;  %v7869_v12 = vpop.f32.mrb[226].mxu1 }
 0x2bc   : > { %v7806_v29 = vpop.f32.mrb[227].mxu0  ;;  %v7870_v31 = vpop.f32.mrb[227].mxu1 }
 0x2bd   : > { %v11009_v46 = vadd.f32 %v7804_v3, %v10859_v19  ;;  %v11012_v38 = vadd.f32 %v7868_v37, %v10862_v56  ;;  %v7807_v9 = vadd.f32 %v7806_v29, %v7805_v48  ;;  %v7871_v30 = vadd.f32 %v7870_v31, %v7869_v12  ;;  %v9183_v56 = vld [vmem:[%s9409_s9 + $0x690] ss:$100 sps:$4 sm:$0xff]   ;;  %v9193_v37 = vld [vmem:[%s9409_s9 + $0x120] ss:$100 sps:$4 sm:$0xff]  }
 0x2be   : > { %5819 = vmatmul.mubr.bf16.gmra.mrb[76].mxu1 %v9177_v1  ;;  %5916 = vmatmul.mubr.bf16.gmra.mrb[76].mxu0 %v9180_v52  ;;  %v9198_v29 = vld [vmem:[%s9409_s9 + $0x824] ss:$100 sps:$4 sm:$0xff]   ;;  %v9201_v31 = vld [vmem:[%s9409_s9 + $0x1ec] ss:$100 sps:$4 sm:$0xff]  }
 0x2bf   : > { %v11015_v6 = vadd.f32 %v7807_v9, %v10865_v17  ;;  %v11018_v22 = vadd.f32 %v7871_v30, %v10868_v53  ;;  %5923 = vmatprep.mubr.bf16.mxu0 %v9185_v27  ;;  %6020 = vmatprep.mubr.bf16.mxu1 %v9188_v13 }
 0x2c1   : > { %v7808_v25 = vpop.f32.mrb[228].mxu0  ;;  %v7872_v19 = vpop.f32.mrb[228].mxu1 }
 0x2c2   : > { %v7809_v5 = vpop.f32.mrb[229].mxu0  ;;  %v7873_v61 = vpop.f32.mrb[229].mxu1 }
 0x2c3   : > { %v7810_v10 = vadd.f32 %v7809_v5, %v7808_v25  ;;  %v7874_v18 = vadd.f32 %v7873_v61, %v7872_v19  ;;  %v7811_v15 = vpop.f32.mrb[230].mxu0  ;;  %v7875_v51 = vpop.f32.mrb[230].mxu1 }
 0x2c4   : > { %v7812_v44 = vpop.f32.mrb[231].mxu0  ;;  %v7876_v17 = vpop.f32.mrb[231].mxu1 }
 0x2c5   : > { %v11025_v53 = vadd.f32 %v7810_v10, %v10878_v40  ;;  %v11028_v50 = vadd.f32 %v7874_v18, %v10881_v16  ;;  %v7813_v24 = vadd.f32 %v7812_v44, %v7811_v15  ;;  %v7877_v8 = vadd.f32 %v7876_v17, %v7875_v51  ;;  %v9190_v16 = vld [vmem:[%s9409_s9 + $0x758] ss:$100 sps:$4 sm:$0xff]   ;;  %v9199_v18 = vld [vmem:[%s9409_s9 + $0x1e8] ss:$100 sps:$4 sm:$0xff]  }
 0x2c6   : > { %5924 = vmatmul.mubr.bf16.gmra.mrb[80].mxu0 %v9183_v56  ;;  %6021 = vmatmul.mubr.bf16.vlgmr.msra.gmra.mrb[80].mxu1 %v9186_v34  ;;  %v9205_v44 = vld [vmem:[%s9409_s9 + $0x8ec] ss:$100 sps:$4 sm:$0xff]   ;;  %v9208_v17 = vld [vmem:[%s9409_s9 + $0x2b4] ss:$100 sps:$4 sm:$0xff]  }
 0x2c7   : > { %v11031_v2 = vadd.f32 %v7813_v24, %v10884_v54  ;;  %v11034_v57 = vadd.f32 %v7877_v8, %v10887_v28  ;;  %5931 = vmatprep.mubr.bf16.mxu0 %v9192_v60  ;;  %6028 = vmatprep.mubr.bf16.mxu1 %v9195_v36 }
 0x2c9   : > { %v7814_v1 = vpop.f32.mrb[232].mxu0  ;;  %v7878_v40 = vpop.f32.mrb[232].mxu1 }
 0x2ca   : > { %v7815_v52 = vpop.f32.mrb[233].mxu0  ;;  %v7879_v3 = vpop.f32.mrb[233].mxu1 }
 0x2cb   : > { %v7816_v48 = vadd.f32 %v7815_v52, %v7814_v1  ;;  %v7880_v12 = vadd.f32 %v7879_v3, %v7878_v40  ;;  %v7817_v27 = vpop.f32.mrb[234].mxu0  ;;  %v7881_v13 = vpop.f32.mrb[234].mxu1 }
 0x2cc   : > { %v7818_v9 = vpop.f32.mrb[235].mxu0  ;;  %v7882_v54 = vpop.f32.mrb[235].mxu1 }
 0x2cd   : > { %v11041_v28 = vadd.f32 %v7816_v48, %v10898_v59  ;;  %v11044_v30 = vadd.f32 %v7880_v12, %v10901_v58  ;;  %v7819_v25 = vadd.f32 %v7818_v9, %v7817_v27  ;;  %v7883_v19 = vadd.f32 %v7882_v54, %v7881_v13  ;;  %v9196_v58 = vld [vmem:[%s9409_s9 + $0x820] ss:$100 sps:$4 sm:$0xff]   ;;  %v9206_v12 = vld [vmem:[%s9409_s9 + $0x2b0] ss:$100 sps:$4 sm:$0xff]  }
 0x2ce   : > { %5932 = vmatmul.mubr.bf16.gmra.mrb[84].mxu0 %v9190_v16  ;;  %6029 = vmatmul.mubr.bf16.gmra.mrb[84].mxu1 %v9193_v37  ;;  %v9211_v9 = vld [vmem:[%s9409_s9 + $0x9b4] ss:$100 sps:$4 sm:$0xff]   ;;  %v9214_v54 = vld [vmem:[%s9409_s9 + $0x37c] ss:$100 sps:$4 sm:$0xff]  }
 0x2cf   : > { %v11047_v5 = vadd.f32 %v7819_v25, %v10907_v20  ;;  %v11050_v61 = vadd.f32 %v7883_v19, %v10910_v55  ;;  %5939 = vmatprep.mubr.bf16.mxu0 %v9198_v29  ;;  %6036 = vmatprep.mubr.bf16.mxu1 %v9201_v31 }
 0x2d1   : > { %v7820_v56 = vpop.f32.mrb[236].mxu0  ;;  %v7884_v59 = vpop.f32.mrb[236].mxu1 }
 0x2d2   : > { %v7821_v34 = vpop.f32.mrb[237].mxu0  ;;  %v7885_v10 = vpop.f32.mrb[237].mxu1 }
 0x2d3   : > { %v7822_v15 = vadd.f32 %v7821_v34, %v7820_v56  ;;  %v7886_v51 = vadd.f32 %v7885_v10, %v7884_v59  ;;  %v7823_v60 = vpop.f32.mrb[238].mxu0  ;;  %v7887_v36 = vpop.f32.mrb[238].mxu1 }
 0x2d4   : > { %v7824_v24 = vpop.f32.mrb[239].mxu0  ;;  %v7888_v20 = vpop.f32.mrb[239].mxu1 }
 0x2d5   : > { %v11057_v55 = vadd.f32 %v7822_v15, %v10920_v45  ;;  %v11060_v8 = vadd.f32 %v7886_v51, %v10923_v33  ;;  %v7825_v1 = vadd.f32 %v7824_v24, %v7823_v60  ;;  %v7889_v40 = vadd.f32 %v7888_v20, %v7887_v36  ;;  %v9203_v33 = vld [vmem:[%s9409_s9 + $0x8e8] ss:$100 sps:$4 sm:$0xff]   ;;  %v9212_v51 = vld [vmem:[%s9409_s9 + $0x378] ss:$100 sps:$4 sm:$0xff]  }
 0x2d6   : > { %5940 = vmatmul.mubr.bf16.gmra.mrb[88].mxu0 %v9196_v58  ;;  %6037 = vmatmul.mubr.bf16.gmra.mrb[88].mxu1 %v9199_v18  ;;  %v9218_v24 = vld [vmem:[%s9409_s9 + $0xa7c] ss:$100 sps:$4 sm:$0xff]   ;;  %v9221_v20 = vld [vmem:[%s9409_s9 + $0x444] ss:$100 sps:$4 sm:$0xff]  }
 0x2d7   : > { %v11063_v52 = vadd.f32 %v7825_v1, %v10929_v49  ;;  %v11066_v3 = vadd.f32 %v7889_v40, %v10932_v0  ;;  %5947 = vmatprep.mubr.bf16.mxu0 %v9205_v44  ;;  %6044 = vmatprep.mubr.bf16.mxu1 %v9208_v17 }
 0x2d9   : > { %v7890_v16 = vpop.f32.mrb[240].mxu1  ;;  %v7954_v45 = vpop.f32.mrb[240].mxu0 }
 0x2da   : > { %v7891_v37 = vpop.f32.mrb[241].mxu1  ;;  %v7955_v48 = vpop.f32.mrb[241].mxu0 }
 0x2db   : > { %v7892_v27 = vadd.f32 %v7891_v37, %v7890_v16  ;;  %v7956_v13 = vadd.f32 %v7955_v48, %v7954_v45  ;;  %v7893_v29 = vpop.f32.mrb[242].mxu1  ;;  %v7957_v31 = vpop.f32.mrb[242].mxu0 }
 0x2dc   : > { %v7894_v25 = vpop.f32.mrb[243].mxu1  ;;  %v7958_v49 = vpop.f32.mrb[243].mxu0 }
 0x2dd   : > { %v11073_v0 = vadd.f32 %v7892_v27, %v10942_v42  ;;  %v11076_v19 = vadd.f32 %v7956_v13, %v10945_v32  ;;  %v7895_v56 = vadd.f32 %v7894_v25, %v7893_v29  ;;  %v7959_v59 = vadd.f32 %v7958_v49, %v7957_v31  ;;  %v9209_v32 = vld [vmem:[%s9409_s9 + $0x9b0] ss:$100 sps:$4 sm:$0xff]   ;;  %v9219_v13 = vld [vmem:[%s9409_s9 + $0x440] ss:$100 sps:$4 sm:$0xff]  }
 0x2de   : > { %5948 = vmatmul.mubr.bf16.gmra.mrb[92].mxu0 %v9203_v33  ;;  %6045 = vmatmul.mubr.bf16.gmra.mrb[92].mxu1 %v9206_v12  ;;  %v9224_v25 = vld [vmem:[%s9409_s9 + $0xb44] ss:$100 sps:$4 sm:$0xff]   ;;  %v9227_v49 = vld [vmem:[%s9409_s9 + $0x50c] ss:$100 sps:$4 sm:$0xff]  }
 0x2df   : > { %v11079_v34 = vadd.f32 %v7895_v56, %v10951_v23  ;;  %v11082_v10 = vadd.f32 %v7959_v59, %v10954_v35  ;;  %5955 = vmatprep.mubr.bf16.mxu0 %v9211_v9  ;;  %6052 = vmatprep.mubr.bf16.mxu1 %v9214_v54 }
 0x2e1   : > { %v7896_v58 = vpop.f32.mrb[244].mxu1  ;;  %v7960_v42 = vpop.f32.mrb[244].mxu0 }
 0x2e2   : > { %v7897_v18 = vpop.f32.mrb[245].mxu1  ;;  %v7961_v15 = vpop.f32.mrb[245].mxu0 }
 0x2e3   : > { %v7898_v60 = vadd.f32 %v7897_v18, %v7896_v58  ;;  %v7962_v36 = vadd.f32 %v7961_v15, %v7960_v42  ;;  %v7899_v44 = vpop.f32.mrb[246].mxu1  ;;  %v7963_v17 = vpop.f32.mrb[246].mxu0 }
 0x2e4   : > { %v7900_v1 = vpop.f32.mrb[247].mxu1  ;;  %v7964_v23 = vpop.f32.mrb[247].mxu0 }
 0x2e5   : > { %v11089_v35 = vadd.f32 %v7898_v60, %v10961_v7  ;;  %v11092_v40 = vadd.f32 %v7962_v36, %v10964_v63  ;;  %v7901_v16 = vadd.f32 %v7900_v1, %v7899_v44  ;;  %v7965_v45 = vadd.f32 %v7964_v23, %v7963_v17  ;;  %v9216_v63 = vld [vmem:[%s9409_s9 + $0xa78] ss:$100 sps:$4 sm:$0xff]   ;;  %v9225_v36 = vld [vmem:[%s9409_s9 + $0x508] ss:$100 sps:$4 sm:$0xff]  }
 0x2e6   : > { %5956 = vmatmul.mubr.bf16.gmra.mrb[96].mxu0 %v9209_v32  ;;  %6053 = vmatmul.mubr.bf16.gmra.mrb[96].mxu1 %v9212_v51  ;;  %v9231_v1 = vld [vmem:[%s9409_s9 + $0xc0c] ss:$100 sps:$4 sm:$0xff]   ;;  %v9234_v23 = vld [vmem:[%s9409_s9 + $0x5d4] ss:$100 sps:$4 sm:$0xff]  }
 0x2e7   : > { %v11095_v37 = vadd.f32 %v7901_v16, %v10967_v4  ;;  %v11098_v48 = vadd.f32 %v7965_v45, %v10970_v41  ;;  %5963 = vmatprep.mubr.bf16.mxu0 %v9218_v24  ;;  %6060 = vmatprep.mubr.bf16.mxu1 %v9221_v20 }
 0x2e9   : > { %v7902_v33 = vpop.f32.mrb[248].mxu1  ;;  %v7966_v7 = vpop.f32.mrb[248].mxu0 }
 0x2ea   : > { %v7903_v12 = vpop.f32.mrb[249].mxu1  ;;  %v7967_v27 = vpop.f32.mrb[249].mxu0 }
 0x2eb   : > { %v7904_v29 = vadd.f32 %v7903_v12, %v7902_v33  ;;  %v7968_v31 = vadd.f32 %v7967_v27, %v7966_v7  ;;  %v7905_v9 = vpop.f32.mrb[250].mxu1  ;;  %v7969_v54 = vpop.f32.mrb[250].mxu0 }
 0x2ec   : > { %v7906_v56 = vpop.f32.mrb[251].mxu1  ;;  %v7970_v4 = vpop.f32.mrb[251].mxu0 }
 0x2ed   : > { %v11105_v41 = vadd.f32 %v7904_v29, %v10977_v62  ;;  %v11108_v59 = vadd.f32 %v7968_v31, %v10980_v11  ;;  %v7907_v58 = vadd.f32 %v7906_v56, %v7905_v9  ;;  %v7971_v42 = vadd.f32 %v7970_v4, %v7969_v54  ;;  %v9222_v11 = vld [vmem:[%s9409_s9 + $0xb40] ss:$100 sps:$4 sm:$0xff]   ;;  %v9232_v31 = vld [vmem:[%s9409_s9 + $0x5d0] ss:$100 sps:$4 sm:$0xff]  }
 0x2ee   : > { %5964 = vmatmul.mubr.bf16.gmra.mrb[100].mxu0 %v9216_v63  ;;  %6061 = vmatmul.mubr.bf16.gmra.mrb[100].mxu1 %v9219_v13  ;;  %v9237_v56 = vld [vmem:[%s9409_s9 + $0x69c] ss:$100 sps:$4 sm:$0xff]  }
 0x2ef   : > { %v11111_v18 = vadd.f32 %v7907_v58, %v10983_v21  ;;  %v11114_v15 = vadd.f32 %v7971_v42, %v10986_v47  ;;  %5971 = vmatprep.mubr.bf16.mxu0 %v9224_v25  ;;  %6068 = vmatprep.mubr.bf16.mxu1 %v9227_v49  ;;  %v9238_v4 = vld [vmem:[%s9409_s9 + $0x60] ss:$100 sps:$4 sm:$0xff]  }
 0x2f1   : > { %v7908_v32 = vpop.f32.mrb[252].mxu1  ;;  %v7972_v62 = vpop.f32.mrb[252].mxu0 }
 0x2f2   : > { %v7909_v51 = vpop.f32.mrb[253].mxu1  ;;  %v7973_v60 = vpop.f32.mrb[253].mxu0 }
 0x2f3   : > { %v7910_v44 = vadd.f32 %v7909_v51, %v7908_v32  ;;  %v7974_v17 = vadd.f32 %v7973_v60, %v7972_v62  ;;  %v7911_v24 = vpop.f32.mrb[254].mxu1  ;;  %v7975_v20 = vpop.f32.mrb[254].mxu0 }
 0x2f4   : > { %v7912_v16 = vpop.f32.mrb[255].mxu1  ;;  %v7976_v21 = vpop.f32.mrb[255].mxu0 }
 0x2f5   : > { %v11121_v47 = vadd.f32 %v7910_v44, %v10993_v43  ;;  %v11124_v45 = vadd.f32 %v7974_v17, %v10996_v14  ;;  %v7913_v33 = vadd.f32 %v7912_v16, %v7911_v24  ;;  %v7977_v7 = vadd.f32 %v7976_v21, %v7975_v20  ;;  %v9229_v14 = vld [vmem:[%s9409_s9 + $0xc08] ss:$100 sps:$4 sm:$0xff]   ;;  %v9243_v21 = vld [vmem:[%s9409_s9 + $0x1f0] ss:$100 sps:$4 sm:$0xff]  }
 0x2f6   : > { %5972 = vmatmul.mubr.bf16.gmra.mrb[104].mxu0 %v9222_v11  ;;  %6069 = vmatmul.mubr.bf16.gmra.mrb[104].mxu1 %v9225_v36  ;;  %v9239_v17 = vld [vmem:[%s9409_s9 + $0x128] ss:$100 sps:$4 sm:$0xff]  }
 0x2f7   : > { %v11127_v12 = vadd.f32 %v7913_v33, %v10999_v39  ;;  %v11130_v27 = vadd.f32 %v7977_v7, %v11002_v26  ;;  %5979 = vmatprep.mubr.bf16.mxu0 %v9231_v1  ;;  %6076 = vmatprep.mubr.bf16.mxu1 %v9234_v23  ;;  %v9242_v16 = vld [vmem:[%s9409_s9 + $0x764] ss:$100 sps:$4 sm:$0xff]  }
 0x2f9   : > { %v7914_v63 = vpop.f32.mrb[0].mxu1  ;;  %v7978_v43 = vpop.f32.mrb[0].mxu0 }
 0x2fa   : > { %v7915_v13 = vpop.f32.mrb[1].mxu1  ;;  %v7979_v29 = vpop.f32.mrb[1].mxu0 }
 0x2fb   : > { %v7916_v9 = vadd.f32 %v7915_v13, %v7914_v63  ;;  %v7980_v54 = vadd.f32 %v7979_v29, %v7978_v43  ;;  %v7917_v25 = vpop.f32.mrb[2].mxu1  ;;  %v7981_v49 = vpop.f32.mrb[2].mxu0 }
 0x2fc   : > { %v7918_v58 = vpop.f32.mrb[3].mxu1  ;;  %v7982_v39 = vpop.f32.mrb[3].mxu0 }
 0x2fd   : > { %v11137_v26 = vadd.f32 %v7916_v9, %v11009_v46  ;;  %v11140_v42 = vadd.f32 %v7980_v54, %v11012_v38  ;;  %v7919_v32 = vadd.f32 %v7918_v58, %v7917_v25  ;;  %v7983_v62 = vadd.f32 %v7982_v39, %v7981_v49  ;;  %v9235_v38 = vld [vmem:[%s9409_s9 + $0x698] ss:$100 sps:$4 sm:$0xff]   ;;  %v9247_v58 = vld [vmem:[%s9409_s9 + $0x82c] ss:$100 sps:$4 sm:$0xff]   ;;  %v9248_v39 = vld [vmem:[%s9409_s9 + $0x380] ss:$100 sps:$4 sm:$0xff]  }
 0x2fe   : > { %5980 = vmatmul.mubr.bf16.gmra.mrb[108].mxu0 %v9229_v14  ;;  %6077 = vmatmul.mubr.bf16.gmra.mrb[108].mxu1 %v9232_v31  ;;  %v9244_v54 = vld [vmem:[%s9409_s9 + $0x2b8] ss:$100 sps:$4 sm:$0xff]  }
 0x2ff   : > { %v11143_v51 = vadd.f32 %v7919_v32, %v11015_v6  ;;  %v11146_v60 = vadd.f32 %v7983_v62, %v11018_v22  ;;  %6084 = vmatprep.mubr.bf16.mxu1 %v9237_v56  ;;  %8426 = vmatprep.mubr.bf16.mxu0 %v9238_v4 }
 0x301   : > { %v7920_v11 = vpop.f32.mrb[4].mxu1  ;;  %v7984_v46 = vpop.f32.mrb[4].mxu0 }
 0x302   : > { %v7921_v36 = vpop.f32.mrb[5].mxu1  ;;  %v7985_v44 = vpop.f32.mrb[5].mxu0 }
 0x303   : > { %v7922_v24 = vadd.f32 %v7921_v36, %v7920_v11  ;;  %v7986_v20 = vadd.f32 %v7985_v44, %v7984_v46  ;;  %v7923_v1 = vpop.f32.mrb[6].mxu1  ;;  %v7987_v23 = vpop.f32.mrb[6].mxu0 }
 0x304   : > { %v7924_v33 = vpop.f32.mrb[7].mxu1  ;;  %v7988_v6 = vpop.f32.mrb[7].mxu0 }
 0x305   : > { %v11153_v22 = vadd.f32 %v7922_v24, %v11025_v53  ;;  %v11156_v7 = vadd.f32 %v7986_v20, %v11028_v50  ;;  %v7925_v63 = vadd.f32 %v7924_v33, %v7923_v1  ;;  %v7989_v43 = vadd.f32 %v7988_v6, %v7987_v23  ;;  %v9240_v50 = vld [vmem:[%s9409_s9 + $0x760] ss:$100 sps:$4 sm:$0xff]   ;;  %v9249_v20 = vld [vmem:[%s9409_s9 + $0x448] ss:$100 sps:$4 sm:$0xff]   ;;  %v9252_v33 = vld [vmem:[%s9409_s9 + $0x8f4] ss:$100 sps:$4 sm:$0xff]  }
 0x306   : > { %6085 = vmatmul.mubr.bf16.gmra.mrb[112].mxu1 %v9235_v38  ;;  %8427 = vmatmul.mubr.bf16.vlgmr.msra.gmra.mrb[112].mxu0 %v9239_v17  ;;  %v9253_v6 = vld [vmem:[%s9409_s9 + $0x510] ss:$100 sps:$4 sm:$0xff]  }
 0x307   : > { %v11159_v13 = vadd.f32 %v7925_v63, %v11031_v2  ;;  %v11162_v29 = vadd.f32 %v7989_v43, %v11034_v57  ;;  %6092 = vmatprep.mubr.bf16.mxu1 %v9242_v16  ;;  %8430 = vmatprep.mubr.bf16.mxu0 %v9243_v21 }
 0x309   : > { %v7926_v14 = vpop.f32.mrb[8].mxu1  ;;  %v7990_v53 = vpop.f32.mrb[8].mxu0 }
 0x30a   : > { %v7927_v31 = vpop.f32.mrb[9].mxu1  ;;  %v7991_v9 = vpop.f32.mrb[9].mxu0 }
 0x30b   : > { %v7928_v25 = vadd.f32 %v7927_v31, %v7926_v14  ;;  %v7992_v49 = vadd.f32 %v7991_v9, %v7990_v53  ;;  %v7929_v56 = vpop.f32.mrb[10].mxu1  ;;  %v7993_v4 = vpop.f32.mrb[10].mxu0 }
 0x30c   : > { %v7930_v32 = vpop.f32.mrb[11].mxu1  ;;  %v7994_v2 = vpop.f32.mrb[11].mxu0 }
 0x30d   : > { %v11169_v57 = vadd.f32 %v7928_v25, %v11041_v28  ;;  %v11172_v62 = vadd.f32 %v7992_v49, %v11044_v30  ;;  %v7931_v11 = vadd.f32 %v7930_v32, %v7929_v56  ;;  %v7995_v46 = vadd.f32 %v7994_v2, %v7993_v4  ;;  %v9245_v30 = vld [vmem:[%s9409_s9 + $0x828] ss:$100 sps:$4 sm:$0xff]   ;;  %v9254_v49 = vld [vmem:[%s9409_s9 + $0x5d8] ss:$100 sps:$4 sm:$0xff]   ;;  %v9258_v2 = vld [vmem:[%s9409_s9 + $0x6a0] ss:$100 sps:$4 sm:$0xff]  }
 0x30e   : > { %6093 = vmatmul.mubr.bf16.gmra.mrb[116].mxu1 %v9240_v50  ;;  %8431 = vmatmul.mubr.bf16.gmra.mrb[116].mxu0 %v9244_v54  ;;  %v9257_v32 = vld [vmem:[%s9409_s9 + $0x9bc] ss:$100 sps:$4 sm:$0xff]  }
 0x30f   : > { %v11175_v36 = vadd.f32 %v7931_v11, %v11047_v5  ;;  %v11178_v44 = vadd.f32 %v7995_v46, %v11050_v61  ;;  %6100 = vmatprep.mubr.bf16.mxu1 %v9247_v58  ;;  %8434 = vmatprep.mubr.bf16.mxu0 %v9248_v39 }
 0x311   : > { %v7932_v38 = vpop.f32.mrb[12].mxu1  ;;  %v7996_v28 = vpop.f32.mrb[12].mxu0 }
 0x312   : > { %v7933_v17 = vpop.f32.mrb[13].mxu1  ;;  %v7997_v24 = vpop.f32.mrb[13].mxu0 }
 0x313   : > { %v7934_v1 = vadd.f32 %v7933_v17, %v7932_v38  ;;  %v7998_v23 = vadd.f32 %v7997_v24, %v7996_v28  ;;  %v7935_v16 = vpop.f32.mrb[14].mxu1  ;;  %v7999_v21 = vpop.f32.mrb[14].mxu0 }
 0x314   : > { %v7936_v63 = vpop.f32.mrb[15].mxu1  ;;  %v8000_v5 = vpop.f32.mrb[15].mxu0 }
 0x315   : > { %v11185_v61 = vadd.f32 %v7934_v1, %v11057_v55  ;;  %v11188_v43 = vadd.f32 %v7998_v23, %v11060_v8  ;;  %v7937_v14 = vadd.f32 %v7936_v63, %v7935_v16  ;;  %v8001_v53 = vadd.f32 %v8000_v5, %v7999_v21  ;;  %v9250_v8 = vld [vmem:[%s9409_s9 + $0x8f0] ss:$100 sps:$4 sm:$0xff]   ;;  %v9259_v23 = vld [vmem:[%s9409_s9 + $0x768] ss:$100 sps:$4 sm:$0xff]  }
 0x316   : > { %6101 = vmatmul.mubr.bf16.gmra.mrb[120].mxu1 %v9245_v30  ;;  %8435 = vmatmul.mubr.bf16.gmra.mrb[120].mxu0 %v9249_v20  ;;  %v9262_v63 = vld [vmem:[%s9409_s9 + $0xa84] ss:$100 sps:$4 sm:$0xff]   ;;  %v9263_v5 = vld [vmem:[%s9409_s9 + $0x830] ss:$100 sps:$4 sm:$0xff]  }
 0x317   : > { %v11191_v31 = vadd.f32 %v7937_v14, %v11063_v52  ;;  %v11194_v9 = vadd.f32 %v8001_v53, %v11066_v3  ;;  %6108 = vmatprep.mubr.bf16.mxu1 %v9252_v33  ;;  %8438 = vmatprep.mubr.bf16.mxu0 %v9253_v6 }
 0x319   : > { %v8002_v50 = vpop.f32.mrb[16].mxu0  ;;  %v8066_v55 = vpop.f32.mrb[16].mxu1 }
 0x31a   : > { %v8003_v54 = vpop.f32.mrb[17].mxu0  ;;  %v8067_v25 = vpop.f32.mrb[17].mxu1 }
 0x31b   : > { %v8004_v56 = vadd.f32 %v8003_v54, %v8002_v50  ;;  %v8068_v4 = vadd.f32 %v8067_v25, %v8066_v55  ;;  %v8005_v58 = vpop.f32.mrb[18].mxu0  ;;  %v8069_v39 = vpop.f32.mrb[18].mxu1 }
 0x31c   : > { %v8006_v11 = vpop.f32.mrb[19].mxu0  ;;  %v8070_v52 = vpop.f32.mrb[19].mxu1 }
 0x31d   : > { %v11201_v3 = vadd.f32 %v8004_v56, %v11073_v0  ;;  %v11204_v46 = vadd.f32 %v8068_v4, %v11076_v19  ;;  %v8007_v38 = vadd.f32 %v8006_v11, %v8005_v58  ;;  %v8071_v28 = vadd.f32 %v8070_v52, %v8069_v39  ;;  %v9255_v19 = vld [vmem:[%s9409_s9 + $0x9b8] ss:$100 sps:$4 sm:$0xff]   ;;  %v9267_v11 = vld [vmem:[%s9409_s9 + $0xb4c] ss:$100 sps:$4 sm:$0xff]   ;;  %v9268_v52 = vld [vmem:[%s9409_s9 + $0x9c0] ss:$100 sps:$4 sm:$0xff]  }
 0x31e   : > { %6109 = vmatmul.mubr.bf16.gmra.mrb[124].mxu1 %v9250_v8  ;;  %8439 = vmatmul.mubr.bf16.gmra.mrb[124].mxu0 %v9254_v49  ;;  %v9264_v4 = vld [vmem:[%s9409_s9 + $0x8f8] ss:$100 sps:$4 sm:$0xff]  }
 0x31f   : > { %v11207_v17 = vadd.f32 %v8007_v38, %v11079_v34  ;;  %v11210_v24 = vadd.f32 %v8071_v28, %v11082_v10  ;;  %6116 = vmatprep.mubr.bf16.mxu1 %v9257_v32  ;;  %8442 = vmatprep.mubr.bf16.mxu0 %v9258_v2 }
 0x321   : > { %v8008_v30 = vpop.f32.mrb[20].mxu0  ;;  %v8072_v0 = vpop.f32.mrb[20].mxu1 }
 0x322   : > { %v8009_v20 = vpop.f32.mrb[21].mxu0  ;;  %v8073_v1 = vpop.f32.mrb[21].mxu1 }
 0x323   : > { %v8010_v16 = vadd.f32 %v8009_v20, %v8008_v30  ;;  %v8074_v21 = vadd.f32 %v8073_v1, %v8072_v0  ;;  %v8011_v33 = vpop.f32.mrb[22].mxu0  ;;  %v8075_v6 = vpop.f32.mrb[22].mxu1 }
 0x324   : > { %v8012_v14 = vpop.f32.mrb[23].mxu0  ;;  %v8076_v34 = vpop.f32.mrb[23].mxu1 }
 0x325   : > { %v11217_v10 = vadd.f32 %v8010_v16, %v11089_v35  ;;  %v11220_v53 = vadd.f32 %v8074_v21, %v11092_v40  ;;  %v8013_v50 = vadd.f32 %v8012_v14, %v8011_v33  ;;  %v8077_v55 = vadd.f32 %v8076_v34, %v8075_v6  ;;  %v9260_v40 = vld [vmem:[%s9409_s9 + $0xa80] ss:$100 sps:$4 sm:$0xff]   ;;  %v9269_v21 = vld [vmem:[%s9409_s9 + $0xa88] ss:$100 sps:$4 sm:$0xff]   ;;  %v9272_v14 = vld [vmem:[%s9409_s9 + $0xc14] ss:$100 sps:$4 sm:$0xff]  }
 0x326   : > { %6117 = vmatmul.mubr.bf16.gmra.mrb[128].mxu1 %v9255_v19  ;;  %8443 = vmatmul.mubr.bf16.gmra.mrb[128].mxu0 %v9259_v23  ;;  %v9273_v34 = vld [vmem:[%s9409_s9 + $0xb50] ss:$100 sps:$4 sm:$0xff]  }
 0x327   : > { %v11223_v54 = vadd.f32 %v8013_v50, %v11095_v37  ;;  %v11226_v25 = vadd.f32 %v8077_v55, %v11098_v48  ;;  %6124 = vmatprep.mubr.bf16.mxu1 %v9262_v63  ;;  %8446 = vmatprep.mubr.bf16.mxu0 %v9263_v5 }
 0x329   : > { %v8014_v8 = vpop.f32.mrb[24].mxu0  ;;  %v8078_v35 = vpop.f32.mrb[24].mxu1 }
 0x32a   : > { %v8015_v49 = vpop.f32.mrb[25].mxu0  ;;  %v8079_v56 = vpop.f32.mrb[25].mxu1 }
 0x32b   : > { %v8016_v58 = vadd.f32 %v8015_v49, %v8014_v8  ;;  %v8080_v39 = vadd.f32 %v8079_v56, %v8078_v35  ;;  %v8017_v32 = vpop.f32.mrb[26].mxu0  ;;  %v8081_v2 = vpop.f32.mrb[26].mxu1 }
 0x32c   : > { %v8018_v38 = vpop.f32.mrb[27].mxu0  ;;  %v8082_v37 = vpop.f32.mrb[27].mxu1 }
 0x32d   : > { %v11233_v48 = vadd.f32 %v8016_v58, %v11105_v41  ;;  %v11236_v28 = vadd.f32 %v8080_v39, %v11108_v59  ;;  %v8019_v30 = vadd.f32 %v8018_v38, %v8017_v32  ;;  %v8083_v0 = vadd.f32 %v8082_v37, %v8081_v2  ;;  %v9265_v59 = vld [vmem:[%s9409_s9 + $0xb48] ss:$100 sps:$4 sm:$0xff]   ;;  %v9270_v39 = vld [vmem:[%s9409_s9 + $0xc10] ss:$100 sps:$4 sm:$0xff]   ;;  %v9274_v32 = vld [vmem:[%s9409_s9 + $0xc18] ss:$100 sps:$4 sm:$0xff]  }
 0x32e   : > { %6125 = vmatmul.mubr.bf16.gmra.mrb[132].mxu1 %v9260_v40  ;;  %8447 = vmatmul.mubr.bf16.gmra.mrb[132].mxu0 %v9264_v4  ;;  %s6438_s9 = sshll.u32 %s11598_s16, 3 }
 0x32f   : > { %v11239_v20 = vadd.f32 %v8019_v30, %v11111_v18  ;;  %v11242_v1 = vadd.f32 %v8083_v0, %v11114_v15  ;;  %6132 = vmatprep.mubr.bf16.mxu1 %v9267_v11  ;;  %8450 = vmatprep.mubr.bf16.mxu0 %v9268_v52  ;;  %s11518_s15 = scalar_lea.vmem %s11596_s3, %s6438_s9 }
 0x331   : > { %v8020_v19 = vpop.f32.mrb[28].mxu0  ;;  %v8084_v41 = vpop.f32.mrb[28].mxu1 }
 0x332   : > { %v8021_v23 = vpop.f32.mrb[29].mxu0  ;;  %v8085_v16 = vpop.f32.mrb[29].mxu1 }
 0x333   : > { %v8022_v33 = vadd.f32 %v8021_v23, %v8020_v19  ;;  %v8086_v6 = vadd.f32 %v8085_v16, %v8084_v41  ;;  %v8023_v63 = vpop.f32.mrb[30].mxu0  ;;  %v8087_v5 = vpop.f32.mrb[30].mxu1 }
 0x334   : > { %v8024_v50 = vpop.f32.mrb[31].mxu0  ;;  %v8088_v18 = vpop.f32.mrb[31].mxu1 }
 0x335   : > { %v11249_v15 = vadd.f32 %v8022_v33, %v11121_v47  ;;  %v11252_v55 = vadd.f32 %v8086_v6, %v11124_v45  ;;  %v8025_v8 = vadd.f32 %v8024_v50, %v8023_v63  ;;  %v8089_v35 = vadd.f32 %v8088_v18, %v8087_v5 }
 0x336   : > { %6133 = vmatmul.mubr.bf16.gmra.mrb[136].mxu1 %v9265_v59  ;;  %8451 = vmatmul.mubr.bf16.gmra.mrb[136].mxu0 %v9269_v21 }
 0x337   : > { %v11255_v49 = vadd.f32 %v8025_v8, %v11127_v12  ;;  %v11258_v56 = vadd.f32 %v8089_v35, %v11130_v27  ;;  %6140 = vmatprep.mubr.bf16.mxu1 %v9272_v14  ;;  %8454 = vmatprep.mubr.bf16.mxu0 %v9273_v34 }
 0x339   : > { %v8026_v40 = vpop.f32.mrb[32].mxu0  ;;  %v8090_v4 = vpop.f32.mrb[32].mxu1 }
 0x33a   : > { %v8027_v58 = vpop.f32.mrb[33].mxu0  ;;  %v8091_v47 = vpop.f32.mrb[33].mxu1 }
 0x33b   : > { %v8028_v45 = vadd.f32 %v8027_v58, %v8026_v40  ;;  %v8092_v2 = vadd.f32 %v8091_v47, %v8090_v4  ;;  %v8029_v11 = vpop.f32.mrb[34].mxu0  ;;  %v8093_v52 = vpop.f32.mrb[34].mxu1 }
 0x33c   : > { %v8030_v38 = vpop.f32.mrb[35].mxu0  ;;  %v8094_v37 = vpop.f32.mrb[35].mxu1 }
 0x33d   : > { %v11263_v12 = vadd.f32 %v8028_v45, %v11137_v26  ;;  %v11266_v27 = vadd.f32 %v8092_v2, %v11140_v42  ;;  %v8031_v30 = vadd.f32 %v8030_v38, %v8029_v11  ;;  %v8095_v0 = vadd.f32 %v8094_v37, %v8093_v52 }
 0x33e   : > { %6141 = vmatmul.mubr.bf16.gmra.mrb[140].mxu1 %v9270_v39  ;;  %8455 = vmatmul.mubr.bf16.gmra.mrb[140].mxu0 %v9274_v32 }
 0x33f   : > { %v11269_v19 = vadd.f32 %v8031_v30, %v11143_v51  ;;  %v11272_v41 = vadd.f32 %v8095_v0, %v11146_v60 }
 0x341   : > { %v8032_v23 = vpop.f32.mrb[36].mxu0  ;;  %v8096_v16 = vpop.f32.mrb[36].mxu1 }
 0x342   : > { %v8033_v59 = vpop.f32.mrb[37].mxu0  ;;  %v8097_v21 = vpop.f32.mrb[37].mxu1 }
 0x343   : > { %v8034_v33 = vadd.f32 %v8033_v59, %v8032_v23  ;;  %v8098_v26 = vadd.f32 %v8097_v21, %v8096_v16  ;;  %v8035_v6 = vpop.f32.mrb[38].mxu0  ;;  %v8099_v63 = vpop.f32.mrb[38].mxu1 }
 0x344   : > { %v8036_v42 = vpop.f32.mrb[39].mxu0  ;;  %v8100_v5 = vpop.f32.mrb[39].mxu1 }
 0x345   : > { %v11275_v14 = vadd.f32 %v8034_v33, %v11153_v22  ;;  %v11278_v34 = vadd.f32 %v8098_v26, %v11156_v7  ;;  %v8037_v51 = vadd.f32 %v8036_v42, %v8035_v6  ;;  %v8101_v50 = vadd.f32 %v8100_v5, %v8099_v63 }
 0x347   : > { %v11281_v60 = vadd.f32 %v8037_v51, %v11159_v13  ;;  %v11284_v18 = vadd.f32 %v8101_v50, %v11162_v29 }
 0x349   : > { %v8038_v8 = vpop.f32.mrb[40].mxu0  ;;  %v8102_v35 = vpop.f32.mrb[40].mxu1 }
 0x34a   : > { %v8039_v40 = vpop.f32.mrb[41].mxu0  ;;  %v8103_v4 = vpop.f32.mrb[41].mxu1 }
 0x34b   : > { %v8040_v58 = vadd.f32 %v8039_v40, %v8038_v8  ;;  %v8104_v47 = vadd.f32 %v8103_v4, %v8102_v35  ;;  %v8041_v39 = vpop.f32.mrb[42].mxu0  ;;  %v8105_v22 = vpop.f32.mrb[42].mxu1 }
 0x34c   : > { %v8042_v32 = vpop.f32.mrb[43].mxu0  ;;  %v8106_v45 = vpop.f32.mrb[43].mxu1 }
 0x34d   : > { %v11287_v7 = vadd.f32 %v8040_v58, %v11169_v57  ;;  %v11290_v2 = vadd.f32 %v8104_v47, %v11172_v62  ;;  %v8043_v13 = vadd.f32 %v8042_v32, %v8041_v39  ;;  %v8107_v11 = vadd.f32 %v8106_v45, %v8105_v22 }
 0x34f   : > { %v11293_v29 = vadd.f32 %v8043_v13, %v11175_v36  ;;  %v11296_v52 = vadd.f32 %v8107_v11, %v11178_v44 }
 0x351   : > { %v8044_v38 = vpop.f32.mrb[44].mxu0  ;;  %v8108_v37 = vpop.f32.mrb[44].mxu1 }
 0x352   : > { %v8045_v30 = vpop.f32.mrb[45].mxu0  ;;  %v8109_v0 = vpop.f32.mrb[45].mxu1 }
 0x353   : > { %v8046_v23 = vadd.f32 %v8045_v30, %v8044_v38  ;;  %v8110_v16 = vadd.f32 %v8109_v0, %v8108_v37  ;;  %v8047_v59 = vpop.f32.mrb[46].mxu0  ;;  %v8111_v57 = vpop.f32.mrb[46].mxu1 }
 0x354   : > { %v8048_v21 = vpop.f32.mrb[47].mxu0  ;;  %v8112_v33 = vpop.f32.mrb[47].mxu1 }
 0x355   : > { %v11299_v62 = vadd.f32 %v8046_v23, %v11185_v61  ;;  %v11302_v26 = vadd.f32 %v8110_v16, %v11188_v43  ;;  %v8049_v36 = vadd.f32 %v8048_v21, %v8047_v59  ;;  %v8113_v6 = vadd.f32 %v8112_v33, %v8111_v57 }
 0x357   : > { %v11305_v44 = vadd.f32 %v8049_v36, %v11191_v31  ;;  %v11308_v63 = vadd.f32 %v8113_v6, %v11194_v9 }
 0x359   : > { %v8114_v42 = vpop.f32.mrb[48].mxu1  ;;  %v8178_v5 = vpop.f32.mrb[48].mxu0 }
 0x35a   : > { %v8115_v51 = vpop.f32.mrb[49].mxu1  ;;  %v8179_v50 = vpop.f32.mrb[49].mxu0 }
 0x35b   : > { %v8116_v8 = vadd.f32 %v8115_v51, %v8114_v42  ;;  %v8180_v35 = vadd.f32 %v8179_v50, %v8178_v5  ;;  %v8117_v40 = vpop.f32.mrb[50].mxu1  ;;  %v8181_v61 = vpop.f32.mrb[50].mxu0 }
 0x35c   : > { %v8118_v4 = vpop.f32.mrb[51].mxu1  ;;  %v8182_v58 = vpop.f32.mrb[51].mxu0 }
 0x35d   : > { %v11311_v43 = vadd.f32 %v8116_v8, %v11201_v3  ;;  %v11314_v47 = vadd.f32 %v8180_v35, %v11204_v46  ;;  %v8119_v31 = vadd.f32 %v8118_v4, %v8117_v40  ;;  %v8183_v39 = vadd.f32 %v8182_v58, %v8181_v61 }
 0x35f   : > { %v11317_v9 = vadd.f32 %v8119_v31, %v11207_v17  ;;  %v11320_v22 = vadd.f32 %v8183_v39, %v11210_v24 }
 0x361   : > { %v8120_v32 = vpop.f32.mrb[52].mxu1  ;;  %v8184_v45 = vpop.f32.mrb[52].mxu0 }
 0x362   : > { %v8121_v13 = vpop.f32.mrb[53].mxu1  ;;  %v8185_v11 = vpop.f32.mrb[53].mxu0 }
 0x363   : > { %v8122_v38 = vadd.f32 %v8121_v13, %v8120_v32  ;;  %v8186_v37 = vadd.f32 %v8185_v11, %v8184_v45  ;;  %v8123_v30 = vpop.f32.mrb[54].mxu1  ;;  %v8187_v3 = vpop.f32.mrb[54].mxu0 }
 0x364   : > { %v8124_v0 = vpop.f32.mrb[55].mxu1  ;;  %v8188_v23 = vpop.f32.mrb[55].mxu0 }
 0x365   : > { %v11323_v46 = vadd.f32 %v8122_v38, %v11217_v10  ;;  %v11326_v16 = vadd.f32 %v8186_v37, %v11220_v53  ;;  %v8125_v17 = vadd.f32 %v8124_v0, %v8123_v30  ;;  %v8189_v59 = vadd.f32 %v8188_v23, %v8187_v3 }
 0x367   : > { %v11329_v24 = vadd.f32 %v8125_v17, %v11223_v54  ;;  %v11332_v57 = vadd.f32 %v8189_v59, %v11226_v25 }
 0x369   : > { %v8126_v21 = vpop.f32.mrb[56].mxu1  ;;  %v8190_v33 = vpop.f32.mrb[56].mxu0 }
 0x36a   : > { %v8127_v36 = vpop.f32.mrb[57].mxu1  ;;  %v8191_v6 = vpop.f32.mrb[57].mxu0 }
 0x36b   : > { %v8128_v42 = vadd.f32 %v8127_v36, %v8126_v21  ;;  %v8192_v5 = vadd.f32 %v8191_v6, %v8190_v33  ;;  %v8129_v51 = vpop.f32.mrb[58].mxu1  ;;  %v8193_v10 = vpop.f32.mrb[58].mxu0 }
 0x36c   : > { %v8130_v50 = vpop.f32.mrb[59].mxu1  ;;  %v8194_v8 = vpop.f32.mrb[59].mxu0 }
 0x36d   : > { %v11335_v53 = vadd.f32 %v8128_v42, %v11233_v48  ;;  %v11338_v35 = vadd.f32 %v8192_v5, %v11236_v28  ;;  %v8131_v54 = vadd.f32 %v8130_v50, %v8129_v51  ;;  %v8195_v40 = vadd.f32 %v8194_v8, %v8193_v10 }
 0x36f   : > { %v11341_v25 = vadd.f32 %v8131_v54, %v11239_v20  ;;  %v11344_v61 = vadd.f32 %v8195_v40, %v11242_v1 }
 0x371   : > { %v8132_v4 = vpop.f32.mrb[60].mxu1  ;;  %v8196_v58 = vpop.f32.mrb[60].mxu0 }
 0x372   : > { %v8133_v31 = vpop.f32.mrb[61].mxu1  ;;  %v8197_v39 = vpop.f32.mrb[61].mxu0 }
 0x373   : > { %v8134_v32 = vadd.f32 %v8133_v31, %v8132_v4  ;;  %v8198_v45 = vadd.f32 %v8197_v39, %v8196_v58  ;;  %v8135_v13 = vpop.f32.mrb[62].mxu1  ;;  %v8199_v48 = vpop.f32.mrb[62].mxu0 }
 0x374   : > { %v8136_v11 = vpop.f32.mrb[63].mxu1  ;;  %v8200_v38 = vpop.f32.mrb[63].mxu0 }
 0x375   : > { %v11347_v28 = vadd.f32 %v8134_v32, %v11249_v15  ;;  %v11350_v37 = vadd.f32 %v8198_v45, %v11252_v55  ;;  %v8137_v20 = vadd.f32 %v8136_v11, %v8135_v13  ;;  %v8201_v30 = vadd.f32 %v8200_v38, %v8199_v48 }
 0x377   : > { %v11353_v1 = vadd.f32 %v8137_v20, %v11255_v49  ;;  %v11356_v3 = vadd.f32 %v8201_v30, %v11258_v56 }
 0x379   : > { %v8138_v0 = vpop.f32.mrb[64].mxu1  ;;  %v8202_v23 = vpop.f32.mrb[64].mxu0 }
 0x37a   : > { %v8139_v17 = vpop.f32.mrb[65].mxu1  ;;  %v8203_v59 = vpop.f32.mrb[65].mxu0 }
 0x37b   : > { %v8140_v21 = vadd.f32 %v8139_v17, %v8138_v0  ;;  %v8204_v33 = vadd.f32 %v8203_v59, %v8202_v23  ;;  %v8141_v36 = vpop.f32.mrb[66].mxu1  ;;  %v8205_v15 = vpop.f32.mrb[66].mxu0 }
 0x37c   : > { %v8142_v6 = vpop.f32.mrb[67].mxu1  ;;  %v8206_v42 = vpop.f32.mrb[67].mxu0 }
 0x37d   : > { %v11359_v55 = vadd.f32 %v8140_v21, %v11263_v12  ;;  %v11362_v5 = vadd.f32 %v8204_v33, %v11266_v27  ;;  %v8143_v49 = vadd.f32 %v8142_v6, %v8141_v36  ;;  %v8207_v51 = vadd.f32 %v8206_v42, %v8205_v15 }
 0x37f   : > { %v11365_v56 = vadd.f32 %v8143_v49, %v11269_v19  ;;  %v11368_v10 = vadd.f32 %v8207_v51, %v11272_v41 }
 0x381   : > { %v8144_v50 = vpop.f32.mrb[68].mxu1  ;;  %v8208_v8 = vpop.f32.mrb[68].mxu0 }
 0x382   : > { %v8145_v54 = vpop.f32.mrb[69].mxu1  ;;  %v8209_v40 = vpop.f32.mrb[69].mxu0 }
 0x383   : > { %v8146_v4 = vadd.f32 %v8145_v54, %v8144_v50  ;;  %v8210_v58 = vadd.f32 %v8209_v40, %v8208_v8  ;;  %v8147_v31 = vpop.f32.mrb[70].mxu1  ;;  %v8211_v12 = vpop.f32.mrb[70].mxu0 }
 0x384   : > { %v8148_v39 = vpop.f32.mrb[71].mxu1  ;;  %v8212_v32 = vpop.f32.mrb[71].mxu0 }
 0x385   : > { %v11371_v27 = vadd.f32 %v8146_v4, %v11275_v14  ;;  %v11374_v45 = vadd.f32 %v8210_v58, %v11278_v34  ;;  %v8149_v19 = vadd.f32 %v8148_v39, %v8147_v31  ;;  %v8213_v13 = vadd.f32 %v8212_v32, %v8211_v12 }
 0x387   : > { %v11377_v41 = vadd.f32 %v8149_v19, %v11281_v60  ;;  %v11380_v48 = vadd.f32 %v8213_v13, %v11284_v18 }
 0x389   : > { %v8150_v11 = vpop.f32.mrb[72].mxu1  ;;  %v8214_v38 = vpop.f32.mrb[72].mxu0 }
 0x38a   : > { %v8151_v20 = vpop.f32.mrb[73].mxu1  ;;  %v8215_v30 = vpop.f32.mrb[73].mxu0 }
 0x38b   : > { %v8152_v0 = vadd.f32 %v8151_v20, %v8150_v11  ;;  %v8216_v23 = vadd.f32 %v8215_v30, %v8214_v38  ;;  %v8153_v17 = vpop.f32.mrb[74].mxu1  ;;  %v8217_v14 = vpop.f32.mrb[74].mxu0 }
 0x38c   : > { %v8154_v59 = vpop.f32.mrb[75].mxu1  ;;  %v8218_v21 = vpop.f32.mrb[75].mxu0 }
 0x38d   : > { %v11383_v34 = vadd.f32 %v8152_v0, %v11287_v7  ;;  %v11386_v33 = vadd.f32 %v8216_v23, %v11290_v2  ;;  %v8155_v60 = vadd.f32 %v8154_v59, %v8153_v17  ;;  %v8219_v36 = vadd.f32 %v8218_v21, %v8217_v14 }
 0x38f   : > { %v11389_v18 = vadd.f32 %v8155_v60, %v11293_v29  ;;  %v11392_v15 = vadd.f32 %v8219_v36, %v11296_v52 }
 0x391   : > { %v8156_v6 = vpop.f32.mrb[76].mxu1  ;;  %v8220_v42 = vpop.f32.mrb[76].mxu0 }
 0x392   : > { %v8157_v49 = vpop.f32.mrb[77].mxu1  ;;  %v8221_v51 = vpop.f32.mrb[77].mxu0 }
 0x393   : > { %v8158_v50 = vadd.f32 %v8157_v49, %v8156_v6  ;;  %v8222_v8 = vadd.f32 %v8221_v51, %v8220_v42  ;;  %v8159_v54 = vpop.f32.mrb[78].mxu1  ;;  %v8223_v7 = vpop.f32.mrb[78].mxu0 }
 0x394   : > { %v8160_v40 = vpop.f32.mrb[79].mxu1  ;;  %v8224_v4 = vpop.f32.mrb[79].mxu0 }
 0x395   : > { %v11395_v2 = vadd.f32 %v8158_v50, %v11299_v62  ;;  %v11398_v58 = vadd.f32 %v8222_v8, %v11302_v26  ;;  %v8161_v29 = vadd.f32 %v8160_v40, %v8159_v54  ;;  %v8225_v31 = vadd.f32 %v8224_v4, %v8223_v7 }
 0x397   : > { %v11401_v52 = vadd.f32 %v8161_v29, %v11305_v44  ;;  %v11404_v12 = vadd.f32 %v8225_v31, %v11308_v63 }
 0x399   : > { %v8226_v39 = vpop.f32.mrb[80].mxu0  ;;  %v8290_v32 = vpop.f32.mrb[80].mxu1 }
 0x39a   : > { %v8227_v19 = vpop.f32.mrb[81].mxu0  ;;  %v8291_v13 = vpop.f32.mrb[81].mxu1 }
 0x39b   : > { %v8228_v11 = vadd.f32 %v8227_v19, %v8226_v39  ;;  %v8292_v38 = vadd.f32 %v8291_v13, %v8290_v32  ;;  %v8229_v20 = vpop.f32.mrb[82].mxu0  ;;  %v8293_v62 = vpop.f32.mrb[82].mxu1 }
 0x39c   : > { %v8230_v30 = vpop.f32.mrb[83].mxu0  ;;  %v8294_v0 = vpop.f32.mrb[83].mxu1 }
 0x39d   : > { %v11407_v26 = vadd.f32 %v8228_v11, %v11311_v43  ;;  %v8231_v23 = vadd.f32 %v8230_v30, %v8229_v20  ;;  %v8295_v17 = vadd.f32 %v8294_v0, %v8293_v62  ;;  %v11410_v44 = vadd.f32 %v8292_v38, %v11314_v47 }
 0x39f   : > { %v11413_v63 = vadd.f32 %v8231_v23, %v11317_v9  ;;  %v11416_v14 = vadd.f32 %v8295_v17, %v11320_v22 }
 0x3a1   : > { %v8232_v59 = vpop.f32.mrb[84].mxu0  ;;  %v8296_v21 = vpop.f32.mrb[84].mxu1 }
 0x3a2   : > { %v8233_v60 = vpop.f32.mrb[85].mxu0  ;;  %v8297_v36 = vpop.f32.mrb[85].mxu1 }
 0x3a3   : > { %v8234_v6 = vadd.f32 %v8233_v60, %v8232_v59  ;;  %v8298_v42 = vadd.f32 %v8297_v36, %v8296_v21  ;;  %v8235_v49 = vpop.f32.mrb[86].mxu0  ;;  %v8299_v43 = vpop.f32.mrb[86].mxu1 }
 0x3a4   : > { %v8236_v51 = vpop.f32.mrb[87].mxu0  ;;  %v8300_v50 = vpop.f32.mrb[87].mxu1 }
 0x3a5   : > { %v11419_v8 = vadd.f32 %v8234_v6, %v11323_v46  ;;  %v8237_v47 = vadd.f32 %v8236_v51, %v8235_v49  ;;  %v8301_v54 = vadd.f32 %v8300_v50, %v8299_v43  ;;  %v11422_v9 = vadd.f32 %v8298_v42, %v11326_v16 }
 0x3a7   : > { %v11425_v22 = vadd.f32 %v8237_v47, %v11329_v24  ;;  %v11428_v7 = vadd.f32 %v8301_v54, %v11332_v57 }
 0x3a9   : > { %v8238_v40 = vpop.f32.mrb[88].mxu0  ;;  %v8302_v4 = vpop.f32.mrb[88].mxu1 }
 0x3aa   : > { %v8239_v29 = vpop.f32.mrb[89].mxu0  ;;  %v8303_v31 = vpop.f32.mrb[89].mxu1 }
 0x3ab   : > { %v8240_v39 = vadd.f32 %v8239_v29, %v8238_v40  ;;  %v8304_v32 = vadd.f32 %v8303_v31, %v8302_v4  ;;  %v8241_v19 = vpop.f32.mrb[90].mxu0  ;;  %v8305_v46 = vpop.f32.mrb[90].mxu1 }
 0x3ac   : > { %v8242_v13 = vpop.f32.mrb[91].mxu0  ;;  %v8306_v11 = vpop.f32.mrb[91].mxu1 }
 0x3ad   : > { %v11431_v38 = vadd.f32 %v8240_v39, %v11335_v53  ;;  %v8243_v16 = vadd.f32 %v8242_v13, %v8241_v19  ;;  %v8307_v20 = vadd.f32 %v8306_v11, %v8305_v46  ;;  %v11434_v24 = vadd.f32 %v8304_v32, %v11338_v35 }
 0x3af   : > { %v11437_v57 = vadd.f32 %v8243_v16, %v11341_v25  ;;  %v11440_v62 = vadd.f32 %v8307_v20, %v11344_v61 }
 0x3b1   : > { %v8244_v30 = vpop.f32.mrb[92].mxu0  ;;  %v8308_v0 = vpop.f32.mrb[92].mxu1 }
 0x3b2   : > { %v8245_v23 = vpop.f32.mrb[93].mxu0  ;;  %v8309_v17 = vpop.f32.mrb[93].mxu1 }
 0x3b3   : > { %v8246_v59 = vadd.f32 %v8245_v23, %v8244_v30  ;;  %v8310_v21 = vadd.f32 %v8309_v17, %v8308_v0  ;;  %v8247_v60 = vpop.f32.mrb[94].mxu0  ;;  %v8311_v53 = vpop.f32.mrb[94].mxu1 }
 0x3b4   : > { %v8248_v36 = vpop.f32.mrb[95].mxu0  ;;  %v8312_v6 = vpop.f32.mrb[95].mxu1 }
 0x3b5   : > { %v11443_v42 = vadd.f32 %v8246_v59, %v11347_v28  ;;  %v8249_v35 = vadd.f32 %v8248_v36, %v8247_v60  ;;  %v8313_v49 = vadd.f32 %v8312_v6, %v8311_v53  ;;  %v11446_v25 = vadd.f32 %v8310_v21, %v11350_v37 }
 0x3b7   : > { %v11449_v61 = vadd.f32 %v8249_v35, %v11353_v1  ;;  %v11452_v43 = vadd.f32 %v8313_v49, %v11356_v3 }
 0x3b9   : > { %v8250_v51 = vpop.f32.mrb[96].mxu0  ;;  %v8314_v50 = vpop.f32.mrb[96].mxu1 }
 0x3ba   : > { %v8251_v47 = vpop.f32.mrb[97].mxu0  ;;  %v8315_v54 = vpop.f32.mrb[97].mxu1 }
 0x3bb   : > { %v8252_v40 = vadd.f32 %v8251_v47, %v8250_v51  ;;  %v8316_v4 = vadd.f32 %v8315_v54, %v8314_v50  ;;  %v8253_v29 = vpop.f32.mrb[98].mxu0  ;;  %v8317_v28 = vpop.f32.mrb[98].mxu1 }
 0x3bc   : > { %v8254_v31 = vpop.f32.mrb[99].mxu0  ;;  %v8318_v39 = vpop.f32.mrb[99].mxu1 }
 0x3bd   : > { %v11455_v32 = vadd.f32 %v8252_v40, %v11359_v55  ;;  %v8255_v37 = vadd.f32 %v8254_v31, %v8253_v29  ;;  %v8319_v19 = vadd.f32 %v8318_v39, %v8317_v28  ;;  %v11458_v1 = vadd.f32 %v8316_v4, %v11362_v5 }
 0x3bf   : > { %v11461_v3 = vadd.f32 %v8255_v37, %v11365_v56  ;;  %v11464_v46 = vadd.f32 %v8319_v19, %v11368_v10 }
 0x3c1   : > { %v8256_v13 = vpop.f32.mrb[100].mxu0  ;;  %v8320_v11 = vpop.f32.mrb[100].mxu1 }
 0x3c2   : > { %v8257_v16 = vpop.f32.mrb[101].mxu0  ;;  %v8321_v20 = vpop.f32.mrb[101].mxu1 }
 0x3c3   : > { %v8258_v30 = vadd.f32 %v8257_v16, %v8256_v13  ;;  %v8322_v0 = vadd.f32 %v8321_v20, %v8320_v11  ;;  %v8259_v23 = vpop.f32.mrb[102].mxu0  ;;  %v8323_v55 = vpop.f32.mrb[102].mxu1 }
 0x3c4   : > { %v8260_v17 = vpop.f32.mrb[103].mxu0  ;;  %v8324_v59 = vpop.f32.mrb[103].mxu1 }
 0x3c5   : > { %v11467_v21 = vadd.f32 %v8258_v30, %v11371_v27  ;;  %v8261_v5 = vadd.f32 %v8260_v17, %v8259_v23  ;;  %v8325_v60 = vadd.f32 %v8324_v59, %v8323_v55  ;;  %v11470_v56 = vadd.f32 %v8322_v0, %v11374_v45 }
 0x3c7   : > { %v11473_v10 = vadd.f32 %v8261_v5, %v11377_v41  ;;  %v11476_v53 = vadd.f32 %v8325_v60, %v11380_v48 }
 0x3c9   : > { %v8262_v36 = vpop.f32.mrb[104].mxu0  ;;  %v8326_v6 = vpop.f32.mrb[104].mxu1 }
 0x3ca   : > { %v8263_v35 = vpop.f32.mrb[105].mxu0  ;;  %v8327_v49 = vpop.f32.mrb[105].mxu1 }
 0x3cb   : > { %v8264_v51 = vadd.f32 %v8263_v35, %v8262_v36  ;;  %v8328_v50 = vadd.f32 %v8327_v49, %v8326_v6  ;;  %v8265_v47 = vpop.f32.mrb[106].mxu0  ;;  %v8329_v27 = vpop.f32.mrb[106].mxu1 }
 0x3cc   : > { %v8266_v54 = vpop.f32.mrb[107].mxu0  ;;  %v8330_v40 = vpop.f32.mrb[107].mxu1 }
 0x3cd   : > { %v11479_v4 = vadd.f32 %v8264_v51, %v11383_v34  ;;  %v8267_v45 = vadd.f32 %v8266_v54, %v8265_v47  ;;  %v8331_v29 = vadd.f32 %v8330_v40, %v8329_v27  ;;  %v11482_v41 = vadd.f32 %v8328_v50, %v11386_v33 }
 0x3cf   : > { %v11485_v48 = vadd.f32 %v8267_v45, %v11389_v18  ;;  %v11488_v28 = vadd.f32 %v8331_v29, %v11392_v15 }
 0x3d1   : > { %v8268_v31 = vpop.f32.mrb[108].mxu0  ;;  %v8332_v39 = vpop.f32.mrb[108].mxu1 }
 0x3d2   : > { %v8269_v37 = vpop.f32.mrb[109].mxu0  ;;  %v8333_v19 = vpop.f32.mrb[109].mxu1 }
 0x3d3   : > { %v8270_v13 = vadd.f32 %v8269_v37, %v8268_v31  ;;  %v8334_v11 = vadd.f32 %v8333_v19, %v8332_v39  ;;  %v8271_v16 = vpop.f32.mrb[110].mxu0  ;;  %v8335_v34 = vpop.f32.mrb[110].mxu1 }
 0x3d4   : > { %v8272_v20 = vpop.f32.mrb[111].mxu0  ;;  %v8336_v30 = vpop.f32.mrb[111].mxu1 }
 0x3d5   : > { %v11491_v0 = vadd.f32 %v8270_v13, %v11395_v2  ;;  %v8273_v33 = vadd.f32 %v8272_v20, %v8271_v16  ;;  %v8337_v23 = vadd.f32 %v8336_v30, %v8335_v34  ;;  %v11494_v18 = vadd.f32 %v8334_v11, %v11398_v58 }
 0x3d7   : > { %v11497_v15 = vadd.f32 %v8273_v33, %v11401_v52  ;;  %v11500_v55 = vadd.f32 %v8337_v23, %v11404_v12 }
 0x3d9   : > { %v8338_v17 = vpop.f32.mrb[112].mxu1  ;;  %v8428_v59 = vpop.f32.mrb[112].mxu0 }
 0x3da   : > { %v6192_v5 = vadd.f32 %v8428_v59, %v11422_v9  ;;  %v8339_v60 = vpop.f32.mrb[113].mxu1  ;;  %v6183_v36 = vpop.f32.mrb[113].mxu0 }
 0x3db   : > { %v8340_v2 = vadd.f32 %v8339_v60, %v8338_v17  ;;  %v6184_v6 = vadd.f32 %v6183_v36, %v11410_v44  ;;  %v8341_v35 = vpop.f32.mrb[114].mxu1  ;;  %v8429_v49 = vpop.f32.mrb[114].mxu0 }
 0x3dc   : > { %9275 = vtanh.f32 %v6192_v5  ;;  %v6195_v58 = vadd.f32 %v8429_v49, %v11428_v7  ;;  %v8342_v52 = vpop.f32.mrb[115].mxu1  ;;  %v6186_v51 = vpop.f32.mrb[115].mxu0 }
 0x3dd   : > { %9277 = vtanh.f32 %v6184_v6  ;;  %v8343_v12 = vadd.f32 %v8342_v52, %v8341_v35  ;;  %v6187_v50 = vadd.f32 %v6186_v51, %v11416_v14  ;;  %v11507_v47 = vadd.f32 %v8340_v2, %v11407_v26 }
 0x3de   : > { %9279 = vtanh.f32 %v6195_v58 }
 0x3df   : > { %9281 = vtanh.f32 %v6187_v50  ;;  %v11510_v9 = vadd.f32 %v8343_v12, %v11413_v63 }
 0x3e1   : > { %v8344_v44 = vpop.f32.mrb[116].mxu1  ;;  %v8432_v27 = vpop.f32.mrb[116].mxu0 }
 0x3e2   : > { %v6208_v54 = vadd.f32 %v8432_v27, %v11446_v25  ;;  %v8345_v7 = vpop.f32.mrb[117].mxu1  ;;  %v6199_v40 = vpop.f32.mrb[117].mxu0 }
 0x3e3   : > { %v8346_v45 = vadd.f32 %v8345_v7, %v8344_v44  ;;  %v6200_v29 = vadd.f32 %v6199_v40, %v11434_v24  ;;  %v8347_v31 = vpop.f32.mrb[118].mxu1  ;;  %v8433_v14 = vpop.f32.mrb[118].mxu0 }
 0x3e4   : > { %9283 = vtanh.f32 %v6208_v54  ;;  %v6211_v26 = vadd.f32 %v8433_v14, %v11452_v43  ;;  %v8348_v63 = vpop.f32.mrb[119].mxu1  ;;  %v6202_v25 = vpop.f32.mrb[119].mxu0 }
 0x3e5   : > { %9285 = vtanh.f32 %v6200_v29  ;;  %v8349_v39 = vadd.f32 %v8348_v63, %v8347_v31  ;;  %v6203_v24 = vadd.f32 %v6202_v25, %v11440_v62  ;;  %v11523_v37 = vadd.f32 %v8346_v45, %v11419_v8 }
 0x3e6   : > { %v9276_v19 = vpop.eup %9275  ;;  %9287 = vtanh.f32 %v6211_v26 }
 0x3e7   : > { %v9278_v13 = vpop.eup %9277  ;;  %6344 = vst [vmem:[%s11518_s15 + $0x10] sm:$0xff] %v9276_v19  ;;  %9289 = vtanh.f32 %v6203_v24  ;;  %v11527_v11 = vadd.f32 %v8349_v39, %v11425_v22 }
 0x3e8   : > { %v9280_v43 = vpop.eup %9279  ;;  %6342 = vst [vmem:[%s11518_s15] sm:$0xff] %v9278_v13 }
 0x3e9   : > { %v9282_v16 = vpop.eup %9281  ;;  %6345 = vst [vmem:[%s11518_s15 + $0x18] sm:$0xff] %v9280_v43  ;;  %v8350_v34 = vpop.f32.mrb[120].mxu1 }
 0x3ea   : > { %v8436_v20 = vpop.f32.mrb[120].mxu0  ;;  %6343 = vst [vmem:[%s11518_s15 + $0x8] sm:$0xff] %v9282_v16  ;;  %v8351_v30 = vpop.f32.mrb[121].mxu1 }
 0x3eb   : > { %v6224_v62 = vadd.f32 %v8436_v20, %v11470_v56  ;;  %v6215_v8 = vpop.f32.mrb[121].mxu0  ;;  %v8352_v33 = vadd.f32 %v8351_v30, %v8350_v34  ;;  %v8353_v17 = vpop.f32.mrb[122].mxu1 }
 0x3ec   : > { %v6216_v23 = vadd.f32 %v6215_v8, %v11458_v1  ;;  %v8437_v59 = vpop.f32.mrb[122].mxu0  ;;  %v8354_v5 = vpop.f32.mrb[123].mxu1 }
 0x3ed   : > { %9291 = vtanh.f32 %v6224_v62  ;;  %v6227_v22 = vadd.f32 %v8437_v59, %v11476_v53  ;;  %v6218_v60 = vpop.f32.mrb[123].mxu0  ;;  %v8355_v36 = vadd.f32 %v8354_v5, %v8353_v17  ;;  %v11537_v2 = vadd.f32 %v8352_v33, %v11431_v38 }
 0x3ee   : > { %9293 = vtanh.f32 %v6216_v23  ;;  %v6219_v56 = vadd.f32 %v6218_v60, %v11464_v46  ;;  %v9284_v6 = vpop.eup %9283 }
 0x3ef   : > { %9295 = vtanh.f32 %v6227_v22  ;;  %v9286_v1 = vpop.eup %9285  ;;  %6348 = vst [vmem:[%s11518_s15 + $0x30] sm:$0xff] %v9284_v6  ;;  %v11541_v35 = vadd.f32 %v8355_v36, %v11437_v57 }
 0x3f0   : > { %9297 = vtanh.f32 %v6219_v56  ;;  %v9288_v53 = vpop.eup %9287  ;;  %6346 = vst [vmem:[%s11518_s15 + $0x20] sm:$0xff] %v9286_v1 }
 0x3f1   : > { %v9290_v49 = vpop.eup %9289  ;;  %6349 = vst [vmem:[%s11518_s15 + $0x38] sm:$0xff] %v9288_v53  ;;  %v8356_v58 = vpop.f32.mrb[124].mxu1 }
 0x3f2   : > { %v8440_v52 = vpop.f32.mrb[124].mxu0  ;;  %6347 = vst [vmem:[%s11518_s15 + $0x28] sm:$0xff] %v9290_v49  ;;  %v8357_v51 = vpop.f32.mrb[125].mxu1 }
 0x3f3   : > { %v6240_v46 = vadd.f32 %v8440_v52, %v11494_v18  ;;  %v6231_v38 = vpop.f32.mrb[125].mxu0  ;;  %v8358_v12 = vadd.f32 %v8357_v51, %v8356_v58  ;;  %v8359_v44 = vpop.f32.mrb[126].mxu1 }
 0x3f4   : > { %v6232_v50 = vadd.f32 %v6231_v38, %v11482_v41  ;;  %v8441_v27 = vpop.f32.mrb[126].mxu0  ;;  %v8360_v54 = vpop.f32.mrb[127].mxu1 }
 0x3f5   : > { %9299 = vtanh.f32 %v6240_v46  ;;  %v6243_v57 = vadd.f32 %v8441_v27, %v11500_v55  ;;  %v6234_v7 = vpop.f32.mrb[127].mxu0  ;;  %v8361_v40 = vadd.f32 %v8360_v54, %v8359_v44  ;;  %v6111_v45 = vadd.f32 %v8358_v12, %v11443_v42 }
 0x3f6   : > { %9301 = vtanh.f32 %v6232_v50  ;;  %v6235_v18 = vadd.f32 %v6234_v7, %v11488_v28 }
 0x3f7   : > { %v9292_v29 = vpop.eup %9291  ;;  %9303 = vtanh.f32 %v6243_v57  ;;  %v6114_v41 = vadd.f32 %v8361_v40, %v11449_v61 }
 0x3f8   : > { %v9294_v31 = vpop.eup %9293  ;;  %6352 = vst [vmem:[%s11518_s15 + $0x50] sm:$0xff] %v9292_v29  ;;  %9305 = vtanh.f32 %v6235_v18 }
 0x3f9   : > { %v9296_v14 = vpop.eup %9295  ;;  %6350 = vst [vmem:[%s11518_s15 + $0x40] sm:$0xff] %v9294_v31  ;;  %v8362_v26 = vpop.f32.mrb[128].mxu1 }
 0x3fa   : > { %v9298_v55 = vpop.eup %9297  ;;  %6353 = vst [vmem:[%s11518_s15 + $0x58] sm:$0xff] %v9296_v14  ;;  %v8444_v63 = vpop.f32.mrb[128].mxu0 }
 0x3fb   : > { %6351 = vst [vmem:[%s11518_s15 + $0x48] sm:$0xff] %v9298_v55  ;;  %v6256_v25 = vadd.f32 %v8444_v63, %v11523_v37  ;;  %v8363_v39 = vpop.f32.mrb[129].mxu1  ;;  %v6247_v28 = vpop.f32.mrb[129].mxu0 }
 0x3fc   : > { %v8364_v42 = vadd.f32 %v8363_v39, %v8362_v26  ;;  %v6248_v24 = vadd.f32 %v6247_v28, %v11507_v47  ;;  %v8365_v19 = vpop.f32.mrb[130].mxu1  ;;  %v8445_v13 = vpop.f32.mrb[130].mxu0 }
 0x3fd   : > { %9307 = vtanh.f32 %v6256_v25  ;;  %v6259_v61 = vadd.f32 %v8445_v13, %v11527_v11  ;;  %v8366_v43 = vpop.f32.mrb[131].mxu1  ;;  %v6250_v16 = vpop.f32.mrb[131].mxu0 }
 0x3fe   : > { %9309 = vtanh.f32 %v6248_v24  ;;  %v8367_v34 = vadd.f32 %v8366_v43, %v8365_v19  ;;  %v6251_v37 = vadd.f32 %v6250_v16, %v11510_v9  ;;  %v6119_v20 = vadd.f32 %v8364_v42, %v11455_v32 }
 0x3ff   : > { %v9300_v62 = vpop.eup %9299  ;;  %9311 = vtanh.f32 %v6259_v61 }
 0x400   : > { %v9302_v30 = vpop.eup %9301  ;;  %6356 = vst [vmem:[%s11518_s15 + $0x70] sm:$0xff] %v9300_v62  ;;  %9313 = vtanh.f32 %v6251_v37  ;;  %v6122_v47 = vadd.f32 %v8367_v34, %v11461_v3 }
 0x401   : > { %v9304_v8 = vpop.eup %9303  ;;  %6354 = vst [vmem:[%s11518_s15 + $0x60] sm:$0xff] %v9302_v30  ;;  %v8368_v33 = vpop.f32.mrb[132].mxu1 }
 0x402   : > { %v9306_v11 = vpop.eup %9305  ;;  %6357 = vst [vmem:[%s11518_s15 + $0x78] sm:$0xff] %v9304_v8  ;;  %v8448_v23 = vpop.f32.mrb[132].mxu0 }
 0x403   : > { %6355 = vst [vmem:[%s11518_s15 + $0x68] sm:$0xff] %v9306_v11  ;;  %v6272_v17 = vadd.f32 %v8448_v23, %v6111_v45  ;;  %v8369_v59 = vpop.f32.mrb[133].mxu1  ;;  %v6263_v22 = vpop.f32.mrb[133].mxu0 }
 0x404   : > { %v8370_v9 = vadd.f32 %v8369_v59, %v8368_v33  ;;  %v6264_v32 = vadd.f32 %v6263_v22, %v11537_v2  ;;  %v8371_v5 = vpop.f32.mrb[134].mxu1  ;;  %v8449_v60 = vpop.f32.mrb[134].mxu0 }
 0x405   : > { %9315 = vtanh.f32 %v6272_v17  ;;  %v6275_v36 = vadd.f32 %v8449_v60, %v6114_v41  ;;  %v8372_v3 = vpop.f32.mrb[135].mxu1  ;;  %v6266_v56 = vpop.f32.mrb[135].mxu0 }
 0x406   : > { %9317 = vtanh.f32 %v6264_v32  ;;  %v8373_v6 = vadd.f32 %v8372_v3, %v8371_v5  ;;  %v6267_v1 = vadd.f32 %v6266_v56, %v11541_v35  ;;  %v6127_v53 = vadd.f32 %v8370_v9, %v11467_v21 }
 0x407   : > { %v9308_v49 = vpop.eup %9307  ;;  %9319 = vtanh.f32 %v6275_v36 }
 0x408   : > { %v9310_v58 = vpop.eup %9309  ;;  %6360 = vst [vmem:[%s11518_s15 + $0x90] sm:$0xff] %v9308_v49  ;;  %9321 = vtanh.f32 %v6267_v1  ;;  %v6130_v2 = vadd.f32 %v8373_v6, %v11473_v10 }
 0x409   : > { %v9312_v52 = vpop.eup %9311  ;;  %6358 = vst [vmem:[%s11518_s15 + $0x80] sm:$0xff] %v9310_v58  ;;  %v8374_v51 = vpop.f32.mrb[136].mxu1 }
 0x40a   : > { %v9314_v46 = vpop.eup %9313  ;;  %6361 = vst [vmem:[%s11518_s15 + $0x98] sm:$0xff] %v9312_v52  ;;  %v8452_v38 = vpop.f32.mrb[136].mxu0 }
 0x40b   : > { %6359 = vst [vmem:[%s11518_s15 + $0x88] sm:$0xff] %v9314_v46  ;;  %v6288_v12 = vadd.f32 %v8452_v38, %v6127_v53  ;;  %v8375_v50 = vpop.f32.mrb[137].mxu1  ;;  %v6279_v44 = vpop.f32.mrb[137].mxu0 }
 0x40c   : > { %v8376_v35 = vadd.f32 %v8375_v50, %v8374_v51  ;;  %v6280_v21 = vadd.f32 %v6279_v44, %v6119_v20  ;;  %v8377_v27 = vpop.f32.mrb[138].mxu1  ;;  %v8453_v57 = vpop.f32.mrb[138].mxu0 }
 0x40d   : > { %9323 = vtanh.f32 %v6288_v12  ;;  %v6291_v54 = vadd.f32 %v8453_v57, %v6130_v2  ;;  %v8378_v10 = vpop.f32.mrb[139].mxu1  ;;  %v6282_v7 = vpop.f32.mrb[139].mxu0 }
 0x40e   : > { %9325 = vtanh.f32 %v6280_v21  ;;  %v8379_v40 = vadd.f32 %v8378_v10, %v8377_v27  ;;  %v6283_v18 = vadd.f32 %v6282_v7, %v6122_v47  ;;  %v6135_v45 = vadd.f32 %v8376_v35, %v11479_v4 }
 0x40f   : > { %v9316_v29 = vpop.eup %9315  ;;  %9327 = vtanh.f32 %v6291_v54 }
 0x410   : > { %v9318_v31 = vpop.eup %9317  ;;  %6364 = vst [vmem:[%s11518_s15 + $0xb0] sm:$0xff] %v9316_v29  ;;  %9329 = vtanh.f32 %v6283_v18  ;;  %v6138_v41 = vadd.f32 %v8379_v40, %v11485_v48 }
 0x411   : > { %v9320_v14 = vpop.eup %9319  ;;  %6362 = vst [vmem:[%s11518_s15 + $0xa0] sm:$0xff] %v9318_v31  ;;  %v8380_v26 = vpop.f32.mrb[140].mxu1 }
 0x412   : > { %v9322_v55 = vpop.eup %9321  ;;  %6365 = vst [vmem:[%s11518_s15 + $0xb8] sm:$0xff] %v9320_v14  ;;  %v8456_v63 = vpop.f32.mrb[140].mxu0 }
 0x413   : > { %6363 = vst [vmem:[%s11518_s15 + $0xa8] sm:$0xff] %v9322_v55  ;;  %v8381_v25 = vpop.f32.mrb[141].mxu1  ;;  %v6295_v39 = vpop.f32.mrb[141].mxu0 }
 0x414   : > { %v8382_v28 = vadd.f32 %v8381_v25, %v8380_v26  ;;  %v6296_v42 = vadd.f32 %v6295_v39, %v6135_v45  ;;  %v8383_v4 = vpop.f32.mrb[142].mxu1  ;;  %v8457_v24 = vpop.f32.mrb[142].mxu0 }
 0x415   : > { %v8384_v19 = vpop.f32.mrb[143].mxu1  ;;  %v6298_v13 = vpop.f32.mrb[143].mxu0 }
 0x416   : > { %v6143_v48 = vadd.f32 %v8382_v28, %v11491_v0  ;;  %9331 = vtanh.f32 %v6296_v42  ;;  %v8385_v61 = vadd.f32 %v8384_v19, %v8383_v4  ;;  %v6299_v43 = vadd.f32 %v6298_v13, %v6138_v41 }
 0x417   : > { %v9324_v16 = vpop.eup %9323 }
 0x418   : > { %v9326_v34 = vpop.eup %9325  ;;  %6368 = vst [vmem:[%s11518_s15 + $0xd0] sm:$0xff] %v9324_v16  ;;  %v6304_v37 = vadd.f32 %v8456_v63, %v6143_v48  ;;  %v6146_v20 = vadd.f32 %v8385_v61, %v11497_v15  ;;  %9333 = vtanh.f32 %v6299_v43 }
 0x419   : > { %v9328_v62 = vpop.eup %9327  ;;  %6366 = vst [vmem:[%s11518_s15 + $0xc0] sm:$0xff] %v9326_v34 }
 0x41a   : > { %v9330_v30 = vpop.eup %9329  ;;  %6369 = vst [vmem:[%s11518_s15 + $0xd8] sm:$0xff] %v9328_v62  ;;  %9335 = vtanh.f32 %v6304_v37  ;;  %v6307_v0 = vadd.f32 %v8457_v24, %v6146_v20 }
 0x41b   : > { %6367 = vst [vmem:[%s11518_s15 + $0xc8] sm:$0xff] %v9330_v30 }
 0x41c   : > { %9337 = vtanh.f32 %v6307_v0 }
 0x420   : > { %v9332_v47 = vpop.eup %9331 }
 0x421   : > { %6370 = vst [vmem:[%s11518_s15 + $0xe0] sm:$0xff] %v9332_v47 }
 0x422   : > { %v9334_v8 = vpop.eup %9333 }
 0x423   : > { %6371 = vst [vmem:[%s11518_s15 + $0xe8] sm:$0xff] %v9334_v8 }
 0x424   : > { %v9336_v11 = vpop.eup %9335 }
 0x425   : > { %6372 = vst [vmem:[%s11518_s15 + $0xf0] sm:$0xff] %v9336_v11 }
 0x426   : > { %v9338_v33 = vpop.eup %9337 }
 0x427   : > { %6373 = vst [vmem:[%s11518_s15 + $0xf8] sm:$0xff] %v9338_v33 }
 0x428 PF: > { %s13_s12 = sadd.s32 1, %s9346_s12  }
 0x429   : > { %p10_p4 = scmp.ge.s32.totalorder %s13_s12, 4  }
 0x42b   :  { %12 = sbr.rel (!%p10_p4) target bundleno = 1 (0x1), region = 62 }

</bundles_post_ra>
